<compile_context>
chip_gen: v7x
topology: tpu7x:2x2x1
jax: 0.10.0
libtpu: 0.0.40
codegen_flags: <defaults>
</compile_context>

<pallas_src>
import math

import jax
import jax.numpy as jnp
from jax import lax
from jax.experimental import pallas as pl
from jax.experimental.pallas import tpu as pltpu


def _round_up(n, m):
    return ((n + m - 1) // m) * m


# ----------------------------------------------------------------------------
# Fused kernel factory: num_layers LSTM layers + (Dropout->ReLU->Linear) x fc.
# ----------------------------------------------------------------------------
def _make_fused_kernel(num_layers, fc, T, Bp, H):
    n_in = 1 + 3 * num_layers + 2 * fc
    L = num_layers
    group = (128 // H) if (128 % H == 0) else 1     # h_t's packed per aligned slab
    slab_w = group * H

    def kernel(*refs):
        in_refs = refs[:n_in]
        out_ref = refs[n_in]
        gx_scr = refs[n_in + 1]        # (T*Bp, 4H)   layer-0 hoisted gate pre-acts
        hall_scr = refs[n_in + 2]      # (Bp, hall_w) last-layer h, feature-major
        hall_w = hall_scr.shape[1]

        x_ref = in_refs[0]
        lstm_refs = [in_refs[1 + 3 * l: 4 + 3 * l] for l in range(L)]
        base = 1 + 3 * L
        head_refs = [in_refs[base + 2 * j: base + 2 * j + 2] for j in range(fc)]
        w0_ref, b0_ref = head_refs[0]

        # ---- layer-0 input projection hoisted: ONE tall MXU matmul for all T ----
        wih0_ref, _whh0_ref, bl0_ref = lstm_refs[0]
        gx_scr[...] = (jnp.dot(x_ref[...], wih0_ref[...],
                               preferred_element_type=jnp.float32) + bl0_ref[...])

        # ---- per-layer resident weights (loaded / broadcast ONCE, not per step) --
        whh = [lstm_refs[l][1][...] for l in range(L)]                    # (H, 4H)
        wih = [None] + [lstm_refs[l][0][...] for l in range(1, L)]        # (H, 4H)
        bias = [None] + [jnp.broadcast_to(lstm_refs[l][2][...], (Bp, 4 * H))
                         for l in range(1, L)]

        h = [jnp.zeros((Bp, H), jnp.float32) for _ in range(L)]
        c = [jnp.zeros((Bp, H), jnp.float32) for _ in range(L)]

        def cell(gates, c_prev):
            # i/f/o columns were pre-scaled by 0.5 -> a single tanh pass suffices:
            #   sigmoid(x) = 0.5 * tanh(x/2) + 0.5  (VPU FMA), g lanes read tanh(g).
            tg = jnp.tanh(gates)
            sg = 0.5 * tg + 0.5
            c_new = sg[:, H:2 * H] * c_prev + sg[:, 0:H] * tg[:, 2 * H:3 * H]
            h_new = sg[:, 3 * H:4 * H] * jnp.tanh(c_new)
            return h_new, c_new

        pending = []      # last-layer h_t awaiting a lane-aligned slab store
        n_slab = 0

        def flush(pend, n):
            while len(pend) < group:
                pend.append(jnp.zeros((Bp, H), jnp.float32))
            slab = pend[0] if len(pend) == 1 else jnp.concatenate(pend, axis=1)
            hall_scr[:, n * slab_w:(n + 1) * slab_w] = slab      # 128-aligned store
            return [], n + 1

        # ---- wavefront over (layer, time): step s runs cell (l, t=s-l) ----------
        for s in range(T + L - 1):
            new_h, new_c = list(h), list(c)
            for l in range(L):
                t = s - l
                if not (0 <= t < T):
                    continue
                if l == 0:
                    gates = (gx_scr[t * Bp:(t + 1) * Bp, :]
                             + jnp.dot(h[0], whh[0],
                                       preferred_element_type=jnp.float32))
                else:
                    # input is previous wavefront step's h[l-1] -> off this chain
                    gates = (jnp.dot(h[l - 1], wih[l],
                                     preferred_element_type=jnp.float32)
                             + jnp.dot(h[l], whh[l],
                                       preferred_element_type=jnp.float32)
                             + bias[l])
                h_new, c_new = cell(gates, c[l])
                new_h[l], new_c[l] = h_new, c_new
                if l == L - 1:
                    pending.append(h_new)
                    if len(pending) == group:
                        pending, n_slab = flush(pending, n_slab)
            h, c = new_h, new_c
        if pending:
            pending, n_slab = flush(pending, n_slab)
        covered = n_slab * slab_w
        if covered < hall_w:                        # zero any padded tail columns
            hall_scr[:, covered:hall_w] = jnp.zeros((Bp, hall_w - covered),
                                                    jnp.float32)

        # ---- head: ReLU + ONE deep-K matmul, then any extra fc layers -----------
        flat = (jnp.dot(jnp.maximum(hall_scr[...], 0.0), w0_ref[...],
                        preferred_element_type=jnp.float32) + b0_ref[...])
        for j in range(1, fc):
            w_ref, bj_ref = head_refs[j]
            flat = (jnp.dot(jnp.maximum(flat, 0.0), w_ref[...],
                            preferred_element_type=jnp.float32) + bj_ref[...])
        out_ref[...] = flat.astype(out_ref.dtype)

    return kernel


# ----------------------------------------------------------------------------
# Module: parameter init (PyTorch-style uniform) + fused forward.
# ----------------------------------------------------------------------------
class ShallowRegressionLSTMPallas:
    SEQ = 40                                       # probe_tensor is (1, 40, features)

    def __init__(self, components, hidden_units, num_layers,
                 dropout=0.3, previous=False, fc=1, *, key):
        self.hidden_units = hidden_units
        self.num_layers = num_layers
        self.features = components if components != 0 else 41 * 41
        self.out_shape = 2 * 20 if previous else 2 * 10
        self.fc = fc
        T, H = self.SEQ, hidden_units
        nb_features = T * H

        # --- raw PyTorch-layout params (also used by the pure-JAX reference) ---
        k_lstm = 1.0 / math.sqrt(H)
        self.lstm_params = []
        for layer in range(num_layers):
            in_dim = self.features if layer == 0 else H
            key, k1, k2, k3, k4 = jax.random.split(key, 5)
            w_ih = jax.random.uniform(k1, (4 * H, in_dim), jnp.float32, -k_lstm, k_lstm)
            w_hh = jax.random.uniform(k2, (4 * H, H), jnp.float32, -k_lstm, k_lstm)
            b_ih = jax.random.uniform(k3, (4 * H,), jnp.float32, -k_lstm, k_lstm)
            b_hh = jax.random.uniform(k4, (4 * H,), jnp.float32, -k_lstm, k_lstm)
            self.lstm_params.append((w_ih, w_hh, b_ih, b_hh))

        self.linear_params = []
        k_lin = 1.0 / math.sqrt(nb_features)
        for i in range(fc):
            out_dim = nb_features if i < fc - 1 else self.out_shape
            key, k1, k2 = jax.random.split(key, 3)
            w = jax.random.uniform(k1, (out_dim, nb_features), jnp.float32, -k_lin, k_lin)
            b = jax.random.uniform(k2, (out_dim,), jnp.float32, -k_lin, k_lin)
            self.linear_params.append((w, b))

        # --- kernel-ready params, precomputed ONCE -------------------------------
        # i/f/o gate columns pre-scaled by 0.5 (gate order in PyTorch: i, f, g, o)
        # so the kernel needs a single tanh pass: sigmoid(x) = 0.5*tanh(x/2) + 0.5.
        gate_scale = jnp.concatenate([jnp.full((H,), 0.5, jnp.float32),
                                      jnp.full((H,), 0.5, jnp.float32),
                                      jnp.ones((H,), jnp.float32),
                                      jnp.full((H,), 0.5, jnp.float32)])
        self.kernel_lstm = []
        for (w_ih, w_hh, b_ih, b_hh) in self.lstm_params:
            self.kernel_lstm.append(
                (jnp.transpose(w_ih) * gate_scale,                    # (F_in, 4H)
                 jnp.transpose(w_hh) * gate_scale,                    # (H, 4H)
                 ((b_ih + b_hh) * gate_scale).reshape(1, 4 * H)))     # folded bias

        # Head weights: transposed, zero-padded lane-dense; the FIRST head weight
        # stays FLAT (T*H, O_pad) so the kernel runs one deep-K matmul post-loop.
        self.hall_w = _round_up(nb_features, 128)
        self.kernel_head = []
        prev_pad = self.hall_w
        for j, (w, b) in enumerate(self.linear_params):
            out_dim = w.shape[0]
            out_pad = _round_up(out_dim, 128)
            w_t = jnp.transpose(w)                                    # (in, out)
            w_t = jnp.pad(w_t, ((0, prev_pad - w_t.shape[0]), (0, out_pad - out_dim)))
            b_p = jnp.pad(b, (0, out_pad - out_dim)).reshape(1, out_pad)
            self.kernel_head.append((w_t, b_p))
            prev_pad = out_pad
        self.head_out_pad = prev_pad

    @staticmethod
    def _full_spec(shape):
        zeros = (0,) * len(shape)
        return pl.BlockSpec(tuple(shape), lambda i, _z=zeros: _z)

    def forward(self, x):
        """x: (batch, 40, features) -> (batch, out_shape//2, 2)."""
        B, T, F = x.shape
        assert T == self.SEQ and F == self.features
        H = self.hidden_units
        Bp = _round_up(max(B, 1), 8)                # sublane-align the batch

        xp = jnp.zeros((Bp, T, F), jnp.float32).at[:B].set(x.astype(jnp.float32))
        x_tm = jnp.transpose(xp, (1, 0, 2)).reshape(T * Bp, F)    # time-major flat

        args = [x_tm]
        in_specs = [self._full_spec(x_tm.shape)]
        for (wih_t, whh_t, bias) in self.kernel_lstm:
            for a in (wih_t, whh_t, bias):
                args.append(a)
                in_specs.append(self._full_spec(a.shape))
        for (w, b) in self.kernel_head:
            args.append(w)
            in_specs.append(self._full_spec(w.shape))
            args.append(b)
            in_specs.append(self._full_spec(b.shape))

        o_pad = self.head_out_pad
        kernel = _make_fused_kernel(self.num_layers, self.fc, T, Bp, H)
        out = pl.pallas_call(
            kernel,
            out_shape=jax.ShapeDtypeStruct((Bp, o_pad), jnp.float32),
            grid_spec=pltpu.PrefetchScalarGridSpec(
                num_scalar_prefetch=0,
                grid=(1,),
                in_specs=in_specs,
                out_specs=pl.BlockSpec((Bp, o_pad), lambda i: (0, 0)),
                scratch_shapes=[
                    pltpu.VMEM((T * Bp, 4 * H), jnp.float32),    # layer-0 gate pre-acts
                    pltpu.VMEM((Bp, self.hall_w), jnp.float32),  # last-layer h, flat
                ],
            ),
            compiler_params=pltpu.CompilerParams(
                dimension_semantics=("arbitrary",)),
        )(*args)

        y = out[:B, :self.out_shape]
        return y.reshape(-1).reshape(-1, self.out_shape // 2, 2)


# ----------------------------------------------------------------------------
# Pure-JAX reference (lax.scan LSTM) for the correctness check.
# ----------------------------------------------------------------------------
def reference_forward(model, x):
    B = x.shape[0]
    h_in = x.astype(jnp.float32)
    for (w_ih, w_hh, b_ih, b_hh) in model.lstm_params:
        H = w_hh.shape[1]

        def step(carry, x_t, w_ih=w_ih, w_hh=w_hh, b_ih=b_ih, b_hh=b_hh):
            h, c = carry
            gates = x_t @ w_ih.T + h @ w_hh.T + b_ih + b_hh
            i, f, g, o = jnp.split(gates, 4, axis=-1)
            c = jax.nn.sigmoid(f) * c + jax.nn.sigmoid(i) * jnp.tanh(g)
            h = jax.nn.sigmoid(o) * jnp.tanh(c)
            return (h, c), h

        init = (jnp.zeros((B, H), jnp.float32), jnp.zeros((B, H), jnp.float32))
        _, outs = lax.scan(step, init, jnp.transpose(h_in, (1, 0, 2)))
        h_in = jnp.transpose(outs, (1, 0, 2))
    flat = h_in.reshape(B, -1)
    for (w, b) in model.linear_params:
        flat = jnp.maximum(flat, 0.0) @ w.T + b
    return flat.reshape(-1).reshape(-1, model.out_shape // 2, 2)


if __name__ == "__main__":
    key = jax.random.PRNGKey(0)
    key, kx, kp = jax.random.split(key, 3)

    batch, seq, components, hidden, layers = 2, 40, 32, 32, 2    # seq must be 40
    x = jax.random.normal(kx, (batch, seq, components), jnp.float32)

    model = ShallowRegressionLSTMPallas(components=components,
                                        hidden_units=hidden,
                                        num_layers=layers,
                                        key=kp)

    y = model.forward(x)
    jax.block_until_ready(y)

    y_ref = reference_forward(model, x)
    assert y.shape == (batch, model.out_shape // 2, 2), y.shape
    assert jnp.allclose(y, y_ref, rtol=1e-4, atol=1e-4), \
        float(jnp.max(jnp.abs(y - y_ref)))

    print("KERNEL_OK")
</pallas_src>

<mosaic_0001>
module attributes {stable_mosaic.version = 11 : i64} {
  func.func @kernel(%arg0: i32, %arg1: memref<320x32xf32, #tpu.memory_space<vmem>>, %arg2: memref<32x128xf32, #tpu.memory_space<vmem>>, %arg3: memref<32x128xf32, #tpu.memory_space<vmem>>, %arg4: memref<1x128xf32, #tpu.memory_space<vmem>>, %arg5: memref<32x128xf32, #tpu.memory_space<vmem>>, %arg6: memref<32x128xf32, #tpu.memory_space<vmem>>, %arg7: memref<1x128xf32, #tpu.memory_space<vmem>>, %arg8: memref<1280x128xf32, #tpu.memory_space<vmem>>, %arg9: memref<1x128xf32, #tpu.memory_space<vmem>>, %arg10: memref<8x128xf32, #tpu.memory_space<vmem>>, %arg11: memref<320x128xf32, #tpu.memory_space<vmem>>, %arg12: memref<8x1280xf32, #tpu.memory_space<vmem>>) attributes {dimension_semantics = [#tpu.dimension_semantics<arbitrary>], iteration_bounds = array<i64: 1>, scalar_prefetch = 0 : i64, scratch_operands = 2 : i64, tpu.core_type = #tpu.core_type<tc>, window_params = [{pipeline_mode = #tpu.pipeline_mode<synchronous>, transform_indices = @transform_0, window_bounds = array<i64: 320, 32>}, {pipeline_mode = #tpu.pipeline_mode<synchronous>, transform_indices = @transform_1, window_bounds = array<i64: 32, 128>}, {pipeline_mode = #tpu.pipeline_mode<synchronous>, transform_indices = @transform_2, window_bounds = array<i64: 32, 128>}, {pipeline_mode = #tpu.pipeline_mode<synchronous>, transform_indices = @transform_3, window_bounds = array<i64: 1, 128>}, {pipeline_mode = #tpu.pipeline_mode<synchronous>, transform_indices = @transform_4, window_bounds = array<i64: 32, 128>}, {pipeline_mode = #tpu.pipeline_mode<synchronous>, transform_indices = @transform_5, window_bounds = array<i64: 32, 128>}, {pipeline_mode = #tpu.pipeline_mode<synchronous>, transform_indices = @transform_6, window_bounds = array<i64: 1, 128>}, {pipeline_mode = #tpu.pipeline_mode<synchronous>, transform_indices = @transform_7, window_bounds = array<i64: 1280, 128>}, {pipeline_mode = #tpu.pipeline_mode<synchronous>, transform_indices = @transform_8, window_bounds = array<i64: 1, 128>}, {pipeline_mode = #tpu.pipeline_mode<synchronous>, transform_indices = @transform_9, window_bounds = array<i64: 8, 128>}]} {
    %c0 = arith.constant 0 : index
    %c0_0 = arith.constant 0 : index
    %0 = vector.load %arg1[%c0, %c0_0] : memref<320x32xf32, #tpu.memory_space<vmem>>, vector<320x32xf32>
    %c0_1 = arith.constant 0 : index
    %c0_2 = arith.constant 0 : index
    %1 = vector.load %arg2[%c0_1, %c0_2] : memref<32x128xf32, #tpu.memory_space<vmem>>, vector<32x128xf32>
    %cst = arith.constant dense<0.000000e+00> : vector<320x128xf32>
    %2 = tpu.matmul %0, %1, %cst {dimension_numbers = #tpu.dot_dimension_numbers<[1], [0], [0], [1], [0, 0, 1, 1], [], []>} : vector<320x32xf32>, vector<32x128xf32>, vector<320x128xf32> -> vector<320x128xf32>
    %c0_3 = arith.constant 0 : index
    %c0_4 = arith.constant 0 : index
    %3 = vector.load %arg4[%c0_3, %c0_4] : memref<1x128xf32, #tpu.memory_space<vmem>>, vector<1x128xf32>
    %4 = vector.broadcast %3 : vector<1x128xf32> to vector<320x128xf32>
    %5 = arith.addf %2, %4 : vector<320x128xf32>
    %c0_5 = arith.constant 0 : index
    %c0_6 = arith.constant 0 : index
    %6 = vector.load %arg11[%c0_5, %c0_6] : memref<320x128xf32, #tpu.memory_space<vmem>>, vector<320x128xf32>
    tpu.vector_store %arg11[%c0_5, %c0_6], %5 {strides = array<i32>} : memref<320x128xf32, #tpu.memory_space<vmem>>, vector<320x128xf32>,
    %c0_7 = arith.constant 0 : index
    %c0_8 = arith.constant 0 : index
    %7 = vector.load %arg3[%c0_7, %c0_8] : memref<32x128xf32, #tpu.memory_space<vmem>>, vector<32x128xf32>
    %c0_9 = arith.constant 0 : index
    %c0_10 = arith.constant 0 : index
    %8 = vector.load %arg6[%c0_9, %c0_10] : memref<32x128xf32, #tpu.memory_space<vmem>>, vector<32x128xf32>
    %c0_11 = arith.constant 0 : index
    %c0_12 = arith.constant 0 : index
    %9 = vector.load %arg5[%c0_11, %c0_12] : memref<32x128xf32, #tpu.memory_space<vmem>>, vector<32x128xf32>
    %c0_13 = arith.constant 0 : index
    %c0_14 = arith.constant 0 : index
    %10 = vector.load %arg7[%c0_13, %c0_14] : memref<1x128xf32, #tpu.memory_space<vmem>>, vector<1x128xf32>
    %11 = vector.shape_cast %10 : vector<1x128xf32> to vector<1x128xf32>
    %12 = vector.broadcast %11 : vector<1x128xf32> to vector<8x128xf32>
    %cst_15 = arith.constant 0.000000e+00 : f32
    %13 = vector.broadcast %cst_15 : f32 to vector<8x32xf32>
    %cst_16 = arith.constant 0.000000e+00 : f32
    %14 = vector.broadcast %cst_16 : f32 to vector<8x32xf32>
    %cst_17 = arith.constant 0.000000e+00 : f32
    %15 = vector.broadcast %cst_17 : f32 to vector<8x32xf32>
    %cst_18 = arith.constant 0.000000e+00 : f32
    %16 = vector.broadcast %cst_18 : f32 to vector<8x32xf32>
    %c0_19 = arith.constant 0 : index
    %c0_20 = arith.constant 0 : index
    %17 = vector.load %arg11[%c0_19, %c0_20] : memref<320x128xf32, #tpu.memory_space<vmem>>, vector<8x128xf32>
    %cst_21 = arith.constant dense<0.000000e+00> : vector<8x128xf32>
    %18 = tpu.matmul %13, %7, %cst_21 {dimension_numbers = #tpu.dot_dimension_numbers<[1], [0], [0], [1], [0, 0, 1, 1], [], []>} : vector<8x32xf32>, vector<32x128xf32>, vector<8x128xf32> -> vector<8x128xf32>
    %19 = arith.addf %17, %18 : vector<8x128xf32>
    %20 = math.tanh %19 : vector<8x128xf32>
    %cst_22 = arith.constant 5.000000e-01 : f32
    %21 = vector.broadcast %cst_22 : f32 to vector<8x128xf32>
    %22 = arith.mulf %21, %20 : vector<8x128xf32>
    %cst_23 = arith.constant 5.000000e-01 : f32
    %23 = vector.broadcast %cst_23 : f32 to vector<8x128xf32>
    %24 = arith.addf %22, %23 : vector<8x128xf32>
    %25 = vector.extract_strided_slice %24 {offsets = [0, 32], sizes = [8, 32], strides = [1, 1]} : vector<8x128xf32> to vector<8x32xf32>
    %26 = arith.mulf %25, %15 : vector<8x32xf32>
    %27 = vector.extract_strided_slice %24 {offsets = [0, 0], sizes = [8, 32], strides = [1, 1]} : vector<8x128xf32> to vector<8x32xf32>
    %28 = vector.extract_strided_slice %20 {offsets = [0, 64], sizes = [8, 32], strides = [1, 1]} : vector<8x128xf32> to vector<8x32xf32>
    %29 = arith.mulf %27, %28 : vector<8x32xf32>
    %30 = arith.addf %26, %29 : vector<8x32xf32>
    %31 = vector.extract_strided_slice %24 {offsets = [0, 96], sizes = [8, 32], strides = [1, 1]} : vector<8x128xf32> to vector<8x32xf32>
    %32 = math.tanh %30 : vector<8x32xf32>
    %33 = arith.mulf %31, %32 : vector<8x32xf32>
    %c8 = arith.constant 8 : index
    %c0_24 = arith.constant 0 : index
    %34 = vector.load %arg11[%c8, %c0_24] : memref<320x128xf32, #tpu.memory_space<vmem>>, vector<8x128xf32>
    %cst_25 = arith.constant dense<0.000000e+00> : vector<8x128xf32>
    %35 = tpu.matmul %33, %7, %cst_25 {dimension_numbers = #tpu.dot_dimension_numbers<[1], [0], [0], [1], [0, 0, 1, 1], [], []>} : vector<8x32xf32>, vector<32x128xf32>, vector<8x128xf32> -> vector<8x128xf32>
    %36 = arith.addf %34, %35 : vector<8x128xf32>
    %37 = math.tanh %36 : vector<8x128xf32>
    %cst_26 = arith.constant 5.000000e-01 : f32
    %38 = vector.broadcast %cst_26 : f32 to vector<8x128xf32>
    %39 = arith.mulf %38, %37 : vector<8x128xf32>
    %cst_27 = arith.constant 5.000000e-01 : f32
    %40 = vector.broadcast %cst_27 : f32 to vector<8x128xf32>
    %41 = arith.addf %39, %40 : vector<8x128xf32>
    %42 = vector.extract_strided_slice %41 {offsets = [0, 32], sizes = [8, 32], strides = [1, 1]} : vector<8x128xf32> to vector<8x32xf32>
    %43 = arith.mulf %42, %30 : vector<8x32xf32>
    %44 = vector.extract_strided_slice %41 {offsets = [0, 0], sizes = [8, 32], strides = [1, 1]} : vector<8x128xf32> to vector<8x32xf32>
    %45 = vector.extract_strided_slice %37 {offsets = [0, 64], sizes = [8, 32], strides = [1, 1]} : vector<8x128xf32> to vector<8x32xf32>
    %46 = arith.mulf %44, %45 : vector<8x32xf32>
    %47 = arith.addf %43, %46 : vector<8x32xf32>
    %48 = vector.extract_strided_slice %41 {offsets = [0, 96], sizes = [8, 32], strides = [1, 1]} : vector<8x128xf32> to vector<8x32xf32>
    %49 = math.tanh %47 : vector<8x32xf32>
    %50 = arith.mulf %48, %49 : vector<8x32xf32>
    %cst_28 = arith.constant dense<0.000000e+00> : vector<8x128xf32>
    %51 = tpu.matmul %33, %9, %cst_28 {dimension_numbers = #tpu.dot_dimension_numbers<[1], [0], [0], [1], [0, 0, 1, 1], [], []>} : vector<8x32xf32>, vector<32x128xf32>, vector<8x128xf32> -> vector<8x128xf32>
    %cst_29 = arith.constant dense<0.000000e+00> : vector<8x128xf32>
    %52 = tpu.matmul %14, %8, %cst_29 {dimension_numbers = #tpu.dot_dimension_numbers<[1], [0], [0], [1], [0, 0, 1, 1], [], []>} : vector<8x32xf32>, vector<32x128xf32>, vector<8x128xf32> -> vector<8x128xf32>
    %53 = arith.addf %51, %52 : vector<8x128xf32>
    %54 = arith.addf %53, %12 : vector<8x128xf32>
    %55 = math.tanh %54 : vector<8x128xf32>
    %cst_30 = arith.constant 5.000000e-01 : f32
    %56 = vector.broadcast %cst_30 : f32 to vector<8x128xf32>
    %57 = arith.mulf %56, %55 : vector<8x128xf32>
    %cst_31 = arith.constant 5.000000e-01 : f32
    %58 = vector.broadcast %cst_31 : f32 to vector<8x128xf32>
    %59 = arith.addf %57, %58 : vector<8x128xf32>
    %60 = vector.extract_strided_slice %59 {offsets = [0, 32], sizes = [8, 32], strides = [1, 1]} : vector<8x128xf32> to vector<8x32xf32>
    %61 = arith.mulf %60, %16 : vector<8x32xf32>
    %62 = vector.extract_strided_slice %59 {offsets = [0, 0], sizes = [8, 32], strides = [1, 1]} : vector<8x128xf32> to vector<8x32xf32>
    %63 = vector.extract_strided_slice %55 {offsets = [0, 64], sizes = [8, 32], strides = [1, 1]} : vector<8x128xf32> to vector<8x32xf32>
    %64 = arith.mulf %62, %63 : vector<8x32xf32>
    %65 = arith.addf %61, %64 : vector<8x32xf32>
    %66 = vector.extract_strided_slice %59 {offsets = [0, 96], sizes = [8, 32], strides = [1, 1]} : vector<8x128xf32> to vector<8x32xf32>
    %67 = math.tanh %65 : vector<8x32xf32>
    %68 = arith.mulf %66, %67 : vector<8x32xf32>
    %c16 = arith.constant 16 : index
    %c0_32 = arith.constant 0 : index
    %69 = vector.load %arg11[%c16, %c0_32] : memref<320x128xf32, #tpu.memory_space<vmem>>, vector<8x128xf32>
    %cst_33 = arith.constant dense<0.000000e+00> : vector<8x128xf32>
    %70 = tpu.matmul %50, %7, %cst_33 {dimension_numbers = #tpu.dot_dimension_numbers<[1], [0], [0], [1], [0, 0, 1, 1], [], []>} : vector<8x32xf32>, vector<32x128xf32>, vector<8x128xf32> -> vector<8x128xf32>
    %71 = arith.addf %69, %70 : vector<8x128xf32>
    %72 = math.tanh %71 : vector<8x128xf32>
    %cst_34 = arith.constant 5.000000e-01 : f32
    %73 = vector.broadcast %cst_34 : f32 to vector<8x128xf32>
    %74 = arith.mulf %73, %72 : vector<8x128xf32>
    %cst_35 = arith.constant 5.000000e-01 : f32
    %75 = vector.broadcast %cst_35 : f32 to vector<8x128xf32>
    %76 = arith.addf %74, %75 : vector<8x128xf32>
    %77 = vector.extract_strided_slice %76 {offsets = [0, 32], sizes = [8, 32], strides = [1, 1]} : vector<8x128xf32> to vector<8x32xf32>
    %78 = arith.mulf %77, %47 : vector<8x32xf32>
    %79 = vector.extract_strided_slice %76 {offsets = [0, 0], sizes = [8, 32], strides = [1, 1]} : vector<8x128xf32> to vector<8x32xf32>
    %80 = vector.extract_strided_slice %72 {offsets = [0, 64], sizes = [8, 32], strides = [1, 1]} : vector<8x128xf32> to vector<8x32xf32>
    %81 = arith.mulf %79, %80 : vector<8x32xf32>
    %82 = arith.addf %78, %81 : vector<8x32xf32>
    %83 = vector.extract_strided_slice %76 {offsets = [0, 96], sizes = [8, 32], strides = [1, 1]} : vector<8x128xf32> to vector<8x32xf32>
    %84 = math.tanh %82 : vector<8x32xf32>
    %85 = arith.mulf %83, %84 : vector<8x32xf32>
    %cst_36 = arith.constant dense<0.000000e+00> : vector<8x128xf32>
    %86 = tpu.matmul %50, %9, %cst_36 {dimension_numbers = #tpu.dot_dimension_numbers<[1], [0], [0], [1], [0, 0, 1, 1], [], []>} : vector<8x32xf32>, vector<32x128xf32>, vector<8x128xf32> -> vector<8x128xf32>
    %cst_37 = arith.constant dense<0.000000e+00> : vector<8x128xf32>
    %87 = tpu.matmul %68, %8, %cst_37 {dimension_numbers = #tpu.dot_dimension_numbers<[1], [0], [0], [1], [0, 0, 1, 1], [], []>} : vector<8x32xf32>, vector<32x128xf32>, vector<8x128xf32> -> vector<8x128xf32>
    %88 = arith.addf %86, %87 : vector<8x128xf32>
    %89 = arith.addf %88, %12 : vector<8x128xf32>
    %90 = math.tanh %89 : vector<8x128xf32>
    %cst_38 = arith.constant 5.000000e-01 : f32
    %91 = vector.broadcast %cst_38 : f32 to vector<8x128xf32>
    %92 = arith.mulf %91, %90 : vector<8x128xf32>
    %cst_39 = arith.constant 5.000000e-01 : f32
    %93 = vector.broadcast %cst_39 : f32 to vector<8x128xf32>
    %94 = arith.addf %92, %93 : vector<8x128xf32>
    %95 = vector.extract_strided_slice %94 {offsets = [0, 32], sizes = [8, 32], strides = [1, 1]} : vector<8x128xf32> to vector<8x32xf32>
    %96 = arith.mulf %95, %65 : vector<8x32xf32>
    %97 = vector.extract_strided_slice %94 {offsets = [0, 0], sizes = [8, 32], strides = [1, 1]} : vector<8x128xf32> to vector<8x32xf32>
    %98 = vector.extract_strided_slice %90 {offsets = [0, 64], sizes = [8, 32], strides = [1, 1]} : vector<8x128xf32> to vector<8x32xf32>
    %99 = arith.mulf %97, %98 : vector<8x32xf32>
    %100 = arith.addf %96, %99 : vector<8x32xf32>
    %101 = vector.extract_strided_slice %94 {offsets = [0, 96], sizes = [8, 32], strides = [1, 1]} : vector<8x128xf32> to vector<8x32xf32>
    %102 = math.tanh %100 : vector<8x32xf32>
    %103 = arith.mulf %101, %102 : vector<8x32xf32>
    %c24 = arith.constant 24 : index
    %c0_40 = arith.constant 0 : index
    %104 = vector.load %arg11[%c24, %c0_40] : memref<320x128xf32, #tpu.memory_space<vmem>>, vector<8x128xf32>
    %cst_41 = arith.constant dense<0.000000e+00> : vector<8x128xf32>
    %105 = tpu.matmul %85, %7, %cst_41 {dimension_numbers = #tpu.dot_dimension_numbers<[1], [0], [0], [1], [0, 0, 1, 1], [], []>} : vector<8x32xf32>, vector<32x128xf32>, vector<8x128xf32> -> vector<8x128xf32>
    %106 = arith.addf %104, %105 : vector<8x128xf32>
    %107 = math.tanh %106 : vector<8x128xf32>
    %cst_42 = arith.constant 5.000000e-01 : f32
    %108 = vector.broadcast %cst_42 : f32 to vector<8x128xf32>
    %109 = arith.mulf %108, %107 : vector<8x128xf32>
    %cst_43 = arith.constant 5.000000e-01 : f32
    %110 = vector.broadcast %cst_43 : f32 to vector<8x128xf32>
    %111 = arith.addf %109, %110 : vector<8x128xf32>
    %112 = vector.extract_strided_slice %111 {offsets = [0, 32], sizes = [8, 32], strides = [1, 1]} : vector<8x128xf32> to vector<8x32xf32>
    %113 = arith.mulf %112, %82 : vector<8x32xf32>
    %114 = vector.extract_strided_slice %111 {offsets = [0, 0], sizes = [8, 32], strides = [1, 1]} : vector<8x128xf32> to vector<8x32xf32>
    %115 = vector.extract_strided_slice %107 {offsets = [0, 64], sizes = [8, 32], strides = [1, 1]} : vector<8x128xf32> to vector<8x32xf32>
    %116 = arith.mulf %114, %115 : vector<8x32xf32>
    %117 = arith.addf %113, %116 : vector<8x32xf32>
    %118 = vector.extract_strided_slice %111 {offsets = [0, 96], sizes = [8, 32], strides = [1, 1]} : vector<8x128xf32> to vector<8x32xf32>
    %119 = math.tanh %117 : vector<8x32xf32>
    %120 = arith.mulf %118, %119 : vector<8x32xf32>
    %cst_44 = arith.constant dense<0.000000e+00> : vector<8x128xf32>
    %121 = tpu.matmul %85, %9, %cst_44 {dimension_numbers = #tpu.dot_dimension_numbers<[1], [0], [0], [1], [0, 0, 1, 1], [], []>} : vector<8x32xf32>, vector<32x128xf32>, vector<8x128xf32> -> vector<8x128xf32>
    %cst_45 = arith.constant dense<0.000000e+00> : vector<8x128xf32>
    %122 = tpu.matmul %103, %8, %cst_45 {dimension_numbers = #tpu.dot_dimension_numbers<[1], [0], [0], [1], [0, 0, 1, 1], [], []>} : vector<8x32xf32>, vector<32x128xf32>, vector<8x128xf32> -> vector<8x128xf32>
    %123 = arith.addf %121, %122 : vector<8x128xf32>
    %124 = arith.addf %123, %12 : vector<8x128xf32>
    %125 = math.tanh %124 : vector<8x128xf32>
    %cst_46 = arith.constant 5.000000e-01 : f32
    %126 = vector.broadcast %cst_46 : f32 to vector<8x128xf32>
    %127 = arith.mulf %126, %125 : vector<8x128xf32>
    %cst_47 = arith.constant 5.000000e-01 : f32
    %128 = vector.broadcast %cst_47 : f32 to vector<8x128xf32>
    %129 = arith.addf %127, %128 : vector<8x128xf32>
    %130 = vector.extract_strided_slice %129 {offsets = [0, 32], sizes = [8, 32], strides = [1, 1]} : vector<8x128xf32> to vector<8x32xf32>
    %131 = arith.mulf %130, %100 : vector<8x32xf32>
    %132 = vector.extract_strided_slice %129 {offsets = [0, 0], sizes = [8, 32], strides = [1, 1]} : vector<8x128xf32> to vector<8x32xf32>
    %133 = vector.extract_strided_slice %125 {offsets = [0, 64], sizes = [8, 32], strides = [1, 1]} : vector<8x128xf32> to vector<8x32xf32>
    %134 = arith.mulf %132, %133 : vector<8x32xf32>
    %135 = arith.addf %131, %134 : vector<8x32xf32>
    %136 = vector.extract_strided_slice %129 {offsets = [0, 96], sizes = [8, 32], strides = [1, 1]} : vector<8x128xf32> to vector<8x32xf32>
    %137 = math.tanh %135 : vector<8x32xf32>
    %138 = arith.mulf %136, %137 : vector<8x32xf32>
    %c32 = arith.constant 32 : index
    %c0_48 = arith.constant 0 : index
    %139 = vector.load %arg11[%c32, %c0_48] : memref<320x128xf32, #tpu.memory_space<vmem>>, vector<8x128xf32>
    %cst_49 = arith.constant dense<0.000000e+00> : vector<8x128xf32>
    %140 = tpu.matmul %120, %7, %cst_49 {dimension_numbers = #tpu.dot_dimension_numbers<[1], [0], [0], [1], [0, 0, 1, 1], [], []>} : vector<8x32xf32>, vector<32x128xf32>, vector<8x128xf32> -> vector<8x128xf32>
    %141 = arith.addf %139, %140 : vector<8x128xf32>
    %142 = math.tanh %141 : vector<8x128xf32>
    %cst_50 = arith.constant 5.000000e-01 : f32
    %143 = vector.broadcast %cst_50 : f32 to vector<8x128xf32>
    %144 = arith.mulf %143, %142 : vector<8x128xf32>
    %cst_51 = arith.constant 5.000000e-01 : f32
    %145 = vector.broadcast %cst_51 : f32 to vector<8x128xf32>
    %146 = arith.addf %144, %145 : vector<8x128xf32>
    %147 = vector.extract_strided_slice %146 {offsets = [0, 32], sizes = [8, 32], strides = [1, 1]} : vector<8x128xf32> to vector<8x32xf32>
    %148 = arith.mulf %147, %117 : vector<8x32xf32>
    %149 = vector.extract_strided_slice %146 {offsets = [0, 0], sizes = [8, 32], strides = [1, 1]} : vector<8x128xf32> to vector<8x32xf32>
    %150 = vector.extract_strided_slice %142 {offsets = [0, 64], sizes = [8, 32], strides = [1, 1]} : vector<8x128xf32> to vector<8x32xf32>
    %151 = arith.mulf %149, %150 : vector<8x32xf32>
    %152 = arith.addf %148, %151 : vector<8x32xf32>
    %153 = vector.extract_strided_slice %146 {offsets = [0, 96], sizes = [8, 32], strides = [1, 1]} : vector<8x128xf32> to vector<8x32xf32>
    %154 = math.tanh %152 : vector<8x32xf32>
    %155 = arith.mulf %153, %154 : vector<8x32xf32>
    %cst_52 = arith.constant dense<0.000000e+00> : vector<8x128xf32>
    %156 = tpu.matmul %120, %9, %cst_52 {dimension_numbers = #tpu.dot_dimension_numbers<[1], [0], [0], [1], [0, 0, 1, 1], [], []>} : vector<8x32xf32>, vector<32x128xf32>, vector<8x128xf32> -> vector<8x128xf32>
    %cst_53 = arith.constant dense<0.000000e+00> : vector<8x128xf32>
    %157 = tpu.matmul %138, %8, %cst_53 {dimension_numbers = #tpu.dot_dimension_numbers<[1], [0], [0], [1], [0, 0, 1, 1], [], []>} : vector<8x32xf32>, vector<32x128xf32>, vector<8x128xf32> -> vector<8x128xf32>
    %158 = arith.addf %156, %157 : vector<8x128xf32>
    %159 = arith.addf %158, %12 : vector<8x128xf32>
    %160 = math.tanh %159 : vector<8x128xf32>
    %cst_54 = arith.constant 5.000000e-01 : f32
    %161 = vector.broadcast %cst_54 : f32 to vector<8x128xf32>
    %162 = arith.mulf %161, %160 : vector<8x128xf32>
    %cst_55 = arith.constant 5.000000e-01 : f32
    %163 = vector.broadcast %cst_55 : f32 to vector<8x128xf32>
    %164 = arith.addf %162, %163 : vector<8x128xf32>
    %165 = vector.extract_strided_slice %164 {offsets = [0, 32], sizes = [8, 32], strides = [1, 1]} : vector<8x128xf32> to vector<8x32xf32>
    %166 = arith.mulf %165, %135 : vector<8x32xf32>
    %167 = vector.extract_strided_slice %164 {offsets = [0, 0], sizes = [8, 32], strides = [1, 1]} : vector<8x128xf32> to vector<8x32xf32>
    %168 = vector.extract_strided_slice %160 {offsets = [0, 64], sizes = [8, 32], strides = [1, 1]} : vector<8x128xf32> to vector<8x32xf32>
    %169 = arith.mulf %167, %168 : vector<8x32xf32>
    %170 = arith.addf %166, %169 : vector<8x32xf32>
    %171 = vector.extract_strided_slice %164 {offsets = [0, 96], sizes = [8, 32], strides = [1, 1]} : vector<8x128xf32> to vector<8x32xf32>
    %172 = math.tanh %170 : vector<8x32xf32>
    %173 = arith.mulf %171, %172 : vector<8x32xf32>
    %174 = tpu.concatenate %68, %103, %138, %173 in 1 : vector<8x32xf32>, vector<8x32xf32>, vector<8x32xf32>, vector<8x32xf32> -> vector<8x128xf32>
    %c0_56 = arith.constant 0 : index
    %c0_57 = arith.constant 0 : index
    %175 = vector.load %arg12[%c0_56, %c0_57] : memref<8x1280xf32, #tpu.memory_space<vmem>>, vector<8x128xf32>
    tpu.vector_store %arg12[%c0_56, %c0_57], %174 {strides = array<i32>} : memref<8x1280xf32, #tpu.memory_space<vmem>>, vector<8x128xf32>,
    %c40 = arith.constant 40 : index
    %c0_58 = arith.constant 0 : index
    %176 = vector.load %arg11[%c40, %c0_58] : memref<320x128xf32, #tpu.memory_space<vmem>>, vector<8x128xf32>
    %cst_59 = arith.constant dense<0.000000e+00> : vector<8x128xf32>
    %177 = tpu.matmul %155, %7, %cst_59 {dimension_numbers = #tpu.dot_dimension_numbers<[1], [0], [0], [1], [0, 0, 1, 1], [], []>} : vector<8x32xf32>, vector<32x128xf32>, vector<8x128xf32> -> vector<8x128xf32>
    %178 = arith.addf %176, %177 : vector<8x128xf32>
    %179 = math.tanh %178 : vector<8x128xf32>
    %cst_60 = arith.constant 5.000000e-01 : f32
    %180 = vector.broadcast %cst_60 : f32 to vector<8x128xf32>
    %181 = arith.mulf %180, %179 : vector<8x128xf32>
    %cst_61 = arith.constant 5.000000e-01 : f32
    %182 = vector.broadcast %cst_61 : f32 to vector<8x128xf32>
    %183 = arith.addf %181, %182 : vector<8x128xf32>
    %184 = vector.extract_strided_slice %183 {offsets = [0, 32], sizes = [8, 32], strides = [1, 1]} : vector<8x128xf32> to vector<8x32xf32>
    %185 = arith.mulf %184, %152 : vector<8x32xf32>
    %186 = vector.extract_strided_slice %183 {offsets = [0, 0], sizes = [8, 32], strides = [1, 1]} : vector<8x128xf32> to vector<8x32xf32>
    %187 = vector.extract_strided_slice %179 {offsets = [0, 64], sizes = [8, 32], strides = [1, 1]} : vector<8x128xf32> to vector<8x32xf32>
    %188 = arith.mulf %186, %187 : vector<8x32xf32>
    %189 = arith.addf %185, %188 : vector<8x32xf32>
    %190 = vector.extract_strided_slice %183 {offsets = [0, 96], sizes = [8, 32], strides = [1, 1]} : vector<8x128xf32> to vector<8x32xf32>
    %191 = math.tanh %189 : vector<8x32xf32>
    %192 = arith.mulf %190, %191 : vector<8x32xf32>
    %cst_62 = arith.constant dense<0.000000e+00> : vector<8x128xf32>
    %193 = tpu.matmul %155, %9, %cst_62 {dimension_numbers = #tpu.dot_dimension_numbers<[1], [0], [0], [1], [0, 0, 1, 1], [], []>} : vector<8x32xf32>, vector<32x128xf32>, vector<8x128xf32> -> vector<8x128xf32>
    %cst_63 = arith.constant dense<0.000000e+00> : vector<8x128xf32>
    %194 = tpu.matmul %173, %8, %cst_63 {dimension_numbers = #tpu.dot_dimension_numbers<[1], [0], [0], [1], [0, 0, 1, 1], [], []>} : vector<8x32xf32>, vector<32x128xf32>, vector<8x128xf32> -> vector<8x128xf32>
    %195 = arith.addf %193, %194 : vector<8x128xf32>
    %196 = arith.addf %195, %12 : vector<8x128xf32>
    %197 = math.tanh %196 : vector<8x128xf32>
    %cst_64 = arith.constant 5.000000e-01 : f32
    %198 = vector.broadcast %cst_64 : f32 to vector<8x128xf32>
    %199 = arith.mulf %198, %197 : vector<8x128xf32>
    %cst_65 = arith.constant 5.000000e-01 : f32
    %200 = vector.broadcast %cst_65 : f32 to vector<8x128xf32>
    %201 = arith.addf %199, %200 : vector<8x128xf32>
    %202 = vector.extract_strided_slice %201 {offsets = [0, 32], sizes = [8, 32], strides = [1, 1]} : vector<8x128xf32> to vector<8x32xf32>
    %203 = arith.mulf %202, %170 : vector<8x32xf32>
    %204 = vector.extract_strided_slice %201 {offsets = [0, 0], sizes = [8, 32], strides = [1, 1]} : vector<8x128xf32> to vector<8x32xf32>
    %205 = vector.extract_strided_slice %197 {offsets = [0, 64], sizes = [8, 32], strides = [1, 1]} : vector<8x128xf32> to vector<8x32xf32>
    %206 = arith.mulf %204, %205 : vector<8x32xf32>
    %207 = arith.addf %203, %206 : vector<8x32xf32>
    %208 = vector.extract_strided_slice %201 {offsets = [0, 96], sizes = [8, 32], strides = [1, 1]} : vector<8x128xf32> to vector<8x32xf32>
    %209 = math.tanh %207 : vector<8x32xf32>
    %210 = arith.mulf %208, %209 : vector<8x32xf32>
    %c48 = arith.constant 48 : index
    %c0_66 = arith.constant 0 : index
    %211 = vector.load %arg11[%c48, %c0_66] : memref<320x128xf32, #tpu.memory_space<vmem>>, vector<8x128xf32>
    %cst_67 = arith.constant dense<0.000000e+00> : vector<8x128xf32>
    %212 = tpu.matmul %192, %7, %cst_67 {dimension_numbers = #tpu.dot_dimension_numbers<[1], [0], [0], [1], [0, 0, 1, 1], [], []>} : vector<8x32xf32>, vector<32x128xf32>, vector<8x128xf32> -> vector<8x128xf32>
    %213 = arith.addf %211, %212 : vector<8x128xf32>
    %214 = math.tanh %213 : vector<8x128xf32>
    %cst_68 = arith.constant 5.000000e-01 : f32
    %215 = vector.broadcast %cst_68 : f32 to vector<8x128xf32>
    %216 = arith.mulf %215, %214 : vector<8x128xf32>
    %cst_69 = arith.constant 5.000000e-01 : f32
    %217 = vector.broadcast %cst_69 : f32 to vector<8x128xf32>
    %218 = arith.addf %216, %217 : vector<8x128xf32>
    %219 = vector.extract_strided_slice %218 {offsets = [0, 32], sizes = [8, 32], strides = [1, 1]} : vector<8x128xf32> to vector<8x32xf32>
    %220 = arith.mulf %219, %189 : vector<8x32xf32>
    %221 = vector.extract_strided_slice %218 {offsets = [0, 0], sizes = [8, 32], strides = [1, 1]} : vector<8x128xf32> to vector<8x32xf32>
    %222 = vector.extract_strided_slice %214 {offsets = [0, 64], sizes = [8, 32], strides = [1, 1]} : vector<8x128xf32> to vector<8x32xf32>
    %223 = arith.mulf %221, %222 : vector<8x32xf32>
    %224 = arith.addf %220, %223 : vector<8x32xf32>
    %225 = vector.extract_strided_slice %218 {offsets = [0, 96], sizes = [8, 32], strides = [1, 1]} : vector<8x128xf32> to vector<8x32xf32>
    %226 = math.tanh %224 : vector<8x32xf32>
    %227 = arith.mulf %225, %226 : vector<8x32xf32>
    %cst_70 = arith.constant dense<0.000000e+00> : vector<8x128xf32>
    %228 = tpu.matmul %192, %9, %cst_70 {dimension_numbers = #tpu.dot_dimension_numbers<[1], [0], [0], [1], [0, 0, 1, 1], [], []>} : vector<8x32xf32>, vector<32x128xf32>, vector<8x128xf32> -> vector<8x128xf32>
    %cst_71 = arith.constant dense<0.000000e+00> : vector<8x128xf32>
    %229 = tpu.matmul %210, %8, %cst_71 {dimension_numbers = #tpu.dot_dimension_numbers<[1], [0], [0], [1], [0, 0, 1, 1], [], []>} : vector<8x32xf32>, vector<32x128xf32>, vector<8x128xf32> -> vector<8x128xf32>
    %230 = arith.addf %228, %229 : vector<8x128xf32>
    %231 = arith.addf %230, %12 : vector<8x128xf32>
    %232 = math.tanh %231 : vector<8x128xf32>
    %cst_72 = arith.constant 5.000000e-01 : f32
    %233 = vector.broadcast %cst_72 : f32 to vector<8x128xf32>
    %234 = arith.mulf %233, %232 : vector<8x128xf32>
    %cst_73 = arith.constant 5.000000e-01 : f32
    %235 = vector.broadcast %cst_73 : f32 to vector<8x128xf32>
    %236 = arith.addf %234, %235 : vector<8x128xf32>
    %237 = vector.extract_strided_slice %236 {offsets = [0, 32], sizes = [8, 32], strides = [1, 1]} : vector<8x128xf32> to vector<8x32xf32>
    %238 = arith.mulf %237, %207 : vector<8x32xf32>
    %239 = vector.extract_strided_slice %236 {offsets = [0, 0], sizes = [8, 32], strides = [1, 1]} : vector<8x128xf32> to vector<8x32xf32>
    %240 = vector.extract_strided_slice %232 {offsets = [0, 64], sizes = [8, 32], strides = [1, 1]} : vector<8x128xf32> to vector<8x32xf32>
    %241 = arith.mulf %239, %240 : vector<8x32xf32>
    %242 = arith.addf %238, %241 : vector<8x32xf32>
    %243 = vector.extract_strided_slice %236 {offsets = [0, 96], sizes = [8, 32], strides = [1, 1]} : vector<8x128xf32> to vector<8x32xf32>
    %244 = math.tanh %242 : vector<8x32xf32>
    %245 = arith.mulf %243, %244 : vector<8x32xf32>
    %c56 = arith.constant 56 : index
    %c0_74 = arith.constant 0 : index
    %246 = vector.load %arg11[%c56, %c0_74] : memref<320x128xf32, #tpu.memory_space<vmem>>, vector<8x128xf32>
    %cst_75 = arith.constant dense<0.000000e+00> : vector<8x128xf32>
    %247 = tpu.matmul %227, %7, %cst_75 {dimension_numbers = #tpu.dot_dimension_numbers<[1], [0], [0], [1], [0, 0, 1, 1], [], []>} : vector<8x32xf32>, vector<32x128xf32>, vector<8x128xf32> -> vector<8x128xf32>
    %248 = arith.addf %246, %247 : vector<8x128xf32>
    %249 = math.tanh %248 : vector<8x128xf32>
    %cst_76 = arith.constant 5.000000e-01 : f32
    %250 = vector.broadcast %cst_76 : f32 to vector<8x128xf32>
    %251 = arith.mulf %250, %249 : vector<8x128xf32>
    %cst_77 = arith.constant 5.000000e-01 : f32
    %252 = vector.broadcast %cst_77 : f32 to vector<8x128xf32>
    %253 = arith.addf %251, %252 : vector<8x128xf32>
    %254 = vector.extract_strided_slice %253 {offsets = [0, 32], sizes = [8, 32], strides = [1, 1]} : vector<8x128xf32> to vector<8x32xf32>
    %255 = arith.mulf %254, %224 : vector<8x32xf32>
    %256 = vector.extract_strided_slice %253 {offsets = [0, 0], sizes = [8, 32], strides = [1, 1]} : vector<8x128xf32> to vector<8x32xf32>
    %257 = vector.extract_strided_slice %249 {offsets = [0, 64], sizes = [8, 32], strides = [1, 1]} : vector<8x128xf32> to vector<8x32xf32>
    %258 = arith.mulf %256, %257 : vector<8x32xf32>
    %259 = arith.addf %255, %258 : vector<8x32xf32>
    %260 = vector.extract_strided_slice %253 {offsets = [0, 96], sizes = [8, 32], strides = [1, 1]} : vector<8x128xf32> to vector<8x32xf32>
    %261 = math.tanh %259 : vector<8x32xf32>
    %262 = arith.mulf %260, %261 : vector<8x32xf32>
    %cst_78 = arith.constant dense<0.000000e+00> : vector<8x128xf32>
    %263 = tpu.matmul %227, %9, %cst_78 {dimension_numbers = #tpu.dot_dimension_numbers<[1], [0], [0], [1], [0, 0, 1, 1], [], []>} : vector<8x32xf32>, vector<32x128xf32>, vector<8x128xf32> -> vector<8x128xf32>
    %cst_79 = arith.constant dense<0.000000e+00> : vector<8x128xf32>
    %264 = tpu.matmul %245, %8, %cst_79 {dimension_numbers = #tpu.dot_dimension_numbers<[1], [0], [0], [1], [0, 0, 1, 1], [], []>} : vector<8x32xf32>, vector<32x128xf32>, vector<8x128xf32> -> vector<8x128xf32>
    %265 = arith.addf %263, %264 : vector<8x128xf32>
    %266 = arith.addf %265, %12 : vector<8x128xf32>
    %267 = math.tanh %266 : vector<8x128xf32>
    %cst_80 = arith.constant 5.000000e-01 : f32
    %268 = vector.broadcast %cst_80 : f32 to vector<8x128xf32>
    %269 = arith.mulf %268, %267 : vector<8x128xf32>
    %cst_81 = arith.constant 5.000000e-01 : f32
    %270 = vector.broadcast %cst_81 : f32 to vector<8x128xf32>
    %271 = arith.addf %269, %270 : vector<8x128xf32>
    %272 = vector.extract_strided_slice %271 {offsets = [0, 32], sizes = [8, 32], strides = [1, 1]} : vector<8x128xf32> to vector<8x32xf32>
    %273 = arith.mulf %272, %242 : vector<8x32xf32>
    %274 = vector.extract_strided_slice %271 {offsets = [0, 0], sizes = [8, 32], strides = [1, 1]} : vector<8x128xf32> to vector<8x32xf32>
    %275 = vector.extract_strided_slice %267 {offsets = [0, 64], sizes = [8, 32], strides = [1, 1]} : vector<8x128xf32> to vector<8x32xf32>
    %276 = arith.mulf %274, %275 : vector<8x32xf32>
    %277 = arith.addf %273, %276 : vector<8x32xf32>
    %278 = vector.extract_strided_slice %271 {offsets = [0, 96], sizes = [8, 32], strides = [1, 1]} : vector<8x128xf32> to vector<8x32xf32>
    %279 = math.tanh %277 : vector<8x32xf32>
    %280 = arith.mulf %278, %279 : vector<8x32xf32>
    %c64 = arith.constant 64 : index
    %c0_82 = arith.constant 0 : index
    %281 = vector.load %arg11[%c64, %c0_82] : memref<320x128xf32, #tpu.memory_space<vmem>>, vector<8x128xf32>
    %cst_83 = arith.constant dense<0.000000e+00> : vector<8x128xf32>
    %282 = tpu.matmul %262, %7, %cst_83 {dimension_numbers = #tpu.dot_dimension_numbers<[1], [0], [0], [1], [0, 0, 1, 1], [], []>} : vector<8x32xf32>, vector<32x128xf32>, vector<8x128xf32> -> vector<8x128xf32>
    %283 = arith.addf %281, %282 : vector<8x128xf32>
    %284 = math.tanh %283 : vector<8x128xf32>
    %cst_84 = arith.constant 5.000000e-01 : f32
    %285 = vector.broadcast %cst_84 : f32 to vector<8x128xf32>
    %286 = arith.mulf %285, %284 : vector<8x128xf32>
    %cst_85 = arith.constant 5.000000e-01 : f32
    %287 = vector.broadcast %cst_85 : f32 to vector<8x128xf32>
    %288 = arith.addf %286, %287 : vector<8x128xf32>
    %289 = vector.extract_strided_slice %288 {offsets = [0, 32], sizes = [8, 32], strides = [1, 1]} : vector<8x128xf32> to vector<8x32xf32>
    %290 = arith.mulf %289, %259 : vector<8x32xf32>
    %291 = vector.extract_strided_slice %288 {offsets = [0, 0], sizes = [8, 32], strides = [1, 1]} : vector<8x128xf32> to vector<8x32xf32>
    %292 = vector.extract_strided_slice %284 {offsets = [0, 64], sizes = [8, 32], strides = [1, 1]} : vector<8x128xf32> to vector<8x32xf32>
    %293 = arith.mulf %291, %292 : vector<8x32xf32>
    %294 = arith.addf %290, %293 : vector<8x32xf32>
    %295 = vector.extract_strided_slice %288 {offsets = [0, 96], sizes = [8, 32], strides = [1, 1]} : vector<8x128xf32> to vector<8x32xf32>
    %296 = math.tanh %294 : vector<8x32xf32>
    %297 = arith.mulf %295, %296 : vector<8x32xf32>
    %cst_86 = arith.constant dense<0.000000e+00> : vector<8x128xf32>
    %298 = tpu.matmul %262, %9, %cst_86 {dimension_numbers = #tpu.dot_dimension_numbers<[1], [0], [0], [1], [0, 0, 1, 1], [], []>} : vector<8x32xf32>, vector<32x128xf32>, vector<8x128xf32> -> vector<8x128xf32>
    %cst_87 = arith.constant dense<0.000000e+00> : vector<8x128xf32>
    %299 = tpu.matmul %280, %8, %cst_87 {dimension_numbers = #tpu.dot_dimension_numbers<[1], [0], [0], [1], [0, 0, 1, 1], [], []>} : vector<8x32xf32>, vector<32x128xf32>, vector<8x128xf32> -> vector<8x128xf32>
    %300 = arith.addf %298, %299 : vector<8x128xf32>
    %301 = arith.addf %300, %12 : vector<8x128xf32>
    %302 = math.tanh %301 : vector<8x128xf32>
    %cst_88 = arith.constant 5.000000e-01 : f32
    %303 = vector.broadcast %cst_88 : f32 to vector<8x128xf32>
    %304 = arith.mulf %303, %302 : vector<8x128xf32>
    %cst_89 = arith.constant 5.000000e-01 : f32
    %305 = vector.broadcast %cst_89 : f32 to vector<8x128xf32>
    %306 = arith.addf %304, %305 : vector<8x128xf32>
    %307 = vector.extract_strided_slice %306 {offsets = [0, 32], sizes = [8, 32], strides = [1, 1]} : vector<8x128xf32> to vector<8x32xf32>
    %308 = arith.mulf %307, %277 : vector<8x32xf32>
    %309 = vector.extract_strided_slice %306 {offsets = [0, 0], sizes = [8, 32], strides = [1, 1]} : vector<8x128xf32> to vector<8x32xf32>
    %310 = vector.extract_strided_slice %302 {offsets = [0, 64], sizes = [8, 32], strides = [1, 1]} : vector<8x128xf32> to vector<8x32xf32>
    %311 = arith.mulf %309, %310 : vector<8x32xf32>
    %312 = arith.addf %308, %311 : vector<8x32xf32>
    %313 = vector.extract_strided_slice %306 {offsets = [0, 96], sizes = [8, 32], strides = [1, 1]} : vector<8x128xf32> to vector<8x32xf32>
    %314 = math.tanh %312 : vector<8x32xf32>
    %315 = arith.mulf %313, %314 : vector<8x32xf32>
    %316 = tpu.concatenate %210, %245, %280, %315 in 1 : vector<8x32xf32>, vector<8x32xf32>, vector<8x32xf32>, vector<8x32xf32> -> vector<8x128xf32>
    %c0_90 = arith.constant 0 : index
    %c128 = arith.constant 128 : index
    %317 = vector.load %arg12[%c0_90, %c128] : memref<8x1280xf32, #tpu.memory_space<vmem>>, vector<8x128xf32>
    tpu.vector_store %arg12[%c0_90, %c128], %316 {strides = array<i32>} : memref<8x1280xf32, #tpu.memory_space<vmem>>, vector<8x128xf32>,
    %c72 = arith.constant 72 : index
    %c0_91 = arith.constant 0 : index
    %318 = vector.load %arg11[%c72, %c0_91] : memref<320x128xf32, #tpu.memory_space<vmem>>, vector<8x128xf32>
    %cst_92 = arith.constant dense<0.000000e+00> : vector<8x128xf32>
    %319 = tpu.matmul %297, %7, %cst_92 {dimension_numbers = #tpu.dot_dimension_numbers<[1], [0], [0], [1], [0, 0, 1, 1], [], []>} : vector<8x32xf32>, vector<32x128xf32>, vector<8x128xf32> -> vector<8x128xf32>
    %320 = arith.addf %318, %319 : vector<8x128xf32>
    %321 = math.tanh %320 : vector<8x128xf32>
    %cst_93 = arith.constant 5.000000e-01 : f32
    %322 = vector.broadcast %cst_93 : f32 to vector<8x128xf32>
    %323 = arith.mulf %322, %321 : vector<8x128xf32>
    %cst_94 = arith.constant 5.000000e-01 : f32
    %324 = vector.broadcast %cst_94 : f32 to vector<8x128xf32>
    %325 = arith.addf %323, %324 : vector<8x128xf32>
    %326 = vector.extract_strided_slice %325 {offsets = [0, 32], sizes = [8, 32], strides = [1, 1]} : vector<8x128xf32> to vector<8x32xf32>
    %327 = arith.mulf %326, %294 : vector<8x32xf32>
    %328 = vector.extract_strided_slice %325 {offsets = [0, 0], sizes = [8, 32], strides = [1, 1]} : vector<8x128xf32> to vector<8x32xf32>
    %329 = vector.extract_strided_slice %321 {offsets = [0, 64], sizes = [8, 32], strides = [1, 1]} : vector<8x128xf32> to vector<8x32xf32>
    %330 = arith.mulf %328, %329 : vector<8x32xf32>
    %331 = arith.addf %327, %330 : vector<8x32xf32>
    %332 = vector.extract_strided_slice %325 {offsets = [0, 96], sizes = [8, 32], strides = [1, 1]} : vector<8x128xf32> to vector<8x32xf32>
    %333 = math.tanh %331 : vector<8x32xf32>
    %334 = arith.mulf %332, %333 : vector<8x32xf32>
    %cst_95 = arith.constant dense<0.000000e+00> : vector<8x128xf32>
    %335 = tpu.matmul %297, %9, %cst_95 {dimension_numbers = #tpu.dot_dimension_numbers<[1], [0], [0], [1], [0, 0, 1, 1], [], []>} : vector<8x32xf32>, vector<32x128xf32>, vector<8x128xf32> -> vector<8x128xf32>
    %cst_96 = arith.constant dense<0.000000e+00> : vector<8x128xf32>
    %336 = tpu.matmul %315, %8, %cst_96 {dimension_numbers = #tpu.dot_dimension_numbers<[1], [0], [0], [1], [0, 0, 1, 1], [], []>} : vector<8x32xf32>, vector<32x128xf32>, vector<8x128xf32> -> vector<8x128xf32>
    %337 = arith.addf %335, %336 : vector<8x128xf32>
    %338 = arith.addf %337, %12 : vector<8x128xf32>
    %339 = math.tanh %338 : vector<8x128xf32>
    %cst_97 = arith.constant 5.000000e-01 : f32
    %340 = vector.broadcast %cst_97 : f32 to vector<8x128xf32>
    %341 = arith.mulf %340, %339 : vector<8x128xf32>
    %cst_98 = arith.constant 5.000000e-01 : f32
    %342 = vector.broadcast %cst_98 : f32 to vector<8x128xf32>
    %343 = arith.addf %341, %342 : vector<8x128xf32>
    %344 = vector.extract_strided_slice %343 {offsets = [0, 32], sizes = [8, 32], strides = [1, 1]} : vector<8x128xf32> to vector<8x32xf32>
    %345 = arith.mulf %344, %312 : vector<8x32xf32>
    %346 = vector.extract_strided_slice %343 {offsets = [0, 0], sizes = [8, 32], strides = [1, 1]} : vector<8x128xf32> to vector<8x32xf32>
    %347 = vector.extract_strided_slice %339 {offsets = [0, 64], sizes = [8, 32], strides = [1, 1]} : vector<8x128xf32> to vector<8x32xf32>
    %348 = arith.mulf %346, %347 : vector<8x32xf32>
    %349 = arith.addf %345, %348 : vector<8x32xf32>
    %350 = vector.extract_strided_slice %343 {offsets = [0, 96], sizes = [8, 32], strides = [1, 1]} : vector<8x128xf32> to vector<8x32xf32>
    %351 = math.tanh %349 : vector<8x32xf32>
    %352 = arith.mulf %350, %351 : vector<8x32xf32>
    %c80 = arith.constant 80 : index
    %c0_99 = arith.constant 0 : index
    %353 = vector.load %arg11[%c80, %c0_99] : memref<320x128xf32, #tpu.memory_space<vmem>>, vector<8x128xf32>
    %cst_100 = arith.constant dense<0.000000e+00> : vector<8x128xf32>
    %354 = tpu.matmul %334, %7, %cst_100 {dimension_numbers = #tpu.dot_dimension_numbers<[1], [0], [0], [1], [0, 0, 1, 1], [], []>} : vector<8x32xf32>, vector<32x128xf32>, vector<8x128xf32> -> vector<8x128xf32>
    %355 = arith.addf %353, %354 : vector<8x128xf32>
    %356 = math.tanh %355 : vector<8x128xf32>
    %cst_101 = arith.constant 5.000000e-01 : f32
    %357 = vector.broadcast %cst_101 : f32 to vector<8x128xf32>
    %358 = arith.mulf %357, %356 : vector<8x128xf32>
    %cst_102 = arith.constant 5.000000e-01 : f32
    %359 = vector.broadcast %cst_102 : f32 to vector<8x128xf32>
    %360 = arith.addf %358, %359 : vector<8x128xf32>
    %361 = vector.extract_strided_slice %360 {offsets = [0, 32], sizes = [8, 32], strides = [1, 1]} : vector<8x128xf32> to vector<8x32xf32>
    %362 = arith.mulf %361, %331 : vector<8x32xf32>
    %363 = vector.extract_strided_slice %360 {offsets = [0, 0], sizes = [8, 32], strides = [1, 1]} : vector<8x128xf32> to vector<8x32xf32>
    %364 = vector.extract_strided_slice %356 {offsets = [0, 64], sizes = [8, 32], strides = [1, 1]} : vector<8x128xf32> to vector<8x32xf32>
    %365 = arith.mulf %363, %364 : vector<8x32xf32>
    %366 = arith.addf %362, %365 : vector<8x32xf32>
    %367 = vector.extract_strided_slice %360 {offsets = [0, 96], sizes = [8, 32], strides = [1, 1]} : vector<8x128xf32> to vector<8x32xf32>
    %368 = math.tanh %366 : vector<8x32xf32>
    %369 = arith.mulf %367, %368 : vector<8x32xf32>
    %cst_103 = arith.constant dense<0.000000e+00> : vector<8x128xf32>
    %370 = tpu.matmul %334, %9, %cst_103 {dimension_numbers = #tpu.dot_dimension_numbers<[1], [0], [0], [1], [0, 0, 1, 1], [], []>} : vector<8x32xf32>, vector<32x128xf32>, vector<8x128xf32> -> vector<8x128xf32>
    %cst_104 = arith.constant dense<0.000000e+00> : vector<8x128xf32>
    %371 = tpu.matmul %352, %8, %cst_104 {dimension_numbers = #tpu.dot_dimension_numbers<[1], [0], [0], [1], [0, 0, 1, 1], [], []>} : vector<8x32xf32>, vector<32x128xf32>, vector<8x128xf32> -> vector<8x128xf32>
    %372 = arith.addf %370, %371 : vector<8x128xf32>
    %373 = arith.addf %372, %12 : vector<8x128xf32>
    %374 = math.tanh %373 : vector<8x128xf32>
    %cst_105 = arith.constant 5.000000e-01 : f32
    %375 = vector.broadcast %cst_105 : f32 to vector<8x128xf32>
    %376 = arith.mulf %375, %374 : vector<8x128xf32>
    %cst_106 = arith.constant 5.000000e-01 : f32
    %377 = vector.broadcast %cst_106 : f32 to vector<8x128xf32>
    %378 = arith.addf %376, %377 : vector<8x128xf32>
    %379 = vector.extract_strided_slice %378 {offsets = [0, 32], sizes = [8, 32], strides = [1, 1]} : vector<8x128xf32> to vector<8x32xf32>
    %380 = arith.mulf %379, %349 : vector<8x32xf32>
    %381 = vector.extract_strided_slice %378 {offsets = [0, 0], sizes = [8, 32], strides = [1, 1]} : vector<8x128xf32> to vector<8x32xf32>
    %382 = vector.extract_strided_slice %374 {offsets = [0, 64], sizes = [8, 32], strides = [1, 1]} : vector<8x128xf32> to vector<8x32xf32>
    %383 = arith.mulf %381, %382 : vector<8x32xf32>
    %384 = arith.addf %380, %383 : vector<8x32xf32>
    %385 = vector.extract_strided_slice %378 {offsets = [0, 96], sizes = [8, 32], strides = [1, 1]} : vector<8x128xf32> to vector<8x32xf32>
    %386 = math.tanh %384 : vector<8x32xf32>
    %387 = arith.mulf %385, %386 : vector<8x32xf32>
    %c88 = arith.constant 88 : index
    %c0_107 = arith.constant 0 : index
    %388 = vector.load %arg11[%c88, %c0_107] : memref<320x128xf32, #tpu.memory_space<vmem>>, vector<8x128xf32>
    %cst_108 = arith.constant dense<0.000000e+00> : vector<8x128xf32>
    %389 = tpu.matmul %369, %7, %cst_108 {dimension_numbers = #tpu.dot_dimension_numbers<[1], [0], [0], [1], [0, 0, 1, 1], [], []>} : vector<8x32xf32>, vector<32x128xf32>, vector<8x128xf32> -> vector<8x128xf32>
    %390 = arith.addf %388, %389 : vector<8x128xf32>
    %391 = math.tanh %390 : vector<8x128xf32>
    %cst_109 = arith.constant 5.000000e-01 : f32
    %392 = vector.broadcast %cst_109 : f32 to vector<8x128xf32>
    %393 = arith.mulf %392, %391 : vector<8x128xf32>
    %cst_110 = arith.constant 5.000000e-01 : f32
    %394 = vector.broadcast %cst_110 : f32 to vector<8x128xf32>
    %395 = arith.addf %393, %394 : vector<8x128xf32>
    %396 = vector.extract_strided_slice %395 {offsets = [0, 32], sizes = [8, 32], strides = [1, 1]} : vector<8x128xf32> to vector<8x32xf32>
    %397 = arith.mulf %396, %366 : vector<8x32xf32>
    %398 = vector.extract_strided_slice %395 {offsets = [0, 0], sizes = [8, 32], strides = [1, 1]} : vector<8x128xf32> to vector<8x32xf32>
    %399 = vector.extract_strided_slice %391 {offsets = [0, 64], sizes = [8, 32], strides = [1, 1]} : vector<8x128xf32> to vector<8x32xf32>
    %400 = arith.mulf %398, %399 : vector<8x32xf32>
    %401 = arith.addf %397, %400 : vector<8x32xf32>
    %402 = vector.extract_strided_slice %395 {offsets = [0, 96], sizes = [8, 32], strides = [1, 1]} : vector<8x128xf32> to vector<8x32xf32>
    %403 = math.tanh %401 : vector<8x32xf32>
    %404 = arith.mulf %402, %403 : vector<8x32xf32>
    %cst_111 = arith.constant dense<0.000000e+00> : vector<8x128xf32>
    %405 = tpu.matmul %369, %9, %cst_111 {dimension_numbers = #tpu.dot_dimension_numbers<[1], [0], [0], [1], [0, 0, 1, 1], [], []>} : vector<8x32xf32>, vector<32x128xf32>, vector<8x128xf32> -> vector<8x128xf32>
    %cst_112 = arith.constant dense<0.000000e+00> : vector<8x128xf32>
    %406 = tpu.matmul %387, %8, %cst_112 {dimension_numbers = #tpu.dot_dimension_numbers<[1], [0], [0], [1], [0, 0, 1, 1], [], []>} : vector<8x32xf32>, vector<32x128xf32>, vector<8x128xf32> -> vector<8x128xf32>
    %407 = arith.addf %405, %406 : vector<8x128xf32>
    %408 = arith.addf %407, %12 : vector<8x128xf32>
    %409 = math.tanh %408 : vector<8x128xf32>
    %cst_113 = arith.constant 5.000000e-01 : f32
    %410 = vector.broadcast %cst_113 : f32 to vector<8x128xf32>
    %411 = arith.mulf %410, %409 : vector<8x128xf32>
    %cst_114 = arith.constant 5.000000e-01 : f32
    %412 = vector.broadcast %cst_114 : f32 to vector<8x128xf32>
    %413 = arith.addf %411, %412 : vector<8x128xf32>
    %414 = vector.extract_strided_slice %413 {offsets = [0, 32], sizes = [8, 32], strides = [1, 1]} : vector<8x128xf32> to vector<8x32xf32>
    %415 = arith.mulf %414, %384 : vector<8x32xf32>
    %416 = vector.extract_strided_slice %413 {offsets = [0, 0], sizes = [8, 32], strides = [1, 1]} : vector<8x128xf32> to vector<8x32xf32>
    %417 = vector.extract_strided_slice %409 {offsets = [0, 64], sizes = [8, 32], strides = [1, 1]} : vector<8x128xf32> to vector<8x32xf32>
    %418 = arith.mulf %416, %417 : vector<8x32xf32>
    %419 = arith.addf %415, %418 : vector<8x32xf32>
    %420 = vector.extract_strided_slice %413 {offsets = [0, 96], sizes = [8, 32], strides = [1, 1]} : vector<8x128xf32> to vector<8x32xf32>
    %421 = math.tanh %419 : vector<8x32xf32>
    %422 = arith.mulf %420, %421 : vector<8x32xf32>
    %c96 = arith.constant 96 : index
    %c0_115 = arith.constant 0 : index
    %423 = vector.load %arg11[%c96, %c0_115] : memref<320x128xf32, #tpu.memory_space<vmem>>, vector<8x128xf32>
    %cst_116 = arith.constant dense<0.000000e+00> : vector<8x128xf32>
    %424 = tpu.matmul %404, %7, %cst_116 {dimension_numbers = #tpu.dot_dimension_numbers<[1], [0], [0], [1], [0, 0, 1, 1], [], []>} : vector<8x32xf32>, vector<32x128xf32>, vector<8x128xf32> -> vector<8x128xf32>
    %425 = arith.addf %423, %424 : vector<8x128xf32>
    %426 = math.tanh %425 : vector<8x128xf32>
    %cst_117 = arith.constant 5.000000e-01 : f32
    %427 = vector.broadcast %cst_117 : f32 to vector<8x128xf32>
    %428 = arith.mulf %427, %426 : vector<8x128xf32>
    %cst_118 = arith.constant 5.000000e-01 : f32
    %429 = vector.broadcast %cst_118 : f32 to vector<8x128xf32>
    %430 = arith.addf %428, %429 : vector<8x128xf32>
    %431 = vector.extract_strided_slice %430 {offsets = [0, 32], sizes = [8, 32], strides = [1, 1]} : vector<8x128xf32> to vector<8x32xf32>
    %432 = arith.mulf %431, %401 : vector<8x32xf32>
    %433 = vector.extract_strided_slice %430 {offsets = [0, 0], sizes = [8, 32], strides = [1, 1]} : vector<8x128xf32> to vector<8x32xf32>
    %434 = vector.extract_strided_slice %426 {offsets = [0, 64], sizes = [8, 32], strides = [1, 1]} : vector<8x128xf32> to vector<8x32xf32>
    %435 = arith.mulf %433, %434 : vector<8x32xf32>
    %436 = arith.addf %432, %435 : vector<8x32xf32>
    %437 = vector.extract_strided_slice %430 {offsets = [0, 96], sizes = [8, 32], strides = [1, 1]} : vector<8x128xf32> to vector<8x32xf32>
    %438 = math.tanh %436 : vector<8x32xf32>
    %439 = arith.mulf %437, %438 : vector<8x32xf32>
    %cst_119 = arith.constant dense<0.000000e+00> : vector<8x128xf32>
    %440 = tpu.matmul %404, %9, %cst_119 {dimension_numbers = #tpu.dot_dimension_numbers<[1], [0], [0], [1], [0, 0, 1, 1], [], []>} : vector<8x32xf32>, vector<32x128xf32>, vector<8x128xf32> -> vector<8x128xf32>
    %cst_120 = arith.constant dense<0.000000e+00> : vector<8x128xf32>
    %441 = tpu.matmul %422, %8, %cst_120 {dimension_numbers = #tpu.dot_dimension_numbers<[1], [0], [0], [1], [0, 0, 1, 1], [], []>} : vector<8x32xf32>, vector<32x128xf32>, vector<8x128xf32> -> vector<8x128xf32>
    %442 = arith.addf %440, %441 : vector<8x128xf32>
    %443 = arith.addf %442, %12 : vector<8x128xf32>
    %444 = math.tanh %443 : vector<8x128xf32>
    %cst_121 = arith.constant 5.000000e-01 : f32
    %445 = vector.broadcast %cst_121 : f32 to vector<8x128xf32>
    %446 = arith.mulf %445, %444 : vector<8x128xf32>
    %cst_122 = arith.constant 5.000000e-01 : f32
    %447 = vector.broadcast %cst_122 : f32 to vector<8x128xf32>
    %448 = arith.addf %446, %447 : vector<8x128xf32>
    %449 = vector.extract_strided_slice %448 {offsets = [0, 32], sizes = [8, 32], strides = [1, 1]} : vector<8x128xf32> to vector<8x32xf32>
    %450 = arith.mulf %449, %419 : vector<8x32xf32>
    %451 = vector.extract_strided_slice %448 {offsets = [0, 0], sizes = [8, 32], strides = [1, 1]} : vector<8x128xf32> to vector<8x32xf32>
    %452 = vector.extract_strided_slice %444 {offsets = [0, 64], sizes = [8, 32], strides = [1, 1]} : vector<8x128xf32> to vector<8x32xf32>
    %453 = arith.mulf %451, %452 : vector<8x32xf32>
    %454 = arith.addf %450, %453 : vector<8x32xf32>
    %455 = vector.extract_strided_slice %448 {offsets = [0, 96], sizes = [8, 32], strides = [1, 1]} : vector<8x128xf32> to vector<8x32xf32>
    %456 = math.tanh %454 : vector<8x32xf32>
    %457 = arith.mulf %455, %456 : vector<8x32xf32>
    %458 = tpu.concatenate %352, %387, %422, %457 in 1 : vector<8x32xf32>, vector<8x32xf32>, vector<8x32xf32>, vector<8x32xf32> -> vector<8x128xf32>
    %c0_123 = arith.constant 0 : index
    %c256 = arith.constant 256 : index
    %459 = vector.load %arg12[%c0_123, %c256] : memref<8x1280xf32, #tpu.memory_space<vmem>>, vector<8x128xf32>
    tpu.vector_store %arg12[%c0_123, %c256], %458 {strides = array<i32>} : memref<8x1280xf32, #tpu.memory_space<vmem>>, vector<8x128xf32>,
    %c104 = arith.constant 104 : index
    %c0_124 = arith.constant 0 : index
    %460 = vector.load %arg11[%c104, %c0_124] : memref<320x128xf32, #tpu.memory_space<vmem>>, vector<8x128xf32>
    %cst_125 = arith.constant dense<0.000000e+00> : vector<8x128xf32>
    %461 = tpu.matmul %439, %7, %cst_125 {dimension_numbers = #tpu.dot_dimension_numbers<[1], [0], [0], [1], [0, 0, 1, 1], [], []>} : vector<8x32xf32>, vector<32x128xf32>, vector<8x128xf32> -> vector<8x128xf32>
    %462 = arith.addf %460, %461 : vector<8x128xf32>
    %463 = math.tanh %462 : vector<8x128xf32>
    %cst_126 = arith.constant 5.000000e-01 : f32
    %464 = vector.broadcast %cst_126 : f32 to vector<8x128xf32>
    %465 = arith.mulf %464, %463 : vector<8x128xf32>
    %cst_127 = arith.constant 5.000000e-01 : f32
    %466 = vector.broadcast %cst_127 : f32 to vector<8x128xf32>
    %467 = arith.addf %465, %466 : vector<8x128xf32>
    %468 = vector.extract_strided_slice %467 {offsets = [0, 32], sizes = [8, 32], strides = [1, 1]} : vector<8x128xf32> to vector<8x32xf32>
    %469 = arith.mulf %468, %436 : vector<8x32xf32>
    %470 = vector.extract_strided_slice %467 {offsets = [0, 0], sizes = [8, 32], strides = [1, 1]} : vector<8x128xf32> to vector<8x32xf32>
    %471 = vector.extract_strided_slice %463 {offsets = [0, 64], sizes = [8, 32], strides = [1, 1]} : vector<8x128xf32> to vector<8x32xf32>
    %472 = arith.mulf %470, %471 : vector<8x32xf32>
    %473 = arith.addf %469, %472 : vector<8x32xf32>
    %474 = vector.extract_strided_slice %467 {offsets = [0, 96], sizes = [8, 32], strides = [1, 1]} : vector<8x128xf32> to vector<8x32xf32>
    %475 = math.tanh %473 : vector<8x32xf32>
    %476 = arith.mulf %474, %475 : vector<8x32xf32>
    %cst_128 = arith.constant dense<0.000000e+00> : vector<8x128xf32>
    %477 = tpu.matmul %439, %9, %cst_128 {dimension_numbers = #tpu.dot_dimension_numbers<[1], [0], [0], [1], [0, 0, 1, 1], [], []>} : vector<8x32xf32>, vector<32x128xf32>, vector<8x128xf32> -> vector<8x128xf32>
    %cst_129 = arith.constant dense<0.000000e+00> : vector<8x128xf32>
    %478 = tpu.matmul %457, %8, %cst_129 {dimension_numbers = #tpu.dot_dimension_numbers<[1], [0], [0], [1], [0, 0, 1, 1], [], []>} : vector<8x32xf32>, vector<32x128xf32>, vector<8x128xf32> -> vector<8x128xf32>
    %479 = arith.addf %477, %478 : vector<8x128xf32>
    %480 = arith.addf %479, %12 : vector<8x128xf32>
    %481 = math.tanh %480 : vector<8x128xf32>
    %cst_130 = arith.constant 5.000000e-01 : f32
    %482 = vector.broadcast %cst_130 : f32 to vector<8x128xf32>
    %483 = arith.mulf %482, %481 : vector<8x128xf32>
    %cst_131 = arith.constant 5.000000e-01 : f32
    %484 = vector.broadcast %cst_131 : f32 to vector<8x128xf32>
    %485 = arith.addf %483, %484 : vector<8x128xf32>
    %486 = vector.extract_strided_slice %485 {offsets = [0, 32], sizes = [8, 32], strides = [1, 1]} : vector<8x128xf32> to vector<8x32xf32>
    %487 = arith.mulf %486, %454 : vector<8x32xf32>
    %488 = vector.extract_strided_slice %485 {offsets = [0, 0], sizes = [8, 32], strides = [1, 1]} : vector<8x128xf32> to vector<8x32xf32>
    %489 = vector.extract_strided_slice %481 {offsets = [0, 64], sizes = [8, 32], strides = [1, 1]} : vector<8x128xf32> to vector<8x32xf32>
    %490 = arith.mulf %488, %489 : vector<8x32xf32>
    %491 = arith.addf %487, %490 : vector<8x32xf32>
    %492 = vector.extract_strided_slice %485 {offsets = [0, 96], sizes = [8, 32], strides = [1, 1]} : vector<8x128xf32> to vector<8x32xf32>
    %493 = math.tanh %491 : vector<8x32xf32>
    %494 = arith.mulf %492, %493 : vector<8x32xf32>
    %c112 = arith.constant 112 : index
    %c0_132 = arith.constant 0 : index
    %495 = vector.load %arg11[%c112, %c0_132] : memref<320x128xf32, #tpu.memory_space<vmem>>, vector<8x128xf32>
    %cst_133 = arith.constant dense<0.000000e+00> : vector<8x128xf32>
    %496 = tpu.matmul %476, %7, %cst_133 {dimension_numbers = #tpu.dot_dimension_numbers<[1], [0], [0], [1], [0, 0, 1, 1], [], []>} : vector<8x32xf32>, vector<32x128xf32>, vector<8x128xf32> -> vector<8x128xf32>
    %497 = arith.addf %495, %496 : vector<8x128xf32>
    %498 = math.tanh %497 : vector<8x128xf32>
    %cst_134 = arith.constant 5.000000e-01 : f32
    %499 = vector.broadcast %cst_134 : f32 to vector<8x128xf32>
    %500 = arith.mulf %499, %498 : vector<8x128xf32>
    %cst_135 = arith.constant 5.000000e-01 : f32
    %501 = vector.broadcast %cst_135 : f32 to vector<8x128xf32>
    %502 = arith.addf %500, %501 : vector<8x128xf32>
    %503 = vector.extract_strided_slice %502 {offsets = [0, 32], sizes = [8, 32], strides = [1, 1]} : vector<8x128xf32> to vector<8x32xf32>
    %504 = arith.mulf %503, %473 : vector<8x32xf32>
    %505 = vector.extract_strided_slice %502 {offsets = [0, 0], sizes = [8, 32], strides = [1, 1]} : vector<8x128xf32> to vector<8x32xf32>
    %506 = vector.extract_strided_slice %498 {offsets = [0, 64], sizes = [8, 32], strides = [1, 1]} : vector<8x128xf32> to vector<8x32xf32>
    %507 = arith.mulf %505, %506 : vector<8x32xf32>
    %508 = arith.addf %504, %507 : vector<8x32xf32>
    %509 = vector.extract_strided_slice %502 {offsets = [0, 96], sizes = [8, 32], strides = [1, 1]} : vector<8x128xf32> to vector<8x32xf32>
    %510 = math.tanh %508 : vector<8x32xf32>
    %511 = arith.mulf %509, %510 : vector<8x32xf32>
    %cst_136 = arith.constant dense<0.000000e+00> : vector<8x128xf32>
    %512 = tpu.matmul %476, %9, %cst_136 {dimension_numbers = #tpu.dot_dimension_numbers<[1], [0], [0], [1], [0, 0, 1, 1], [], []>} : vector<8x32xf32>, vector<32x128xf32>, vector<8x128xf32> -> vector<8x128xf32>
    %cst_137 = arith.constant dense<0.000000e+00> : vector<8x128xf32>
    %513 = tpu.matmul %494, %8, %cst_137 {dimension_numbers = #tpu.dot_dimension_numbers<[1], [0], [0], [1], [0, 0, 1, 1], [], []>} : vector<8x32xf32>, vector<32x128xf32>, vector<8x128xf32> -> vector<8x128xf32>
    %514 = arith.addf %512, %513 : vector<8x128xf32>
    %515 = arith.addf %514, %12 : vector<8x128xf32>
    %516 = math.tanh %515 : vector<8x128xf32>
    %cst_138 = arith.constant 5.000000e-01 : f32
    %517 = vector.broadcast %cst_138 : f32 to vector<8x128xf32>
    %518 = arith.mulf %517, %516 : vector<8x128xf32>
    %cst_139 = arith.constant 5.000000e-01 : f32
    %519 = vector.broadcast %cst_139 : f32 to vector<8x128xf32>
    %520 = arith.addf %518, %519 : vector<8x128xf32>
    %521 = vector.extract_strided_slice %520 {offsets = [0, 32], sizes = [8, 32], strides = [1, 1]} : vector<8x128xf32> to vector<8x32xf32>
    %522 = arith.mulf %521, %491 : vector<8x32xf32>
    %523 = vector.extract_strided_slice %520 {offsets = [0, 0], sizes = [8, 32], strides = [1, 1]} : vector<8x128xf32> to vector<8x32xf32>
    %524 = vector.extract_strided_slice %516 {offsets = [0, 64], sizes = [8, 32], strides = [1, 1]} : vector<8x128xf32> to vector<8x32xf32>
    %525 = arith.mulf %523, %524 : vector<8x32xf32>
    %526 = arith.addf %522, %525 : vector<8x32xf32>
    %527 = vector.extract_strided_slice %520 {offsets = [0, 96], sizes = [8, 32], strides = [1, 1]} : vector<8x128xf32> to vector<8x32xf32>
    %528 = math.tanh %526 : vector<8x32xf32>
    %529 = arith.mulf %527, %528 : vector<8x32xf32>
    %c120 = arith.constant 120 : index
    %c0_140 = arith.constant 0 : index
    %530 = vector.load %arg11[%c120, %c0_140] : memref<320x128xf32, #tpu.memory_space<vmem>>, vector<8x128xf32>
    %cst_141 = arith.constant dense<0.000000e+00> : vector<8x128xf32>
    %531 = tpu.matmul %511, %7, %cst_141 {dimension_numbers = #tpu.dot_dimension_numbers<[1], [0], [0], [1], [0, 0, 1, 1], [], []>} : vector<8x32xf32>, vector<32x128xf32>, vector<8x128xf32> -> vector<8x128xf32>
    %532 = arith.addf %530, %531 : vector<8x128xf32>
    %533 = math.tanh %532 : vector<8x128xf32>
    %cst_142 = arith.constant 5.000000e-01 : f32
    %534 = vector.broadcast %cst_142 : f32 to vector<8x128xf32>
    %535 = arith.mulf %534, %533 : vector<8x128xf32>
    %cst_143 = arith.constant 5.000000e-01 : f32
    %536 = vector.broadcast %cst_143 : f32 to vector<8x128xf32>
    %537 = arith.addf %535, %536 : vector<8x128xf32>
    %538 = vector.extract_strided_slice %537 {offsets = [0, 32], sizes = [8, 32], strides = [1, 1]} : vector<8x128xf32> to vector<8x32xf32>
    %539 = arith.mulf %538, %508 : vector<8x32xf32>
    %540 = vector.extract_strided_slice %537 {offsets = [0, 0], sizes = [8, 32], strides = [1, 1]} : vector<8x128xf32> to vector<8x32xf32>
    %541 = vector.extract_strided_slice %533 {offsets = [0, 64], sizes = [8, 32], strides = [1, 1]} : vector<8x128xf32> to vector<8x32xf32>
    %542 = arith.mulf %540, %541 : vector<8x32xf32>
    %543 = arith.addf %539, %542 : vector<8x32xf32>
    %544 = vector.extract_strided_slice %537 {offsets = [0, 96], sizes = [8, 32], strides = [1, 1]} : vector<8x128xf32> to vector<8x32xf32>
    %545 = math.tanh %543 : vector<8x32xf32>
    %546 = arith.mulf %544, %545 : vector<8x32xf32>
    %cst_144 = arith.constant dense<0.000000e+00> : vector<8x128xf32>
    %547 = tpu.matmul %511, %9, %cst_144 {dimension_numbers = #tpu.dot_dimension_numbers<[1], [0], [0], [1], [0, 0, 1, 1], [], []>} : vector<8x32xf32>, vector<32x128xf32>, vector<8x128xf32> -> vector<8x128xf32>
    %cst_145 = arith.constant dense<0.000000e+00> : vector<8x128xf32>
    %548 = tpu.matmul %529, %8, %cst_145 {dimension_numbers = #tpu.dot_dimension_numbers<[1], [0], [0], [1], [0, 0, 1, 1], [], []>} : vector<8x32xf32>, vector<32x128xf32>, vector<8x128xf32> -> vector<8x128xf32>
    %549 = arith.addf %547, %548 : vector<8x128xf32>
    %550 = arith.addf %549, %12 : vector<8x128xf32>
    %551 = math.tanh %550 : vector<8x128xf32>
    %cst_146 = arith.constant 5.000000e-01 : f32
    %552 = vector.broadcast %cst_146 : f32 to vector<8x128xf32>
    %553 = arith.mulf %552, %551 : vector<8x128xf32>
    %cst_147 = arith.constant 5.000000e-01 : f32
    %554 = vector.broadcast %cst_147 : f32 to vector<8x128xf32>
    %555 = arith.addf %553, %554 : vector<8x128xf32>
    %556 = vector.extract_strided_slice %555 {offsets = [0, 32], sizes = [8, 32], strides = [1, 1]} : vector<8x128xf32> to vector<8x32xf32>
    %557 = arith.mulf %556, %526 : vector<8x32xf32>
    %558 = vector.extract_strided_slice %555 {offsets = [0, 0], sizes = [8, 32], strides = [1, 1]} : vector<8x128xf32> to vector<8x32xf32>
    %559 = vector.extract_strided_slice %551 {offsets = [0, 64], sizes = [8, 32], strides = [1, 1]} : vector<8x128xf32> to vector<8x32xf32>
    %560 = arith.mulf %558, %559 : vector<8x32xf32>
    %561 = arith.addf %557, %560 : vector<8x32xf32>
    %562 = vector.extract_strided_slice %555 {offsets = [0, 96], sizes = [8, 32], strides = [1, 1]} : vector<8x128xf32> to vector<8x32xf32>
    %563 = math.tanh %561 : vector<8x32xf32>
    %564 = arith.mulf %562, %563 : vector<8x32xf32>
    %c128_148 = arith.constant 128 : index
    %c0_149 = arith.constant 0 : index
    %565 = vector.load %arg11[%c128_148, %c0_149] : memref<320x128xf32, #tpu.memory_space<vmem>>, vector<8x128xf32>
    %cst_150 = arith.constant dense<0.000000e+00> : vector<8x128xf32>
    %566 = tpu.matmul %546, %7, %cst_150 {dimension_numbers = #tpu.dot_dimension_numbers<[1], [0], [0], [1], [0, 0, 1, 1], [], []>} : vector<8x32xf32>, vector<32x128xf32>, vector<8x128xf32> -> vector<8x128xf32>
    %567 = arith.addf %565, %566 : vector<8x128xf32>
    %568 = math.tanh %567 : vector<8x128xf32>
    %cst_151 = arith.constant 5.000000e-01 : f32
    %569 = vector.broadcast %cst_151 : f32 to vector<8x128xf32>
    %570 = arith.mulf %569, %568 : vector<8x128xf32>
    %cst_152 = arith.constant 5.000000e-01 : f32
    %571 = vector.broadcast %cst_152 : f32 to vector<8x128xf32>
    %572 = arith.addf %570, %571 : vector<8x128xf32>
    %573 = vector.extract_strided_slice %572 {offsets = [0, 32], sizes = [8, 32], strides = [1, 1]} : vector<8x128xf32> to vector<8x32xf32>
    %574 = arith.mulf %573, %543 : vector<8x32xf32>
    %575 = vector.extract_strided_slice %572 {offsets = [0, 0], sizes = [8, 32], strides = [1, 1]} : vector<8x128xf32> to vector<8x32xf32>
    %576 = vector.extract_strided_slice %568 {offsets = [0, 64], sizes = [8, 32], strides = [1, 1]} : vector<8x128xf32> to vector<8x32xf32>
    %577 = arith.mulf %575, %576 : vector<8x32xf32>
    %578 = arith.addf %574, %577 : vector<8x32xf32>
    %579 = vector.extract_strided_slice %572 {offsets = [0, 96], sizes = [8, 32], strides = [1, 1]} : vector<8x128xf32> to vector<8x32xf32>
    %580 = math.tanh %578 : vector<8x32xf32>
    %581 = arith.mulf %579, %580 : vector<8x32xf32>
    %cst_153 = arith.constant dense<0.000000e+00> : vector<8x128xf32>
    %582 = tpu.matmul %546, %9, %cst_153 {dimension_numbers = #tpu.dot_dimension_numbers<[1], [0], [0], [1], [0, 0, 1, 1], [], []>} : vector<8x32xf32>, vector<32x128xf32>, vector<8x128xf32> -> vector<8x128xf32>
    %cst_154 = arith.constant dense<0.000000e+00> : vector<8x128xf32>
    %583 = tpu.matmul %564, %8, %cst_154 {dimension_numbers = #tpu.dot_dimension_numbers<[1], [0], [0], [1], [0, 0, 1, 1], [], []>} : vector<8x32xf32>, vector<32x128xf32>, vector<8x128xf32> -> vector<8x128xf32>
    %584 = arith.addf %582, %583 : vector<8x128xf32>
    %585 = arith.addf %584, %12 : vector<8x128xf32>
    %586 = math.tanh %585 : vector<8x128xf32>
    %cst_155 = arith.constant 5.000000e-01 : f32
    %587 = vector.broadcast %cst_155 : f32 to vector<8x128xf32>
    %588 = arith.mulf %587, %586 : vector<8x128xf32>
    %cst_156 = arith.constant 5.000000e-01 : f32
    %589 = vector.broadcast %cst_156 : f32 to vector<8x128xf32>
    %590 = arith.addf %588, %589 : vector<8x128xf32>
    %591 = vector.extract_strided_slice %590 {offsets = [0, 32], sizes = [8, 32], strides = [1, 1]} : vector<8x128xf32> to vector<8x32xf32>
    %592 = arith.mulf %591, %561 : vector<8x32xf32>
    %593 = vector.extract_strided_slice %590 {offsets = [0, 0], sizes = [8, 32], strides = [1, 1]} : vector<8x128xf32> to vector<8x32xf32>
    %594 = vector.extract_strided_slice %586 {offsets = [0, 64], sizes = [8, 32], strides = [1, 1]} : vector<8x128xf32> to vector<8x32xf32>
    %595 = arith.mulf %593, %594 : vector<8x32xf32>
    %596 = arith.addf %592, %595 : vector<8x32xf32>
    %597 = vector.extract_strided_slice %590 {offsets = [0, 96], sizes = [8, 32], strides = [1, 1]} : vector<8x128xf32> to vector<8x32xf32>
    %598 = math.tanh %596 : vector<8x32xf32>
    %599 = arith.mulf %597, %598 : vector<8x32xf32>
    %600 = tpu.concatenate %494, %529, %564, %599 in 1 : vector<8x32xf32>, vector<8x32xf32>, vector<8x32xf32>, vector<8x32xf32> -> vector<8x128xf32>
    %c0_157 = arith.constant 0 : index
    %c384 = arith.constant 384 : index
    %601 = vector.load %arg12[%c0_157, %c384] : memref<8x1280xf32, #tpu.memory_space<vmem>>, vector<8x128xf32>
    tpu.vector_store %arg12[%c0_157, %c384], %600 {strides = array<i32>} : memref<8x1280xf32, #tpu.memory_space<vmem>>, vector<8x128xf32>,
    %c136 = arith.constant 136 : index
    %c0_158 = arith.constant 0 : index
    %602 = vector.load %arg11[%c136, %c0_158] : memref<320x128xf32, #tpu.memory_space<vmem>>, vector<8x128xf32>
    %cst_159 = arith.constant dense<0.000000e+00> : vector<8x128xf32>
    %603 = tpu.matmul %581, %7, %cst_159 {dimension_numbers = #tpu.dot_dimension_numbers<[1], [0], [0], [1], [0, 0, 1, 1], [], []>} : vector<8x32xf32>, vector<32x128xf32>, vector<8x128xf32> -> vector<8x128xf32>
    %604 = arith.addf %602, %603 : vector<8x128xf32>
    %605 = math.tanh %604 : vector<8x128xf32>
    %cst_160 = arith.constant 5.000000e-01 : f32
    %606 = vector.broadcast %cst_160 : f32 to vector<8x128xf32>
    %607 = arith.mulf %606, %605 : vector<8x128xf32>
    %cst_161 = arith.constant 5.000000e-01 : f32
    %608 = vector.broadcast %cst_161 : f32 to vector<8x128xf32>
    %609 = arith.addf %607, %608 : vector<8x128xf32>
    %610 = vector.extract_strided_slice %609 {offsets = [0, 32], sizes = [8, 32], strides = [1, 1]} : vector<8x128xf32> to vector<8x32xf32>
    %611 = arith.mulf %610, %578 : vector<8x32xf32>
    %612 = vector.extract_strided_slice %609 {offsets = [0, 0], sizes = [8, 32], strides = [1, 1]} : vector<8x128xf32> to vector<8x32xf32>
    %613 = vector.extract_strided_slice %605 {offsets = [0, 64], sizes = [8, 32], strides = [1, 1]} : vector<8x128xf32> to vector<8x32xf32>
    %614 = arith.mulf %612, %613 : vector<8x32xf32>
    %615 = arith.addf %611, %614 : vector<8x32xf32>
    %616 = vector.extract_strided_slice %609 {offsets = [0, 96], sizes = [8, 32], strides = [1, 1]} : vector<8x128xf32> to vector<8x32xf32>
    %617 = math.tanh %615 : vector<8x32xf32>
    %618 = arith.mulf %616, %617 : vector<8x32xf32>
    %cst_162 = arith.constant dense<0.000000e+00> : vector<8x128xf32>
    %619 = tpu.matmul %581, %9, %cst_162 {dimension_numbers = #tpu.dot_dimension_numbers<[1], [0], [0], [1], [0, 0, 1, 1], [], []>} : vector<8x32xf32>, vector<32x128xf32>, vector<8x128xf32> -> vector<8x128xf32>
    %cst_163 = arith.constant dense<0.000000e+00> : vector<8x128xf32>
    %620 = tpu.matmul %599, %8, %cst_163 {dimension_numbers = #tpu.dot_dimension_numbers<[1], [0], [0], [1], [0, 0, 1, 1], [], []>} : vector<8x32xf32>, vector<32x128xf32>, vector<8x128xf32> -> vector<8x128xf32>
    %621 = arith.addf %619, %620 : vector<8x128xf32>
    %622 = arith.addf %621, %12 : vector<8x128xf32>
    %623 = math.tanh %622 : vector<8x128xf32>
    %cst_164 = arith.constant 5.000000e-01 : f32
    %624 = vector.broadcast %cst_164 : f32 to vector<8x128xf32>
    %625 = arith.mulf %624, %623 : vector<8x128xf32>
    %cst_165 = arith.constant 5.000000e-01 : f32
    %626 = vector.broadcast %cst_165 : f32 to vector<8x128xf32>
    %627 = arith.addf %625, %626 : vector<8x128xf32>
    %628 = vector.extract_strided_slice %627 {offsets = [0, 32], sizes = [8, 32], strides = [1, 1]} : vector<8x128xf32> to vector<8x32xf32>
    %629 = arith.mulf %628, %596 : vector<8x32xf32>
    %630 = vector.extract_strided_slice %627 {offsets = [0, 0], sizes = [8, 32], strides = [1, 1]} : vector<8x128xf32> to vector<8x32xf32>
    %631 = vector.extract_strided_slice %623 {offsets = [0, 64], sizes = [8, 32], strides = [1, 1]} : vector<8x128xf32> to vector<8x32xf32>
    %632 = arith.mulf %630, %631 : vector<8x32xf32>
    %633 = arith.addf %629, %632 : vector<8x32xf32>
    %634 = vector.extract_strided_slice %627 {offsets = [0, 96], sizes = [8, 32], strides = [1, 1]} : vector<8x128xf32> to vector<8x32xf32>
    %635 = math.tanh %633 : vector<8x32xf32>
    %636 = arith.mulf %634, %635 : vector<8x32xf32>
    %c144 = arith.constant 144 : index
    %c0_166 = arith.constant 0 : index
    %637 = vector.load %arg11[%c144, %c0_166] : memref<320x128xf32, #tpu.memory_space<vmem>>, vector<8x128xf32>
    %cst_167 = arith.constant dense<0.000000e+00> : vector<8x128xf32>
    %638 = tpu.matmul %618, %7, %cst_167 {dimension_numbers = #tpu.dot_dimension_numbers<[1], [0], [0], [1], [0, 0, 1, 1], [], []>} : vector<8x32xf32>, vector<32x128xf32>, vector<8x128xf32> -> vector<8x128xf32>
    %639 = arith.addf %637, %638 : vector<8x128xf32>
    %640 = math.tanh %639 : vector<8x128xf32>
    %cst_168 = arith.constant 5.000000e-01 : f32
    %641 = vector.broadcast %cst_168 : f32 to vector<8x128xf32>
    %642 = arith.mulf %641, %640 : vector<8x128xf32>
    %cst_169 = arith.constant 5.000000e-01 : f32
    %643 = vector.broadcast %cst_169 : f32 to vector<8x128xf32>
    %644 = arith.addf %642, %643 : vector<8x128xf32>
    %645 = vector.extract_strided_slice %644 {offsets = [0, 32], sizes = [8, 32], strides = [1, 1]} : vector<8x128xf32> to vector<8x32xf32>
    %646 = arith.mulf %645, %615 : vector<8x32xf32>
    %647 = vector.extract_strided_slice %644 {offsets = [0, 0], sizes = [8, 32], strides = [1, 1]} : vector<8x128xf32> to vector<8x32xf32>
    %648 = vector.extract_strided_slice %640 {offsets = [0, 64], sizes = [8, 32], strides = [1, 1]} : vector<8x128xf32> to vector<8x32xf32>
    %649 = arith.mulf %647, %648 : vector<8x32xf32>
    %650 = arith.addf %646, %649 : vector<8x32xf32>
    %651 = vector.extract_strided_slice %644 {offsets = [0, 96], sizes = [8, 32], strides = [1, 1]} : vector<8x128xf32> to vector<8x32xf32>
    %652 = math.tanh %650 : vector<8x32xf32>
    %653 = arith.mulf %651, %652 : vector<8x32xf32>
    %cst_170 = arith.constant dense<0.000000e+00> : vector<8x128xf32>
    %654 = tpu.matmul %618, %9, %cst_170 {dimension_numbers = #tpu.dot_dimension_numbers<[1], [0], [0], [1], [0, 0, 1, 1], [], []>} : vector<8x32xf32>, vector<32x128xf32>, vector<8x128xf32> -> vector<8x128xf32>
    %cst_171 = arith.constant dense<0.000000e+00> : vector<8x128xf32>
    %655 = tpu.matmul %636, %8, %cst_171 {dimension_numbers = #tpu.dot_dimension_numbers<[1], [0], [0], [1], [0, 0, 1, 1], [], []>} : vector<8x32xf32>, vector<32x128xf32>, vector<8x128xf32> -> vector<8x128xf32>
    %656 = arith.addf %654, %655 : vector<8x128xf32>
    %657 = arith.addf %656, %12 : vector<8x128xf32>
    %658 = math.tanh %657 : vector<8x128xf32>
    %cst_172 = arith.constant 5.000000e-01 : f32
    %659 = vector.broadcast %cst_172 : f32 to vector<8x128xf32>
    %660 = arith.mulf %659, %658 : vector<8x128xf32>
    %cst_173 = arith.constant 5.000000e-01 : f32
    %661 = vector.broadcast %cst_173 : f32 to vector<8x128xf32>
    %662 = arith.addf %660, %661 : vector<8x128xf32>
    %663 = vector.extract_strided_slice %662 {offsets = [0, 32], sizes = [8, 32], strides = [1, 1]} : vector<8x128xf32> to vector<8x32xf32>
    %664 = arith.mulf %663, %633 : vector<8x32xf32>
    %665 = vector.extract_strided_slice %662 {offsets = [0, 0], sizes = [8, 32], strides = [1, 1]} : vector<8x128xf32> to vector<8x32xf32>
    %666 = vector.extract_strided_slice %658 {offsets = [0, 64], sizes = [8, 32], strides = [1, 1]} : vector<8x128xf32> to vector<8x32xf32>
    %667 = arith.mulf %665, %666 : vector<8x32xf32>
    %668 = arith.addf %664, %667 : vector<8x32xf32>
    %669 = vector.extract_strided_slice %662 {offsets = [0, 96], sizes = [8, 32], strides = [1, 1]} : vector<8x128xf32> to vector<8x32xf32>
    %670 = math.tanh %668 : vector<8x32xf32>
    %671 = arith.mulf %669, %670 : vector<8x32xf32>
    %c152 = arith.constant 152 : index
    %c0_174 = arith.constant 0 : index
    %672 = vector.load %arg11[%c152, %c0_174] : memref<320x128xf32, #tpu.memory_space<vmem>>, vector<8x128xf32>
    %cst_175 = arith.constant dense<0.000000e+00> : vector<8x128xf32>
    %673 = tpu.matmul %653, %7, %cst_175 {dimension_numbers = #tpu.dot_dimension_numbers<[1], [0], [0], [1], [0, 0, 1, 1], [], []>} : vector<8x32xf32>, vector<32x128xf32>, vector<8x128xf32> -> vector<8x128xf32>
    %674 = arith.addf %672, %673 : vector<8x128xf32>
    %675 = math.tanh %674 : vector<8x128xf32>
    %cst_176 = arith.constant 5.000000e-01 : f32
    %676 = vector.broadcast %cst_176 : f32 to vector<8x128xf32>
    %677 = arith.mulf %676, %675 : vector<8x128xf32>
    %cst_177 = arith.constant 5.000000e-01 : f32
    %678 = vector.broadcast %cst_177 : f32 to vector<8x128xf32>
    %679 = arith.addf %677, %678 : vector<8x128xf32>
    %680 = vector.extract_strided_slice %679 {offsets = [0, 32], sizes = [8, 32], strides = [1, 1]} : vector<8x128xf32> to vector<8x32xf32>
    %681 = arith.mulf %680, %650 : vector<8x32xf32>
    %682 = vector.extract_strided_slice %679 {offsets = [0, 0], sizes = [8, 32], strides = [1, 1]} : vector<8x128xf32> to vector<8x32xf32>
    %683 = vector.extract_strided_slice %675 {offsets = [0, 64], sizes = [8, 32], strides = [1, 1]} : vector<8x128xf32> to vector<8x32xf32>
    %684 = arith.mulf %682, %683 : vector<8x32xf32>
    %685 = arith.addf %681, %684 : vector<8x32xf32>
    %686 = vector.extract_strided_slice %679 {offsets = [0, 96], sizes = [8, 32], strides = [1, 1]} : vector<8x128xf32> to vector<8x32xf32>
    %687 = math.tanh %685 : vector<8x32xf32>
    %688 = arith.mulf %686, %687 : vector<8x32xf32>
    %cst_178 = arith.constant dense<0.000000e+00> : vector<8x128xf32>
    %689 = tpu.matmul %653, %9, %cst_178 {dimension_numbers = #tpu.dot_dimension_numbers<[1], [0], [0], [1], [0, 0, 1, 1], [], []>} : vector<8x32xf32>, vector<32x128xf32>, vector<8x128xf32> -> vector<8x128xf32>
    %cst_179 = arith.constant dense<0.000000e+00> : vector<8x128xf32>
    %690 = tpu.matmul %671, %8, %cst_179 {dimension_numbers = #tpu.dot_dimension_numbers<[1], [0], [0], [1], [0, 0, 1, 1], [], []>} : vector<8x32xf32>, vector<32x128xf32>, vector<8x128xf32> -> vector<8x128xf32>
    %691 = arith.addf %689, %690 : vector<8x128xf32>
    %692 = arith.addf %691, %12 : vector<8x128xf32>
    %693 = math.tanh %692 : vector<8x128xf32>
    %cst_180 = arith.constant 5.000000e-01 : f32
    %694 = vector.broadcast %cst_180 : f32 to vector<8x128xf32>
    %695 = arith.mulf %694, %693 : vector<8x128xf32>
    %cst_181 = arith.constant 5.000000e-01 : f32
    %696 = vector.broadcast %cst_181 : f32 to vector<8x128xf32>
    %697 = arith.addf %695, %696 : vector<8x128xf32>
    %698 = vector.extract_strided_slice %697 {offsets = [0, 32], sizes = [8, 32], strides = [1, 1]} : vector<8x128xf32> to vector<8x32xf32>
    %699 = arith.mulf %698, %668 : vector<8x32xf32>
    %700 = vector.extract_strided_slice %697 {offsets = [0, 0], sizes = [8, 32], strides = [1, 1]} : vector<8x128xf32> to vector<8x32xf32>
    %701 = vector.extract_strided_slice %693 {offsets = [0, 64], sizes = [8, 32], strides = [1, 1]} : vector<8x128xf32> to vector<8x32xf32>
    %702 = arith.mulf %700, %701 : vector<8x32xf32>
    %703 = arith.addf %699, %702 : vector<8x32xf32>
    %704 = vector.extract_strided_slice %697 {offsets = [0, 96], sizes = [8, 32], strides = [1, 1]} : vector<8x128xf32> to vector<8x32xf32>
    %705 = math.tanh %703 : vector<8x32xf32>
    %706 = arith.mulf %704, %705 : vector<8x32xf32>
    %c160 = arith.constant 160 : index
    %c0_182 = arith.constant 0 : index
    %707 = vector.load %arg11[%c160, %c0_182] : memref<320x128xf32, #tpu.memory_space<vmem>>, vector<8x128xf32>
    %cst_183 = arith.constant dense<0.000000e+00> : vector<8x128xf32>
    %708 = tpu.matmul %688, %7, %cst_183 {dimension_numbers = #tpu.dot_dimension_numbers<[1], [0], [0], [1], [0, 0, 1, 1], [], []>} : vector<8x32xf32>, vector<32x128xf32>, vector<8x128xf32> -> vector<8x128xf32>
    %709 = arith.addf %707, %708 : vector<8x128xf32>
    %710 = math.tanh %709 : vector<8x128xf32>
    %cst_184 = arith.constant 5.000000e-01 : f32
    %711 = vector.broadcast %cst_184 : f32 to vector<8x128xf32>
    %712 = arith.mulf %711, %710 : vector<8x128xf32>
    %cst_185 = arith.constant 5.000000e-01 : f32
    %713 = vector.broadcast %cst_185 : f32 to vector<8x128xf32>
    %714 = arith.addf %712, %713 : vector<8x128xf32>
    %715 = vector.extract_strided_slice %714 {offsets = [0, 32], sizes = [8, 32], strides = [1, 1]} : vector<8x128xf32> to vector<8x32xf32>
    %716 = arith.mulf %715, %685 : vector<8x32xf32>
    %717 = vector.extract_strided_slice %714 {offsets = [0, 0], sizes = [8, 32], strides = [1, 1]} : vector<8x128xf32> to vector<8x32xf32>
    %718 = vector.extract_strided_slice %710 {offsets = [0, 64], sizes = [8, 32], strides = [1, 1]} : vector<8x128xf32> to vector<8x32xf32>
    %719 = arith.mulf %717, %718 : vector<8x32xf32>
    %720 = arith.addf %716, %719 : vector<8x32xf32>
    %721 = vector.extract_strided_slice %714 {offsets = [0, 96], sizes = [8, 32], strides = [1, 1]} : vector<8x128xf32> to vector<8x32xf32>
    %722 = math.tanh %720 : vector<8x32xf32>
    %723 = arith.mulf %721, %722 : vector<8x32xf32>
    %cst_186 = arith.constant dense<0.000000e+00> : vector<8x128xf32>
    %724 = tpu.matmul %688, %9, %cst_186 {dimension_numbers = #tpu.dot_dimension_numbers<[1], [0], [0], [1], [0, 0, 1, 1], [], []>} : vector<8x32xf32>, vector<32x128xf32>, vector<8x128xf32> -> vector<8x128xf32>
    %cst_187 = arith.constant dense<0.000000e+00> : vector<8x128xf32>
    %725 = tpu.matmul %706, %8, %cst_187 {dimension_numbers = #tpu.dot_dimension_numbers<[1], [0], [0], [1], [0, 0, 1, 1], [], []>} : vector<8x32xf32>, vector<32x128xf32>, vector<8x128xf32> -> vector<8x128xf32>
    %726 = arith.addf %724, %725 : vector<8x128xf32>
    %727 = arith.addf %726, %12 : vector<8x128xf32>
    %728 = math.tanh %727 : vector<8x128xf32>
    %cst_188 = arith.constant 5.000000e-01 : f32
    %729 = vector.broadcast %cst_188 : f32 to vector<8x128xf32>
    %730 = arith.mulf %729, %728 : vector<8x128xf32>
    %cst_189 = arith.constant 5.000000e-01 : f32
    %731 = vector.broadcast %cst_189 : f32 to vector<8x128xf32>
    %732 = arith.addf %730, %731 : vector<8x128xf32>
    %733 = vector.extract_strided_slice %732 {offsets = [0, 32], sizes = [8, 32], strides = [1, 1]} : vector<8x128xf32> to vector<8x32xf32>
    %734 = arith.mulf %733, %703 : vector<8x32xf32>
    %735 = vector.extract_strided_slice %732 {offsets = [0, 0], sizes = [8, 32], strides = [1, 1]} : vector<8x128xf32> to vector<8x32xf32>
    %736 = vector.extract_strided_slice %728 {offsets = [0, 64], sizes = [8, 32], strides = [1, 1]} : vector<8x128xf32> to vector<8x32xf32>
    %737 = arith.mulf %735, %736 : vector<8x32xf32>
    %738 = arith.addf %734, %737 : vector<8x32xf32>
    %739 = vector.extract_strided_slice %732 {offsets = [0, 96], sizes = [8, 32], strides = [1, 1]} : vector<8x128xf32> to vector<8x32xf32>
    %740 = math.tanh %738 : vector<8x32xf32>
    %741 = arith.mulf %739, %740 : vector<8x32xf32>
    %742 = tpu.concatenate %636, %671, %706, %741 in 1 : vector<8x32xf32>, vector<8x32xf32>, vector<8x32xf32>, vector<8x32xf32> -> vector<8x128xf32>
    %c0_190 = arith.constant 0 : index
    %c512 = arith.constant 512 : index
    %743 = vector.load %arg12[%c0_190, %c512] : memref<8x1280xf32, #tpu.memory_space<vmem>>, vector<8x128xf32>
    tpu.vector_store %arg12[%c0_190, %c512], %742 {strides = array<i32>} : memref<8x1280xf32, #tpu.memory_space<vmem>>, vector<8x128xf32>,
    %c168 = arith.constant 168 : index
    %c0_191 = arith.constant 0 : index
    %744 = vector.load %arg11[%c168, %c0_191] : memref<320x128xf32, #tpu.memory_space<vmem>>, vector<8x128xf32>
    %cst_192 = arith.constant dense<0.000000e+00> : vector<8x128xf32>
    %745 = tpu.matmul %723, %7, %cst_192 {dimension_numbers = #tpu.dot_dimension_numbers<[1], [0], [0], [1], [0, 0, 1, 1], [], []>} : vector<8x32xf32>, vector<32x128xf32>, vector<8x128xf32> -> vector<8x128xf32>
    %746 = arith.addf %744, %745 : vector<8x128xf32>
    %747 = math.tanh %746 : vector<8x128xf32>
    %cst_193 = arith.constant 5.000000e-01 : f32
    %748 = vector.broadcast %cst_193 : f32 to vector<8x128xf32>
    %749 = arith.mulf %748, %747 : vector<8x128xf32>
    %cst_194 = arith.constant 5.000000e-01 : f32
    %750 = vector.broadcast %cst_194 : f32 to vector<8x128xf32>
    %751 = arith.addf %749, %750 : vector<8x128xf32>
    %752 = vector.extract_strided_slice %751 {offsets = [0, 32], sizes = [8, 32], strides = [1, 1]} : vector<8x128xf32> to vector<8x32xf32>
    %753 = arith.mulf %752, %720 : vector<8x32xf32>
    %754 = vector.extract_strided_slice %751 {offsets = [0, 0], sizes = [8, 32], strides = [1, 1]} : vector<8x128xf32> to vector<8x32xf32>
    %755 = vector.extract_strided_slice %747 {offsets = [0, 64], sizes = [8, 32], strides = [1, 1]} : vector<8x128xf32> to vector<8x32xf32>
    %756 = arith.mulf %754, %755 : vector<8x32xf32>
    %757 = arith.addf %753, %756 : vector<8x32xf32>
    %758 = vector.extract_strided_slice %751 {offsets = [0, 96], sizes = [8, 32], strides = [1, 1]} : vector<8x128xf32> to vector<8x32xf32>
    %759 = math.tanh %757 : vector<8x32xf32>
    %760 = arith.mulf %758, %759 : vector<8x32xf32>
    %cst_195 = arith.constant dense<0.000000e+00> : vector<8x128xf32>
    %761 = tpu.matmul %723, %9, %cst_195 {dimension_numbers = #tpu.dot_dimension_numbers<[1], [0], [0], [1], [0, 0, 1, 1], [], []>} : vector<8x32xf32>, vector<32x128xf32>, vector<8x128xf32> -> vector<8x128xf32>
    %cst_196 = arith.constant dense<0.000000e+00> : vector<8x128xf32>
    %762 = tpu.matmul %741, %8, %cst_196 {dimension_numbers = #tpu.dot_dimension_numbers<[1], [0], [0], [1], [0, 0, 1, 1], [], []>} : vector<8x32xf32>, vector<32x128xf32>, vector<8x128xf32> -> vector<8x128xf32>
    %763 = arith.addf %761, %762 : vector<8x128xf32>
    %764 = arith.addf %763, %12 : vector<8x128xf32>
    %765 = math.tanh %764 : vector<8x128xf32>
    %cst_197 = arith.constant 5.000000e-01 : f32
    %766 = vector.broadcast %cst_197 : f32 to vector<8x128xf32>
    %767 = arith.mulf %766, %765 : vector<8x128xf32>
    %cst_198 = arith.constant 5.000000e-01 : f32
    %768 = vector.broadcast %cst_198 : f32 to vector<8x128xf32>
    %769 = arith.addf %767, %768 : vector<8x128xf32>
    %770 = vector.extract_strided_slice %769 {offsets = [0, 32], sizes = [8, 32], strides = [1, 1]} : vector<8x128xf32> to vector<8x32xf32>
    %771 = arith.mulf %770, %738 : vector<8x32xf32>
    %772 = vector.extract_strided_slice %769 {offsets = [0, 0], sizes = [8, 32], strides = [1, 1]} : vector<8x128xf32> to vector<8x32xf32>
    %773 = vector.extract_strided_slice %765 {offsets = [0, 64], sizes = [8, 32], strides = [1, 1]} : vector<8x128xf32> to vector<8x32xf32>
    %774 = arith.mulf %772, %773 : vector<8x32xf32>
    %775 = arith.addf %771, %774 : vector<8x32xf32>
    %776 = vector.extract_strided_slice %769 {offsets = [0, 96], sizes = [8, 32], strides = [1, 1]} : vector<8x128xf32> to vector<8x32xf32>
    %777 = math.tanh %775 : vector<8x32xf32>
    %778 = arith.mulf %776, %777 : vector<8x32xf32>
    %c176 = arith.constant 176 : index
    %c0_199 = arith.constant 0 : index
    %779 = vector.load %arg11[%c176, %c0_199] : memref<320x128xf32, #tpu.memory_space<vmem>>, vector<8x128xf32>
    %cst_200 = arith.constant dense<0.000000e+00> : vector<8x128xf32>
    %780 = tpu.matmul %760, %7, %cst_200 {dimension_numbers = #tpu.dot_dimension_numbers<[1], [0], [0], [1], [0, 0, 1, 1], [], []>} : vector<8x32xf32>, vector<32x128xf32>, vector<8x128xf32> -> vector<8x128xf32>
    %781 = arith.addf %779, %780 : vector<8x128xf32>
    %782 = math.tanh %781 : vector<8x128xf32>
    %cst_201 = arith.constant 5.000000e-01 : f32
    %783 = vector.broadcast %cst_201 : f32 to vector<8x128xf32>
    %784 = arith.mulf %783, %782 : vector<8x128xf32>
    %cst_202 = arith.constant 5.000000e-01 : f32
    %785 = vector.broadcast %cst_202 : f32 to vector<8x128xf32>
    %786 = arith.addf %784, %785 : vector<8x128xf32>
    %787 = vector.extract_strided_slice %786 {offsets = [0, 32], sizes = [8, 32], strides = [1, 1]} : vector<8x128xf32> to vector<8x32xf32>
    %788 = arith.mulf %787, %757 : vector<8x32xf32>
    %789 = vector.extract_strided_slice %786 {offsets = [0, 0], sizes = [8, 32], strides = [1, 1]} : vector<8x128xf32> to vector<8x32xf32>
    %790 = vector.extract_strided_slice %782 {offsets = [0, 64], sizes = [8, 32], strides = [1, 1]} : vector<8x128xf32> to vector<8x32xf32>
    %791 = arith.mulf %789, %790 : vector<8x32xf32>
    %792 = arith.addf %788, %791 : vector<8x32xf32>
    %793 = vector.extract_strided_slice %786 {offsets = [0, 96], sizes = [8, 32], strides = [1, 1]} : vector<8x128xf32> to vector<8x32xf32>
    %794 = math.tanh %792 : vector<8x32xf32>
    %795 = arith.mulf %793, %794 : vector<8x32xf32>
    %cst_203 = arith.constant dense<0.000000e+00> : vector<8x128xf32>
    %796 = tpu.matmul %760, %9, %cst_203 {dimension_numbers = #tpu.dot_dimension_numbers<[1], [0], [0], [1], [0, 0, 1, 1], [], []>} : vector<8x32xf32>, vector<32x128xf32>, vector<8x128xf32> -> vector<8x128xf32>
    %cst_204 = arith.constant dense<0.000000e+00> : vector<8x128xf32>
    %797 = tpu.matmul %778, %8, %cst_204 {dimension_numbers = #tpu.dot_dimension_numbers<[1], [0], [0], [1], [0, 0, 1, 1], [], []>} : vector<8x32xf32>, vector<32x128xf32>, vector<8x128xf32> -> vector<8x128xf32>
    %798 = arith.addf %796, %797 : vector<8x128xf32>
    %799 = arith.addf %798, %12 : vector<8x128xf32>
    %800 = math.tanh %799 : vector<8x128xf32>
    %cst_205 = arith.constant 5.000000e-01 : f32
    %801 = vector.broadcast %cst_205 : f32 to vector<8x128xf32>
    %802 = arith.mulf %801, %800 : vector<8x128xf32>
    %cst_206 = arith.constant 5.000000e-01 : f32
    %803 = vector.broadcast %cst_206 : f32 to vector<8x128xf32>
    %804 = arith.addf %802, %803 : vector<8x128xf32>
    %805 = vector.extract_strided_slice %804 {offsets = [0, 32], sizes = [8, 32], strides = [1, 1]} : vector<8x128xf32> to vector<8x32xf32>
    %806 = arith.mulf %805, %775 : vector<8x32xf32>
    %807 = vector.extract_strided_slice %804 {offsets = [0, 0], sizes = [8, 32], strides = [1, 1]} : vector<8x128xf32> to vector<8x32xf32>
    %808 = vector.extract_strided_slice %800 {offsets = [0, 64], sizes = [8, 32], strides = [1, 1]} : vector<8x128xf32> to vector<8x32xf32>
    %809 = arith.mulf %807, %808 : vector<8x32xf32>
    %810 = arith.addf %806, %809 : vector<8x32xf32>
    %811 = vector.extract_strided_slice %804 {offsets = [0, 96], sizes = [8, 32], strides = [1, 1]} : vector<8x128xf32> to vector<8x32xf32>
    %812 = math.tanh %810 : vector<8x32xf32>
    %813 = arith.mulf %811, %812 : vector<8x32xf32>
    %c184 = arith.constant 184 : index
    %c0_207 = arith.constant 0 : index
    %814 = vector.load %arg11[%c184, %c0_207] : memref<320x128xf32, #tpu.memory_space<vmem>>, vector<8x128xf32>
    %cst_208 = arith.constant dense<0.000000e+00> : vector<8x128xf32>
    %815 = tpu.matmul %795, %7, %cst_208 {dimension_numbers = #tpu.dot_dimension_numbers<[1], [0], [0], [1], [0, 0, 1, 1], [], []>} : vector<8x32xf32>, vector<32x128xf32>, vector<8x128xf32> -> vector<8x128xf32>
    %816 = arith.addf %814, %815 : vector<8x128xf32>
    %817 = math.tanh %816 : vector<8x128xf32>
    %cst_209 = arith.constant 5.000000e-01 : f32
    %818 = vector.broadcast %cst_209 : f32 to vector<8x128xf32>
    %819 = arith.mulf %818, %817 : vector<8x128xf32>
    %cst_210 = arith.constant 5.000000e-01 : f32
    %820 = vector.broadcast %cst_210 : f32 to vector<8x128xf32>
    %821 = arith.addf %819, %820 : vector<8x128xf32>
    %822 = vector.extract_strided_slice %821 {offsets = [0, 32], sizes = [8, 32], strides = [1, 1]} : vector<8x128xf32> to vector<8x32xf32>
    %823 = arith.mulf %822, %792 : vector<8x32xf32>
    %824 = vector.extract_strided_slice %821 {offsets = [0, 0], sizes = [8, 32], strides = [1, 1]} : vector<8x128xf32> to vector<8x32xf32>
    %825 = vector.extract_strided_slice %817 {offsets = [0, 64], sizes = [8, 32], strides = [1, 1]} : vector<8x128xf32> to vector<8x32xf32>
    %826 = arith.mulf %824, %825 : vector<8x32xf32>
    %827 = arith.addf %823, %826 : vector<8x32xf32>
    %828 = vector.extract_strided_slice %821 {offsets = [0, 96], sizes = [8, 32], strides = [1, 1]} : vector<8x128xf32> to vector<8x32xf32>
    %829 = math.tanh %827 : vector<8x32xf32>
    %830 = arith.mulf %828, %829 : vector<8x32xf32>
    %cst_211 = arith.constant dense<0.000000e+00> : vector<8x128xf32>
    %831 = tpu.matmul %795, %9, %cst_211 {dimension_numbers = #tpu.dot_dimension_numbers<[1], [0], [0], [1], [0, 0, 1, 1], [], []>} : vector<8x32xf32>, vector<32x128xf32>, vector<8x128xf32> -> vector<8x128xf32>
    %cst_212 = arith.constant dense<0.000000e+00> : vector<8x128xf32>
    %832 = tpu.matmul %813, %8, %cst_212 {dimension_numbers = #tpu.dot_dimension_numbers<[1], [0], [0], [1], [0, 0, 1, 1], [], []>} : vector<8x32xf32>, vector<32x128xf32>, vector<8x128xf32> -> vector<8x128xf32>
    %833 = arith.addf %831, %832 : vector<8x128xf32>
    %834 = arith.addf %833, %12 : vector<8x128xf32>
    %835 = math.tanh %834 : vector<8x128xf32>
    %cst_213 = arith.constant 5.000000e-01 : f32
    %836 = vector.broadcast %cst_213 : f32 to vector<8x128xf32>
    %837 = arith.mulf %836, %835 : vector<8x128xf32>
    %cst_214 = arith.constant 5.000000e-01 : f32
    %838 = vector.broadcast %cst_214 : f32 to vector<8x128xf32>
    %839 = arith.addf %837, %838 : vector<8x128xf32>
    %840 = vector.extract_strided_slice %839 {offsets = [0, 32], sizes = [8, 32], strides = [1, 1]} : vector<8x128xf32> to vector<8x32xf32>
    %841 = arith.mulf %840, %810 : vector<8x32xf32>
    %842 = vector.extract_strided_slice %839 {offsets = [0, 0], sizes = [8, 32], strides = [1, 1]} : vector<8x128xf32> to vector<8x32xf32>
    %843 = vector.extract_strided_slice %835 {offsets = [0, 64], sizes = [8, 32], strides = [1, 1]} : vector<8x128xf32> to vector<8x32xf32>
    %844 = arith.mulf %842, %843 : vector<8x32xf32>
    %845 = arith.addf %841, %844 : vector<8x32xf32>
    %846 = vector.extract_strided_slice %839 {offsets = [0, 96], sizes = [8, 32], strides = [1, 1]} : vector<8x128xf32> to vector<8x32xf32>
    %847 = math.tanh %845 : vector<8x32xf32>
    %848 = arith.mulf %846, %847 : vector<8x32xf32>
    %c192 = arith.constant 192 : index
    %c0_215 = arith.constant 0 : index
    %849 = vector.load %arg11[%c192, %c0_215] : memref<320x128xf32, #tpu.memory_space<vmem>>, vector<8x128xf32>
    %cst_216 = arith.constant dense<0.000000e+00> : vector<8x128xf32>
    %850 = tpu.matmul %830, %7, %cst_216 {dimension_numbers = #tpu.dot_dimension_numbers<[1], [0], [0], [1], [0, 0, 1, 1], [], []>} : vector<8x32xf32>, vector<32x128xf32>, vector<8x128xf32> -> vector<8x128xf32>
    %851 = arith.addf %849, %850 : vector<8x128xf32>
    %852 = math.tanh %851 : vector<8x128xf32>
    %cst_217 = arith.constant 5.000000e-01 : f32
    %853 = vector.broadcast %cst_217 : f32 to vector<8x128xf32>
    %854 = arith.mulf %853, %852 : vector<8x128xf32>
    %cst_218 = arith.constant 5.000000e-01 : f32
    %855 = vector.broadcast %cst_218 : f32 to vector<8x128xf32>
    %856 = arith.addf %854, %855 : vector<8x128xf32>
    %857 = vector.extract_strided_slice %856 {offsets = [0, 32], sizes = [8, 32], strides = [1, 1]} : vector<8x128xf32> to vector<8x32xf32>
    %858 = arith.mulf %857, %827 : vector<8x32xf32>
    %859 = vector.extract_strided_slice %856 {offsets = [0, 0], sizes = [8, 32], strides = [1, 1]} : vector<8x128xf32> to vector<8x32xf32>
    %860 = vector.extract_strided_slice %852 {offsets = [0, 64], sizes = [8, 32], strides = [1, 1]} : vector<8x128xf32> to vector<8x32xf32>
    %861 = arith.mulf %859, %860 : vector<8x32xf32>
    %862 = arith.addf %858, %861 : vector<8x32xf32>
    %863 = vector.extract_strided_slice %856 {offsets = [0, 96], sizes = [8, 32], strides = [1, 1]} : vector<8x128xf32> to vector<8x32xf32>
    %864 = math.tanh %862 : vector<8x32xf32>
    %865 = arith.mulf %863, %864 : vector<8x32xf32>
    %cst_219 = arith.constant dense<0.000000e+00> : vector<8x128xf32>
    %866 = tpu.matmul %830, %9, %cst_219 {dimension_numbers = #tpu.dot_dimension_numbers<[1], [0], [0], [1], [0, 0, 1, 1], [], []>} : vector<8x32xf32>, vector<32x128xf32>, vector<8x128xf32> -> vector<8x128xf32>
    %cst_220 = arith.constant dense<0.000000e+00> : vector<8x128xf32>
    %867 = tpu.matmul %848, %8, %cst_220 {dimension_numbers = #tpu.dot_dimension_numbers<[1], [0], [0], [1], [0, 0, 1, 1], [], []>} : vector<8x32xf32>, vector<32x128xf32>, vector<8x128xf32> -> vector<8x128xf32>
    %868 = arith.addf %866, %867 : vector<8x128xf32>
    %869 = arith.addf %868, %12 : vector<8x128xf32>
    %870 = math.tanh %869 : vector<8x128xf32>
    %cst_221 = arith.constant 5.000000e-01 : f32
    %871 = vector.broadcast %cst_221 : f32 to vector<8x128xf32>
    %872 = arith.mulf %871, %870 : vector<8x128xf32>
    %cst_222 = arith.constant 5.000000e-01 : f32
    %873 = vector.broadcast %cst_222 : f32 to vector<8x128xf32>
    %874 = arith.addf %872, %873 : vector<8x128xf32>
    %875 = vector.extract_strided_slice %874 {offsets = [0, 32], sizes = [8, 32], strides = [1, 1]} : vector<8x128xf32> to vector<8x32xf32>
    %876 = arith.mulf %875, %845 : vector<8x32xf32>
    %877 = vector.extract_strided_slice %874 {offsets = [0, 0], sizes = [8, 32], strides = [1, 1]} : vector<8x128xf32> to vector<8x32xf32>
    %878 = vector.extract_strided_slice %870 {offsets = [0, 64], sizes = [8, 32], strides = [1, 1]} : vector<8x128xf32> to vector<8x32xf32>
    %879 = arith.mulf %877, %878 : vector<8x32xf32>
    %880 = arith.addf %876, %879 : vector<8x32xf32>
    %881 = vector.extract_strided_slice %874 {offsets = [0, 96], sizes = [8, 32], strides = [1, 1]} : vector<8x128xf32> to vector<8x32xf32>
    %882 = math.tanh %880 : vector<8x32xf32>
    %883 = arith.mulf %881, %882 : vector<8x32xf32>
    %884 = tpu.concatenate %778, %813, %848, %883 in 1 : vector<8x32xf32>, vector<8x32xf32>, vector<8x32xf32>, vector<8x32xf32> -> vector<8x128xf32>
    %c0_223 = arith.constant 0 : index
    %c640 = arith.constant 640 : index
    %885 = vector.load %arg12[%c0_223, %c640] : memref<8x1280xf32, #tpu.memory_space<vmem>>, vector<8x128xf32>
    tpu.vector_store %arg12[%c0_223, %c640], %884 {strides = array<i32>} : memref<8x1280xf32, #tpu.memory_space<vmem>>, vector<8x128xf32>,
    %c200 = arith.constant 200 : index
    %c0_224 = arith.constant 0 : index
    %886 = vector.load %arg11[%c200, %c0_224] : memref<320x128xf32, #tpu.memory_space<vmem>>, vector<8x128xf32>
    %cst_225 = arith.constant dense<0.000000e+00> : vector<8x128xf32>
    %887 = tpu.matmul %865, %7, %cst_225 {dimension_numbers = #tpu.dot_dimension_numbers<[1], [0], [0], [1], [0, 0, 1, 1], [], []>} : vector<8x32xf32>, vector<32x128xf32>, vector<8x128xf32> -> vector<8x128xf32>
    %888 = arith.addf %886, %887 : vector<8x128xf32>
    %889 = math.tanh %888 : vector<8x128xf32>
    %cst_226 = arith.constant 5.000000e-01 : f32
    %890 = vector.broadcast %cst_226 : f32 to vector<8x128xf32>
    %891 = arith.mulf %890, %889 : vector<8x128xf32>
    %cst_227 = arith.constant 5.000000e-01 : f32
    %892 = vector.broadcast %cst_227 : f32 to vector<8x128xf32>
    %893 = arith.addf %891, %892 : vector<8x128xf32>
    %894 = vector.extract_strided_slice %893 {offsets = [0, 32], sizes = [8, 32], strides = [1, 1]} : vector<8x128xf32> to vector<8x32xf32>
    %895 = arith.mulf %894, %862 : vector<8x32xf32>
    %896 = vector.extract_strided_slice %893 {offsets = [0, 0], sizes = [8, 32], strides = [1, 1]} : vector<8x128xf32> to vector<8x32xf32>
    %897 = vector.extract_strided_slice %889 {offsets = [0, 64], sizes = [8, 32], strides = [1, 1]} : vector<8x128xf32> to vector<8x32xf32>
    %898 = arith.mulf %896, %897 : vector<8x32xf32>
    %899 = arith.addf %895, %898 : vector<8x32xf32>
    %900 = vector.extract_strided_slice %893 {offsets = [0, 96], sizes = [8, 32], strides = [1, 1]} : vector<8x128xf32> to vector<8x32xf32>
    %901 = math.tanh %899 : vector<8x32xf32>
    %902 = arith.mulf %900, %901 : vector<8x32xf32>
    %cst_228 = arith.constant dense<0.000000e+00> : vector<8x128xf32>
    %903 = tpu.matmul %865, %9, %cst_228 {dimension_numbers = #tpu.dot_dimension_numbers<[1], [0], [0], [1], [0, 0, 1, 1], [], []>} : vector<8x32xf32>, vector<32x128xf32>, vector<8x128xf32> -> vector<8x128xf32>
    %cst_229 = arith.constant dense<0.000000e+00> : vector<8x128xf32>
    %904 = tpu.matmul %883, %8, %cst_229 {dimension_numbers = #tpu.dot_dimension_numbers<[1], [0], [0], [1], [0, 0, 1, 1], [], []>} : vector<8x32xf32>, vector<32x128xf32>, vector<8x128xf32> -> vector<8x128xf32>
    %905 = arith.addf %903, %904 : vector<8x128xf32>
    %906 = arith.addf %905, %12 : vector<8x128xf32>
    %907 = math.tanh %906 : vector<8x128xf32>
    %cst_230 = arith.constant 5.000000e-01 : f32
    %908 = vector.broadcast %cst_230 : f32 to vector<8x128xf32>
    %909 = arith.mulf %908, %907 : vector<8x128xf32>
    %cst_231 = arith.constant 5.000000e-01 : f32
    %910 = vector.broadcast %cst_231 : f32 to vector<8x128xf32>
    %911 = arith.addf %909, %910 : vector<8x128xf32>
    %912 = vector.extract_strided_slice %911 {offsets = [0, 32], sizes = [8, 32], strides = [1, 1]} : vector<8x128xf32> to vector<8x32xf32>
    %913 = arith.mulf %912, %880 : vector<8x32xf32>
    %914 = vector.extract_strided_slice %911 {offsets = [0, 0], sizes = [8, 32], strides = [1, 1]} : vector<8x128xf32> to vector<8x32xf32>
    %915 = vector.extract_strided_slice %907 {offsets = [0, 64], sizes = [8, 32], strides = [1, 1]} : vector<8x128xf32> to vector<8x32xf32>
    %916 = arith.mulf %914, %915 : vector<8x32xf32>
    %917 = arith.addf %913, %916 : vector<8x32xf32>
    %918 = vector.extract_strided_slice %911 {offsets = [0, 96], sizes = [8, 32], strides = [1, 1]} : vector<8x128xf32> to vector<8x32xf32>
    %919 = math.tanh %917 : vector<8x32xf32>
    %920 = arith.mulf %918, %919 : vector<8x32xf32>
    %c208 = arith.constant 208 : index
    %c0_232 = arith.constant 0 : index
    %921 = vector.load %arg11[%c208, %c0_232] : memref<320x128xf32, #tpu.memory_space<vmem>>, vector<8x128xf32>
    %cst_233 = arith.constant dense<0.000000e+00> : vector<8x128xf32>
    %922 = tpu.matmul %902, %7, %cst_233 {dimension_numbers = #tpu.dot_dimension_numbers<[1], [0], [0], [1], [0, 0, 1, 1], [], []>} : vector<8x32xf32>, vector<32x128xf32>, vector<8x128xf32> -> vector<8x128xf32>
    %923 = arith.addf %921, %922 : vector<8x128xf32>
    %924 = math.tanh %923 : vector<8x128xf32>
    %cst_234 = arith.constant 5.000000e-01 : f32
    %925 = vector.broadcast %cst_234 : f32 to vector<8x128xf32>
    %926 = arith.mulf %925, %924 : vector<8x128xf32>
    %cst_235 = arith.constant 5.000000e-01 : f32
    %927 = vector.broadcast %cst_235 : f32 to vector<8x128xf32>
    %928 = arith.addf %926, %927 : vector<8x128xf32>
    %929 = vector.extract_strided_slice %928 {offsets = [0, 32], sizes = [8, 32], strides = [1, 1]} : vector<8x128xf32> to vector<8x32xf32>
    %930 = arith.mulf %929, %899 : vector<8x32xf32>
    %931 = vector.extract_strided_slice %928 {offsets = [0, 0], sizes = [8, 32], strides = [1, 1]} : vector<8x128xf32> to vector<8x32xf32>
    %932 = vector.extract_strided_slice %924 {offsets = [0, 64], sizes = [8, 32], strides = [1, 1]} : vector<8x128xf32> to vector<8x32xf32>
    %933 = arith.mulf %931, %932 : vector<8x32xf32>
    %934 = arith.addf %930, %933 : vector<8x32xf32>
    %935 = vector.extract_strided_slice %928 {offsets = [0, 96], sizes = [8, 32], strides = [1, 1]} : vector<8x128xf32> to vector<8x32xf32>
    %936 = math.tanh %934 : vector<8x32xf32>
    %937 = arith.mulf %935, %936 : vector<8x32xf32>
    %cst_236 = arith.constant dense<0.000000e+00> : vector<8x128xf32>
    %938 = tpu.matmul %902, %9, %cst_236 {dimension_numbers = #tpu.dot_dimension_numbers<[1], [0], [0], [1], [0, 0, 1, 1], [], []>} : vector<8x32xf32>, vector<32x128xf32>, vector<8x128xf32> -> vector<8x128xf32>
    %cst_237 = arith.constant dense<0.000000e+00> : vector<8x128xf32>
    %939 = tpu.matmul %920, %8, %cst_237 {dimension_numbers = #tpu.dot_dimension_numbers<[1], [0], [0], [1], [0, 0, 1, 1], [], []>} : vector<8x32xf32>, vector<32x128xf32>, vector<8x128xf32> -> vector<8x128xf32>
    %940 = arith.addf %938, %939 : vector<8x128xf32>
    %941 = arith.addf %940, %12 : vector<8x128xf32>
    %942 = math.tanh %941 : vector<8x128xf32>
    %cst_238 = arith.constant 5.000000e-01 : f32
    %943 = vector.broadcast %cst_238 : f32 to vector<8x128xf32>
    %944 = arith.mulf %943, %942 : vector<8x128xf32>
    %cst_239 = arith.constant 5.000000e-01 : f32
    %945 = vector.broadcast %cst_239 : f32 to vector<8x128xf32>
    %946 = arith.addf %944, %945 : vector<8x128xf32>
    %947 = vector.extract_strided_slice %946 {offsets = [0, 32], sizes = [8, 32], strides = [1, 1]} : vector<8x128xf32> to vector<8x32xf32>
    %948 = arith.mulf %947, %917 : vector<8x32xf32>
    %949 = vector.extract_strided_slice %946 {offsets = [0, 0], sizes = [8, 32], strides = [1, 1]} : vector<8x128xf32> to vector<8x32xf32>
    %950 = vector.extract_strided_slice %942 {offsets = [0, 64], sizes = [8, 32], strides = [1, 1]} : vector<8x128xf32> to vector<8x32xf32>
    %951 = arith.mulf %949, %950 : vector<8x32xf32>
    %952 = arith.addf %948, %951 : vector<8x32xf32>
    %953 = vector.extract_strided_slice %946 {offsets = [0, 96], sizes = [8, 32], strides = [1, 1]} : vector<8x128xf32> to vector<8x32xf32>
    %954 = math.tanh %952 : vector<8x32xf32>
    %955 = arith.mulf %953, %954 : vector<8x32xf32>
    %c216 = arith.constant 216 : index
    %c0_240 = arith.constant 0 : index
    %956 = vector.load %arg11[%c216, %c0_240] : memref<320x128xf32, #tpu.memory_space<vmem>>, vector<8x128xf32>
    %cst_241 = arith.constant dense<0.000000e+00> : vector<8x128xf32>
    %957 = tpu.matmul %937, %7, %cst_241 {dimension_numbers = #tpu.dot_dimension_numbers<[1], [0], [0], [1], [0, 0, 1, 1], [], []>} : vector<8x32xf32>, vector<32x128xf32>, vector<8x128xf32> -> vector<8x128xf32>
    %958 = arith.addf %956, %957 : vector<8x128xf32>
    %959 = math.tanh %958 : vector<8x128xf32>
    %cst_242 = arith.constant 5.000000e-01 : f32
    %960 = vector.broadcast %cst_242 : f32 to vector<8x128xf32>
    %961 = arith.mulf %960, %959 : vector<8x128xf32>
    %cst_243 = arith.constant 5.000000e-01 : f32
    %962 = vector.broadcast %cst_243 : f32 to vector<8x128xf32>
    %963 = arith.addf %961, %962 : vector<8x128xf32>
    %964 = vector.extract_strided_slice %963 {offsets = [0, 32], sizes = [8, 32], strides = [1, 1]} : vector<8x128xf32> to vector<8x32xf32>
    %965 = arith.mulf %964, %934 : vector<8x32xf32>
    %966 = vector.extract_strided_slice %963 {offsets = [0, 0], sizes = [8, 32], strides = [1, 1]} : vector<8x128xf32> to vector<8x32xf32>
    %967 = vector.extract_strided_slice %959 {offsets = [0, 64], sizes = [8, 32], strides = [1, 1]} : vector<8x128xf32> to vector<8x32xf32>
    %968 = arith.mulf %966, %967 : vector<8x32xf32>
    %969 = arith.addf %965, %968 : vector<8x32xf32>
    %970 = vector.extract_strided_slice %963 {offsets = [0, 96], sizes = [8, 32], strides = [1, 1]} : vector<8x128xf32> to vector<8x32xf32>
    %971 = math.tanh %969 : vector<8x32xf32>
    %972 = arith.mulf %970, %971 : vector<8x32xf32>
    %cst_244 = arith.constant dense<0.000000e+00> : vector<8x128xf32>
    %973 = tpu.matmul %937, %9, %cst_244 {dimension_numbers = #tpu.dot_dimension_numbers<[1], [0], [0], [1], [0, 0, 1, 1], [], []>} : vector<8x32xf32>, vector<32x128xf32>, vector<8x128xf32> -> vector<8x128xf32>
    %cst_245 = arith.constant dense<0.000000e+00> : vector<8x128xf32>
    %974 = tpu.matmul %955, %8, %cst_245 {dimension_numbers = #tpu.dot_dimension_numbers<[1], [0], [0], [1], [0, 0, 1, 1], [], []>} : vector<8x32xf32>, vector<32x128xf32>, vector<8x128xf32> -> vector<8x128xf32>
    %975 = arith.addf %973, %974 : vector<8x128xf32>
    %976 = arith.addf %975, %12 : vector<8x128xf32>
    %977 = math.tanh %976 : vector<8x128xf32>
    %cst_246 = arith.constant 5.000000e-01 : f32
    %978 = vector.broadcast %cst_246 : f32 to vector<8x128xf32>
    %979 = arith.mulf %978, %977 : vector<8x128xf32>
    %cst_247 = arith.constant 5.000000e-01 : f32
    %980 = vector.broadcast %cst_247 : f32 to vector<8x128xf32>
    %981 = arith.addf %979, %980 : vector<8x128xf32>
    %982 = vector.extract_strided_slice %981 {offsets = [0, 32], sizes = [8, 32], strides = [1, 1]} : vector<8x128xf32> to vector<8x32xf32>
    %983 = arith.mulf %982, %952 : vector<8x32xf32>
    %984 = vector.extract_strided_slice %981 {offsets = [0, 0], sizes = [8, 32], strides = [1, 1]} : vector<8x128xf32> to vector<8x32xf32>
    %985 = vector.extract_strided_slice %977 {offsets = [0, 64], sizes = [8, 32], strides = [1, 1]} : vector<8x128xf32> to vector<8x32xf32>
    %986 = arith.mulf %984, %985 : vector<8x32xf32>
    %987 = arith.addf %983, %986 : vector<8x32xf32>
    %988 = vector.extract_strided_slice %981 {offsets = [0, 96], sizes = [8, 32], strides = [1, 1]} : vector<8x128xf32> to vector<8x32xf32>
    %989 = math.tanh %987 : vector<8x32xf32>
    %990 = arith.mulf %988, %989 : vector<8x32xf32>
    %c224 = arith.constant 224 : index
    %c0_248 = arith.constant 0 : index
    %991 = vector.load %arg11[%c224, %c0_248] : memref<320x128xf32, #tpu.memory_space<vmem>>, vector<8x128xf32>
    %cst_249 = arith.constant dense<0.000000e+00> : vector<8x128xf32>
    %992 = tpu.matmul %972, %7, %cst_249 {dimension_numbers = #tpu.dot_dimension_numbers<[1], [0], [0], [1], [0, 0, 1, 1], [], []>} : vector<8x32xf32>, vector<32x128xf32>, vector<8x128xf32> -> vector<8x128xf32>
    %993 = arith.addf %991, %992 : vector<8x128xf32>
    %994 = math.tanh %993 : vector<8x128xf32>
    %cst_250 = arith.constant 5.000000e-01 : f32
    %995 = vector.broadcast %cst_250 : f32 to vector<8x128xf32>
    %996 = arith.mulf %995, %994 : vector<8x128xf32>
    %cst_251 = arith.constant 5.000000e-01 : f32
    %997 = vector.broadcast %cst_251 : f32 to vector<8x128xf32>
    %998 = arith.addf %996, %997 : vector<8x128xf32>
    %999 = vector.extract_strided_slice %998 {offsets = [0, 32], sizes = [8, 32], strides = [1, 1]} : vector<8x128xf32> to vector<8x32xf32>
    %1000 = arith.mulf %999, %969 : vector<8x32xf32>
    %1001 = vector.extract_strided_slice %998 {offsets = [0, 0], sizes = [8, 32], strides = [1, 1]} : vector<8x128xf32> to vector<8x32xf32>
    %1002 = vector.extract_strided_slice %994 {offsets = [0, 64], sizes = [8, 32], strides = [1, 1]} : vector<8x128xf32> to vector<8x32xf32>
    %1003 = arith.mulf %1001, %1002 : vector<8x32xf32>
    %1004 = arith.addf %1000, %1003 : vector<8x32xf32>
    %1005 = vector.extract_strided_slice %998 {offsets = [0, 96], sizes = [8, 32], strides = [1, 1]} : vector<8x128xf32> to vector<8x32xf32>
    %1006 = math.tanh %1004 : vector<8x32xf32>
    %1007 = arith.mulf %1005, %1006 : vector<8x32xf32>
    %cst_252 = arith.constant dense<0.000000e+00> : vector<8x128xf32>
    %1008 = tpu.matmul %972, %9, %cst_252 {dimension_numbers = #tpu.dot_dimension_numbers<[1], [0], [0], [1], [0, 0, 1, 1], [], []>} : vector<8x32xf32>, vector<32x128xf32>, vector<8x128xf32> -> vector<8x128xf32>
    %cst_253 = arith.constant dense<0.000000e+00> : vector<8x128xf32>
    %1009 = tpu.matmul %990, %8, %cst_253 {dimension_numbers = #tpu.dot_dimension_numbers<[1], [0], [0], [1], [0, 0, 1, 1], [], []>} : vector<8x32xf32>, vector<32x128xf32>, vector<8x128xf32> -> vector<8x128xf32>
    %1010 = arith.addf %1008, %1009 : vector<8x128xf32>
    %1011 = arith.addf %1010, %12 : vector<8x128xf32>
    %1012 = math.tanh %1011 : vector<8x128xf32>
    %cst_254 = arith.constant 5.000000e-01 : f32
    %1013 = vector.broadcast %cst_254 : f32 to vector<8x128xf32>
    %1014 = arith.mulf %1013, %1012 : vector<8x128xf32>
    %cst_255 = arith.constant 5.000000e-01 : f32
    %1015 = vector.broadcast %cst_255 : f32 to vector<8x128xf32>
    %1016 = arith.addf %1014, %1015 : vector<8x128xf32>
    %1017 = vector.extract_strided_slice %1016 {offsets = [0, 32], sizes = [8, 32], strides = [1, 1]} : vector<8x128xf32> to vector<8x32xf32>
    %1018 = arith.mulf %1017, %987 : vector<8x32xf32>
    %1019 = vector.extract_strided_slice %1016 {offsets = [0, 0], sizes = [8, 32], strides = [1, 1]} : vector<8x128xf32> to vector<8x32xf32>
    %1020 = vector.extract_strided_slice %1012 {offsets = [0, 64], sizes = [8, 32], strides = [1, 1]} : vector<8x128xf32> to vector<8x32xf32>
    %1021 = arith.mulf %1019, %1020 : vector<8x32xf32>
    %1022 = arith.addf %1018, %1021 : vector<8x32xf32>
    %1023 = vector.extract_strided_slice %1016 {offsets = [0, 96], sizes = [8, 32], strides = [1, 1]} : vector<8x128xf32> to vector<8x32xf32>
    %1024 = math.tanh %1022 : vector<8x32xf32>
    %1025 = arith.mulf %1023, %1024 : vector<8x32xf32>
    %1026 = tpu.concatenate %920, %955, %990, %1025 in 1 : vector<8x32xf32>, vector<8x32xf32>, vector<8x32xf32>, vector<8x32xf32> -> vector<8x128xf32>
    %c0_256 = arith.constant 0 : index
    %c768 = arith.constant 768 : index
    %1027 = vector.load %arg12[%c0_256, %c768] : memref<8x1280xf32, #tpu.memory_space<vmem>>, vector<8x128xf32>
    tpu.vector_store %arg12[%c0_256, %c768], %1026 {strides = array<i32>} : memref<8x1280xf32, #tpu.memory_space<vmem>>, vector<8x128xf32>,
    %c232 = arith.constant 232 : index
    %c0_257 = arith.constant 0 : index
    %1028 = vector.load %arg11[%c232, %c0_257] : memref<320x128xf32, #tpu.memory_space<vmem>>, vector<8x128xf32>
    %cst_258 = arith.constant dense<0.000000e+00> : vector<8x128xf32>
    %1029 = tpu.matmul %1007, %7, %cst_258 {dimension_numbers = #tpu.dot_dimension_numbers<[1], [0], [0], [1], [0, 0, 1, 1], [], []>} : vector<8x32xf32>, vector<32x128xf32>, vector<8x128xf32> -> vector<8x128xf32>
    %1030 = arith.addf %1028, %1029 : vector<8x128xf32>
    %1031 = math.tanh %1030 : vector<8x128xf32>
    %cst_259 = arith.constant 5.000000e-01 : f32
    %1032 = vector.broadcast %cst_259 : f32 to vector<8x128xf32>
    %1033 = arith.mulf %1032, %1031 : vector<8x128xf32>
    %cst_260 = arith.constant 5.000000e-01 : f32
    %1034 = vector.broadcast %cst_260 : f32 to vector<8x128xf32>
    %1035 = arith.addf %1033, %1034 : vector<8x128xf32>
    %1036 = vector.extract_strided_slice %1035 {offsets = [0, 32], sizes = [8, 32], strides = [1, 1]} : vector<8x128xf32> to vector<8x32xf32>
    %1037 = arith.mulf %1036, %1004 : vector<8x32xf32>
    %1038 = vector.extract_strided_slice %1035 {offsets = [0, 0], sizes = [8, 32], strides = [1, 1]} : vector<8x128xf32> to vector<8x32xf32>
    %1039 = vector.extract_strided_slice %1031 {offsets = [0, 64], sizes = [8, 32], strides = [1, 1]} : vector<8x128xf32> to vector<8x32xf32>
    %1040 = arith.mulf %1038, %1039 : vector<8x32xf32>
    %1041 = arith.addf %1037, %1040 : vector<8x32xf32>
    %1042 = vector.extract_strided_slice %1035 {offsets = [0, 96], sizes = [8, 32], strides = [1, 1]} : vector<8x128xf32> to vector<8x32xf32>
    %1043 = math.tanh %1041 : vector<8x32xf32>
    %1044 = arith.mulf %1042, %1043 : vector<8x32xf32>
    %cst_261 = arith.constant dense<0.000000e+00> : vector<8x128xf32>
    %1045 = tpu.matmul %1007, %9, %cst_261 {dimension_numbers = #tpu.dot_dimension_numbers<[1], [0], [0], [1], [0, 0, 1, 1], [], []>} : vector<8x32xf32>, vector<32x128xf32>, vector<8x128xf32> -> vector<8x128xf32>
    %cst_262 = arith.constant dense<0.000000e+00> : vector<8x128xf32>
    %1046 = tpu.matmul %1025, %8, %cst_262 {dimension_numbers = #tpu.dot_dimension_numbers<[1], [0], [0], [1], [0, 0, 1, 1], [], []>} : vector<8x32xf32>, vector<32x128xf32>, vector<8x128xf32> -> vector<8x128xf32>
    %1047 = arith.addf %1045, %1046 : vector<8x128xf32>
    %1048 = arith.addf %1047, %12 : vector<8x128xf32>
    %1049 = math.tanh %1048 : vector<8x128xf32>
    %cst_263 = arith.constant 5.000000e-01 : f32
    %1050 = vector.broadcast %cst_263 : f32 to vector<8x128xf32>
    %1051 = arith.mulf %1050, %1049 : vector<8x128xf32>
    %cst_264 = arith.constant 5.000000e-01 : f32
    %1052 = vector.broadcast %cst_264 : f32 to vector<8x128xf32>
    %1053 = arith.addf %1051, %1052 : vector<8x128xf32>
    %1054 = vector.extract_strided_slice %1053 {offsets = [0, 32], sizes = [8, 32], strides = [1, 1]} : vector<8x128xf32> to vector<8x32xf32>
    %1055 = arith.mulf %1054, %1022 : vector<8x32xf32>
    %1056 = vector.extract_strided_slice %1053 {offsets = [0, 0], sizes = [8, 32], strides = [1, 1]} : vector<8x128xf32> to vector<8x32xf32>
    %1057 = vector.extract_strided_slice %1049 {offsets = [0, 64], sizes = [8, 32], strides = [1, 1]} : vector<8x128xf32> to vector<8x32xf32>
    %1058 = arith.mulf %1056, %1057 : vector<8x32xf32>
    %1059 = arith.addf %1055, %1058 : vector<8x32xf32>
    %1060 = vector.extract_strided_slice %1053 {offsets = [0, 96], sizes = [8, 32], strides = [1, 1]} : vector<8x128xf32> to vector<8x32xf32>
    %1061 = math.tanh %1059 : vector<8x32xf32>
    %1062 = arith.mulf %1060, %1061 : vector<8x32xf32>
    %c240 = arith.constant 240 : index
    %c0_265 = arith.constant 0 : index
    %1063 = vector.load %arg11[%c240, %c0_265] : memref<320x128xf32, #tpu.memory_space<vmem>>, vector<8x128xf32>
    %cst_266 = arith.constant dense<0.000000e+00> : vector<8x128xf32>
    %1064 = tpu.matmul %1044, %7, %cst_266 {dimension_numbers = #tpu.dot_dimension_numbers<[1], [0], [0], [1], [0, 0, 1, 1], [], []>} : vector<8x32xf32>, vector<32x128xf32>, vector<8x128xf32> -> vector<8x128xf32>
    %1065 = arith.addf %1063, %1064 : vector<8x128xf32>
    %1066 = math.tanh %1065 : vector<8x128xf32>
    %cst_267 = arith.constant 5.000000e-01 : f32
    %1067 = vector.broadcast %cst_267 : f32 to vector<8x128xf32>
    %1068 = arith.mulf %1067, %1066 : vector<8x128xf32>
    %cst_268 = arith.constant 5.000000e-01 : f32
    %1069 = vector.broadcast %cst_268 : f32 to vector<8x128xf32>
    %1070 = arith.addf %1068, %1069 : vector<8x128xf32>
    %1071 = vector.extract_strided_slice %1070 {offsets = [0, 32], sizes = [8, 32], strides = [1, 1]} : vector<8x128xf32> to vector<8x32xf32>
    %1072 = arith.mulf %1071, %1041 : vector<8x32xf32>
    %1073 = vector.extract_strided_slice %1070 {offsets = [0, 0], sizes = [8, 32], strides = [1, 1]} : vector<8x128xf32> to vector<8x32xf32>
    %1074 = vector.extract_strided_slice %1066 {offsets = [0, 64], sizes = [8, 32], strides = [1, 1]} : vector<8x128xf32> to vector<8x32xf32>
    %1075 = arith.mulf %1073, %1074 : vector<8x32xf32>
    %1076 = arith.addf %1072, %1075 : vector<8x32xf32>
    %1077 = vector.extract_strided_slice %1070 {offsets = [0, 96], sizes = [8, 32], strides = [1, 1]} : vector<8x128xf32> to vector<8x32xf32>
    %1078 = math.tanh %1076 : vector<8x32xf32>
    %1079 = arith.mulf %1077, %1078 : vector<8x32xf32>
    %cst_269 = arith.constant dense<0.000000e+00> : vector<8x128xf32>
    %1080 = tpu.matmul %1044, %9, %cst_269 {dimension_numbers = #tpu.dot_dimension_numbers<[1], [0], [0], [1], [0, 0, 1, 1], [], []>} : vector<8x32xf32>, vector<32x128xf32>, vector<8x128xf32> -> vector<8x128xf32>
    %cst_270 = arith.constant dense<0.000000e+00> : vector<8x128xf32>
    %1081 = tpu.matmul %1062, %8, %cst_270 {dimension_numbers = #tpu.dot_dimension_numbers<[1], [0], [0], [1], [0, 0, 1, 1], [], []>} : vector<8x32xf32>, vector<32x128xf32>, vector<8x128xf32> -> vector<8x128xf32>
    %1082 = arith.addf %1080, %1081 : vector<8x128xf32>
    %1083 = arith.addf %1082, %12 : vector<8x128xf32>
    %1084 = math.tanh %1083 : vector<8x128xf32>
    %cst_271 = arith.constant 5.000000e-01 : f32
    %1085 = vector.broadcast %cst_271 : f32 to vector<8x128xf32>
    %1086 = arith.mulf %1085, %1084 : vector<8x128xf32>
    %cst_272 = arith.constant 5.000000e-01 : f32
    %1087 = vector.broadcast %cst_272 : f32 to vector<8x128xf32>
    %1088 = arith.addf %1086, %1087 : vector<8x128xf32>
    %1089 = vector.extract_strided_slice %1088 {offsets = [0, 32], sizes = [8, 32], strides = [1, 1]} : vector<8x128xf32> to vector<8x32xf32>
    %1090 = arith.mulf %1089, %1059 : vector<8x32xf32>
    %1091 = vector.extract_strided_slice %1088 {offsets = [0, 0], sizes = [8, 32], strides = [1, 1]} : vector<8x128xf32> to vector<8x32xf32>
    %1092 = vector.extract_strided_slice %1084 {offsets = [0, 64], sizes = [8, 32], strides = [1, 1]} : vector<8x128xf32> to vector<8x32xf32>
    %1093 = arith.mulf %1091, %1092 : vector<8x32xf32>
    %1094 = arith.addf %1090, %1093 : vector<8x32xf32>
    %1095 = vector.extract_strided_slice %1088 {offsets = [0, 96], sizes = [8, 32], strides = [1, 1]} : vector<8x128xf32> to vector<8x32xf32>
    %1096 = math.tanh %1094 : vector<8x32xf32>
    %1097 = arith.mulf %1095, %1096 : vector<8x32xf32>
    %c248 = arith.constant 248 : index
    %c0_273 = arith.constant 0 : index
    %1098 = vector.load %arg11[%c248, %c0_273] : memref<320x128xf32, #tpu.memory_space<vmem>>, vector<8x128xf32>
    %cst_274 = arith.constant dense<0.000000e+00> : vector<8x128xf32>
    %1099 = tpu.matmul %1079, %7, %cst_274 {dimension_numbers = #tpu.dot_dimension_numbers<[1], [0], [0], [1], [0, 0, 1, 1], [], []>} : vector<8x32xf32>, vector<32x128xf32>, vector<8x128xf32> -> vector<8x128xf32>
    %1100 = arith.addf %1098, %1099 : vector<8x128xf32>
    %1101 = math.tanh %1100 : vector<8x128xf32>
    %cst_275 = arith.constant 5.000000e-01 : f32
    %1102 = vector.broadcast %cst_275 : f32 to vector<8x128xf32>
    %1103 = arith.mulf %1102, %1101 : vector<8x128xf32>
    %cst_276 = arith.constant 5.000000e-01 : f32
    %1104 = vector.broadcast %cst_276 : f32 to vector<8x128xf32>
    %1105 = arith.addf %1103, %1104 : vector<8x128xf32>
    %1106 = vector.extract_strided_slice %1105 {offsets = [0, 32], sizes = [8, 32], strides = [1, 1]} : vector<8x128xf32> to vector<8x32xf32>
    %1107 = arith.mulf %1106, %1076 : vector<8x32xf32>
    %1108 = vector.extract_strided_slice %1105 {offsets = [0, 0], sizes = [8, 32], strides = [1, 1]} : vector<8x128xf32> to vector<8x32xf32>
    %1109 = vector.extract_strided_slice %1101 {offsets = [0, 64], sizes = [8, 32], strides = [1, 1]} : vector<8x128xf32> to vector<8x32xf32>
    %1110 = arith.mulf %1108, %1109 : vector<8x32xf32>
    %1111 = arith.addf %1107, %1110 : vector<8x32xf32>
    %1112 = vector.extract_strided_slice %1105 {offsets = [0, 96], sizes = [8, 32], strides = [1, 1]} : vector<8x128xf32> to vector<8x32xf32>
    %1113 = math.tanh %1111 : vector<8x32xf32>
    %1114 = arith.mulf %1112, %1113 : vector<8x32xf32>
    %cst_277 = arith.constant dense<0.000000e+00> : vector<8x128xf32>
    %1115 = tpu.matmul %1079, %9, %cst_277 {dimension_numbers = #tpu.dot_dimension_numbers<[1], [0], [0], [1], [0, 0, 1, 1], [], []>} : vector<8x32xf32>, vector<32x128xf32>, vector<8x128xf32> -> vector<8x128xf32>
    %cst_278 = arith.constant dense<0.000000e+00> : vector<8x128xf32>
    %1116 = tpu.matmul %1097, %8, %cst_278 {dimension_numbers = #tpu.dot_dimension_numbers<[1], [0], [0], [1], [0, 0, 1, 1], [], []>} : vector<8x32xf32>, vector<32x128xf32>, vector<8x128xf32> -> vector<8x128xf32>
    %1117 = arith.addf %1115, %1116 : vector<8x128xf32>
    %1118 = arith.addf %1117, %12 : vector<8x128xf32>
    %1119 = math.tanh %1118 : vector<8x128xf32>
    %cst_279 = arith.constant 5.000000e-01 : f32
    %1120 = vector.broadcast %cst_279 : f32 to vector<8x128xf32>
    %1121 = arith.mulf %1120, %1119 : vector<8x128xf32>
    %cst_280 = arith.constant 5.000000e-01 : f32
    %1122 = vector.broadcast %cst_280 : f32 to vector<8x128xf32>
    %1123 = arith.addf %1121, %1122 : vector<8x128xf32>
    %1124 = vector.extract_strided_slice %1123 {offsets = [0, 32], sizes = [8, 32], strides = [1, 1]} : vector<8x128xf32> to vector<8x32xf32>
    %1125 = arith.mulf %1124, %1094 : vector<8x32xf32>
    %1126 = vector.extract_strided_slice %1123 {offsets = [0, 0], sizes = [8, 32], strides = [1, 1]} : vector<8x128xf32> to vector<8x32xf32>
    %1127 = vector.extract_strided_slice %1119 {offsets = [0, 64], sizes = [8, 32], strides = [1, 1]} : vector<8x128xf32> to vector<8x32xf32>
    %1128 = arith.mulf %1126, %1127 : vector<8x32xf32>
    %1129 = arith.addf %1125, %1128 : vector<8x32xf32>
    %1130 = vector.extract_strided_slice %1123 {offsets = [0, 96], sizes = [8, 32], strides = [1, 1]} : vector<8x128xf32> to vector<8x32xf32>
    %1131 = math.tanh %1129 : vector<8x32xf32>
    %1132 = arith.mulf %1130, %1131 : vector<8x32xf32>
    %c256_281 = arith.constant 256 : index
    %c0_282 = arith.constant 0 : index
    %1133 = vector.load %arg11[%c256_281, %c0_282] : memref<320x128xf32, #tpu.memory_space<vmem>>, vector<8x128xf32>
    %cst_283 = arith.constant dense<0.000000e+00> : vector<8x128xf32>
    %1134 = tpu.matmul %1114, %7, %cst_283 {dimension_numbers = #tpu.dot_dimension_numbers<[1], [0], [0], [1], [0, 0, 1, 1], [], []>} : vector<8x32xf32>, vector<32x128xf32>, vector<8x128xf32> -> vector<8x128xf32>
    %1135 = arith.addf %1133, %1134 : vector<8x128xf32>
    %1136 = math.tanh %1135 : vector<8x128xf32>
    %cst_284 = arith.constant 5.000000e-01 : f32
    %1137 = vector.broadcast %cst_284 : f32 to vector<8x128xf32>
    %1138 = arith.mulf %1137, %1136 : vector<8x128xf32>
    %cst_285 = arith.constant 5.000000e-01 : f32
    %1139 = vector.broadcast %cst_285 : f32 to vector<8x128xf32>
    %1140 = arith.addf %1138, %1139 : vector<8x128xf32>
    %1141 = vector.extract_strided_slice %1140 {offsets = [0, 32], sizes = [8, 32], strides = [1, 1]} : vector<8x128xf32> to vector<8x32xf32>
    %1142 = arith.mulf %1141, %1111 : vector<8x32xf32>
    %1143 = vector.extract_strided_slice %1140 {offsets = [0, 0], sizes = [8, 32], strides = [1, 1]} : vector<8x128xf32> to vector<8x32xf32>
    %1144 = vector.extract_strided_slice %1136 {offsets = [0, 64], sizes = [8, 32], strides = [1, 1]} : vector<8x128xf32> to vector<8x32xf32>
    %1145 = arith.mulf %1143, %1144 : vector<8x32xf32>
    %1146 = arith.addf %1142, %1145 : vector<8x32xf32>
    %1147 = vector.extract_strided_slice %1140 {offsets = [0, 96], sizes = [8, 32], strides = [1, 1]} : vector<8x128xf32> to vector<8x32xf32>
    %1148 = math.tanh %1146 : vector<8x32xf32>
    %1149 = arith.mulf %1147, %1148 : vector<8x32xf32>
    %cst_286 = arith.constant dense<0.000000e+00> : vector<8x128xf32>
    %1150 = tpu.matmul %1114, %9, %cst_286 {dimension_numbers = #tpu.dot_dimension_numbers<[1], [0], [0], [1], [0, 0, 1, 1], [], []>} : vector<8x32xf32>, vector<32x128xf32>, vector<8x128xf32> -> vector<8x128xf32>
    %cst_287 = arith.constant dense<0.000000e+00> : vector<8x128xf32>
    %1151 = tpu.matmul %1132, %8, %cst_287 {dimension_numbers = #tpu.dot_dimension_numbers<[1], [0], [0], [1], [0, 0, 1, 1], [], []>} : vector<8x32xf32>, vector<32x128xf32>, vector<8x128xf32> -> vector<8x128xf32>
    %1152 = arith.addf %1150, %1151 : vector<8x128xf32>
    %1153 = arith.addf %1152, %12 : vector<8x128xf32>
    %1154 = math.tanh %1153 : vector<8x128xf32>
    %cst_288 = arith.constant 5.000000e-01 : f32
    %1155 = vector.broadcast %cst_288 : f32 to vector<8x128xf32>
    %1156 = arith.mulf %1155, %1154 : vector<8x128xf32>
    %cst_289 = arith.constant 5.000000e-01 : f32
    %1157 = vector.broadcast %cst_289 : f32 to vector<8x128xf32>
    %1158 = arith.addf %1156, %1157 : vector<8x128xf32>
    %1159 = vector.extract_strided_slice %1158 {offsets = [0, 32], sizes = [8, 32], strides = [1, 1]} : vector<8x128xf32> to vector<8x32xf32>
    %1160 = arith.mulf %1159, %1129 : vector<8x32xf32>
    %1161 = vector.extract_strided_slice %1158 {offsets = [0, 0], sizes = [8, 32], strides = [1, 1]} : vector<8x128xf32> to vector<8x32xf32>
    %1162 = vector.extract_strided_slice %1154 {offsets = [0, 64], sizes = [8, 32], strides = [1, 1]} : vector<8x128xf32> to vector<8x32xf32>
    %1163 = arith.mulf %1161, %1162 : vector<8x32xf32>
    %1164 = arith.addf %1160, %1163 : vector<8x32xf32>
    %1165 = vector.extract_strided_slice %1158 {offsets = [0, 96], sizes = [8, 32], strides = [1, 1]} : vector<8x128xf32> to vector<8x32xf32>
    %1166 = math.tanh %1164 : vector<8x32xf32>
    %1167 = arith.mulf %1165, %1166 : vector<8x32xf32>
    %1168 = tpu.concatenate %1062, %1097, %1132, %1167 in 1 : vector<8x32xf32>, vector<8x32xf32>, vector<8x32xf32>, vector<8x32xf32> -> vector<8x128xf32>
    %c0_290 = arith.constant 0 : index
    %c896 = arith.constant 896 : index
    %1169 = vector.load %arg12[%c0_290, %c896] : memref<8x1280xf32, #tpu.memory_space<vmem>>, vector<8x128xf32>
    tpu.vector_store %arg12[%c0_290, %c896], %1168 {strides = array<i32>} : memref<8x1280xf32, #tpu.memory_space<vmem>>, vector<8x128xf32>,
    %c264 = arith.constant 264 : index
    %c0_291 = arith.constant 0 : index
    %1170 = vector.load %arg11[%c264, %c0_291] : memref<320x128xf32, #tpu.memory_space<vmem>>, vector<8x128xf32>
    %cst_292 = arith.constant dense<0.000000e+00> : vector<8x128xf32>
    %1171 = tpu.matmul %1149, %7, %cst_292 {dimension_numbers = #tpu.dot_dimension_numbers<[1], [0], [0], [1], [0, 0, 1, 1], [], []>} : vector<8x32xf32>, vector<32x128xf32>, vector<8x128xf32> -> vector<8x128xf32>
    %1172 = arith.addf %1170, %1171 : vector<8x128xf32>
    %1173 = math.tanh %1172 : vector<8x128xf32>
    %cst_293 = arith.constant 5.000000e-01 : f32
    %1174 = vector.broadcast %cst_293 : f32 to vector<8x128xf32>
    %1175 = arith.mulf %1174, %1173 : vector<8x128xf32>
    %cst_294 = arith.constant 5.000000e-01 : f32
    %1176 = vector.broadcast %cst_294 : f32 to vector<8x128xf32>
    %1177 = arith.addf %1175, %1176 : vector<8x128xf32>
    %1178 = vector.extract_strided_slice %1177 {offsets = [0, 32], sizes = [8, 32], strides = [1, 1]} : vector<8x128xf32> to vector<8x32xf32>
    %1179 = arith.mulf %1178, %1146 : vector<8x32xf32>
    %1180 = vector.extract_strided_slice %1177 {offsets = [0, 0], sizes = [8, 32], strides = [1, 1]} : vector<8x128xf32> to vector<8x32xf32>
    %1181 = vector.extract_strided_slice %1173 {offsets = [0, 64], sizes = [8, 32], strides = [1, 1]} : vector<8x128xf32> to vector<8x32xf32>
    %1182 = arith.mulf %1180, %1181 : vector<8x32xf32>
    %1183 = arith.addf %1179, %1182 : vector<8x32xf32>
    %1184 = vector.extract_strided_slice %1177 {offsets = [0, 96], sizes = [8, 32], strides = [1, 1]} : vector<8x128xf32> to vector<8x32xf32>
    %1185 = math.tanh %1183 : vector<8x32xf32>
    %1186 = arith.mulf %1184, %1185 : vector<8x32xf32>
    %cst_295 = arith.constant dense<0.000000e+00> : vector<8x128xf32>
    %1187 = tpu.matmul %1149, %9, %cst_295 {dimension_numbers = #tpu.dot_dimension_numbers<[1], [0], [0], [1], [0, 0, 1, 1], [], []>} : vector<8x32xf32>, vector<32x128xf32>, vector<8x128xf32> -> vector<8x128xf32>
    %cst_296 = arith.constant dense<0.000000e+00> : vector<8x128xf32>
    %1188 = tpu.matmul %1167, %8, %cst_296 {dimension_numbers = #tpu.dot_dimension_numbers<[1], [0], [0], [1], [0, 0, 1, 1], [], []>} : vector<8x32xf32>, vector<32x128xf32>, vector<8x128xf32> -> vector<8x128xf32>
    %1189 = arith.addf %1187, %1188 : vector<8x128xf32>
    %1190 = arith.addf %1189, %12 : vector<8x128xf32>
    %1191 = math.tanh %1190 : vector<8x128xf32>
    %cst_297 = arith.constant 5.000000e-01 : f32
    %1192 = vector.broadcast %cst_297 : f32 to vector<8x128xf32>
    %1193 = arith.mulf %1192, %1191 : vector<8x128xf32>
    %cst_298 = arith.constant 5.000000e-01 : f32
    %1194 = vector.broadcast %cst_298 : f32 to vector<8x128xf32>
    %1195 = arith.addf %1193, %1194 : vector<8x128xf32>
    %1196 = vector.extract_strided_slice %1195 {offsets = [0, 32], sizes = [8, 32], strides = [1, 1]} : vector<8x128xf32> to vector<8x32xf32>
    %1197 = arith.mulf %1196, %1164 : vector<8x32xf32>
    %1198 = vector.extract_strided_slice %1195 {offsets = [0, 0], sizes = [8, 32], strides = [1, 1]} : vector<8x128xf32> to vector<8x32xf32>
    %1199 = vector.extract_strided_slice %1191 {offsets = [0, 64], sizes = [8, 32], strides = [1, 1]} : vector<8x128xf32> to vector<8x32xf32>
    %1200 = arith.mulf %1198, %1199 : vector<8x32xf32>
    %1201 = arith.addf %1197, %1200 : vector<8x32xf32>
    %1202 = vector.extract_strided_slice %1195 {offsets = [0, 96], sizes = [8, 32], strides = [1, 1]} : vector<8x128xf32> to vector<8x32xf32>
    %1203 = math.tanh %1201 : vector<8x32xf32>
    %1204 = arith.mulf %1202, %1203 : vector<8x32xf32>
    %c272 = arith.constant 272 : index
    %c0_299 = arith.constant 0 : index
    %1205 = vector.load %arg11[%c272, %c0_299] : memref<320x128xf32, #tpu.memory_space<vmem>>, vector<8x128xf32>
    %cst_300 = arith.constant dense<0.000000e+00> : vector<8x128xf32>
    %1206 = tpu.matmul %1186, %7, %cst_300 {dimension_numbers = #tpu.dot_dimension_numbers<[1], [0], [0], [1], [0, 0, 1, 1], [], []>} : vector<8x32xf32>, vector<32x128xf32>, vector<8x128xf32> -> vector<8x128xf32>
    %1207 = arith.addf %1205, %1206 : vector<8x128xf32>
    %1208 = math.tanh %1207 : vector<8x128xf32>
    %cst_301 = arith.constant 5.000000e-01 : f32
    %1209 = vector.broadcast %cst_301 : f32 to vector<8x128xf32>
    %1210 = arith.mulf %1209, %1208 : vector<8x128xf32>
    %cst_302 = arith.constant 5.000000e-01 : f32
    %1211 = vector.broadcast %cst_302 : f32 to vector<8x128xf32>
    %1212 = arith.addf %1210, %1211 : vector<8x128xf32>
    %1213 = vector.extract_strided_slice %1212 {offsets = [0, 32], sizes = [8, 32], strides = [1, 1]} : vector<8x128xf32> to vector<8x32xf32>
    %1214 = arith.mulf %1213, %1183 : vector<8x32xf32>
    %1215 = vector.extract_strided_slice %1212 {offsets = [0, 0], sizes = [8, 32], strides = [1, 1]} : vector<8x128xf32> to vector<8x32xf32>
    %1216 = vector.extract_strided_slice %1208 {offsets = [0, 64], sizes = [8, 32], strides = [1, 1]} : vector<8x128xf32> to vector<8x32xf32>
    %1217 = arith.mulf %1215, %1216 : vector<8x32xf32>
    %1218 = arith.addf %1214, %1217 : vector<8x32xf32>
    %1219 = vector.extract_strided_slice %1212 {offsets = [0, 96], sizes = [8, 32], strides = [1, 1]} : vector<8x128xf32> to vector<8x32xf32>
    %1220 = math.tanh %1218 : vector<8x32xf32>
    %1221 = arith.mulf %1219, %1220 : vector<8x32xf32>
    %cst_303 = arith.constant dense<0.000000e+00> : vector<8x128xf32>
    %1222 = tpu.matmul %1186, %9, %cst_303 {dimension_numbers = #tpu.dot_dimension_numbers<[1], [0], [0], [1], [0, 0, 1, 1], [], []>} : vector<8x32xf32>, vector<32x128xf32>, vector<8x128xf32> -> vector<8x128xf32>
    %cst_304 = arith.constant dense<0.000000e+00> : vector<8x128xf32>
    %1223 = tpu.matmul %1204, %8, %cst_304 {dimension_numbers = #tpu.dot_dimension_numbers<[1], [0], [0], [1], [0, 0, 1, 1], [], []>} : vector<8x32xf32>, vector<32x128xf32>, vector<8x128xf32> -> vector<8x128xf32>
    %1224 = arith.addf %1222, %1223 : vector<8x128xf32>
    %1225 = arith.addf %1224, %12 : vector<8x128xf32>
    %1226 = math.tanh %1225 : vector<8x128xf32>
    %cst_305 = arith.constant 5.000000e-01 : f32
    %1227 = vector.broadcast %cst_305 : f32 to vector<8x128xf32>
    %1228 = arith.mulf %1227, %1226 : vector<8x128xf32>
    %cst_306 = arith.constant 5.000000e-01 : f32
    %1229 = vector.broadcast %cst_306 : f32 to vector<8x128xf32>
    %1230 = arith.addf %1228, %1229 : vector<8x128xf32>
    %1231 = vector.extract_strided_slice %1230 {offsets = [0, 32], sizes = [8, 32], strides = [1, 1]} : vector<8x128xf32> to vector<8x32xf32>
    %1232 = arith.mulf %1231, %1201 : vector<8x32xf32>
    %1233 = vector.extract_strided_slice %1230 {offsets = [0, 0], sizes = [8, 32], strides = [1, 1]} : vector<8x128xf32> to vector<8x32xf32>
    %1234 = vector.extract_strided_slice %1226 {offsets = [0, 64], sizes = [8, 32], strides = [1, 1]} : vector<8x128xf32> to vector<8x32xf32>
    %1235 = arith.mulf %1233, %1234 : vector<8x32xf32>
    %1236 = arith.addf %1232, %1235 : vector<8x32xf32>
    %1237 = vector.extract_strided_slice %1230 {offsets = [0, 96], sizes = [8, 32], strides = [1, 1]} : vector<8x128xf32> to vector<8x32xf32>
    %1238 = math.tanh %1236 : vector<8x32xf32>
    %1239 = arith.mulf %1237, %1238 : vector<8x32xf32>
    %c280 = arith.constant 280 : index
    %c0_307 = arith.constant 0 : index
    %1240 = vector.load %arg11[%c280, %c0_307] : memref<320x128xf32, #tpu.memory_space<vmem>>, vector<8x128xf32>
    %cst_308 = arith.constant dense<0.000000e+00> : vector<8x128xf32>
    %1241 = tpu.matmul %1221, %7, %cst_308 {dimension_numbers = #tpu.dot_dimension_numbers<[1], [0], [0], [1], [0, 0, 1, 1], [], []>} : vector<8x32xf32>, vector<32x128xf32>, vector<8x128xf32> -> vector<8x128xf32>
    %1242 = arith.addf %1240, %1241 : vector<8x128xf32>
    %1243 = math.tanh %1242 : vector<8x128xf32>
    %cst_309 = arith.constant 5.000000e-01 : f32
    %1244 = vector.broadcast %cst_309 : f32 to vector<8x128xf32>
    %1245 = arith.mulf %1244, %1243 : vector<8x128xf32>
    %cst_310 = arith.constant 5.000000e-01 : f32
    %1246 = vector.broadcast %cst_310 : f32 to vector<8x128xf32>
    %1247 = arith.addf %1245, %1246 : vector<8x128xf32>
    %1248 = vector.extract_strided_slice %1247 {offsets = [0, 32], sizes = [8, 32], strides = [1, 1]} : vector<8x128xf32> to vector<8x32xf32>
    %1249 = arith.mulf %1248, %1218 : vector<8x32xf32>
    %1250 = vector.extract_strided_slice %1247 {offsets = [0, 0], sizes = [8, 32], strides = [1, 1]} : vector<8x128xf32> to vector<8x32xf32>
    %1251 = vector.extract_strided_slice %1243 {offsets = [0, 64], sizes = [8, 32], strides = [1, 1]} : vector<8x128xf32> to vector<8x32xf32>
    %1252 = arith.mulf %1250, %1251 : vector<8x32xf32>
    %1253 = arith.addf %1249, %1252 : vector<8x32xf32>
    %1254 = vector.extract_strided_slice %1247 {offsets = [0, 96], sizes = [8, 32], strides = [1, 1]} : vector<8x128xf32> to vector<8x32xf32>
    %1255 = math.tanh %1253 : vector<8x32xf32>
    %1256 = arith.mulf %1254, %1255 : vector<8x32xf32>
    %cst_311 = arith.constant dense<0.000000e+00> : vector<8x128xf32>
    %1257 = tpu.matmul %1221, %9, %cst_311 {dimension_numbers = #tpu.dot_dimension_numbers<[1], [0], [0], [1], [0, 0, 1, 1], [], []>} : vector<8x32xf32>, vector<32x128xf32>, vector<8x128xf32> -> vector<8x128xf32>
    %cst_312 = arith.constant dense<0.000000e+00> : vector<8x128xf32>
    %1258 = tpu.matmul %1239, %8, %cst_312 {dimension_numbers = #tpu.dot_dimension_numbers<[1], [0], [0], [1], [0, 0, 1, 1], [], []>} : vector<8x32xf32>, vector<32x128xf32>, vector<8x128xf32> -> vector<8x128xf32>
    %1259 = arith.addf %1257, %1258 : vector<8x128xf32>
    %1260 = arith.addf %1259, %12 : vector<8x128xf32>
    %1261 = math.tanh %1260 : vector<8x128xf32>
    %cst_313 = arith.constant 5.000000e-01 : f32
    %1262 = vector.broadcast %cst_313 : f32 to vector<8x128xf32>
    %1263 = arith.mulf %1262, %1261 : vector<8x128xf32>
    %cst_314 = arith.constant 5.000000e-01 : f32
    %1264 = vector.broadcast %cst_314 : f32 to vector<8x128xf32>
    %1265 = arith.addf %1263, %1264 : vector<8x128xf32>
    %1266 = vector.extract_strided_slice %1265 {offsets = [0, 32], sizes = [8, 32], strides = [1, 1]} : vector<8x128xf32> to vector<8x32xf32>
    %1267 = arith.mulf %1266, %1236 : vector<8x32xf32>
    %1268 = vector.extract_strided_slice %1265 {offsets = [0, 0], sizes = [8, 32], strides = [1, 1]} : vector<8x128xf32> to vector<8x32xf32>
    %1269 = vector.extract_strided_slice %1261 {offsets = [0, 64], sizes = [8, 32], strides = [1, 1]} : vector<8x128xf32> to vector<8x32xf32>
    %1270 = arith.mulf %1268, %1269 : vector<8x32xf32>
    %1271 = arith.addf %1267, %1270 : vector<8x32xf32>
    %1272 = vector.extract_strided_slice %1265 {offsets = [0, 96], sizes = [8, 32], strides = [1, 1]} : vector<8x128xf32> to vector<8x32xf32>
    %1273 = math.tanh %1271 : vector<8x32xf32>
    %1274 = arith.mulf %1272, %1273 : vector<8x32xf32>
    %c288 = arith.constant 288 : index
    %c0_315 = arith.constant 0 : index
    %1275 = vector.load %arg11[%c288, %c0_315] : memref<320x128xf32, #tpu.memory_space<vmem>>, vector<8x128xf32>
    %cst_316 = arith.constant dense<0.000000e+00> : vector<8x128xf32>
    %1276 = tpu.matmul %1256, %7, %cst_316 {dimension_numbers = #tpu.dot_dimension_numbers<[1], [0], [0], [1], [0, 0, 1, 1], [], []>} : vector<8x32xf32>, vector<32x128xf32>, vector<8x128xf32> -> vector<8x128xf32>
    %1277 = arith.addf %1275, %1276 : vector<8x128xf32>
    %1278 = math.tanh %1277 : vector<8x128xf32>
    %cst_317 = arith.constant 5.000000e-01 : f32
    %1279 = vector.broadcast %cst_317 : f32 to vector<8x128xf32>
    %1280 = arith.mulf %1279, %1278 : vector<8x128xf32>
    %cst_318 = arith.constant 5.000000e-01 : f32
    %1281 = vector.broadcast %cst_318 : f32 to vector<8x128xf32>
    %1282 = arith.addf %1280, %1281 : vector<8x128xf32>
    %1283 = vector.extract_strided_slice %1282 {offsets = [0, 32], sizes = [8, 32], strides = [1, 1]} : vector<8x128xf32> to vector<8x32xf32>
    %1284 = arith.mulf %1283, %1253 : vector<8x32xf32>
    %1285 = vector.extract_strided_slice %1282 {offsets = [0, 0], sizes = [8, 32], strides = [1, 1]} : vector<8x128xf32> to vector<8x32xf32>
    %1286 = vector.extract_strided_slice %1278 {offsets = [0, 64], sizes = [8, 32], strides = [1, 1]} : vector<8x128xf32> to vector<8x32xf32>
    %1287 = arith.mulf %1285, %1286 : vector<8x32xf32>
    %1288 = arith.addf %1284, %1287 : vector<8x32xf32>
    %1289 = vector.extract_strided_slice %1282 {offsets = [0, 96], sizes = [8, 32], strides = [1, 1]} : vector<8x128xf32> to vector<8x32xf32>
    %1290 = math.tanh %1288 : vector<8x32xf32>
    %1291 = arith.mulf %1289, %1290 : vector<8x32xf32>
    %cst_319 = arith.constant dense<0.000000e+00> : vector<8x128xf32>
    %1292 = tpu.matmul %1256, %9, %cst_319 {dimension_numbers = #tpu.dot_dimension_numbers<[1], [0], [0], [1], [0, 0, 1, 1], [], []>} : vector<8x32xf32>, vector<32x128xf32>, vector<8x128xf32> -> vector<8x128xf32>
    %cst_320 = arith.constant dense<0.000000e+00> : vector<8x128xf32>
    %1293 = tpu.matmul %1274, %8, %cst_320 {dimension_numbers = #tpu.dot_dimension_numbers<[1], [0], [0], [1], [0, 0, 1, 1], [], []>} : vector<8x32xf32>, vector<32x128xf32>, vector<8x128xf32> -> vector<8x128xf32>
    %1294 = arith.addf %1292, %1293 : vector<8x128xf32>
    %1295 = arith.addf %1294, %12 : vector<8x128xf32>
    %1296 = math.tanh %1295 : vector<8x128xf32>
    %cst_321 = arith.constant 5.000000e-01 : f32
    %1297 = vector.broadcast %cst_321 : f32 to vector<8x128xf32>
    %1298 = arith.mulf %1297, %1296 : vector<8x128xf32>
    %cst_322 = arith.constant 5.000000e-01 : f32
    %1299 = vector.broadcast %cst_322 : f32 to vector<8x128xf32>
    %1300 = arith.addf %1298, %1299 : vector<8x128xf32>
    %1301 = vector.extract_strided_slice %1300 {offsets = [0, 32], sizes = [8, 32], strides = [1, 1]} : vector<8x128xf32> to vector<8x32xf32>
    %1302 = arith.mulf %1301, %1271 : vector<8x32xf32>
    %1303 = vector.extract_strided_slice %1300 {offsets = [0, 0], sizes = [8, 32], strides = [1, 1]} : vector<8x128xf32> to vector<8x32xf32>
    %1304 = vector.extract_strided_slice %1296 {offsets = [0, 64], sizes = [8, 32], strides = [1, 1]} : vector<8x128xf32> to vector<8x32xf32>
    %1305 = arith.mulf %1303, %1304 : vector<8x32xf32>
    %1306 = arith.addf %1302, %1305 : vector<8x32xf32>
    %1307 = vector.extract_strided_slice %1300 {offsets = [0, 96], sizes = [8, 32], strides = [1, 1]} : vector<8x128xf32> to vector<8x32xf32>
    %1308 = math.tanh %1306 : vector<8x32xf32>
    %1309 = arith.mulf %1307, %1308 : vector<8x32xf32>
    %1310 = tpu.concatenate %1204, %1239, %1274, %1309 in 1 : vector<8x32xf32>, vector<8x32xf32>, vector<8x32xf32>, vector<8x32xf32> -> vector<8x128xf32>
    %c0_323 = arith.constant 0 : index
    %c1024 = arith.constant 1024 : index
    %1311 = vector.load %arg12[%c0_323, %c1024] : memref<8x1280xf32, #tpu.memory_space<vmem>>, vector<8x128xf32>
    tpu.vector_store %arg12[%c0_323, %c1024], %1310 {strides = array<i32>} : memref<8x1280xf32, #tpu.memory_space<vmem>>, vector<8x128xf32>,
    %c296 = arith.constant 296 : index
    %c0_324 = arith.constant 0 : index
    %1312 = vector.load %arg11[%c296, %c0_324] : memref<320x128xf32, #tpu.memory_space<vmem>>, vector<8x128xf32>
    %cst_325 = arith.constant dense<0.000000e+00> : vector<8x128xf32>
    %1313 = tpu.matmul %1291, %7, %cst_325 {dimension_numbers = #tpu.dot_dimension_numbers<[1], [0], [0], [1], [0, 0, 1, 1], [], []>} : vector<8x32xf32>, vector<32x128xf32>, vector<8x128xf32> -> vector<8x128xf32>
    %1314 = arith.addf %1312, %1313 : vector<8x128xf32>
    %1315 = math.tanh %1314 : vector<8x128xf32>
    %cst_326 = arith.constant 5.000000e-01 : f32
    %1316 = vector.broadcast %cst_326 : f32 to vector<8x128xf32>
    %1317 = arith.mulf %1316, %1315 : vector<8x128xf32>
    %cst_327 = arith.constant 5.000000e-01 : f32
    %1318 = vector.broadcast %cst_327 : f32 to vector<8x128xf32>
    %1319 = arith.addf %1317, %1318 : vector<8x128xf32>
    %1320 = vector.extract_strided_slice %1319 {offsets = [0, 32], sizes = [8, 32], strides = [1, 1]} : vector<8x128xf32> to vector<8x32xf32>
    %1321 = arith.mulf %1320, %1288 : vector<8x32xf32>
    %1322 = vector.extract_strided_slice %1319 {offsets = [0, 0], sizes = [8, 32], strides = [1, 1]} : vector<8x128xf32> to vector<8x32xf32>
    %1323 = vector.extract_strided_slice %1315 {offsets = [0, 64], sizes = [8, 32], strides = [1, 1]} : vector<8x128xf32> to vector<8x32xf32>
    %1324 = arith.mulf %1322, %1323 : vector<8x32xf32>
    %1325 = arith.addf %1321, %1324 : vector<8x32xf32>
    %1326 = vector.extract_strided_slice %1319 {offsets = [0, 96], sizes = [8, 32], strides = [1, 1]} : vector<8x128xf32> to vector<8x32xf32>
    %1327 = math.tanh %1325 : vector<8x32xf32>
    %1328 = arith.mulf %1326, %1327 : vector<8x32xf32>
    %cst_328 = arith.constant dense<0.000000e+00> : vector<8x128xf32>
    %1329 = tpu.matmul %1291, %9, %cst_328 {dimension_numbers = #tpu.dot_dimension_numbers<[1], [0], [0], [1], [0, 0, 1, 1], [], []>} : vector<8x32xf32>, vector<32x128xf32>, vector<8x128xf32> -> vector<8x128xf32>
    %cst_329 = arith.constant dense<0.000000e+00> : vector<8x128xf32>
    %1330 = tpu.matmul %1309, %8, %cst_329 {dimension_numbers = #tpu.dot_dimension_numbers<[1], [0], [0], [1], [0, 0, 1, 1], [], []>} : vector<8x32xf32>, vector<32x128xf32>, vector<8x128xf32> -> vector<8x128xf32>
    %1331 = arith.addf %1329, %1330 : vector<8x128xf32>
    %1332 = arith.addf %1331, %12 : vector<8x128xf32>
    %1333 = math.tanh %1332 : vector<8x128xf32>
    %cst_330 = arith.constant 5.000000e-01 : f32
    %1334 = vector.broadcast %cst_330 : f32 to vector<8x128xf32>
    %1335 = arith.mulf %1334, %1333 : vector<8x128xf32>
    %cst_331 = arith.constant 5.000000e-01 : f32
    %1336 = vector.broadcast %cst_331 : f32 to vector<8x128xf32>
    %1337 = arith.addf %1335, %1336 : vector<8x128xf32>
    %1338 = vector.extract_strided_slice %1337 {offsets = [0, 32], sizes = [8, 32], strides = [1, 1]} : vector<8x128xf32> to vector<8x32xf32>
    %1339 = arith.mulf %1338, %1306 : vector<8x32xf32>
    %1340 = vector.extract_strided_slice %1337 {offsets = [0, 0], sizes = [8, 32], strides = [1, 1]} : vector<8x128xf32> to vector<8x32xf32>
    %1341 = vector.extract_strided_slice %1333 {offsets = [0, 64], sizes = [8, 32], strides = [1, 1]} : vector<8x128xf32> to vector<8x32xf32>
    %1342 = arith.mulf %1340, %1341 : vector<8x32xf32>
    %1343 = arith.addf %1339, %1342 : vector<8x32xf32>
    %1344 = vector.extract_strided_slice %1337 {offsets = [0, 96], sizes = [8, 32], strides = [1, 1]} : vector<8x128xf32> to vector<8x32xf32>
    %1345 = math.tanh %1343 : vector<8x32xf32>
    %1346 = arith.mulf %1344, %1345 : vector<8x32xf32>
    %c304 = arith.constant 304 : index
    %c0_332 = arith.constant 0 : index
    %1347 = vector.load %arg11[%c304, %c0_332] : memref<320x128xf32, #tpu.memory_space<vmem>>, vector<8x128xf32>
    %cst_333 = arith.constant dense<0.000000e+00> : vector<8x128xf32>
    %1348 = tpu.matmul %1328, %7, %cst_333 {dimension_numbers = #tpu.dot_dimension_numbers<[1], [0], [0], [1], [0, 0, 1, 1], [], []>} : vector<8x32xf32>, vector<32x128xf32>, vector<8x128xf32> -> vector<8x128xf32>
    %1349 = arith.addf %1347, %1348 : vector<8x128xf32>
    %1350 = math.tanh %1349 : vector<8x128xf32>
    %cst_334 = arith.constant 5.000000e-01 : f32
    %1351 = vector.broadcast %cst_334 : f32 to vector<8x128xf32>
    %1352 = arith.mulf %1351, %1350 : vector<8x128xf32>
    %cst_335 = arith.constant 5.000000e-01 : f32
    %1353 = vector.broadcast %cst_335 : f32 to vector<8x128xf32>
    %1354 = arith.addf %1352, %1353 : vector<8x128xf32>
    %1355 = vector.extract_strided_slice %1354 {offsets = [0, 32], sizes = [8, 32], strides = [1, 1]} : vector<8x128xf32> to vector<8x32xf32>
    %1356 = arith.mulf %1355, %1325 : vector<8x32xf32>
    %1357 = vector.extract_strided_slice %1354 {offsets = [0, 0], sizes = [8, 32], strides = [1, 1]} : vector<8x128xf32> to vector<8x32xf32>
    %1358 = vector.extract_strided_slice %1350 {offsets = [0, 64], sizes = [8, 32], strides = [1, 1]} : vector<8x128xf32> to vector<8x32xf32>
    %1359 = arith.mulf %1357, %1358 : vector<8x32xf32>
    %1360 = arith.addf %1356, %1359 : vector<8x32xf32>
    %1361 = vector.extract_strided_slice %1354 {offsets = [0, 96], sizes = [8, 32], strides = [1, 1]} : vector<8x128xf32> to vector<8x32xf32>
    %1362 = math.tanh %1360 : vector<8x32xf32>
    %1363 = arith.mulf %1361, %1362 : vector<8x32xf32>
    %cst_336 = arith.constant dense<0.000000e+00> : vector<8x128xf32>
    %1364 = tpu.matmul %1328, %9, %cst_336 {dimension_numbers = #tpu.dot_dimension_numbers<[1], [0], [0], [1], [0, 0, 1, 1], [], []>} : vector<8x32xf32>, vector<32x128xf32>, vector<8x128xf32> -> vector<8x128xf32>
    %cst_337 = arith.constant dense<0.000000e+00> : vector<8x128xf32>
    %1365 = tpu.matmul %1346, %8, %cst_337 {dimension_numbers = #tpu.dot_dimension_numbers<[1], [0], [0], [1], [0, 0, 1, 1], [], []>} : vector<8x32xf32>, vector<32x128xf32>, vector<8x128xf32> -> vector<8x128xf32>
    %1366 = arith.addf %1364, %1365 : vector<8x128xf32>
    %1367 = arith.addf %1366, %12 : vector<8x128xf32>
    %1368 = math.tanh %1367 : vector<8x128xf32>
    %cst_338 = arith.constant 5.000000e-01 : f32
    %1369 = vector.broadcast %cst_338 : f32 to vector<8x128xf32>
    %1370 = arith.mulf %1369, %1368 : vector<8x128xf32>
    %cst_339 = arith.constant 5.000000e-01 : f32
    %1371 = vector.broadcast %cst_339 : f32 to vector<8x128xf32>
    %1372 = arith.addf %1370, %1371 : vector<8x128xf32>
    %1373 = vector.extract_strided_slice %1372 {offsets = [0, 32], sizes = [8, 32], strides = [1, 1]} : vector<8x128xf32> to vector<8x32xf32>
    %1374 = arith.mulf %1373, %1343 : vector<8x32xf32>
    %1375 = vector.extract_strided_slice %1372 {offsets = [0, 0], sizes = [8, 32], strides = [1, 1]} : vector<8x128xf32> to vector<8x32xf32>
    %1376 = vector.extract_strided_slice %1368 {offsets = [0, 64], sizes = [8, 32], strides = [1, 1]} : vector<8x128xf32> to vector<8x32xf32>
    %1377 = arith.mulf %1375, %1376 : vector<8x32xf32>
    %1378 = arith.addf %1374, %1377 : vector<8x32xf32>
    %1379 = vector.extract_strided_slice %1372 {offsets = [0, 96], sizes = [8, 32], strides = [1, 1]} : vector<8x128xf32> to vector<8x32xf32>
    %1380 = math.tanh %1378 : vector<8x32xf32>
    %1381 = arith.mulf %1379, %1380 : vector<8x32xf32>
    %c312 = arith.constant 312 : index
    %c0_340 = arith.constant 0 : index
    %1382 = vector.load %arg11[%c312, %c0_340] : memref<320x128xf32, #tpu.memory_space<vmem>>, vector<8x128xf32>
    %cst_341 = arith.constant dense<0.000000e+00> : vector<8x128xf32>
    %1383 = tpu.matmul %1363, %7, %cst_341 {dimension_numbers = #tpu.dot_dimension_numbers<[1], [0], [0], [1], [0, 0, 1, 1], [], []>} : vector<8x32xf32>, vector<32x128xf32>, vector<8x128xf32> -> vector<8x128xf32>
    %1384 = arith.addf %1382, %1383 : vector<8x128xf32>
    %1385 = math.tanh %1384 : vector<8x128xf32>
    %cst_342 = arith.constant 5.000000e-01 : f32
    %1386 = vector.broadcast %cst_342 : f32 to vector<8x128xf32>
    %1387 = arith.mulf %1386, %1385 : vector<8x128xf32>
    %cst_343 = arith.constant 5.000000e-01 : f32
    %1388 = vector.broadcast %cst_343 : f32 to vector<8x128xf32>
    %1389 = arith.addf %1387, %1388 : vector<8x128xf32>
    %1390 = vector.extract_strided_slice %1389 {offsets = [0, 32], sizes = [8, 32], strides = [1, 1]} : vector<8x128xf32> to vector<8x32xf32>
    %1391 = arith.mulf %1390, %1360 : vector<8x32xf32>
    %1392 = vector.extract_strided_slice %1389 {offsets = [0, 0], sizes = [8, 32], strides = [1, 1]} : vector<8x128xf32> to vector<8x32xf32>
    %1393 = vector.extract_strided_slice %1385 {offsets = [0, 64], sizes = [8, 32], strides = [1, 1]} : vector<8x128xf32> to vector<8x32xf32>
    %1394 = arith.mulf %1392, %1393 : vector<8x32xf32>
    %1395 = arith.addf %1391, %1394 : vector<8x32xf32>
    %1396 = vector.extract_strided_slice %1389 {offsets = [0, 96], sizes = [8, 32], strides = [1, 1]} : vector<8x128xf32> to vector<8x32xf32>
    %1397 = math.tanh %1395 : vector<8x32xf32>
    %1398 = arith.mulf %1396, %1397 : vector<8x32xf32>
    %cst_344 = arith.constant dense<0.000000e+00> : vector<8x128xf32>
    %1399 = tpu.matmul %1363, %9, %cst_344 {dimension_numbers = #tpu.dot_dimension_numbers<[1], [0], [0], [1], [0, 0, 1, 1], [], []>} : vector<8x32xf32>, vector<32x128xf32>, vector<8x128xf32> -> vector<8x128xf32>
    %cst_345 = arith.constant dense<0.000000e+00> : vector<8x128xf32>
    %1400 = tpu.matmul %1381, %8, %cst_345 {dimension_numbers = #tpu.dot_dimension_numbers<[1], [0], [0], [1], [0, 0, 1, 1], [], []>} : vector<8x32xf32>, vector<32x128xf32>, vector<8x128xf32> -> vector<8x128xf32>
    %1401 = arith.addf %1399, %1400 : vector<8x128xf32>
    %1402 = arith.addf %1401, %12 : vector<8x128xf32>
    %1403 = math.tanh %1402 : vector<8x128xf32>
    %cst_346 = arith.constant 5.000000e-01 : f32
    %1404 = vector.broadcast %cst_346 : f32 to vector<8x128xf32>
    %1405 = arith.mulf %1404, %1403 : vector<8x128xf32>
    %cst_347 = arith.constant 5.000000e-01 : f32
    %1406 = vector.broadcast %cst_347 : f32 to vector<8x128xf32>
    %1407 = arith.addf %1405, %1406 : vector<8x128xf32>
    %1408 = vector.extract_strided_slice %1407 {offsets = [0, 32], sizes = [8, 32], strides = [1, 1]} : vector<8x128xf32> to vector<8x32xf32>
    %1409 = arith.mulf %1408, %1378 : vector<8x32xf32>
    %1410 = vector.extract_strided_slice %1407 {offsets = [0, 0], sizes = [8, 32], strides = [1, 1]} : vector<8x128xf32> to vector<8x32xf32>
    %1411 = vector.extract_strided_slice %1403 {offsets = [0, 64], sizes = [8, 32], strides = [1, 1]} : vector<8x128xf32> to vector<8x32xf32>
    %1412 = arith.mulf %1410, %1411 : vector<8x32xf32>
    %1413 = arith.addf %1409, %1412 : vector<8x32xf32>
    %1414 = vector.extract_strided_slice %1407 {offsets = [0, 96], sizes = [8, 32], strides = [1, 1]} : vector<8x128xf32> to vector<8x32xf32>
    %1415 = math.tanh %1413 : vector<8x32xf32>
    %1416 = arith.mulf %1414, %1415 : vector<8x32xf32>
    %cst_348 = arith.constant dense<0.000000e+00> : vector<8x128xf32>
    %1417 = tpu.matmul %1398, %9, %cst_348 {dimension_numbers = #tpu.dot_dimension_numbers<[1], [0], [0], [1], [0, 0, 1, 1], [], []>} : vector<8x32xf32>, vector<32x128xf32>, vector<8x128xf32> -> vector<8x128xf32>
    %cst_349 = arith.constant dense<0.000000e+00> : vector<8x128xf32>
    %1418 = tpu.matmul %1416, %8, %cst_349 {dimension_numbers = #tpu.dot_dimension_numbers<[1], [0], [0], [1], [0, 0, 1, 1], [], []>} : vector<8x32xf32>, vector<32x128xf32>, vector<8x128xf32> -> vector<8x128xf32>
    %1419 = arith.addf %1417, %1418 : vector<8x128xf32>
    %1420 = arith.addf %1419, %12 : vector<8x128xf32>
    %1421 = math.tanh %1420 : vector<8x128xf32>
    %cst_350 = arith.constant 5.000000e-01 : f32
    %1422 = vector.broadcast %cst_350 : f32 to vector<8x128xf32>
    %1423 = arith.mulf %1422, %1421 : vector<8x128xf32>
    %cst_351 = arith.constant 5.000000e-01 : f32
    %1424 = vector.broadcast %cst_351 : f32 to vector<8x128xf32>
    %1425 = arith.addf %1423, %1424 : vector<8x128xf32>
    %1426 = vector.extract_strided_slice %1425 {offsets = [0, 32], sizes = [8, 32], strides = [1, 1]} : vector<8x128xf32> to vector<8x32xf32>
    %1427 = arith.mulf %1426, %1413 : vector<8x32xf32>
    %1428 = vector.extract_strided_slice %1425 {offsets = [0, 0], sizes = [8, 32], strides = [1, 1]} : vector<8x128xf32> to vector<8x32xf32>
    %1429 = vector.extract_strided_slice %1421 {offsets = [0, 64], sizes = [8, 32], strides = [1, 1]} : vector<8x128xf32> to vector<8x32xf32>
    %1430 = arith.mulf %1428, %1429 : vector<8x32xf32>
    %1431 = arith.addf %1427, %1430 : vector<8x32xf32>
    %1432 = vector.extract_strided_slice %1425 {offsets = [0, 96], sizes = [8, 32], strides = [1, 1]} : vector<8x128xf32> to vector<8x32xf32>
    %1433 = math.tanh %1431 : vector<8x32xf32>
    %1434 = arith.mulf %1432, %1433 : vector<8x32xf32>
    %1435 = tpu.concatenate %1346, %1381, %1416, %1434 in 1 : vector<8x32xf32>, vector<8x32xf32>, vector<8x32xf32>, vector<8x32xf32> -> vector<8x128xf32>
    %c0_352 = arith.constant 0 : index
    %c1152 = arith.constant 1152 : index
    %1436 = vector.load %arg12[%c0_352, %c1152] : memref<8x1280xf32, #tpu.memory_space<vmem>>, vector<8x128xf32>
    tpu.vector_store %arg12[%c0_352, %c1152], %1435 {strides = array<i32>} : memref<8x1280xf32, #tpu.memory_space<vmem>>, vector<8x128xf32>,
    %c0_353 = arith.constant 0 : index
    %c0_354 = arith.constant 0 : index
    %1437 = vector.load %arg12[%c0_353, %c0_354] : memref<8x1280xf32, #tpu.memory_space<vmem>>, vector<8x1280xf32>
    %cst_355 = arith.constant 0.000000e+00 : f32
    %1438 = vector.broadcast %cst_355 : f32 to vector<8x1280xf32>
    %1439 = arith.maximumf %1437, %1438 : vector<8x1280xf32>
    %c0_356 = arith.constant 0 : index
    %c0_357 = arith.constant 0 : index
    %1440 = vector.load %arg8[%c0_356, %c0_357] : memref<1280x128xf32, #tpu.memory_space<vmem>>, vector<1280x128xf32>
    %cst_358 = arith.constant dense<0.000000e+00> : vector<8x128xf32>
    %1441 = tpu.matmul %1439, %1440, %cst_358 {dimension_numbers = #tpu.dot_dimension_numbers<[1], [0], [0], [1], [0, 0, 1, 1], [], []>} : vector<8x1280xf32>, vector<1280x128xf32>, vector<8x128xf32> -> vector<8x128xf32>
    %c0_359 = arith.constant 0 : index
    %c0_360 = arith.constant 0 : index
    %1442 = vector.load %arg9[%c0_359, %c0_360] : memref<1x128xf32, #tpu.memory_space<vmem>>, vector<1x128xf32>
    %1443 = vector.broadcast %1442 : vector<1x128xf32> to vector<8x128xf32>
    %1444 = arith.addf %1441, %1443 : vector<8x128xf32>
    %c0_361 = arith.constant 0 : index
    %c0_362 = arith.constant 0 : index
    %1445 = vector.load %arg10[%c0_361, %c0_362] : memref<8x128xf32, #tpu.memory_space<vmem>>, vector<8x128xf32>
    tpu.vector_store %arg10[%c0_361, %c0_362], %1444 {strides = array<i32>} : memref<8x128xf32, #tpu.memory_space<vmem>>, vector<8x128xf32>,
    return
  }
  func.func @transform_0(%arg0: i32) -> (i32, i32) {
    %c0_i32 = arith.constant 0 : i32
    %c0_i32_0 = arith.constant 0 : i32
    %c0_i32_1 = arith.constant 0 : i32
    return %c0_i32, %c0_i32_0 : i32, i32
  }
  func.func @transform_1(%arg0: i32) -> (i32, i32) {
    %c0_i32 = arith.constant 0 : i32
    %c0_i32_0 = arith.constant 0 : i32
    %c0_i32_1 = arith.constant 0 : i32
    return %c0_i32, %c0_i32_0 : i32, i32
  }
  func.func @transform_2(%arg0: i32) -> (i32, i32) {
    %c0_i32 = arith.constant 0 : i32
    %c0_i32_0 = arith.constant 0 : i32
    %c0_i32_1 = arith.constant 0 : i32
    return %c0_i32, %c0_i32_0 : i32, i32
  }
  func.func @transform_3(%arg0: i32) -> (i32, i32) {
    %c0_i32 = arith.constant 0 : i32
    %c0_i32_0 = arith.constant 0 : i32
    %c0_i32_1 = arith.constant 0 : i32
    return %c0_i32, %c0_i32_0 : i32, i32
  }
  func.func @transform_4(%arg0: i32) -> (i32, i32) {
    %c0_i32 = arith.constant 0 : i32
    %c0_i32_0 = arith.constant 0 : i32
    %c0_i32_1 = arith.constant 0 : i32
    return %c0_i32, %c0_i32_0 : i32, i32
  }
  func.func @transform_5(%arg0: i32) -> (i32, i32) {
    %c0_i32 = arith.constant 0 : i32
    %c0_i32_0 = arith.constant 0 : i32
    %c0_i32_1 = arith.constant 0 : i32
    return %c0_i32, %c0_i32_0 : i32, i32
  }
  func.func @transform_6(%arg0: i32) -> (i32, i32) {
    %c0_i32 = arith.constant 0 : i32
    %c0_i32_0 = arith.constant 0 : i32
    %c0_i32_1 = arith.constant 0 : i32
    return %c0_i32, %c0_i32_0 : i32, i32
  }
  func.func @transform_7(%arg0: i32) -> (i32, i32) {
    %c0_i32 = arith.constant 0 : i32
    %c0_i32_0 = arith.constant 0 : i32
    %c0_i32_1 = arith.constant 0 : i32
    return %c0_i32, %c0_i32_0 : i32, i32
  }
  func.func @transform_8(%arg0: i32) -> (i32, i32) {
    %c0_i32 = arith.constant 0 : i32
    %c0_i32_0 = arith.constant 0 : i32
    %c0_i32_1 = arith.constant 0 : i32
    return %c0_i32, %c0_i32_0 : i32, i32
  }
  func.func @transform_9(%arg0: i32) -> (i32, i32) {
    %c0_i32 = arith.constant 0 : i32
    %c0_i32_0 = arith.constant 0 : i32
    %c0_i32_1 = arith.constant 0 : i32
    return %c0_i32, %c0_i32_0 : i32, i32
  }
}

</mosaic_0001>

<bundles_post_ra>
// kernel: tpu_custom_call.1
= control target key start
LH: loop header
LB: loop body
LE: loop exit
PB: predicated region body
PF: predicated region fallthrough
CT: control target
= control target key end

     0   :  { %14 = vsyncpa [#allocation5], 0  ;;  %s17448_s0 = inlined_call_operand.vmem [shape: f32[320,32], index: 0, kind: input, shape index: {}]   ;;  %s17449_s1 = inlined_call_operand.vmem [shape: f32[32,128], index: 1, kind: input, shape index: {}]   ;;  %s17450_s2 = inlined_call_operand.vmem [shape: f32[32,128], index: 2, kind: input, shape index: {}]   ;;  %s17451_s3 = inlined_call_operand.vmem [shape: f32[1,128], index: 3, kind: input, shape index: {}]   ;;  %s17452_s4 = inlined_call_operand.vmem [shape: f32[32,128], index: 4, kind: input, shape index: {}]   ;;  %s17453_s5 = inlined_call_operand.vmem [shape: f32[32,128], index: 5, kind: input, shape index: {}]   ;;  %s17454_s6 = inlined_call_operand.vmem [shape: f32[1,128], index: 6, kind: input, shape index: {}]   ;;  %s17455_s7 = inlined_call_operand.hbm [shape: f32[1280,128], index: 7, kind: input, shape index: {}]   ;;  %s17456_s8 = inlined_call_operand.vmem [shape: f32[1,128], index: 8, kind: input, shape index: {}]   ;;  %s17457_s9 = inlined_call_operand.hbm [shape: f32[8,128], index: 9, kind: output, shape index: {}]  }
   0x1   :  { %15 = vsyncpa [#allocation6], 0  ;;  %s15422_s30 = smov [#allocation4]   ;;  %s15374_s13 = scalar_lea.hbm %s17455_s7, 20480 }
   0x2   :  { %s35_s10 = sshll.u32 %s15422_s30, 4  ;;  %p15375_p0 = scmp.ne.s32.totalorder %s17455_s7, %s15374_s13  ;;  %s36_s10 = int_to_ptr.vmem [resolvable:$true] %s35_s10 }
   0x3   :  { %p15378_p1 = scmp.lt.u32.totalorder %s15374_s13, %s17455_s7 }
   0x5   :  { %p15380_p2 = pnand %p15378_p1, %p15375_p0 }
   0x7   :  { %15383 = shalt.err (!%p15380_p2)
}
   0x8   :  { %s15384_s18 = scalar_lea.vmem %s36_s10, 20480  ;;  %p15389_p4 = scmp.lt.s32.totalorder %s36_s10, %s36_s10 }
   0x9   :  { %p15385_p3 = scmp.ne.s32.totalorder %s36_s10, %s15384_s18  ;;  %p15390_p5 = scmp.lt.s32.totalorder %s15384_s18, %s15384_s18 }
   0xb   :  { %p15391_p6 = por %p15390_p5, %p15389_p4 }
   0xd   :  { %p15392_p7 = pnand %p15391_p6, %p15385_p3 }
   0xf   :  { %15395 = shalt.err (!%p15392_p7)
}
  0x10   :  { %s15423_s19 = smov 128   ;;  %s15424_s20 = smov 8  }
  0x11   :  { %41 = dma.hbm_to_vmem [thread:$0]  %s17455_s7, 20480, %s36_s10, [#allocation5], %s15423_s19, %s15423_s19, %s15424_s20  }
  0x12   :  { %15418 = dma.done.wait [#allocation5], 20480  }
  0x13   :  { %15419 = vsyncadd [#allocation5], 4294946816  ;;  %vm98_vm0 = vcmask 261120   ;;  %v87_v0 = vld [vmem:[%s17449_s1] sm:$0xff]  ;;  %v88_v1 = vld [vmem:[%s17449_s1 + $0x8] sm:$0xff]  ;;  %v17458_v13 = vmov 0.0|0.0  }
  0x14   :  { %v89_v2 = vld [vmem:[%s17449_s1 + $0x10] sm:$0xff]  ;;  %v14094_v3 = vpack.c.bf16 %v88_v1, %v87_v0  ;;  %v90_v4 = vld [vmem:[%s17449_s1 + $0x18] sm:$0xff]  ;;  %v79_v5 = vld [vmem:[%s17448_s0 + $0x100] sm:$0xff]  ;;  %vm15426_vm1 = vmmov 0   ;;  %v17460_v23 = vmov 0.0   ;;  %s15428_s1 = smov 64  }
  0x15   :  { %v14098_v6 = vpack.c.bf16 %v90_v4, %v89_v2  ;;  %12762 = vmatprep.mubr.msk.f32.mxu1 %vm98_vm0, %v79_v5  ;;  %v524_v7 = vld [vmem:[%s17450_s2] sm:$0xff]  ;;  %v525_v8 = vld [vmem:[%s17450_s2 + $0x8] sm:$0xff]  ;;  %v81_v14 = vld [vmem:[%s17448_s0 + $0x110] sm:$0xff]  ;;  %s15429_s15 = smov 32   ;;  %vm1693_vm2 = vcmask 523264   ;;  %vm1695_vm3 = vcmask 785408  }
  0x16   :  { %14982 = vmatprep.subr.bf16.mxu1 %v14094_v3  ;;  %14095 = vmatprep.subr.bf16.mxu0 %v14094_v3  ;;  %v47_v9 = vld [vmem:[%s17448_s0] sm:$0xff]  ;;  %v80_v10 = vld [vmem:[%s17448_s0 + $0x108] sm:$0xff]  ;;  %v15523_v11 = vpack.c.bf16 %v525_v8, %v524_v7  ;;  %v526_v15 = vld [vmem:[%s17450_s2 + $0x10] sm:$0xff]  ;;  %s15431_s11 = smov [#allocation7]  }
  0x17   :  { %14984 = vmatpush3.bf16.msra.mxu1 %v14094_v3  ;;  %14097 = vmatpush3.bf16.msra.mxu0 %v14094_v3  ;;  %v48_v12 = vld [vmem:[%s17448_s0 + $0x8] sm:$0xff]  ;;  %v527_v16 = vld [vmem:[%s17450_s2 + $0x18] sm:$0xff]  ;;  %v83_v19 = vld [vmem:[%s17448_s0 + $0x120] sm:$0xff]  ;;  %s11717_s12 = sshll.u32 %s15431_s11, 4  ;;  %s11718_s12 = int_to_ptr.vmem [resolvable:$true] %s11717_s12 }
  0x18   :  { %14983 = vmatprep.subr.bf16.mxu1 %v14098_v6  ;;  %14099 = vmatprep.subr.bf16.mxu0 %v14098_v6  ;;  %v82_v17 = vld [vmem:[%s17448_s0 + $0x118] sm:$0xff]  ;;  %v15546_v18 = vpack.c.bf16 %v527_v16, %v526_v15  ;;  %v84_v20 = vld [vmem:[%s17448_s0 + $0x128] sm:$0xff]  ;;  %v85_v21 = vld [vmem:[%s17448_s0 + $0x130] sm:$0xff]  ;;  %p15401_p9 = scmp.lt.s32.totalorder %s11718_s12, %s11718_s12 }
  0x19   :  { %12714 = vmatprep.mubr.msk.f32.mxu0 %vm98_vm0, %v47_v9  ;;  %v86_v22 = vld [vmem:[%s17448_s0 + $0x138] sm:$0xff]  ;;  %v15598_v32 = vld [vmem:[%s17451_s3] ss:$0 sm:$0xff]  ;;  %v529_v51 = vld [vmem:[%s17453_s5 + $0x8] sm:$0xff] }
  0x1a   :  { %v528_v50 = vld [vmem:[%s17453_s5] sm:$0xff]  ;;  %v530_v53 = vld [vmem:[%s17453_s5 + $0x10] sm:$0xff]  ;;  %v531_v54 = vld [vmem:[%s17453_s5 + $0x18] sm:$0xff] }
  0x1b   :  { %14985 = vmatpush3.bf16.msra.mxu1 %v14098_v6  ;;  %14101 = vmatpush3.bf16.msra.mxu0 %v14098_v6  ;;  %v15618_v52 = vpack.c.bf16 %v529_v51, %v528_v50  ;;  %v15628_v56 = vpack.c.bf16 %v531_v54, %v530_v53  ;;  %v532_v57 = vld [vmem:[%s17452_s4] sm:$0xff]  ;;  %v533_v58 = vld [vmem:[%s17452_s4 + $0x8] sm:$0xff]  ;;  %v534_v60 = vld [vmem:[%s17452_s4 + $0x10] sm:$0xff] }
  0x1c   :  { %14102 = vmatprep.subr.bf16.mxu1 %v17458_v13  ;;  %14162 = vmatprep.subr.bf16.mxu0 %v17458_v13  ;;  %v15640_v59 = vpack.c.bf16 %v533_v58, %v532_v57  ;;  %v535_v61 = vld [vmem:[%s17452_s4 + $0x18] sm:$0xff]  ;;  %v15671_v6 = vld [vmem:[%s17454_s6] ss:$0 sm:$0xff] }
  0x1d   :  { %v15651_v62 = vpack.c.bf16 %v535_v61, %v534_v60 }
  0x1e   :  { %12763 = vmatmul.mubr.msk.f32.vlgmr.msra.gmra.mrb[0].mxu1 %vm98_vm0, %v80_v10  ;;  %12715 = vmatmul.mubr.msk.f32.vlgmr.msra.gmra.mrb[0].mxu0 %vm98_vm0, %v48_v12 }
  0x1f   :  { %14104 = vmatpush3.bf16.msra.mxu1 %v15523_v11  ;;  %12765 = vmatprep.mubr.msk.f32.mxu1 %vm98_vm0, %v81_v14 }
  0x20   :  { %14105 = vmatprep.subr.bf16.mxu1 %v17458_v13  ;;  %14164 = vmatpush3.bf16.msra.mxu0 %v15523_v11 }
  0x21   :  { %14165 = vmatprep.subr.bf16.mxu0 %v17458_v13 }
  0x22   :  { %12766 = vmatmul.mubr.msk.f32.gmra.mrb[2].mxu1 %vm98_vm0, %v82_v17 }
  0x23   :  { %12768 = vmatprep.mubr.msk.f32.mxu1 %vm98_vm0, %v83_v19  ;;  %14107 = vmatpush3.bf16.msra.mxu1 %v15546_v18 }
  0x24   :  { %14108 = vmatprep.subr.bf16.mxu1 %v17458_v13  ;;  %14167 = vmatpush3.bf16.msra.mxu0 %v15546_v18 }
  0x25   :  { %14174 = vmatprep.subr.bf16.mxu0 %v17458_v13 }
  0x26   :  { %12769 = vmatmul.mubr.msk.f32.gmra.mrb[4].mxu1 %vm98_vm0, %v84_v20 }
  0x27   :  { %12771 = vmatprep.mubr.msk.f32.mxu1 %vm98_vm0, %v85_v21 }
  0x2a   :  { %12772 = vmatmul.mubr.msk.f32.gmra.mrb[6].mxu1 %vm98_vm0, %v86_v22 }
  0x2b   :  { %12782 = vmatprep.mubr.msk.f32.mxu1 %vm15426_vm1, %v17460_v23 }
  0x2e   :  { %12783 = vmatmul.mubr.f32.vlgmr.msra.gmra.mrb[8].mxu1 %v17460_v23 }
  0x2f   :  { %14110 = vmatpush3.bf16.msra.mxu1 %v15523_v11  ;;  %12793 = vmatprep.mubr.msk.f32.mxu1 %vm15426_vm1, %v17460_v23 }
  0x30   :  { %14111 = vmatprep.subr.bf16.mxu1 %v17458_v13 }
  0x33   :  { %14113 = vmatpush3.bf16.msra.mxu1 %v15546_v18 }
  0x34   :  { %14114 = vmatprep.subr.bf16.mxu1 %v17458_v13 }
  0xf1   :  { %v15581_v24 = vpop.f32.mrb[0].mxu1  ;;  %v15583_v25 = vpop.f32.mrb[0].mxu0 }
  0xf2   :  { %v15585_v26 = vpop.f32.mrb[1].mxu1  ;;  %v285_v27 = vpop.f32.mrb[1].mxu0  ;;  %v291_v63 = vadd.f32 %v15583_v25, %v15598_v32 }
  0xf3   :  { %v286_v35 = vadd.f32 %v15598_v32, %v285_v27 }
  0xf5   :  { %v15587_v28 = vpop.f32.mrb[2].mxu1 }
  0xf6   :  { %v15589_v29 = vpop.f32.mrb[3].mxu1 }
  0xf9   :  { %v15591_v30 = vpop.f32.mrb[4].mxu1 }
  0xfa   :  { %v15593_v31 = vpop.f32.mrb[5].mxu1 }
  0xfd   :  { %v15600_v33 = vpop.f32.mrb[6].mxu1 }
  0xfe   :  { %v15602_v34 = vpop.f32.mrb[7].mxu1 }
 0x101   :  { %v613_v36 = vpop.f32.mrb[8].mxu1 }
 0x102   :  { %v617_v37 = vadd.f32 %v613_v36, %v286_v35  ;;  %v12784_v38 = vpop.f32.mrb[9].mxu1 }
 0x104   :  { %15046 = vtanh.f32 %v617_v37 }
 0x10e   :  { %v15047_v39 = vpop.eup %15046 }
 0x10f   :  { %623 = vrot.lane.b32.xlu0 %v15047_v39, %s15428_s1  ;;  %v619_v40 = vmul.f32 0.5, %v15047_v39 }
 0x111   :  { %v620_v41 = vadd.f32 0.5, %v619_v40  ;;  %v49_v40 = vld [vmem:[%s17448_s0 + $0x10] sm:$0xff] }
 0x112   :  { %12717 = vmatprep.mubr.msk.f32.mxu0 %vm98_vm0, %v49_v40 }
 0x113   :  { %v621_v44 = vmul.f32 0.0, %v620_v41 }
 0x181   :  { %v624_v42 = vpop.permute.xlu0 %623 }
 0x182   :  { %v626_v43 = vmul.f32 %v624_v42, %v620_v41 }
 0x184   :  { %628 = vrot.lane.b32.xlu0 %v626_v43, %s15429_s15 }
 0x1f6   :  { %v629_v45 = vpop.permute.xlu0 %628 }
 0x1f7   :  { %v15607_v46 = vadd.f32 %v629_v45, %v621_v44 }
 0x1f9   :  { %15048 = vtanh.f32 %v15607_v46 }
 0x203   :  { %v15049_v47 = vpop.eup %15048 }
 0x204   :  { %634 = vrot.lane.b32.xlu1 %v15049_v47, %s15428_s1 }
 0x276   :  { %v635_v48 = vpop.permute.xlu1 %634 }
 0x277   :  { %v637_v49 = vmul.f32 %v635_v48, %v620_v41  ;;  %v50_v41 = vld [vmem:[%s17448_s0 + $0x18] sm:$0xff] }
 0x278   :  { %12718 = vmatmul.mubr.msk.f32.gmra.mrb[2].mxu0 %vm98_vm0, %v50_v41 }
 0x279   :  { %640 = vrot.lane.b32.xlu1 %v637_v49, %s15429_s15 }
 0x2eb   :  { %v641_v55 = vpop.permute.xlu1 %640 }
 0x2ec   :  { %12794 = vmatmul.mubr.msk.f32.vlgmr.msra.gmra.mrb[10].mxu1 %vm98_vm0, %v641_v55 }
 0x2ed   :  { %14116 = vmatpush3.bf16.msra.mxu1 %v15618_v52  ;;  %12804 = vmatprep.mubr.msk.f32.mxu1 %vm15426_vm1, %v17460_v23 }
 0x2ee   :  { %14117 = vmatprep.subr.bf16.mxu1 %v17458_v13 }
 0x2f1   :  { %14119 = vmatpush3.bf16.msra.mxu1 %v15628_v56 }
 0x2f2   :  { %14120 = vmatprep.subr.bf16.mxu1 %v17458_v13 }
 0x2f4   :  { %12805 = vmatmul.mubr.f32.vlgmr.msra.gmra.mrb[12].mxu1 %v17460_v23 }
 0x2f5   :  { %14122 = vmatpush3.bf16.msra.mxu1 %v15640_v59  ;;  %12815 = vmatprep.mubr.msk.f32.mxu1 %vm15426_vm1, %v17460_v23 }
 0x2f6   :  { %14123 = vmatprep.subr.bf16.mxu1 %v17458_v13 }
 0x2f9   :  { %14125 = vmatpush3.bf16.msra.mxu1 %v15651_v62 }
 0x2fa   :  { %14126 = vmatprep.subr.bf16.mxu1 %v17458_v13 }
 0x2fc   :  { %12816 = vmatmul.mubr.msk.f32.vlgmr.msra.gmra.mrb[14].mxu1 %vm98_vm0, %v641_v55 }
 0x2fd   :  { %14128 = vmatpush3.bf16.msra.mxu1 %v15523_v11  ;;  %12826 = vmatprep.mubr.msk.f32.mxu1 %vm15426_vm1, %v17460_v23 }
 0x2fe   :  { %14129 = vmatprep.subr.bf16.mxu1 %v17458_v13 }
 0x301   :  { %14131 = vmatpush3.bf16.msra.mxu1 %v15546_v18 }
 0x302   :  { %14132 = vmatprep.subr.bf16.mxu1 %v17458_v13 }
 0x34b   :  { %v15696_v47 = vpop.f32.mrb[2].mxu0 }
 0x34c   :  { %v295_v48 = vpop.f32.mrb[3].mxu0 }
 0x34d   :  { %v296_v51 = vadd.f32 %v15598_v32, %v295_v48 }
 0x3bf   :  { %v710_v0 = vpop.f32.mrb[10].mxu1 }
 0x3c0   :  { %v714_v1 = vadd.f32 %v710_v0, %v291_v63  ;;  %v12795_v2 = vpop.f32.mrb[11].mxu1 }
 0x3c2   :  { %15050 = vtanh.f32 %v714_v1 }
 0x3c7   :  { %v801_v3 = vpop.f32.mrb[12].mxu1 }
 0x3c8   :  { %v12806_v4 = vpop.f32.mrb[13].mxu1 }
 0x3cc   :  { %v15051_v5 = vpop.eup %15050 }
 0x3cd   :  { %720 = vrot.lane.b32.xlu0 %v15051_v5, %s15428_s1  ;;  %v716_v14 = vmul.f32 0.5, %v15051_v5 }
 0x3cf   :  { %v871_v7 = vpop.f32.mrb[14].mxu1  ;;  %v717_v15 = vadd.f32 0.5, %v716_v14 }
 0x3d0   :  { %v872_v8 = vadd.f32 %v871_v7, %v801_v3  ;;  %v12817_v9 = vpop.f32.mrb[15].mxu1 }
 0x3d1   :  { %v718_v25 = vmul.f32 %v717_v15, %v15607_v46 }
 0x3d2   :  { %v875_v10 = vadd.f32 %v15671_v6, %v872_v8 }
 0x3d4   :  { %15052 = vtanh.f32 %v875_v10 }
 0x3de   :  { %v15053_v12 = vpop.eup %15052 }
 0x3df   :  { %881 = vrot.lane.b32.xlu1 %v15053_v12, %s15428_s1  ;;  %v877_v19 = vmul.f32 0.5, %v15053_v12 }
 0x3e1   :  { %v878_v20 = vadd.f32 0.5, %v877_v19 }
 0x3e3   :  { %v879_v37 = vmul.f32 0.0, %v878_v20 }
 0x43f   :  { %v721_v16 = vpop.permute.xlu0 %720 }
 0x440   :  { %v723_v17 = vmul.f32 %v721_v16, %v717_v15 }
 0x442   :  { %725 = vrot.lane.b32.xlu0 %v723_v17, %s15429_s15 }
 0x451   :  { %v882_v21 = vpop.permute.xlu1 %881 }
 0x452   :  { %v884_v22 = vmul.f32 %v882_v21, %v878_v20 }
 0x454   :  { %886 = vrot.lane.b32.xlu1 %v884_v22, %s15429_s15 }
 0x4b4   :  { %v726_v27 = vpop.permute.xlu0 %725 }
 0x4b5   :  { %v15678_v35 = vadd.f32 %v726_v27, %v718_v25 }
 0x4b7   :  { %15054 = vtanh.f32 %v15678_v35 }
 0x4c1   :  { %v15055_v36 = vpop.eup %15054 }
 0x4c2   :  { %731 = vrot.lane.b32.xlu0 %v15055_v36, %s15428_s1 }
 0x4c6   :  { %v887_v38 = vpop.permute.xlu1 %886 }
 0x4c7   :  { %v15682_v39 = vadd.f32 %v887_v38, %v879_v37 }
 0x4c9   :  { %15056 = vtanh.f32 %v15682_v39 }
 0x4d3   :  { %v15057_v42 = vpop.eup %15056 }
 0x4d4   :  { %892 = vrot.lane.b32.xlu1 %v15057_v42, %s15428_s1 }
 0x534   :  { %v732_v43 = vpop.permute.xlu0 %731 }
 0x535   :  { %v734_v44 = vmul.f32 %v732_v43, %v717_v15 }
 0x537   :  { %898 = vrot.lane.b32.xlu0 %v734_v44, %s15429_s15 }
 0x546   :  { %v893_v45 = vpop.permute.xlu1 %892 }
 0x547   :  { %v895_v46 = vmul.f32 %v893_v45, %v878_v20 }
 0x549   :  { %994 = vrot.lane.b32.xlu1 %v895_v46, %s15429_s15 }
 0x5a9   :  { %v899_v49 = vpop.permute.xlu0 %898 }
 0x5aa   :  { %12827 = vmatmul.mubr.msk.f32.vlgmr.msra.gmra.mrb[16].mxu1 %vm98_vm0, %v899_v49 }
 0x5ab   :  { %14134 = vmatpush3.bf16.msra.mxu1 %v15618_v52  ;;  %12837 = vmatprep.mubr.msk.f32.mxu1 %vm15426_vm1, %v17460_v23 }
 0x5ac   :  { %14135 = vmatprep.subr.bf16.mxu1 %v17458_v13 }
 0x5af   :  { %14137 = vmatpush3.bf16.msra.mxu1 %v15628_v56 }
 0x5b0   :  { %14138 = vmatprep.subr.bf16.mxu1 %v17458_v13 }
 0x5bb   :  { %v15705_v50 = vpop.permute.xlu1 %994 }
 0x5bc   :  { %12838 = vmatmul.mubr.msk.f32.vlgmr.msra.gmra.mrb[18].mxu1 %vm98_vm0, %v15705_v50 }
 0x5bd   :  { %14140 = vmatpush3.bf16.msra.mxu1 %v15640_v59  ;;  %12848 = vmatprep.mubr.msk.f32.mxu1 %vm15426_vm1, %v17460_v23 }
 0x5be   :  { %14141 = vmatprep.subr.bf16.mxu1 %v17458_v13 }
 0x5c1   :  { %14143 = vmatpush3.bf16.msra.mxu1 %v15651_v62 }
 0x5c2   :  { %14144 = vmatprep.subr.bf16.mxu1 %v17458_v13 }
 0x5c4   :  { %12849 = vmatmul.mubr.msk.f32.vlgmr.msra.gmra.mrb[20].mxu1 %vm98_vm0, %v899_v49 }
 0x5c5   :  { %14146 = vmatpush3.bf16.msra.mxu1 %v15523_v11  ;;  %12859 = vmatprep.mubr.msk.f32.mxu1 %vm15426_vm1, %v17460_v23 }
 0x5c6   :  { %14147 = vmatprep.subr.bf16.mxu1 %v17458_v13 }
 0x5c9   :  { %14149 = vmatpush3.bf16.msra.mxu1 %v15546_v18 }
 0x5ca   :  { %14150 = vmatprep.subr.bf16.mxu1 %v17458_v13 }
 0x67d   :  { %v968_v53 = vpop.f32.mrb[16].mxu1 }
 0x67e   :  { %v972_v54 = vadd.f32 %v968_v53, %v296_v51  ;;  %v12828_v55 = vpop.f32.mrb[17].mxu1 }
 0x680   :  { %15058 = vtanh.f32 %v972_v54 }
 0x68a   :  { %v15059_v57 = vpop.eup %15058 }
 0x68b   :  { %978 = vrot.lane.b32.xlu0 %v15059_v57, %s15428_s1  ;;  %v974_v3 = vmul.f32 0.5, %v15059_v57 }
 0x68d   :  { %v975_v4 = vadd.f32 0.5, %v974_v3 }
 0x68f   :  { %v1064_v58 = vpop.f32.mrb[18].mxu1  ;;  %v976_v14 = vmul.f32 %v975_v4, %v15678_v35 }
 0x690   :  { %v12839_v60 = vpop.f32.mrb[19].mxu1 }
 0x697   :  { %v1134_v61 = vpop.f32.mrb[20].mxu1 }
 0x698   :  { %v1135_v63 = vadd.f32 %v1134_v61, %v1064_v58  ;;  %v12850_v0 = vpop.f32.mrb[21].mxu1 }
 0x69a   :  { %v1138_v1 = vadd.f32 %v15671_v6, %v1135_v63 }
 0x69c   :  { %15060 = vtanh.f32 %v1138_v1 }
 0x6a6   :  { %v15061_v2 = vpop.eup %15060 }
 0x6a7   :  { %1144 = vrot.lane.b32.xlu1 %v15061_v2, %s15428_s1  ;;  %v1140_v8 = vmul.f32 0.5, %v15061_v2 }
 0x6a9   :  { %v1141_v9 = vadd.f32 0.5, %v1140_v8  ;;  %v51_v8 = vld [vmem:[%s17448_s0 + $0x20] sm:$0xff] }
 0x6aa   :  { %12720 = vmatprep.mubr.msk.f32.mxu0 %vm98_vm0, %v51_v8 }
 0x6ab   :  { %v1142_v19 = vmul.f32 %v1141_v9, %v15682_v39  ;;  %v301_v39 = vadd.f32 %v15696_v47, %v15598_v32 }
 0x6fd   :  { %v979_v5 = vpop.permute.xlu0 %978 }
 0x6fe   :  { %v981_v7 = vmul.f32 %v979_v5, %v975_v4 }
 0x700   :  { %983 = vrot.lane.b32.xlu0 %v981_v7, %s15429_s15 }
 0x719   :  { %v1145_v10 = vpop.permute.xlu1 %1144 }
 0x71a   :  { %v1147_v12 = vmul.f32 %v1145_v10, %v1141_v9  ;;  %v53_v10 = vld [vmem:[%s17448_s0 + $0x30] sm:$0xff] }
 0x71c   :  { %1149 = vrot.lane.b32.xlu1 %v1147_v12, %s15429_s15  ;;  %v54_v12 = vld [vmem:[%s17448_s0 + $0x38] sm:$0xff] }
 0x772   :  { %v984_v15 = vpop.permute.xlu0 %983 }
 0x773   :  { %v986_v16 = vadd.f32 %v984_v15, %v976_v14  ;;  %v55_v14 = vld [vmem:[%s17448_s0 + $0x40] sm:$0xff]  ;;  %v56_v15 = vld [vmem:[%s17448_s0 + $0x48] sm:$0xff] }
 0x775   :  { %15062 = vtanh.f32 %v986_v16 }
 0x77f   :  { %v15063_v17 = vpop.eup %15062 }
 0x780   :  { %989 = vrot.lane.b32.xlu0 %v15063_v17, %s15428_s1 }
 0x78e   :  { %v1150_v20 = vpop.permute.xlu1 %1149 }
 0x78f   :  { %v1152_v21 = vadd.f32 %v1150_v20, %v1142_v19  ;;  %v58_v19 = vld [vmem:[%s17448_s0 + $0x58] sm:$0xff]  ;;  %v59_v20 = vld [vmem:[%s17448_s0 + $0x60] sm:$0xff] }
 0x791   :  { %15064 = vtanh.f32 %v1152_v21 }
 0x79b   :  { %v15065_v22 = vpop.eup %15064 }
 0x79c   :  { %1155 = vrot.lane.b32.xlu1 %v15065_v22, %s15428_s1  ;;  %v61_v22 = vld [vmem:[%s17448_s0 + $0x70] sm:$0xff] }
 0x7f2   :  { %v990_v25 = vpop.permute.xlu0 %989 }
 0x7f3   :  { %v992_v27 = vmul.f32 %v990_v25, %v975_v4  ;;  %v62_v25 = vld [vmem:[%s17448_s0 + $0x78] sm:$0xff] }
 0x7f5   :  { %1161 = vrot.lane.b32.xlu0 %v992_v27, %s15429_s15  ;;  %v63_v27 = vld [vmem:[%s17448_s0 + $0x80] sm:$0xff] }
 0x80e   :  { %v1156_v36 = vpop.permute.xlu1 %1155 }
 0x80f   :  { %v15733_v35 = vmul.f32 %v1156_v36, %v1141_v9  ;;  %v52_v9 = vld [vmem:[%s17448_s0 + $0x28] sm:$0xff] }
 0x810   :  { %12721 = vmatmul.mubr.msk.f32.gmra.mrb[4].mxu0 %vm98_vm0, %v52_v9  ;;  %v64_v36 = vld [vmem:[%s17448_s0 + $0x88] sm:$0xff] }
 0x811   :  { %1257 = vrot.lane.b32.xlu1 %v15733_v35, %s15429_s15  ;;  %12723 = vmatprep.mubr.msk.f32.mxu0 %vm98_vm0, %v53_v10 }
 0x814   :  { %12724 = vmatmul.mubr.msk.f32.gmra.mrb[6].mxu0 %vm98_vm0, %v54_v12 }
 0x815   :  { %12726 = vmatprep.mubr.msk.f32.mxu0 %vm98_vm0, %v55_v14 }
 0x818   :  { %12727 = vmatmul.mubr.msk.f32.gmra.mrb[8].mxu0 %vm98_vm0, %v56_v15 }
 0x867   :  { %v1162_v37 = vpop.permute.xlu0 %1161 }
 0x868   :  { %12860 = vmatmul.mubr.msk.f32.vlgmr.msra.gmra.mrb[22].mxu1 %vm98_vm0, %v1162_v37 }
 0x869   :  { %14152 = vmatpush3.bf16.msra.mxu1 %v15618_v52  ;;  %12870 = vmatprep.mubr.msk.f32.mxu1 %vm15426_vm1, %v17460_v23 }
 0x86a   :  { %14153 = vmatprep.subr.bf16.mxu1 %v17458_v13 }
 0x86d   :  { %14155 = vmatpush3.bf16.msra.mxu1 %v15628_v56 }
 0x86e   :  { %14156 = vmatprep.subr.bf16.mxu1 %v17458_v13 }
 0x883   :  { %v1258_v38 = vpop.permute.xlu1 %1257 }
 0x884   :  { %12871 = vmatmul.mubr.msk.f32.vlgmr.msra.gmra.mrb[24].mxu1 %vm98_vm0, %v1258_v38  ;;  %v66_v38 = vld [vmem:[%s17448_s0 + $0x98] sm:$0xff] }
 0x885   :  { %14158 = vmatpush3.bf16.msra.mxu1 %v15640_v59  ;;  %12881 = vmatprep.mubr.msk.f32.mxu1 %vm15426_vm1, %v17460_v23 }
 0x886   :  { %14159 = vmatprep.subr.bf16.mxu1 %v17458_v13 }
 0x889   :  { %14161 = vmatpush3.bf16.msra.mxu1 %v15651_v62 }
 0x88a   :  { %14168 = vmatprep.subr.bf16.mxu1 %v17458_v13 }
 0x88c   :  { %12882 = vmatmul.mubr.msk.f32.vlgmr.msra.gmra.mrb[26].mxu1 %vm98_vm0, %v1162_v37  ;;  %v65_v37 = vld [vmem:[%s17448_s0 + $0x90] sm:$0xff] }
 0x88d   :  { %14170 = vmatpush3.bf16.msra.mxu1 %v15618_v52  ;;  %12903 = vmatprep.mubr.msk.f32.mxu1 %vm15426_vm1, %v17460_v23 }
 0x88e   :  { %14171 = vmatprep.subr.bf16.mxu1 %v17458_v13 }
 0x891   :  { %14173 = vmatpush3.bf16.msra.mxu1 %v15628_v56 }
 0x892   :  { %14180 = vmatprep.subr.bf16.mxu1 %v17458_v13 }
 0x93b   :  { %v1231_v40 = vpop.f32.mrb[22].mxu1 }
 0x93c   :  { %v1235_v41 = vadd.f32 %v1231_v40, %v301_v39  ;;  %v12861_v42 = vpop.f32.mrb[23].mxu1  ;;  %v67_v39 = vld [vmem:[%s17448_s0 + $0xa0] sm:$0xff]  ;;  %v68_v40 = vld [vmem:[%s17448_s0 + $0xa8] sm:$0xff] }
 0x93d   :  { %v70_v42 = vld [vmem:[%s17448_s0 + $0xb8] sm:$0xff] }
 0x93e   :  { %15066 = vtanh.f32 %v1235_v41  ;;  %v69_v41 = vld [vmem:[%s17448_s0 + $0xb0] sm:$0xff] }
 0x948   :  { %v15067_v43 = vpop.eup %15066 }
 0x949   :  { %1241 = vrot.lane.b32.xlu0 %v15067_v43, %s15428_s1  ;;  %v1237_v54 = vmul.f32 0.5, %v15067_v43  ;;  %v71_v43 = vld [vmem:[%s17448_s0 + $0xc0] sm:$0xff] }
 0x94b   :  { %v15763_v47 = vadd.f32 0.5, %v1237_v54 }
 0x94d   :  { %v1239_v0 = vmul.f32 %v15763_v47, %v986_v16  ;;  %v57_v16 = vld [vmem:[%s17448_s0 + $0x50] sm:$0xff] }
 0x94e   :  { %12729 = vmatprep.mubr.msk.f32.mxu0 %vm98_vm0, %v57_v16 }
 0x94f   :  { %12730 = vmatmul.mubr.msk.f32.gmra.mrb[10].mxu0 %vm98_vm0, %v58_v19 }
 0x950   :  { %12732 = vmatprep.mubr.msk.f32.mxu0 %vm98_vm0, %v59_v20 }
 0x957   :  { %v1327_v44 = vpop.f32.mrb[24].mxu1 }
 0x958   :  { %v12872_v45 = vpop.f32.mrb[25].mxu1 }
 0x959   :  { %v73_v45 = vld [vmem:[%s17448_s0 + $0xd0] sm:$0xff] }
 0x95f   :  { %v1397_v46 = vpop.f32.mrb[26].mxu1 }
 0x960   :  { %v1398_v48 = vadd.f32 %v1397_v46, %v1327_v44  ;;  %v12883_v49 = vpop.f32.mrb[27].mxu1  ;;  %v72_v44 = vld [vmem:[%s17448_s0 + $0xc8] sm:$0xff]  ;;  %v74_v46 = vld [vmem:[%s17448_s0 + $0xd8] sm:$0xff] }
 0x961   :  { %v76_v49 = vld [vmem:[%s17448_s0 + $0xe8] sm:$0xff] }
 0x962   :  { %v1401_v51 = vadd.f32 %v15671_v6, %v1398_v48  ;;  %v75_v48 = vld [vmem:[%s17448_s0 + $0xe0] sm:$0xff] }
 0x964   :  { %15068 = vtanh.f32 %v1401_v51  ;;  %v77_v51 = vld [vmem:[%s17448_s0 + $0xf0] sm:$0xff] }
 0x96e   :  { %v15069_v53 = vpop.eup %15068 }
 0x96f   :  { %1407 = vrot.lane.b32.xlu1 %v15069_v53, %s15428_s1  ;;  %v1403_v58 = vmul.f32 0.5, %v15069_v53  ;;  %v78_v53 = vld [vmem:[%s17448_s0 + $0xf8] sm:$0xff] }
 0x971   :  { %v15767_v60 = vadd.f32 0.5, %v1403_v58 }
 0x973   :  { %v1405_v4 = vmul.f32 %v15767_v60, %v1152_v21  ;;  %v60_v21 = vld [vmem:[%s17448_s0 + $0x68] sm:$0xff] }
 0x974   :  { %12733 = vmatmul.mubr.msk.f32.gmra.mrb[12].mxu0 %vm98_vm0, %v60_v21 }
 0x975   :  { %12735 = vmatprep.mubr.msk.f32.mxu0 %vm98_vm0, %v61_v22 }
 0x978   :  { %12736 = vmatmul.mubr.msk.f32.gmra.mrb[14].mxu0 %vm98_vm0, %v62_v25 }
 0x979   :  { %12738 = vmatprep.mubr.msk.f32.mxu0 %vm98_vm0, %v63_v27 }
 0x97c   :  { %12739 = vmatmul.mubr.msk.f32.gmra.mrb[16].mxu0 %vm98_vm0, %v64_v36 }
 0x97d   :  { %12741 = vmatprep.mubr.msk.f32.mxu0 %vm98_vm0, %v65_v37 }
 0x980   :  { %12742 = vmatmul.mubr.msk.f32.gmra.mrb[18].mxu0 %vm98_vm0, %v66_v38 }
 0x981   :  { %12744 = vmatprep.mubr.msk.f32.mxu0 %vm98_vm0, %v67_v39 }
 0x984   :  { %12745 = vmatmul.mubr.msk.f32.gmra.mrb[20].mxu0 %vm98_vm0, %v68_v40 }
 0x985   :  { %12747 = vmatprep.mubr.msk.f32.mxu0 %vm98_vm0, %v69_v41 }
 0x988   :  { %12748 = vmatmul.mubr.msk.f32.gmra.mrb[22].mxu0 %vm98_vm0, %v70_v42 }
 0x989   :  { %12750 = vmatprep.mubr.msk.f32.mxu0 %vm98_vm0, %v71_v43 }
 0x98c   :  { %12751 = vmatmul.mubr.msk.f32.gmra.mrb[24].mxu0 %vm98_vm0, %v72_v44 }
 0x98d   :  { %12753 = vmatprep.mubr.msk.f32.mxu0 %vm98_vm0, %v73_v45 }
 0x990   :  { %12754 = vmatmul.mubr.msk.f32.gmra.mrb[26].mxu0 %vm98_vm0, %v74_v46 }
 0x991   :  { %12756 = vmatprep.mubr.msk.f32.mxu0 %vm98_vm0, %v75_v48 }
 0x994   :  { %12757 = vmatmul.mubr.msk.f32.gmra.mrb[28].mxu0 %vm98_vm0, %v76_v49 }
 0x995   :  { %12759 = vmatprep.mubr.msk.f32.mxu0 %vm98_vm0, %v77_v51 }
 0x998   :  { %12760 = vmatmul.mubr.msk.f32.gmra.mrb[30].mxu0 %vm98_vm0, %v78_v53 }
 0x999   :  { %12892 = vmatprep.mubr.msk.f32.mxu0 %vm15426_vm1, %v17460_v23 }
 0x9bb   :  { %v1242_v55 = vpop.permute.xlu0 %1241 }
 0x9bc   :  { %v1244_v57 = vmul.f32 %v1242_v55, %v15763_v47 }
 0x9be   :  { %1246 = vrot.lane.b32.xlu0 %v1244_v57, %s15429_s15 }
 0x9e1   :  { %v1408_v61 = vpop.permute.xlu1 %1407 }
 0x9e2   :  { %v1410_v63 = vmul.f32 %v1408_v61, %v15767_v60 }
 0x9e4   :  { %1412 = vrot.lane.b32.xlu1 %v1410_v63, %s15429_s15 }
 0xa30   :  { %v1247_v1 = vpop.permute.xlu0 %1246 }
 0xa31   :  { %v15772_v2 = vadd.f32 %v1247_v1, %v1239_v0 }
 0xa33   :  { %15070 = vtanh.f32 %v15772_v2 }
 0xa3d   :  { %v15071_v3 = vpop.eup %15070 }
 0xa3e   :  { %1252 = vrot.lane.b32.xlu0 %v15071_v3, %s15428_s1 }
 0xa56   :  { %v1413_v5 = vpop.permute.xlu1 %1412 }
 0xa57   :  { %v15777_v7 = vadd.f32 %v1413_v5, %v1405_v4 }
 0xa59   :  { %15072 = vtanh.f32 %v15777_v7 }
 0xa63   :  { %v15073_v17 = vpop.eup %15072 }
 0xa64   :  { %1418 = vrot.lane.b32.xlu1 %v15073_v17, %s15428_s1 }
 0xab0   :  { %v1253_v54 = vpop.permute.xlu0 %1252 }
 0xab1   :  { %v1255_v55 = vmul.f32 %v1253_v54, %v15763_v47  ;;  %v15910_v47 = vpop.f32.mrb[4].mxu0 }
 0xab3   :  { %1424 = vrot.lane.b32.xlu0 %v1255_v55, %s15429_s15 }
 0xad6   :  { %v1419_v57 = vpop.permute.xlu1 %1418 }
 0xad7   :  { %v15898_v58 = vmul.f32 %v1419_v57, %v15767_v60  ;;  %v305_v60 = vpop.f32.mrb[5].mxu0 }
 0xad8   :  { %v15916_v63 = vpop.f32.mrb[6].mxu0  ;;  %v306_v43 = vadd.f32 %v15598_v32, %v305_v60 }
 0xad9   :  { %1520 = vrot.lane.b32.xlu1 %v15898_v58, %s15429_s15  ;;  %v15918_v0 = vpop.f32.mrb[7].mxu0 }
 0xada   :  { %v15922_v1 = vpop.f32.mrb[8].mxu0 }
 0xadb   :  { %v15924_v3 = vpop.f32.mrb[9].mxu0 }
 0xadc   :  { %v15926_v4 = vpop.f32.mrb[10].mxu0 }
 0xadd   :  { %v15928_v5 = vpop.f32.mrb[11].mxu0 }
 0xade   :  { %v15930_v8 = vpop.f32.mrb[12].mxu0 }
 0xadf   :  { %v15932_v9 = vpop.f32.mrb[13].mxu0 }
 0xae0   :  { %v15934_v10 = vpop.f32.mrb[14].mxu0 }
 0xae1   :  { %v15936_v12 = vpop.f32.mrb[15].mxu0 }
 0xae2   :  { %v15938_v14 = vpop.f32.mrb[16].mxu0 }
 0xae3   :  { %v15940_v15 = vpop.f32.mrb[17].mxu0 }
 0xae4   :  { %v15942_v16 = vpop.f32.mrb[18].mxu0 }
 0xae5   :  { %v15944_v19 = vpop.f32.mrb[19].mxu0 }
 0xae6   :  { %v15950_v20 = vpop.f32.mrb[20].mxu0 }
 0xae7   :  { %v15953_v21 = vpop.f32.mrb[21].mxu0 }
 0xae8   :  { %v15956_v22 = vpop.f32.mrb[22].mxu0 }
 0xae9   :  { %v15959_v25 = vpop.f32.mrb[23].mxu0 }
 0xaea   :  { %v15961_v27 = vpop.f32.mrb[24].mxu0 }
 0xaeb   :  { %v15963_v36 = vpop.f32.mrb[25].mxu0 }
 0xaec   :  { %v15965_v37 = vpop.f32.mrb[26].mxu0 }
 0xaed   :  { %v15967_v38 = vpop.f32.mrb[27].mxu0 }
 0xaee   :  { %v15969_v39 = vpop.f32.mrb[28].mxu0 }
 0xaef   :  { %v15971_v40 = vpop.f32.mrb[29].mxu0 }
 0xaf0   :  { %v15973_v41 = vpop.f32.mrb[30].mxu0 }
 0xaf1   :  { %v15975_v42 = vpop.f32.mrb[31].mxu0 }
 0xb25   :  { %v1425_v61 = vpop.permute.xlu0 %1424 }
 0xb26   :  { %12893 = vmatmul.mubr.msk.f32.vlgmr.msra.gmra.mrb[32].mxu0 %vm98_vm0, %v1425_v61 }
 0xb27   :  { %14176 = vmatpush3.bf16.msra.mxu0 %v15640_v59  ;;  %12914 = vmatprep.mubr.msk.f32.mxu0 %vm15426_vm1, %v17460_v23 }
 0xb28   :  { %14177 = vmatprep.subr.bf16.mxu0 %v17458_v13 }
 0xb2b   :  { %14179 = vmatpush3.bf16.msra.mxu0 %v15651_v62 }
 0xb2c   :  { %14186 = vmatprep.subr.bf16.mxu0 %v17458_v13 }
 0xb2e   :  { %12915 = vmatmul.mubr.msk.f32.vlgmr.msra.gmra.mrb[34].mxu0 %vm98_vm0, %v1425_v61 }
 0xb2f   :  { %14188 = vmatpush3.bf16.msra.mxu0 %v15618_v52  ;;  %12936 = vmatprep.mubr.msk.f32.mxu0 %vm15426_vm1, %v17460_v23 }
 0xb30   :  { %14189 = vmatprep.subr.bf16.mxu0 %v17458_v13 }
 0xb33   :  { %14191 = vmatpush3.bf16.msra.mxu0 %v15628_v56 }
 0xb34   :  { %14198 = vmatprep.subr.bf16.mxu0 %v17458_v13 }
 0xb4b   :  { %v1521_v17 = vpop.permute.xlu1 %1520 }
 0xb4c   :  { %12904 = vmatmul.mubr.msk.f32.vlgmr.msra.gmra.mrb[28].mxu1 %vm98_vm0, %v1521_v17 }
 0xb4d   :  { %14182 = vmatpush3.bf16.msra.mxu1 %v15523_v11  ;;  %12925 = vmatprep.mubr.msk.f32.mxu1 %vm15426_vm1, %v17460_v23 }
 0xb4e   :  { %14183 = vmatprep.subr.bf16.mxu1 %v17458_v13 }
 0xb51   :  { %14185 = vmatpush3.bf16.msra.mxu1 %v15546_v18 }
 0xb52   :  { %14192 = vmatprep.subr.bf16.mxu1 %v17458_v13 }
 0xbf9   :  { %v1494_v44 = vpop.f32.mrb[32].mxu0 }
 0xbfa   :  { %v1498_v45 = vadd.f32 %v1494_v44, %v306_v43  ;;  %v12894_v46 = vpop.f32.mrb[33].mxu0 }
 0xbfc   :  { %15074 = vtanh.f32 %v1498_v45 }
 0xc01   :  { %v1660_v48 = vpop.f32.mrb[34].mxu0 }
 0xc02   :  { %v12916_v49 = vpop.f32.mrb[35].mxu0 }
 0xc06   :  { %v15075_v51 = vpop.eup %15074 }
 0xc07   :  { %1504 = vrot.lane.b32.xlu0 %v15075_v51, %s15428_s1  ;;  %v1500_v17 = vmul.f32 0.5, %v15075_v51 }
 0xc09   :  { %v1501_v60 = vadd.f32 0.5, %v1500_v17 }
 0xc1f   :  { %v1590_v53 = vpop.f32.mrb[28].mxu1 }
 0xc20   :  { %v1661_v54 = vadd.f32 %v1660_v48, %v1590_v53  ;;  %v12905_v55 = vpop.f32.mrb[29].mxu1  ;;  %v1502_v48 = vmul.f32 %v1501_v60, %v15772_v2 }
 0xc22   :  { %v1664_v57 = vadd.f32 %v15671_v6, %v1661_v54 }
 0xc24   :  { %15076 = vtanh.f32 %v1664_v57 }
 0xc2e   :  { %v15077_v61 = vpop.eup %15076 }
 0xc2f   :  { %1670 = vrot.lane.b32.xlu1 %v15077_v61, %s15428_s1  ;;  %v1666_v44 = vmul.f32 0.5, %v15077_v61 }
 0xc31   :  { %v1667_v45 = vadd.f32 0.5, %v1666_v44 }
 0xc33   :  { %v1668_v51 = vmul.f32 %v1667_v45, %v15777_v7  ;;  %v17464_v7 = vmov 0.0|0.0  }
 0xc79   :  { %v1505_v13 = vpop.permute.xlu0 %1504 }
 0xc7a   :  { %v1507_v43 = vmul.f32 %v1505_v13, %v1501_v60 }
 0xc7c   :  { %1509 = vrot.lane.b32.xlu0 %v1507_v43, %s15429_s15 }
 0xca1   :  { %v1671_v46 = vpop.permute.xlu1 %1670 }
 0xca2   :  { %v1673_v49 = vmul.f32 %v1671_v46, %v1667_v45 }
 0xca4   :  { %1675 = vrot.lane.b32.xlu1 %v1673_v49, %s15429_s15 }
 0xcee   :  { %v1510_v53 = vpop.permute.xlu0 %1509 }
 0xcef   :  { %v1512_v54 = vadd.f32 %v1510_v53, %v1502_v48 }
 0xcf1   :  { %15078 = vtanh.f32 %v1512_v54 }
 0xcfb   :  { %v15079_v55 = vpop.eup %15078 }
 0xcfc   :  { %1515 = vrot.lane.b32.xlu0 %v15079_v55, %s15428_s1 }
 0xd16   :  { %v1676_v57 = vpop.permute.xlu1 %1675 }
 0xd17   :  { %v1678_v13 = vadd.f32 %v1676_v57, %v1668_v51 }
 0xd19   :  { %15080 = vtanh.f32 %v1678_v13 }
 0xd23   :  { %v15081_v17 = vpop.eup %15080 }
 0xd24   :  { %1681 = vrot.lane.b32.xlu1 %v15081_v17, %s15428_s1 }
 0xd6e   :  { %v1516_v61 = vpop.permute.xlu0 %1515 }
 0xd6f   :  { %v1518_v43 = vmul.f32 %v1516_v61, %v1501_v60 }
 0xd71   :  { %1700 = vrot.lane.b32.xlu0 %v1518_v43, %s15429_s15 }
 0xd96   :  { %v1682_v44 = vpop.permute.xlu1 %1681 }
 0xd97   :  { %v15988_v2 = vmul.f32 %v1682_v44, %v1667_v45  ;;  %v311_v45 = vadd.f32 %v15910_v47, %v15598_v32 }
 0xd99   :  { %17463 = vst [vmem:[#allocation10_spill] sm:$0xff] %v15988_v2  ;;  %1796 = vrot.lane.b32.xlu1 %v15988_v2, %s15429_s15 }
 0xde3   :  { %v1701_v46 = vpop.permute.xlu0 %1700 }
 0xde4   :  { %12926 = vmatmul.mubr.msk.f32.vlgmr.msra.gmra.mrb[30].mxu1 %vm98_vm0, %v1701_v46 }
 0xde5   :  { %14194 = vmatpush3.bf16.msra.mxu1 %v15640_v59  ;;  %12947 = vmatprep.mubr.msk.f32.mxu1 %vm15426_vm1, %v17460_v23 }
 0xde6   :  { %14195 = vmatprep.subr.bf16.mxu1 %v17464_v7 }
 0xde9   :  { %14197 = vmatpush3.bf16.msra.mxu1 %v15651_v62 }
 0xdea   :  { %14204 = vmatprep.subr.bf16.mxu1 %v17464_v7 }
 0xdec   :  { %12948 = vmatmul.mubr.msk.f32.vlgmr.msra.gmra.mrb[32].mxu1 %vm98_vm0, %v1701_v46 }
 0xded   :  { %14206 = vmatpush3.bf16.msra.mxu1 %v15618_v52  ;;  %12969 = vmatprep.mubr.msk.f32.mxu1 %vm15426_vm1, %v17460_v23 }
 0xdee   :  { %14207 = vmatprep.subr.bf16.mxu1 %v17464_v7 }
 0xdf1   :  { %14209 = vmatpush3.bf16.msra.mxu1 %v15628_v56 }
 0xdf2   :  { %14216 = vmatprep.subr.bf16.mxu1 %v17464_v7 }
 0xe0b   :  { %v1797_v60 = vpop.permute.xlu1 %1796 }
 0xe0c   :  { %12937 = vmatmul.mubr.msk.f32.vlgmr.msra.gmra.mrb[36].mxu0 %vm98_vm0, %v1797_v60 }
 0xe0d   :  { %14200 = vmatpush3.bf16.msra.mxu0 %v15523_v11  ;;  %12958 = vmatprep.mubr.msk.f32.mxu0 %vm15426_vm1, %v17460_v23 }
 0xe0e   :  { %14201 = vmatprep.subr.bf16.mxu0 %v17464_v7 }
 0xe11   :  { %14203 = vmatpush3.bf16.msra.mxu0 %v15546_v18 }
 0xe12   :  { %14210 = vmatprep.subr.bf16.mxu0 %v17464_v7 }
 0xeb7   :  { %v1770_v49 = vpop.f32.mrb[30].mxu1 }
 0xeb8   :  { %v1774_v48 = vadd.f32 %v1770_v49, %v311_v45  ;;  %v12927_v53 = vpop.f32.mrb[31].mxu1 }
 0xeba   :  { %15082 = vtanh.f32 %v1774_v48 }
 0xebf   :  { %v1936_v55 = vpop.f32.mrb[32].mxu1 }
 0xec0   :  { %v12949_v51 = vpop.f32.mrb[33].mxu1 }
 0xec4   :  { %v15083_v57 = vpop.eup %15082 }
 0xec5   :  { %1780 = vrot.lane.b32.xlu0 %v15083_v57, %s15428_s1  ;;  %v1776_v60 = vmul.f32 0.5, %v15083_v57 }
 0xec7   :  { %v1777_v47 = vadd.f32 0.5, %v1776_v60 }
 0xedf   :  { %v1866_v17 = vpop.f32.mrb[36].mxu0 }
 0xee0   :  { %v1937_v61 = vadd.f32 %v1936_v55, %v1866_v17  ;;  %v12938_v43 = vpop.f32.mrb[37].mxu0  ;;  %v1778_v55 = vmul.f32 %v1777_v47, %v1512_v54 }
 0xee2   :  { %v1940_v44 = vadd.f32 %v15671_v6, %v1937_v61 }
 0xee4   :  { %15084 = vtanh.f32 %v1940_v44 }
 0xeee   :  { %v15085_v46 = vpop.eup %15084 }
 0xeef   :  { %1946 = vrot.lane.b32.xlu1 %v15085_v46, %s15428_s1  ;;  %v1942_v49 = vmul.f32 0.5, %v15085_v46 }
 0xef1   :  { %v1943_v48 = vadd.f32 0.5, %v1942_v49 }
 0xef3   :  { %v1944_v44 = vmul.f32 %v1943_v48, %v1678_v13  ;;  %v17465_v13 = vmov 0.0  }
 0xf37   :  { %v1781_v23 = vpop.permute.xlu0 %1780 }
 0xf38   :  { %v1783_v45 = vmul.f32 %v1781_v23, %v1777_v47 }
 0xf3a   :  { %1785 = vrot.lane.b32.xlu0 %v1783_v45, %s15429_s15 }
 0xf61   :  { %v1947_v53 = vpop.permute.xlu1 %1946 }
 0xf62   :  { %v1949_v51 = vmul.f32 %v1947_v53, %v1943_v48 }
 0xf64   :  { %1951 = vrot.lane.b32.xlu1 %v1949_v51, %s15429_s15 }
 0xfac   :  { %v1786_v17 = vpop.permute.xlu0 %1785 }
 0xfad   :  { %v1788_v43 = vadd.f32 %v1786_v17, %v1778_v55 }
 0xfaf   :  { %15086 = vtanh.f32 %v1788_v43 }
 0xfb9   :  { %v15087_v61 = vpop.eup %15086 }
 0xfba   :  { %1791 = vrot.lane.b32.xlu0 %v15087_v61, %s15428_s1 }
 0xfd6   :  { %v1952_v57 = vpop.permute.xlu1 %1951 }
 0xfd7   :  { %v1954_v60 = vadd.f32 %v1952_v57, %v1944_v44 }
 0xfd9   :  { %15088 = vtanh.f32 %v1954_v60 }
 0xfe3   :  { %v15089_v23 = vpop.eup %15088 }
 0xfe4   :  { %1957 = vrot.lane.b32.xlu1 %v15089_v23, %s15428_s1 }
0x102c   :  { %v1792_v46 = vpop.permute.xlu0 %1791 }
0x102d   :  { %v1794_v45 = vmul.f32 %v1792_v46, %v1777_v47 }
0x102f   :  { %1963 = vrot.lane.b32.xlu0 %v1794_v45, %s15429_s15 }
0x1056   :  { %v1958_v49 = vpop.permute.xlu1 %1957 }
0x1057   :  { %v1960_v53 = vmul.f32 %v1958_v49, %v1943_v48  ;;  %v316_v48 = vadd.f32 %v15598_v32, %v15918_v0 }
0x1059   :  { %2059 = vrot.lane.b32.xlu1 %v1960_v53, %s15429_s15 }
0x10a1   :  { %v1964_v54 = vpop.permute.xlu0 %1963 }
0x10a2   :  { %12959 = vmatmul.mubr.msk.f32.vlgmr.msra.gmra.mrb[38].mxu0 %vm98_vm0, %v1964_v54 }
0x10a3   :  { %14212 = vmatpush3.bf16.msra.mxu0 %v15640_v59  ;;  %12980 = vmatprep.mubr.msk.f32.mxu0 %vm15426_vm1, %v17465_v13 }
0x10a4   :  { %14213 = vmatprep.subr.bf16.mxu0 %v17464_v7 }
0x10a7   :  { %14215 = vmatpush3.bf16.msra.mxu0 %v15651_v62 }
0x10a8   :  { %14222 = vmatprep.subr.bf16.mxu0 %v17464_v7 }
0x10aa   :  { %12981 = vmatmul.mubr.msk.f32.vlgmr.msra.gmra.mrb[40].mxu0 %vm98_vm0, %v1964_v54 }
0x10ab   :  { %14224 = vmatpush3.bf16.msra.mxu0 %v15618_v52  ;;  %13002 = vmatprep.mubr.msk.f32.mxu0 %vm15426_vm1, %v17465_v13 }
0x10ac   :  { %14225 = vmatprep.subr.bf16.mxu0 %v17464_v7 }
0x10af   :  { %14227 = vmatpush3.bf16.msra.mxu0 %v15628_v56 }
0x10b0   :  { %14234 = vmatprep.subr.bf16.mxu0 %v17464_v7 }
0x10cb   :  { %v16038_v47 = vpop.permute.xlu1 %2059 }
0x10cc   :  { %12970 = vmatmul.mubr.msk.f32.vlgmr.msra.gmra.mrb[34].mxu1 %vm98_vm0, %v16038_v47 }
0x10cd   :  { %14218 = vmatpush3.bf16.msra.mxu1 %v15523_v11  ;;  %12991 = vmatprep.mubr.msk.f32.mxu1 %vm15426_vm1, %v17465_v13 }
0x10ce   :  { %14219 = vmatprep.subr.bf16.mxu1 %v17464_v7 }
0x10d1   :  { %14221 = vmatpush3.bf16.msra.mxu1 %v15546_v18 }
0x10d2   :  { %14228 = vmatprep.subr.bf16.mxu1 %v17464_v7 }
0x1175   :  { %v2033_v51 = vpop.f32.mrb[38].mxu0 }
0x1176   :  { %v2037_v55 = vadd.f32 %v2033_v51, %v316_v48  ;;  %v12960_v17 = vpop.f32.mrb[39].mxu0 }
0x1178   :  { %15090 = vtanh.f32 %v2037_v55 }
0x117d   :  { %v2199_v61 = vpop.f32.mrb[40].mxu0 }
0x117e   :  { %v12982_v44 = vpop.f32.mrb[41].mxu0 }
0x1182   :  { %v15091_v57 = vpop.eup %15090 }
0x1183   :  { %2043 = vrot.lane.b32.xlu0 %v15091_v57, %s15428_s1  ;;  %v2039_v54 = vmul.f32 0.5, %v15091_v57 }
0x1185   :  { %v2040_v32 = vadd.f32 0.5, %v2039_v54 }
0x119f   :  { %v2129_v23 = vpop.f32.mrb[34].mxu1 }
0x11a0   :  { %v2200_v46 = vadd.f32 %v2199_v61, %v2129_v23  ;;  %v12971_v45 = vpop.f32.mrb[35].mxu1  ;;  %v2041_v61 = vmul.f32 %v2040_v32, %v1788_v43 }
0x11a2   :  { %v2203_v49 = vadd.f32 %v15671_v6, %v2200_v46 }
0x11a4   :  { %15092 = vtanh.f32 %v2203_v49 }
0x11ae   :  { %v15093_v53 = vpop.eup %15092 }
0x11af   :  { %2209 = vrot.lane.b32.xlu1 %v15093_v53, %s15428_s1  ;;  %v2205_v51 = vmul.f32 0.5, %v15093_v53 }
0x11b1   :  { %v2206_v55 = vadd.f32 0.5, %v2205_v51 }
0x11b3   :  { %v2207_v57 = vmul.f32 %v2206_v55, %v1954_v60 }
0x11f5   :  { %v2044_v0 = vpop.permute.xlu0 %2043 }
0x11f6   :  { %v2046_v48 = vmul.f32 %v2044_v0, %v2040_v32 }
0x11f8   :  { %2048 = vrot.lane.b32.xlu0 %v2046_v48, %s15429_s15 }
0x1221   :  { %v2210_v17 = vpop.permute.xlu1 %2209 }
0x1222   :  { %v2212_v44 = vmul.f32 %v2210_v17, %v2206_v55 }
0x1224   :  { %2214 = vrot.lane.b32.xlu1 %v2212_v44, %s15429_s15 }
0x126a   :  { %v2049_v23 = vpop.permute.xlu0 %2048 }
0x126b   :  { %v16055_v45 = vadd.f32 %v2049_v23, %v2041_v61 }
0x126d   :  { %15094 = vtanh.f32 %v16055_v45 }
0x1277   :  { %v15095_v46 = vpop.eup %15094 }
0x1278   :  { %2054 = vrot.lane.b32.xlu0 %v15095_v46, %s15428_s1 }
0x1296   :  { %v2215_v49 = vpop.permute.xlu1 %2214 }
0x1297   :  { %v16059_v54 = vadd.f32 %v2215_v49, %v2207_v57 }
0x1299   :  { %15096 = vtanh.f32 %v16059_v54 }
0x12a3   :  { %v15097_v53 = vpop.eup %15096 }
0x12a4   :  { %2220 = vrot.lane.b32.xlu1 %v15097_v53, %s15428_s1 }
0x12ea   :  { %v2055_v0 = vpop.permute.xlu0 %2054 }
0x12eb   :  { %v2057_v48 = vmul.f32 %v2055_v0, %v2040_v32  ;;  %v16092_v32 = vld [vmem:[%s17451_s3] ss:$0 sm:$0xff] }
0x12ed   :  { %2226 = vrot.lane.b32.xlu0 %v2057_v48, %s15429_s15 }
0x1316   :  { %v2221_v43 = vpop.permute.xlu1 %2220 }
0x1317   :  { %v16064_v51 = vmul.f32 %v2221_v43, %v2206_v55  ;;  %v321_v55 = vadd.f32 %v16092_v32, %v15916_v63 }
0x1319   :  { %2322 = vrot.lane.b32.xlu1 %v16064_v51, %s15429_s15 }
0x135f   :  { %v2227_v17 = vpop.permute.xlu0 %2226 }
0x1360   :  { %12992 = vmatmul.mubr.msk.f32.vlgmr.msra.gmra.mrb[36].mxu1 %vm98_vm0, %v2227_v17 }
0x1361   :  { %14230 = vmatpush3.bf16.msra.mxu1 %v15640_v59  ;;  %13013 = vmatprep.mubr.msk.f32.mxu1 %vm15426_vm1, %v17465_v13 }
0x1362   :  { %14231 = vmatprep.subr.bf16.mxu1 %v17464_v7 }
0x1365   :  { %14233 = vmatpush3.bf16.msra.mxu1 %v15651_v62 }
0x1366   :  { %14240 = vmatprep.subr.bf16.mxu1 %v17464_v7 }
0x1368   :  { %13014 = vmatmul.mubr.msk.f32.vlgmr.msra.gmra.mrb[38].mxu1 %vm98_vm0, %v2227_v17 }
0x1369   :  { %14242 = vmatpush3.bf16.msra.mxu1 %v15618_v52  ;;  %13035 = vmatprep.mubr.msk.f32.mxu1 %vm15426_vm1, %v17465_v13 }
0x136a   :  { %14243 = vmatprep.subr.bf16.mxu1 %v17464_v7 }
0x136d   :  { %14245 = vmatpush3.bf16.msra.mxu1 %v15628_v56 }
0x136e   :  { %14252 = vmatprep.subr.bf16.mxu1 %v17464_v7 }
0x138b   :  { %v2323_v60 = vpop.permute.xlu1 %2322 }
0x138c   :  { %13003 = vmatmul.mubr.msk.f32.vlgmr.msra.gmra.mrb[42].mxu0 %vm98_vm0, %v2323_v60 }
0x138d   :  { %14236 = vmatpush3.bf16.msra.mxu0 %v15523_v11  ;;  %13024 = vmatprep.mubr.msk.f32.mxu0 %vm15426_vm1, %v17465_v13 }
0x138e   :  { %14237 = vmatprep.subr.bf16.mxu0 %v17464_v7 }
0x1391   :  { %14239 = vmatpush3.bf16.msra.mxu0 %v15546_v18 }
0x1392   :  { %14246 = vmatprep.subr.bf16.mxu0 %v17464_v7 }
0x1433   :  { %v2296_v44 = vpop.f32.mrb[36].mxu1 }
0x1434   :  { %v2300_v61 = vadd.f32 %v2296_v44, %v321_v55  ;;  %v12993_v23 = vpop.f32.mrb[37].mxu1 }
0x1436   :  { %15098 = vtanh.f32 %v2300_v61 }
0x143b   :  { %v2462_v46 = vpop.f32.mrb[38].mxu1 }
0x143c   :  { %v13015_v57 = vpop.f32.mrb[39].mxu1 }
0x1440   :  { %v15099_v49 = vpop.eup %15098 }
0x1441   :  { %2306 = vrot.lane.b32.xlu0 %v15099_v49, %s15428_s1  ;;  %v2302_v60 = vmul.f32 0.5, %v15099_v49 }
0x1443   :  { %v2303_v63 = vadd.f32 0.5, %v2302_v60 }
0x145f   :  { %v2392_v53 = vpop.f32.mrb[42].mxu0 }
0x1460   :  { %v2463_v0 = vadd.f32 %v2462_v46, %v2392_v53  ;;  %v13004_v48 = vpop.f32.mrb[43].mxu0  ;;  %v2304_v46 = vmul.f32 %v2303_v63, %v16055_v45 }
0x1462   :  { %v2466_v43 = vadd.f32 %v15671_v6, %v2463_v0 }
0x1464   :  { %15100 = vtanh.f32 %v2466_v43 }
0x146e   :  { %v15101_v17 = vpop.eup %15100 }
0x146f   :  { %2472 = vrot.lane.b32.xlu1 %v15101_v17, %s15428_s1  ;;  %v2468_v44 = vmul.f32 0.5, %v15101_v17 }
0x1471   :  { %v2469_v61 = vadd.f32 0.5, %v2468_v44 }
0x14b3   :  { %v2307_v2 = vpop.permute.xlu0 %2306 }
0x14b4   :  { %v2309_v55 = vmul.f32 %v2307_v2, %v2303_v63  ;;  %v2470_v2 = vmul.f32 %v2469_v61, %v16059_v54 }
0x14b6   :  { %2311 = vrot.lane.b32.xlu0 %v2309_v55, %s15429_s15 }
0x14e1   :  { %v2473_v23 = vpop.permute.xlu1 %2472 }
0x14e2   :  { %v2475_v57 = vmul.f32 %v2473_v23, %v2469_v61 }
0x14e4   :  { %2477 = vrot.lane.b32.xlu1 %v2475_v57, %s15429_s15 }
0x1528   :  { %v2312_v53 = vpop.permute.xlu0 %2311 }
0x1529   :  { %v16102_v6 = vadd.f32 %v2312_v53, %v2304_v46 }
0x152b   :  { %15102 = vtanh.f32 %v16102_v6 }
0x1535   :  { %v15103_v0 = vpop.eup %15102 }
0x1536   :  { %2317 = vrot.lane.b32.xlu0 %v15103_v0, %s15428_s1 }
0x1556   :  { %v2478_v49 = vpop.permute.xlu1 %2477 }
0x1557   :  { %v16107_v48 = vadd.f32 %v2478_v49, %v2470_v2 }
0x1559   :  { %15104 = vtanh.f32 %v16107_v48 }
0x1563   :  { %v15105_v43 = vpop.eup %15104 }
0x1564   :  { %2483 = vrot.lane.b32.xlu1 %v15105_v43, %s15428_s1 }
0x15a8   :  { %v2318_v17 = vpop.permute.xlu0 %2317 }
0x15a9   :  { %v2320_v45 = vmul.f32 %v2318_v17, %v2303_v63  ;;  %v326_v63 = vadd.f32 %v16092_v32, %v15924_v3  ;;  %v16143_v17 = vld [vmem:[%s17454_s6] ss:$0 sm:$0xff] }
0x15ab   :  { %2489 = vrot.lane.b32.xlu0 %v2320_v45, %s15429_s15 }
0x15d6   :  { %v2484_v60 = vpop.permute.xlu1 %2483 }
0x15d7   :  { %v16112_v55 = vmul.f32 %v2484_v60, %v2469_v61 }
0x15d9   :  { %2585 = vrot.lane.b32.xlu1 %v16112_v55, %s15429_s15 }
0x161d   :  { %v2490_v44 = vpop.permute.xlu0 %2489 }
0x161e   :  { %13025 = vmatmul.mubr.msk.f32.vlgmr.msra.gmra.mrb[44].mxu0 %vm98_vm0, %v2490_v44 }
0x161f   :  { %14248 = vmatpush3.bf16.msra.mxu0 %v15640_v59  ;;  %13046 = vmatprep.mubr.msk.f32.mxu0 %vm15426_vm1, %v17465_v13 }
0x1620   :  { %14249 = vmatprep.subr.bf16.mxu0 %v17464_v7 }
0x1623   :  { %14251 = vmatpush3.bf16.msra.mxu0 %v15651_v62 }
0x1624   :  { %14258 = vmatprep.subr.bf16.mxu0 %v17464_v7 }
0x1626   :  { %13047 = vmatmul.mubr.msk.f32.vlgmr.msra.gmra.mrb[46].mxu0 %vm98_vm0, %v2490_v44 }
0x1627   :  { %14260 = vmatpush3.bf16.msra.mxu0 %v15618_v52  ;;  %13068 = vmatprep.mubr.msk.f32.mxu0 %vm15426_vm1, %v17465_v13 }
0x1628   :  { %14261 = vmatprep.subr.bf16.mxu0 %v17464_v7 }
0x162b   :  { %14263 = vmatpush3.bf16.msra.mxu0 %v15628_v56 }
0x162c   :  { %14270 = vmatprep.subr.bf16.mxu0 %v17464_v7 }
0x164b   :  { %v2586_v54 = vpop.permute.xlu1 %2585 }
0x164c   :  { %13036 = vmatmul.mubr.msk.f32.vlgmr.msra.gmra.mrb[40].mxu1 %vm98_vm0, %v2586_v54 }
0x164d   :  { %14254 = vmatpush3.bf16.msra.mxu1 %v15523_v11  ;;  %13057 = vmatprep.mubr.msk.f32.mxu1 %vm15426_vm1, %v17465_v13 }
0x164e   :  { %14255 = vmatprep.subr.bf16.mxu1 %v17464_v7 }
0x1651   :  { %14257 = vmatpush3.bf16.msra.mxu1 %v15546_v18 }
0x1652   :  { %14264 = vmatprep.subr.bf16.mxu1 %v17464_v7 }
0x16f1   :  { %v2559_v61 = vpop.f32.mrb[44].mxu0 }
0x16f2   :  { %v2563_v23 = vadd.f32 %v2559_v61, %v326_v63  ;;  %v13026_v57 = vpop.f32.mrb[45].mxu0 }
0x16f4   :  { %15106 = vtanh.f32 %v2563_v23 }
0x16f9   :  { %v2725_v46 = vpop.f32.mrb[46].mxu0 }
0x16fa   :  { %v13048_v53 = vpop.f32.mrb[47].mxu0 }
0x16fe   :  { %v15107_v0 = vpop.eup %15106 }
0x16ff   :  { %2569 = vrot.lane.b32.xlu0 %v15107_v0, %s15428_s1  ;;  %v2565_v60 = vmul.f32 0.5, %v15107_v0 }
0x1701   :  { %v2566_v44 = vadd.f32 0.5, %v2565_v60 }
0x1703   :  { %v2567_v53 = vmul.f32 %v2566_v44, %v16102_v6 }
0x171f   :  { %v2655_v2 = vpop.f32.mrb[40].mxu1 }
0x1720   :  { %v2726_v49 = vadd.f32 %v2725_v46, %v2655_v2  ;;  %v13037_v43 = vpop.f32.mrb[41].mxu1 }
0x1722   :  { %v2729_v45 = vadd.f32 %v16143_v17, %v2726_v49 }
0x1724   :  { %15108 = vtanh.f32 %v2729_v45 }
0x172e   :  { %v15109_v3 = vpop.eup %15108 }
0x172f   :  { %2735 = vrot.lane.b32.xlu1 %v15109_v3, %s15428_s1  ;;  %v2731_v61 = vmul.f32 0.5, %v15109_v3 }
0x1731   :  { %v2732_v23 = vadd.f32 0.5, %v2731_v61 }
0x1733   :  { %v2733_v0 = vmul.f32 %v2732_v23, %v16107_v48 }
0x1771   :  { %v2570_v54 = vpop.permute.xlu0 %2569 }
0x1772   :  { %v2572_v63 = vmul.f32 %v2570_v54, %v2566_v44 }
0x1774   :  { %2574 = vrot.lane.b32.xlu0 %v2572_v63, %s15429_s15 }
0x17a1   :  { %v2736_v57 = vpop.permute.xlu1 %2735 }
0x17a2   :  { %v2738_v46 = vmul.f32 %v2736_v57, %v2732_v23 }
0x17a4   :  { %2740 = vrot.lane.b32.xlu1 %v2738_v46, %s15429_s15 }
0x17e6   :  { %v2575_v2 = vpop.permute.xlu0 %2574 }
0x17e7   :  { %v2577_v49 = vadd.f32 %v2575_v2, %v2567_v53 }
0x17e9   :  { %15110 = vtanh.f32 %v2577_v49 }
0x17f3   :  { %v15111_v43 = vpop.eup %15110 }
0x17f4   :  { %2580 = vrot.lane.b32.xlu0 %v15111_v43, %s15428_s1 }
0x1816   :  { %v2741_v45 = vpop.permute.xlu1 %2740 }
0x1817   :  { %v2743_v60 = vadd.f32 %v2741_v45, %v2733_v0 }
0x1819   :  { %15112 = vtanh.f32 %v2743_v60 }
0x1823   :  { %v15113_v54 = vpop.eup %15112 }
0x1824   :  { %2746 = vrot.lane.b32.xlu1 %v15113_v54, %s15428_s1 }
0x1866   :  { %v2581_v3 = vpop.permute.xlu0 %2580 }
0x1867   :  { %v2583_v63 = vmul.f32 %v2581_v3, %v2566_v44  ;;  %v331_v44 = vadd.f32 %v16092_v32, %v15922_v1 }
0x1869   :  { %2763 = vrot.lane.b32.xlu0 %v2583_v63, %s15429_s15 }
0x1896   :  { %v2747_v61 = vpop.permute.xlu1 %2746 }
0x1897   :  { %v16154_v6 = vmul.f32 %v2747_v61, %v2732_v23 }
0x1899   :  { %2859 = vrot.lane.b32.xlu1 %v16154_v6, %s15429_s15 }
0x18db   :  { %v2764_v57 = vpop.permute.xlu0 %2763 }
0x18dc   :  { %13058 = vmatmul.mubr.msk.f32.vlgmr.msra.gmra.mrb[42].mxu1 %vm98_vm0, %v2764_v57 }
0x18dd   :  { %14266 = vmatpush3.bf16.msra.mxu1 %v15640_v59  ;;  %13079 = vmatprep.mubr.msk.f32.mxu1 %vm15426_vm1, %v17465_v13 }
0x18de   :  { %14267 = vmatprep.subr.bf16.mxu1 %v17464_v7 }
0x18e1   :  { %14269 = vmatpush3.bf16.msra.mxu1 %v15651_v62 }
0x18e2   :  { %14276 = vmatprep.subr.bf16.mxu1 %v17464_v7 }
0x18e4   :  { %13080 = vmatmul.mubr.msk.f32.vlgmr.msra.gmra.mrb[44].mxu1 %vm98_vm0, %v2764_v57 }
0x18e5   :  { %14278 = vmatpush3.bf16.msra.mxu1 %v15618_v52  ;;  %13101 = vmatprep.mubr.msk.f32.mxu1 %vm15426_vm1, %v17465_v13 }
0x18e6   :  { %14279 = vmatprep.subr.bf16.mxu1 %v17464_v7 }
0x18e9   :  { %14281 = vmatpush3.bf16.msra.mxu1 %v15628_v56 }
0x18ea   :  { %14288 = vmatprep.subr.bf16.mxu1 %v17464_v7 }
0x190b   :  { %v2860_v48 = vpop.permute.xlu1 %2859 }
0x190c   :  { %13069 = vmatmul.mubr.msk.f32.vlgmr.msra.gmra.mrb[48].mxu0 %vm98_vm0, %v2860_v48 }
0x190d   :  { %14272 = vmatpush3.bf16.msra.mxu0 %v15523_v11  ;;  %13090 = vmatprep.mubr.msk.f32.mxu0 %vm15426_vm1, %v17465_v13 }
0x190e   :  { %14273 = vmatprep.subr.bf16.mxu0 %v17464_v7 }
0x1911   :  { %14275 = vmatpush3.bf16.msra.mxu0 %v15546_v18 }
0x1912   :  { %14282 = vmatprep.subr.bf16.mxu0 %v17464_v7 }
0x19af   :  { %v2833_v23 = vpop.f32.mrb[42].mxu1 }
0x19b0   :  { %v2837_v46 = vadd.f32 %v2833_v23, %v331_v44  ;;  %v13059_v53 = vpop.f32.mrb[43].mxu1 }
0x19b2   :  { %15114 = vtanh.f32 %v2837_v46 }
0x19b7   :  { %v2999_v2 = vpop.f32.mrb[44].mxu1 }
0x19b8   :  { %v13081_v43 = vpop.f32.mrb[45].mxu1 }
0x19bc   :  { %v15115_v0 = vpop.eup %15114 }
0x19bd   :  { %2843 = vrot.lane.b32.xlu0 %v15115_v0, %s15428_s1  ;;  %v2839_v57 = vmul.f32 0.5, %v15115_v0 }
0x19bf   :  { %v2840_v1 = vadd.f32 0.5, %v2839_v57 }
0x19df   :  { %v2929_v45 = vpop.f32.mrb[48].mxu0 }
0x19e0   :  { %v3000_v54 = vadd.f32 %v2999_v2, %v2929_v45  ;;  %v13070_v3 = vpop.f32.mrb[49].mxu0  ;;  %v2841_v2 = vmul.f32 %v2840_v1, %v2577_v49 }
0x19e2   :  { %v3003_v63 = vadd.f32 %v16143_v17, %v3000_v54 }
0x19e4   :  { %15116 = vtanh.f32 %v3003_v63 }
0x19ee   :  { %v15117_v61 = vpop.eup %15116 }
0x19ef   :  { %3009 = vrot.lane.b32.xlu1 %v15117_v61, %s15428_s1  ;;  %v3005_v23 = vmul.f32 0.5, %v15117_v61 }
0x19f1   :  { %v3006_v46 = vadd.f32 0.5, %v3005_v23 }
0x19f3   :  { %v3007_v63 = vmul.f32 %v3006_v46, %v2743_v60 }
0x1a2f   :  { %v2844_v48 = vpop.permute.xlu0 %2843 }
0x1a30   :  { %v2846_v44 = vmul.f32 %v2844_v48, %v2840_v1 }
0x1a32   :  { %2848 = vrot.lane.b32.xlu0 %v2846_v44, %s15429_s15 }
0x1a61   :  { %v3010_v53 = vpop.permute.xlu1 %3009 }
0x1a62   :  { %v3012_v43 = vmul.f32 %v3010_v53, %v3006_v46 }
0x1a64   :  { %3014 = vrot.lane.b32.xlu1 %v3012_v43, %s15429_s15 }
0x1aa4   :  { %v2849_v45 = vpop.permute.xlu0 %2848 }
0x1aa5   :  { %v2851_v3 = vadd.f32 %v2849_v45, %v2841_v2 }
0x1aa7   :  { %15118 = vtanh.f32 %v2851_v3 }
0x1ab1   :  { %v15119_v54 = vpop.eup %15118 }
0x1ab2   :  { %2854 = vrot.lane.b32.xlu0 %v15119_v54, %s15428_s1 }
0x1ad6   :  { %v3015_v0 = vpop.permute.xlu1 %3014 }
0x1ad7   :  { %v3017_v57 = vadd.f32 %v3015_v0, %v3007_v63 }
0x1ad9   :  { %15120 = vtanh.f32 %v3017_v57 }
0x1ae3   :  { %v15121_v48 = vpop.eup %15120 }
0x1ae4   :  { %3020 = vrot.lane.b32.xlu1 %v15121_v48, %s15428_s1 }
0x1b24   :  { %v2855_v61 = vpop.permute.xlu0 %2854 }
0x1b25   :  { %v2857_v44 = vmul.f32 %v2855_v61, %v2840_v1  ;;  %v336_v1 = vadd.f32 %v16092_v32, %v15928_v5 }
0x1b27   :  { %3026 = vrot.lane.b32.xlu0 %v2857_v44, %s15429_s15 }
0x1b56   :  { %v3021_v23 = vpop.permute.xlu1 %3020 }
0x1b57   :  { %v3023_v53 = vmul.f32 %v3021_v23, %v3006_v46 }
0x1b59   :  { %3122 = vrot.lane.b32.xlu1 %v3023_v53, %s15429_s15 }
0x1b99   :  { %v3027_v49 = vpop.permute.xlu0 %3026 }
0x1b9a   :  { %13091 = vmatmul.mubr.msk.f32.vlgmr.msra.gmra.mrb[50].mxu0 %vm98_vm0, %v3027_v49 }
0x1b9b   :  { %14284 = vmatpush3.bf16.msra.mxu0 %v15640_v59  ;;  %13112 = vmatprep.mubr.msk.f32.mxu0 %vm15426_vm1, %v17465_v13 }
0x1b9c   :  { %14285 = vmatprep.subr.bf16.mxu0 %v17464_v7 }
0x1b9f   :  { %14287 = vmatpush3.bf16.msra.mxu0 %v15651_v62 }
0x1ba0   :  { %14294 = vmatprep.subr.bf16.mxu0 %v17464_v7 }
0x1ba2   :  { %13113 = vmatmul.mubr.msk.f32.vlgmr.msra.gmra.mrb[52].mxu0 %vm98_vm0, %v3027_v49 }
0x1ba3   :  { %14296 = vmatpush3.bf16.msra.mxu0 %v15618_v52  ;;  %13134 = vmatprep.mubr.msk.f32.mxu0 %vm15426_vm1, %v17465_v13 }
0x1ba4   :  { %14297 = vmatprep.subr.bf16.mxu0 %v17464_v7 }
0x1ba7   :  { %14299 = vmatpush3.bf16.msra.mxu0 %v15628_v56 }
0x1ba8   :  { %14306 = vmatprep.subr.bf16.mxu0 %v17464_v7 }
0x1bcb   :  { %v16204_v60 = vpop.permute.xlu1 %3122 }
0x1bcc   :  { %13102 = vmatmul.mubr.msk.f32.vlgmr.msra.gmra.mrb[46].mxu1 %vm98_vm0, %v16204_v60 }
0x1bcd   :  { %14290 = vmatpush3.bf16.msra.mxu1 %v15523_v11  ;;  %13123 = vmatprep.mubr.msk.f32.mxu1 %vm15426_vm1, %v17465_v13 }
0x1bce   :  { %14291 = vmatprep.subr.bf16.mxu1 %v17464_v7 }
0x1bd1   :  { %14293 = vmatpush3.bf16.msra.mxu1 %v15546_v18 }
0x1bd2   :  { %14300 = vmatprep.subr.bf16.mxu1 %v17464_v7 }
0x1c6d   :  { %v3096_v46 = vpop.f32.mrb[50].mxu0 }
0x1c6e   :  { %v3100_v43 = vadd.f32 %v3096_v46, %v336_v1  ;;  %v13092_v2 = vpop.f32.mrb[51].mxu0 }
0x1c70   :  { %15122 = vtanh.f32 %v3100_v43 }
0x1c75   :  { %v3262_v45 = vpop.f32.mrb[52].mxu0 }
0x1c76   :  { %v13114_v54 = vpop.f32.mrb[53].mxu0 }
0x1c7a   :  { %v15123_v63 = vpop.eup %15122 }
0x1c7b   :  { %3106 = vrot.lane.b32.xlu0 %v15123_v63, %s15428_s1  ;;  %v3102_v53 = vmul.f32 0.5, %v15123_v63 }
0x1c7d   :  { %v3103_v5 = vadd.f32 0.5, %v3102_v53 }
0x1c9f   :  { %v3192_v0 = vpop.f32.mrb[46].mxu1 }
0x1ca0   :  { %v3263_v48 = vadd.f32 %v3262_v45, %v3192_v0  ;;  %v13103_v61 = vpop.f32.mrb[47].mxu1  ;;  %v3104_v45 = vmul.f32 %v3103_v5, %v2851_v3 }
0x1ca2   :  { %v3266_v44 = vadd.f32 %v16143_v17, %v3263_v48 }
0x1ca4   :  { %15124 = vtanh.f32 %v3266_v44 }
0x1cae   :  { %v15125_v23 = vpop.eup %15124 }
0x1caf   :  { %3272 = vrot.lane.b32.xlu1 %v15125_v23, %s15428_s1  ;;  %v3268_v46 = vmul.f32 0.5, %v15125_v23 }
0x1cb1   :  { %v3269_v43 = vadd.f32 0.5, %v3268_v46 }
0x1cb3   :  { %v3270_v44 = vmul.f32 %v3269_v43, %v3017_v57 }
0x1ced   :  { %v3107_v49 = vpop.permute.xlu0 %3106 }
0x1cee   :  { %v3109_v1 = vmul.f32 %v3107_v49, %v3103_v5 }
0x1cf0   :  { %3111 = vrot.lane.b32.xlu0 %v3109_v1, %s15429_s15 }
0x1d21   :  { %v3273_v2 = vpop.permute.xlu1 %3272 }
0x1d22   :  { %v3275_v54 = vmul.f32 %v3273_v2, %v3269_v43 }
0x1d24   :  { %3277 = vrot.lane.b32.xlu1 %v3275_v54, %s15429_s15 }
0x1d62   :  { %v3112_v0 = vpop.permute.xlu0 %3111 }
0x1d63   :  { %v3114_v61 = vadd.f32 %v3112_v0, %v3104_v45 }
0x1d65   :  { %15126 = vtanh.f32 %v3114_v61 }
0x1d6f   :  { %v15127_v48 = vpop.eup %15126 }
0x1d70   :  { %3117 = vrot.lane.b32.xlu0 %v15127_v48, %s15428_s1 }
0x1d96   :  { %v3278_v63 = vpop.permute.xlu1 %3277 }
0x1d97   :  { %v3280_v53 = vadd.f32 %v3278_v63, %v3270_v44 }
0x1d99   :  { %15128 = vtanh.f32 %v3280_v53 }
0x1da3   :  { %v15129_v49 = vpop.eup %15128 }
0x1da4   :  { %3283 = vrot.lane.b32.xlu1 %v15129_v49, %s15428_s1 }
0x1de2   :  { %v3118_v23 = vpop.permute.xlu0 %3117 }
0x1de3   :  { %v3120_v1 = vmul.f32 %v3118_v23, %v3103_v5  ;;  %v341_v5 = vadd.f32 %v16092_v32, %v15926_v4 }
0x1de5   :  { %3289 = vrot.lane.b32.xlu0 %v3120_v1, %s15429_s15 }
0x1e16   :  { %v3284_v46 = vpop.permute.xlu1 %3283 }
0x1e17   :  { %v16224_v2 = vmul.f32 %v3284_v46, %v3269_v43 }
0x1e19   :  { %3385 = vrot.lane.b32.xlu1 %v16224_v2, %s15429_s15 }
0x1e57   :  { %v3290_v3 = vpop.permute.xlu0 %3289 }
0x1e58   :  { %13124 = vmatmul.mubr.msk.f32.vlgmr.msra.gmra.mrb[48].mxu1 %vm98_vm0, %v3290_v3 }
0x1e59   :  { %14302 = vmatpush3.bf16.msra.mxu1 %v15640_v59  ;;  %13145 = vmatprep.mubr.msk.f32.mxu1 %vm15426_vm1, %v17465_v13 }
0x1e5a   :  { %14303 = vmatprep.subr.bf16.mxu1 %v17464_v7 }
0x1e5d   :  { %14305 = vmatpush3.bf16.msra.mxu1 %v15651_v62 }
0x1e5e   :  { %14312 = vmatprep.subr.bf16.mxu1 %v17464_v7 }
0x1e60   :  { %13146 = vmatmul.mubr.msk.f32.vlgmr.msra.gmra.mrb[50].mxu1 %vm98_vm0, %v3290_v3 }
0x1e61   :  { %14314 = vmatpush3.bf16.msra.mxu1 %v15618_v52  ;;  %13167 = vmatprep.mubr.msk.f32.mxu1 %vm15426_vm1, %v17465_v13 }
0x1e62   :  { %14315 = vmatprep.subr.bf16.mxu1 %v17464_v7 }
0x1e65   :  { %14317 = vmatpush3.bf16.msra.mxu1 %v15628_v56 }
0x1e66   :  { %14324 = vmatprep.subr.bf16.mxu1 %v17464_v7 }
0x1e8b   :  { %v3386_v57 = vpop.permute.xlu1 %3385 }
0x1e8c   :  { %13135 = vmatmul.mubr.msk.f32.vlgmr.msra.gmra.mrb[54].mxu0 %vm98_vm0, %v3386_v57 }
0x1e8d   :  { %14308 = vmatpush3.bf16.msra.mxu0 %v15523_v11  ;;  %13156 = vmatprep.mubr.msk.f32.mxu0 %vm15426_vm1, %v17465_v13 }
0x1e8e   :  { %14309 = vmatprep.subr.bf16.mxu0 %v17464_v7 }
0x1e91   :  { %14311 = vmatpush3.bf16.msra.mxu0 %v15546_v18 }
0x1e92   :  { %14318 = vmatprep.subr.bf16.mxu0 %v17464_v7 }
0x1f2b   :  { %v3359_v43 = vpop.f32.mrb[48].mxu1 }
0x1f2c   :  { %v3363_v54 = vadd.f32 %v3359_v43, %v341_v5  ;;  %v13125_v45 = vpop.f32.mrb[49].mxu1 }
0x1f2e   :  { %15130 = vtanh.f32 %v3363_v54 }
0x1f33   :  { %v3525_v0 = vpop.f32.mrb[50].mxu1 }
0x1f34   :  { %v13147_v48 = vpop.f32.mrb[51].mxu1 }
0x1f38   :  { %v15131_v44 = vpop.eup %15130 }
0x1f39   :  { %3369 = vrot.lane.b32.xlu0 %v15131_v44, %s15428_s1  ;;  %v3365_v3 = vmul.f32 0.5, %v15131_v44 }
0x1f3b   :  { %v3366_v4 = vadd.f32 0.5, %v3365_v3 }
0x1f5f   :  { %v3455_v63 = vpop.f32.mrb[54].mxu0 }
0x1f60   :  { %v3526_v49 = vadd.f32 %v3525_v0, %v3455_v63  ;;  %v13136_v23 = vpop.f32.mrb[55].mxu0  ;;  %v3367_v0 = vmul.f32 %v3366_v4, %v3114_v61 }
0x1f62   :  { %v3529_v1 = vadd.f32 %v16143_v17, %v3526_v49 }
0x1f64   :  { %15132 = vtanh.f32 %v3529_v1 }
0x1f6e   :  { %v15133_v46 = vpop.eup %15132 }
0x1f6f   :  { %3535 = vrot.lane.b32.xlu1 %v15133_v46, %s15428_s1  ;;  %v3531_v43 = vmul.f32 0.5, %v15133_v46 }
0x1f71   :  { %v3532_v54 = vadd.f32 0.5, %v3531_v43 }
0x1f73   :  { %v3533_v1 = vmul.f32 %v3532_v54, %v3280_v53 }
0x1fab   :  { %v3370_v57 = vpop.permute.xlu0 %3369 }
0x1fac   :  { %v3372_v5 = vmul.f32 %v3370_v57, %v3366_v4 }
0x1fae   :  { %3374 = vrot.lane.b32.xlu0 %v3372_v5, %s15429_s15 }
0x1fe1   :  { %v3536_v45 = vpop.permute.xlu1 %3535 }
0x1fe2   :  { %v3538_v48 = vmul.f32 %v3536_v45, %v3532_v54 }
0x1fe4   :  { %3540 = vrot.lane.b32.xlu1 %v3538_v48, %s15429_s15 }
0x2020   :  { %v3375_v63 = vpop.permute.xlu0 %3374 }
0x2021   :  { %v3377_v23 = vadd.f32 %v3375_v63, %v3367_v0 }
0x2023   :  { %15134 = vtanh.f32 %v3377_v23 }
0x202d   :  { %v15135_v49 = vpop.eup %15134 }
0x202e   :  { %3380 = vrot.lane.b32.xlu0 %v15135_v49, %s15428_s1 }
0x2056   :  { %v3541_v44 = vpop.permute.xlu1 %3540 }
0x2057   :  { %v3543_v3 = vadd.f32 %v3541_v44, %v3533_v1 }
0x2059   :  { %15136 = vtanh.f32 %v3543_v3 }
0x2063   :  { %v15137_v57 = vpop.eup %15136 }
0x2064   :  { %3546 = vrot.lane.b32.xlu1 %v15137_v57, %s15428_s1 }
0x20a0   :  { %v3381_v46 = vpop.permute.xlu0 %3380 }
0x20a1   :  { %v3383_v5 = vmul.f32 %v3381_v46, %v3366_v4  ;;  %v346_v4 = vadd.f32 %v16092_v32, %v15932_v9 }
0x20a3   :  { %3552 = vrot.lane.b32.xlu0 %v3383_v5, %s15429_s15 }
0x20d6   :  { %v3547_v43 = vpop.permute.xlu1 %3546 }
0x20d7   :  { %v16259_v45 = vmul.f32 %v3547_v43, %v3532_v54 }
0x20d9   :  { %3648 = vrot.lane.b32.xlu1 %v16259_v45, %s15429_s15 }
0x2115   :  { %v3553_v61 = vpop.permute.xlu0 %3552 }
0x2116   :  { %13157 = vmatmul.mubr.msk.f32.vlgmr.msra.gmra.mrb[56].mxu0 %vm98_vm0, %v3553_v61 }
0x2117   :  { %14320 = vmatpush3.bf16.msra.mxu0 %v15640_v59  ;;  %13178 = vmatprep.mubr.msk.f32.mxu0 %vm15426_vm1, %v17465_v13 }
0x2118   :  { %14321 = vmatprep.subr.bf16.mxu0 %v17464_v7 }
0x211b   :  { %14323 = vmatpush3.bf16.msra.mxu0 %v15651_v62 }
0x211c   :  { %14330 = vmatprep.subr.bf16.mxu0 %v17464_v7 }
0x211e   :  { %13179 = vmatmul.mubr.msk.f32.vlgmr.msra.gmra.mrb[58].mxu0 %vm98_vm0, %v3553_v61 }
0x211f   :  { %14332 = vmatpush3.bf16.msra.mxu0 %v15618_v52  ;;  %13200 = vmatprep.mubr.msk.f32.mxu0 %vm15426_vm1, %v17465_v13 }
0x2120   :  { %14333 = vmatprep.subr.bf16.mxu0 %v17464_v7 }
0x2123   :  { %14335 = vmatpush3.bf16.msra.mxu0 %v15628_v56 }
0x2124   :  { %14342 = vmatprep.subr.bf16.mxu0 %v17464_v7 }
0x214b   :  { %v3649_v53 = vpop.permute.xlu1 %3648 }
0x214c   :  { %13168 = vmatmul.mubr.msk.f32.vlgmr.msra.gmra.mrb[52].mxu1 %vm98_vm0, %v3649_v53 }
0x214d   :  { %14326 = vmatpush3.bf16.msra.mxu1 %v15523_v11  ;;  %13189 = vmatprep.mubr.msk.f32.mxu1 %vm15426_vm1, %v17465_v13 }
0x214e   :  { %14327 = vmatprep.subr.bf16.mxu1 %v17464_v7 }
0x2151   :  { %14329 = vmatpush3.bf16.msra.mxu1 %v15546_v18 }
0x2152   :  { %14336 = vmatprep.subr.bf16.mxu1 %v17464_v7 }
0x21e9   :  { %v3622_v54 = vpop.f32.mrb[56].mxu0 }
0x21ea   :  { %v3626_v48 = vadd.f32 %v3622_v54, %v346_v4  ;;  %v13158_v0 = vpop.f32.mrb[57].mxu0 }
0x21ec   :  { %15138 = vtanh.f32 %v3626_v48 }
0x21f1   :  { %v3788_v63 = vpop.f32.mrb[58].mxu0 }
0x21f2   :  { %v13180_v49 = vpop.f32.mrb[59].mxu0 }
0x21f6   :  { %v15139_v1 = vpop.eup %15138 }
0x21f7   :  { %3632 = vrot.lane.b32.xlu0 %v15139_v1, %s15428_s1  ;;  %v3628_v61 = vmul.f32 0.5, %v15139_v1 }
0x21f9   :  { %v3629_v9 = vadd.f32 0.5, %v3628_v61 }
0x221f   :  { %v3718_v44 = vpop.f32.mrb[52].mxu1 }
0x2220   :  { %v3789_v57 = vadd.f32 %v3788_v63, %v3718_v44  ;;  %v13169_v46 = vpop.f32.mrb[53].mxu1  ;;  %v3630_v63 = vmul.f32 %v3629_v9, %v3377_v23 }
0x2222   :  { %v3792_v5 = vadd.f32 %v16143_v17, %v3789_v57 }
0x2224   :  { %15140 = vtanh.f32 %v3792_v5 }
0x222e   :  { %v15141_v43 = vpop.eup %15140 }
0x222f   :  { %3798 = vrot.lane.b32.xlu1 %v15141_v43, %s15428_s1  ;;  %v3794_v54 = vmul.f32 0.5, %v15141_v43 }
0x2231   :  { %v3795_v48 = vadd.f32 0.5, %v3794_v54 }
0x2233   :  { %v3796_v5 = vmul.f32 %v3795_v48, %v3543_v3 }
0x2269   :  { %v3633_v53 = vpop.permute.xlu0 %3632 }
0x226a   :  { %v3635_v4 = vmul.f32 %v3633_v53, %v3629_v9 }
0x226c   :  { %3637 = vrot.lane.b32.xlu0 %v3635_v4, %s15429_s15 }
0x22a1   :  { %v3799_v0 = vpop.permute.xlu1 %3798 }
0x22a2   :  { %v3801_v49 = vmul.f32 %v3799_v0, %v3795_v48 }
0x22a4   :  { %3803 = vrot.lane.b32.xlu1 %v3801_v49, %s15429_s15 }
0x22de   :  { %v3638_v44 = vpop.permute.xlu0 %3637 }
0x22df   :  { %v3640_v46 = vadd.f32 %v3638_v44, %v3630_v63 }
0x22e1   :  { %15142 = vtanh.f32 %v3640_v46 }
0x22eb   :  { %v15143_v57 = vpop.eup %15142 }
0x22ec   :  { %3643 = vrot.lane.b32.xlu0 %v15143_v57, %s15428_s1 }
0x2316   :  { %v3804_v1 = vpop.permute.xlu1 %3803 }
0x2317   :  { %v3806_v61 = vadd.f32 %v3804_v1, %v3796_v5 }
0x2319   :  { %15144 = vtanh.f32 %v3806_v61 }
0x2323   :  { %v15145_v53 = vpop.eup %15144 }
0x2324   :  { %3809 = vrot.lane.b32.xlu1 %v15145_v53, %s15428_s1 }
0x235e   :  { %v3644_v43 = vpop.permute.xlu0 %3643 }
0x235f   :  { %v3646_v4 = vmul.f32 %v3644_v43, %v3629_v9  ;;  %v351_v9 = vadd.f32 %v16092_v32, %v15930_v8 }
0x2361   :  { %3826 = vrot.lane.b32.xlu0 %v3646_v4, %s15429_s15 }
0x2396   :  { %v3810_v54 = vpop.permute.xlu1 %3809 }
0x2397   :  { %v16294_v0 = vmul.f32 %v3810_v54, %v3795_v48 }
0x2399   :  { %3922 = vrot.lane.b32.xlu1 %v16294_v0, %s15429_s15 }
0x23d3   :  { %v3827_v23 = vpop.permute.xlu0 %3826 }
0x23d4   :  { %13190 = vmatmul.mubr.msk.f32.vlgmr.msra.gmra.mrb[54].mxu1 %vm98_vm0, %v3827_v23 }
0x23d5   :  { %14338 = vmatpush3.bf16.msra.mxu1 %v15640_v59  ;;  %13211 = vmatprep.mubr.msk.f32.mxu1 %vm15426_vm1, %v17465_v13 }
0x23d6   :  { %14339 = vmatprep.subr.bf16.mxu1 %v17464_v7 }
0x23d9   :  { %14341 = vmatpush3.bf16.msra.mxu1 %v15651_v62 }
0x23da   :  { %14348 = vmatprep.subr.bf16.mxu1 %v17464_v7 }
0x23dc   :  { %13212 = vmatmul.mubr.msk.f32.vlgmr.msra.gmra.mrb[56].mxu1 %vm98_vm0, %v3827_v23 }
0x23dd   :  { %14350 = vmatpush3.bf16.msra.mxu1 %v15618_v52  ;;  %13233 = vmatprep.mubr.msk.f32.mxu1 %vm15426_vm1, %v17465_v13 }
0x23de   :  { %14351 = vmatprep.subr.bf16.mxu1 %v17464_v7 }
0x23e1   :  { %14353 = vmatpush3.bf16.msra.mxu1 %v15628_v56 }
0x23e2   :  { %14360 = vmatprep.subr.bf16.mxu1 %v17464_v7 }
0x240b   :  { %v3923_v3 = vpop.permute.xlu1 %3922 }
0x240c   :  { %13201 = vmatmul.mubr.msk.f32.vlgmr.msra.gmra.mrb[60].mxu0 %vm98_vm0, %v3923_v3 }
0x240d   :  { %14344 = vmatpush3.bf16.msra.mxu0 %v15523_v11  ;;  %13222 = vmatprep.mubr.msk.f32.mxu0 %vm15426_vm1, %v17465_v13 }
0x240e   :  { %14345 = vmatprep.subr.bf16.mxu0 %v17464_v7 }
0x2411   :  { %14347 = vmatpush3.bf16.msra.mxu0 %v15546_v18 }
0x2412   :  { %14354 = vmatprep.subr.bf16.mxu0 %v17464_v7 }
0x24a7   :  { %v3896_v48 = vpop.f32.mrb[54].mxu1 }
0x24a8   :  { %v3900_v49 = vadd.f32 %v3896_v48, %v351_v9  ;;  %v13191_v63 = vpop.f32.mrb[55].mxu1 }
0x24aa   :  { %15146 = vtanh.f32 %v3900_v49 }
0x24af   :  { %v4062_v44 = vpop.f32.mrb[56].mxu1 }
0x24b0   :  { %v13213_v57 = vpop.f32.mrb[57].mxu1 }
0x24b4   :  { %v15147_v5 = vpop.eup %15146 }
0x24b5   :  { %3906 = vrot.lane.b32.xlu0 %v15147_v5, %s15428_s1  ;;  %v3902_v23 = vmul.f32 0.5, %v15147_v5 }
0x24b7   :  { %v3903_v8 = vadd.f32 0.5, %v3902_v23 }
0x24df   :  { %v3992_v1 = vpop.f32.mrb[60].mxu0 }
0x24e0   :  { %v4063_v53 = vadd.f32 %v4062_v44, %v3992_v1  ;;  %v13202_v43 = vpop.f32.mrb[61].mxu0  ;;  %v3904_v44 = vmul.f32 %v3903_v8, %v3640_v46 }
0x24e2   :  { %v4066_v4 = vadd.f32 %v16143_v17, %v4063_v53 }
0x24e4   :  { %15148 = vtanh.f32 %v4066_v4 }
0x24ee   :  { %v15149_v54 = vpop.eup %15148 }
0x24ef   :  { %4072 = vrot.lane.b32.xlu1 %v15149_v54, %s15428_s1  ;;  %v4068_v48 = vmul.f32 0.5, %v15149_v54 }
0x24f1   :  { %v4069_v49 = vadd.f32 0.5, %v4068_v48 }
0x24f3   :  { %v4070_v4 = vmul.f32 %v4069_v49, %v3806_v61 }
0x2527   :  { %v3907_v3 = vpop.permute.xlu0 %3906 }
0x2528   :  { %v3909_v9 = vmul.f32 %v3907_v3, %v3903_v8 }
0x252a   :  { %3911 = vrot.lane.b32.xlu0 %v3909_v9, %s15429_s15 }
0x2561   :  { %v4073_v63 = vpop.permute.xlu1 %4072 }
0x2562   :  { %v4075_v57 = vmul.f32 %v4073_v63, %v4069_v49 }
0x2564   :  { %4077 = vrot.lane.b32.xlu1 %v4075_v57, %s15429_s15 }
0x259c   :  { %v3912_v1 = vpop.permute.xlu0 %3911 }
0x259d   :  { %v3914_v43 = vadd.f32 %v3912_v1, %v3904_v44 }
0x259f   :  { %15150 = vtanh.f32 %v3914_v43 }
0x25a9   :  { %v15151_v53 = vpop.eup %15150 }
0x25aa   :  { %3917 = vrot.lane.b32.xlu0 %v15151_v53, %s15428_s1 }
0x25d6   :  { %v4078_v5 = vpop.permute.xlu1 %4077 }
0x25d7   :  { %v4080_v23 = vadd.f32 %v4078_v5, %v4070_v4 }
0x25d9   :  { %15152 = vtanh.f32 %v4080_v23 }
0x25e3   :  { %v15153_v3 = vpop.eup %15152 }
0x25e4   :  { %4083 = vrot.lane.b32.xlu1 %v15153_v3, %s15428_s1 }
0x261c   :  { %v3918_v54 = vpop.permute.xlu0 %3917 }
0x261d   :  { %v3920_v9 = vmul.f32 %v3918_v54, %v3903_v8  ;;  %v356_v8 = vadd.f32 %v16092_v32, %v15936_v12 }
0x261f   :  { %4089 = vrot.lane.b32.xlu0 %v3920_v9, %s15429_s15 }
0x2656   :  { %v4084_v48 = vpop.permute.xlu1 %4083 }
0x2657   :  { %v4086_v63 = vmul.f32 %v4084_v48, %v4069_v49 }
0x2659   :  { %4185 = vrot.lane.b32.xlu1 %v4086_v63, %s15429_s15 }
0x2691   :  { %v4090_v46 = vpop.permute.xlu0 %4089 }
0x2692   :  { %13223 = vmatmul.mubr.msk.f32.vlgmr.msra.gmra.mrb[62].mxu0 %vm98_vm0, %v4090_v46 }
0x2693   :  { %14356 = vmatpush3.bf16.msra.mxu0 %v15640_v59  ;;  %13244 = vmatprep.mubr.msk.f32.mxu0 %vm15426_vm1, %v17465_v13 }
0x2694   :  { %14357 = vmatprep.subr.bf16.mxu0 %v17464_v7 }
0x2697   :  { %14359 = vmatpush3.bf16.msra.mxu0 %v15651_v62 }
0x2698   :  { %14366 = vmatprep.subr.bf16.mxu0 %v17464_v7 }
0x269a   :  { %13245 = vmatmul.mubr.msk.f32.vlgmr.msra.gmra.mrb[64].mxu0 %vm98_vm0, %v4090_v46 }
0x269b   :  { %14368 = vmatpush3.bf16.msra.mxu0 %v15618_v52  ;;  %13266 = vmatprep.mubr.msk.f32.mxu0 %vm15426_vm1, %v17465_v13 }
0x269c   :  { %14369 = vmatprep.subr.bf16.mxu0 %v17464_v7 }
0x269f   :  { %14371 = vmatpush3.bf16.msra.mxu0 %v15628_v56 }
0x26a0   :  { %14378 = vmatprep.subr.bf16.mxu0 %v17464_v7 }
0x26cb   :  { %v16344_v61 = vpop.permute.xlu1 %4185 }
0x26cc   :  { %13234 = vmatmul.mubr.msk.f32.vlgmr.msra.gmra.mrb[58].mxu1 %vm98_vm0, %v16344_v61 }
0x26cd   :  { %14362 = vmatpush3.bf16.msra.mxu1 %v15523_v11  ;;  %13255 = vmatprep.mubr.msk.f32.mxu1 %vm15426_vm1, %v17465_v13 }
0x26ce   :  { %14363 = vmatprep.subr.bf16.mxu1 %v17464_v7 }
0x26d1   :  { %14365 = vmatpush3.bf16.msra.mxu1 %v15546_v18 }
0x26d2   :  { %14372 = vmatprep.subr.bf16.mxu1 %v17464_v7 }
0x2765   :  { %v4159_v49 = vpop.f32.mrb[62].mxu0 }
0x2766   :  { %v4163_v57 = vadd.f32 %v4159_v49, %v356_v8  ;;  %v13224_v44 = vpop.f32.mrb[63].mxu0 }
0x2768   :  { %15154 = vtanh.f32 %v4163_v57 }
0x276d   :  { %v4325_v1 = vpop.f32.mrb[64].mxu0 }
0x276e   :  { %v13246_v53 = vpop.f32.mrb[65].mxu0 }
0x2772   :  { %v15155_v4 = vpop.eup %15154 }
0x2773   :  { %4169 = vrot.lane.b32.xlu0 %v15155_v4, %s15428_s1  ;;  %v4165_v63 = vmul.f32 0.5, %v15155_v4 }
0x2775   :  { %v4166_v12 = vadd.f32 0.5, %v4165_v63 }
0x279f   :  { %v4255_v5 = vpop.f32.mrb[58].mxu1 }
0x27a0   :  { %v4326_v3 = vadd.f32 %v4325_v1, %v4255_v5  ;;  %v13235_v54 = vpop.f32.mrb[59].mxu1  ;;  %v4167_v1 = vmul.f32 %v4166_v12, %v3914_v43 }
0x27a2   :  { %v4329_v9 = vadd.f32 %v16143_v17, %v4326_v3 }
0x27a4   :  { %15156 = vtanh.f32 %v4329_v9 }
0x27ae   :  { %v15157_v48 = vpop.eup %15156 }
0x27af   :  { %4335 = vrot.lane.b32.xlu1 %v15157_v48, %s15428_s1  ;;  %v4331_v8 = vmul.f32 0.5, %v15157_v48 }
0x27b1   :  { %v4332_v49 = vadd.f32 0.5, %v4331_v8 }
0x27b3   :  { %v4333_v4 = vmul.f32 %v4332_v49, %v4080_v23 }
0x27e5   :  { %v4170_v32 = vpop.permute.xlu0 %4169 }
0x27e6   :  { %v4172_v46 = vmul.f32 %v4170_v32, %v4166_v12 }
0x27e8   :  { %4174 = vrot.lane.b32.xlu0 %v4172_v46, %s15429_s15 }
0x2821   :  { %v4336_v57 = vpop.permute.xlu1 %4335 }
0x2822   :  { %v4338_v44 = vmul.f32 %v4336_v57, %v4332_v49 }
0x2824   :  { %4340 = vrot.lane.b32.xlu1 %v4338_v44, %s15429_s15 }
0x285a   :  { %v4175_v53 = vpop.permute.xlu0 %4174 }
0x285b   :  { %v16361_v5 = vadd.f32 %v4175_v53, %v4167_v1 }
0x285d   :  { %15158 = vtanh.f32 %v16361_v5 }
0x2867   :  { %v15159_v3 = vpop.eup %15158 }
0x2868   :  { %4180 = vrot.lane.b32.xlu0 %v15159_v3, %s15428_s1 }
0x2896   :  { %v4341_v54 = vpop.permute.xlu1 %4340 }
0x2897   :  { %v16365_v9 = vadd.f32 %v4341_v54, %v4333_v4 }
0x2899   :  { %15160 = vtanh.f32 %v16365_v9 }
0x28a3   :  { %v15161_v48 = vpop.eup %15160 }
0x28a4   :  { %4346 = vrot.lane.b32.xlu1 %v15161_v48, %s15428_s1 }
0x28da   :  { %v4181_v63 = vpop.permute.xlu0 %4180 }
0x28db   :  { %v4183_v32 = vmul.f32 %v4181_v63, %v4166_v12  ;;  %v16398_v12 = vld [vmem:[%s17451_s3] ss:$0 sm:$0xff] }
0x28dd   :  { %4352 = vrot.lane.b32.xlu0 %v4183_v32, %s15429_s15 }
0x2916   :  { %v4347_v43 = vpop.permute.xlu1 %4346 }
0x2917   :  { %v16370_v46 = vmul.f32 %v4347_v43, %v4332_v49  ;;  %v361_v49 = vadd.f32 %v16398_v12, %v15934_v10 }
0x2919   :  { %4448 = vrot.lane.b32.xlu1 %v16370_v46, %s15429_s15 }
0x294f   :  { %v4353_v8 = vpop.permute.xlu0 %4352 }
0x2950   :  { %13256 = vmatmul.mubr.msk.f32.vlgmr.msra.gmra.mrb[60].mxu1 %vm98_vm0, %v4353_v8 }
0x2951   :  { %14374 = vmatpush3.bf16.msra.mxu1 %v15640_v59  ;;  %13277 = vmatprep.mubr.msk.f32.mxu1 %vm15426_vm1, %v17465_v13 }
0x2952   :  { %14375 = vmatprep.subr.bf16.mxu1 %v17464_v7 }
0x2955   :  { %14377 = vmatpush3.bf16.msra.mxu1 %v15651_v62 }
0x2956   :  { %14384 = vmatprep.subr.bf16.mxu1 %v17464_v7 }
0x2958   :  { %13278 = vmatmul.mubr.msk.f32.vlgmr.msra.gmra.mrb[62].mxu1 %vm98_vm0, %v4353_v8 }
0x2959   :  { %14386 = vmatpush3.bf16.msra.mxu1 %v15618_v52  ;;  %13299 = vmatprep.mubr.msk.f32.mxu1 %vm15426_vm1, %v17465_v13 }
0x295a   :  { %14387 = vmatprep.subr.bf16.mxu1 %v17464_v7 }
0x295d   :  { %14389 = vmatpush3.bf16.msra.mxu1 %v15628_v56 }
0x295e   :  { %14396 = vmatprep.subr.bf16.mxu1 %v17464_v7 }
0x298b   :  { %v4449_v23 = vpop.permute.xlu1 %4448 }
0x298c   :  { %13267 = vmatmul.mubr.msk.f32.vlgmr.msra.gmra.mrb[66].mxu0 %vm98_vm0, %v4449_v23 }
0x298d   :  { %14380 = vmatpush3.bf16.msra.mxu0 %v15523_v11  ;;  %13288 = vmatprep.mubr.msk.f32.mxu0 %vm15426_vm1, %v17465_v13 }
0x298e   :  { %14381 = vmatprep.subr.bf16.mxu0 %v17464_v7 }
0x2991   :  { %14383 = vmatpush3.bf16.msra.mxu0 %v15546_v18 }
0x2992   :  { %14390 = vmatprep.subr.bf16.mxu0 %v17464_v7 }
0x2a23   :  { %v4422_v57 = vpop.f32.mrb[60].mxu1 }
0x2a24   :  { %v4426_v44 = vadd.f32 %v4422_v57, %v361_v49  ;;  %v13257_v1 = vpop.f32.mrb[61].mxu1 }
0x2a26   :  { %15162 = vtanh.f32 %v4426_v44 }
0x2a2b   :  { %v4588_v53 = vpop.f32.mrb[62].mxu1 }
0x2a2c   :  { %v13279_v3 = vpop.f32.mrb[63].mxu1 }
0x2a30   :  { %v15163_v4 = vpop.eup %15162 }
0x2a31   :  { %4432 = vrot.lane.b32.xlu0 %v15163_v4, %s15428_s1  ;;  %v4428_v8 = vmul.f32 0.5, %v15163_v4 }
0x2a33   :  { %v4429_v10 = vadd.f32 0.5, %v4428_v8 }
0x2a5f   :  { %v4518_v54 = vpop.f32.mrb[66].mxu0 }
0x2a60   :  { %v4589_v48 = vadd.f32 %v4588_v53, %v4518_v54  ;;  %v13268_v63 = vpop.f32.mrb[67].mxu0  ;;  %v4430_v53 = vmul.f32 %v4429_v10, %v16361_v5 }
0x2a62   :  { %v4592_v32 = vadd.f32 %v16143_v17, %v4589_v48 }
0x2a64   :  { %15164 = vtanh.f32 %v4592_v32 }
0x2a6e   :  { %v15165_v43 = vpop.eup %15164 }
0x2a6f   :  { %4598 = vrot.lane.b32.xlu1 %v15165_v43, %s15428_s1  ;;  %v4594_v57 = vmul.f32 0.5, %v15165_v43 }
0x2a71   :  { %v4595_v44 = vadd.f32 0.5, %v4594_v57 }
0x2a73   :  { %v4596_v4 = vmul.f32 %v4595_v44, %v16365_v9 }
0x2aa3   :  { %v4433_v23 = vpop.permute.xlu0 %4432 }
0x2aa4   :  { %v4435_v49 = vmul.f32 %v4433_v23, %v4429_v10 }
0x2aa6   :  { %4437 = vrot.lane.b32.xlu0 %v4435_v49, %s15429_s15 }
0x2ae1   :  { %v4599_v1 = vpop.permute.xlu1 %4598 }
0x2ae2   :  { %v4601_v3 = vmul.f32 %v4599_v1, %v4595_v44 }
0x2ae4   :  { %4603 = vrot.lane.b32.xlu1 %v4601_v3, %s15429_s15 }
0x2b18   :  { %v4438_v54 = vpop.permute.xlu0 %4437 }
0x2b19   :  { %v16408_v17 = vadd.f32 %v4438_v54, %v4430_v53 }
0x2b1b   :  { %15166 = vtanh.f32 %v16408_v17 }
0x2b25   :  { %v15167_v48 = vpop.eup %15166 }
0x2b26   :  { %4443 = vrot.lane.b32.xlu0 %v15167_v48, %s15428_s1 }
0x2b56   :  { %v4604_v63 = vpop.permute.xlu1 %4603 }
0x2b57   :  { %v16413_v32 = vadd.f32 %v4604_v63, %v4596_v4 }
0x2b59   :  { %15168 = vtanh.f32 %v16413_v32 }
0x2b63   :  { %v15169_v43 = vpop.eup %15168 }
0x2b64   :  { %4609 = vrot.lane.b32.xlu1 %v15169_v43, %s15428_s1 }
0x2b98   :  { %v4444_v8 = vpop.permute.xlu0 %4443 }
0x2b99   :  { %v4446_v5 = vmul.f32 %v4444_v8, %v4429_v10  ;;  %v366_v10 = vadd.f32 %v16398_v12, %v15940_v15  ;;  %v16449_v8 = vld [vmem:[%s17454_s6] ss:$0 sm:$0xff] }
0x2b9b   :  { %4615 = vrot.lane.b32.xlu0 %v4446_v5, %s15429_s15 }
0x2bd6   :  { %v4610_v23 = vpop.permute.xlu1 %4609 }
0x2bd7   :  { %v16418_v49 = vmul.f32 %v4610_v23, %v4595_v44 }
0x2bd9   :  { %4711 = vrot.lane.b32.xlu1 %v16418_v49, %s15429_s15 }
0x2c0d   :  { %v4616_v57 = vpop.permute.xlu0 %4615 }
0x2c0e   :  { %13289 = vmatmul.mubr.msk.f32.vlgmr.msra.gmra.mrb[68].mxu0 %vm98_vm0, %v4616_v57 }
0x2c0f   :  { %14392 = vmatpush3.bf16.msra.mxu0 %v15640_v59  ;;  %13310 = vmatprep.mubr.msk.f32.mxu0 %vm15426_vm1, %v17465_v13 }
0x2c10   :  { %14393 = vmatprep.subr.bf16.mxu0 %v17464_v7 }
0x2c13   :  { %14395 = vmatpush3.bf16.msra.mxu0 %v15651_v62 }
0x2c14   :  { %14402 = vmatprep.subr.bf16.mxu0 %v17464_v7 }
0x2c16   :  { %13311 = vmatmul.mubr.msk.f32.vlgmr.msra.gmra.mrb[70].mxu0 %vm98_vm0, %v4616_v57 }
0x2c17   :  { %14404 = vmatpush3.bf16.msra.mxu0 %v15618_v52  ;;  %13332 = vmatprep.mubr.msk.f32.mxu0 %vm15426_vm1, %v17465_v13 }
0x2c18   :  { %14405 = vmatprep.subr.bf16.mxu0 %v17464_v7 }
0x2c1b   :  { %14407 = vmatpush3.bf16.msra.mxu0 %v15628_v56 }
0x2c1c   :  { %14414 = vmatprep.subr.bf16.mxu0 %v17464_v7 }
0x2c4b   :  { %v4712_v9 = vpop.permute.xlu1 %4711 }
0x2c4c   :  { %13300 = vmatmul.mubr.msk.f32.vlgmr.msra.gmra.mrb[64].mxu1 %vm98_vm0, %v4712_v9 }
0x2c4d   :  { %14398 = vmatpush3.bf16.msra.mxu1 %v15523_v11  ;;  %13321 = vmatprep.mubr.msk.f32.mxu1 %vm15426_vm1, %v17465_v13 }
0x2c4e   :  { %14399 = vmatprep.subr.bf16.mxu1 %v17464_v7 }
0x2c51   :  { %14401 = vmatpush3.bf16.msra.mxu1 %v15546_v18 }
0x2c52   :  { %14408 = vmatprep.subr.bf16.mxu1 %v17464_v7 }
0x2ce1   :  { %v4685_v44 = vpop.f32.mrb[68].mxu0 }
0x2ce2   :  { %v4689_v1 = vadd.f32 %v4685_v44, %v366_v10  ;;  %v13290_v3 = vpop.f32.mrb[69].mxu0 }
0x2ce4   :  { %15170 = vtanh.f32 %v4689_v1 }
0x2ce9   :  { %v4851_v53 = vpop.f32.mrb[70].mxu0 }
0x2cea   :  { %v13312_v54 = vpop.f32.mrb[71].mxu0 }
0x2cee   :  { %v15171_v48 = vpop.eup %15170 }
0x2cef   :  { %4695 = vrot.lane.b32.xlu0 %v15171_v48, %s15428_s1  ;;  %v4691_v23 = vmul.f32 0.5, %v15171_v48 }
0x2cf1   :  { %v4692_v57 = vadd.f32 0.5, %v4691_v23 }
0x2cf3   :  { %v4693_v54 = vmul.f32 %v4692_v57, %v16408_v17 }
0x2d1f   :  { %v4781_v4 = vpop.f32.mrb[64].mxu1 }
0x2d20   :  { %v4852_v63 = vadd.f32 %v4851_v53, %v4781_v4  ;;  %v13301_v43 = vpop.f32.mrb[65].mxu1 }
0x2d22   :  { %v4855_v5 = vadd.f32 %v16449_v8, %v4852_v63 }
0x2d24   :  { %15172 = vtanh.f32 %v4855_v5 }
0x2d2e   :  { %v15173_v15 = vpop.eup %15172 }
0x2d2f   :  { %4861 = vrot.lane.b32.xlu1 %v15173_v15, %s15428_s1  ;;  %v4857_v44 = vmul.f32 0.5, %v15173_v15 }
0x2d31   :  { %v4858_v1 = vadd.f32 0.5, %v4857_v44 }
0x2d33   :  { %v4859_v48 = vmul.f32 %v4858_v1, %v16413_v32 }
0x2d61   :  { %v4696_v9 = vpop.permute.xlu0 %4695 }
0x2d62   :  { %v4698_v10 = vmul.f32 %v4696_v9, %v4692_v57 }
0x2d64   :  { %4700 = vrot.lane.b32.xlu0 %v4698_v10, %s15429_s15 }
0x2da1   :  { %v4862_v3 = vpop.permute.xlu1 %4861 }
0x2da2   :  { %v4864_v53 = vmul.f32 %v4862_v3, %v4858_v1 }
0x2da4   :  { %4866 = vrot.lane.b32.xlu1 %v4864_v53, %s15429_s15 }
0x2dd6   :  { %v4701_v4 = vpop.permute.xlu0 %4700 }
0x2dd7   :  { %v4703_v63 = vadd.f32 %v4701_v4, %v4693_v54 }
0x2dd9   :  { %15174 = vtanh.f32 %v4703_v63 }
0x2de3   :  { %v15175_v43 = vpop.eup %15174 }
0x2de4   :  { %4706 = vrot.lane.b32.xlu0 %v15175_v43, %s15428_s1 }
0x2e16   :  { %v4867_v5 = vpop.permute.xlu1 %4866 }
0x2e17   :  { %v4869_v23 = vadd.f32 %v4867_v5, %v4859_v48 }
0x2e19   :  { %15176 = vtanh.f32 %v4869_v23 }
0x2e23   :  { %v15177_v9 = vpop.eup %15176 }
0x2e24   :  { %4872 = vrot.lane.b32.xlu1 %v15177_v9, %s15428_s1 }
0x2e56   :  { %v4707_v15 = vpop.permute.xlu0 %4706 }
0x2e57   :  { %v4709_v10 = vmul.f32 %v4707_v15, %v4692_v57  ;;  %v371_v57 = vadd.f32 %v16398_v12, %v15938_v14 }
0x2e59   :  { %4889 = vrot.lane.b32.xlu0 %v4709_v10, %s15429_s15 }
0x2e96   :  { %v4873_v44 = vpop.permute.xlu1 %4872 }
0x2e97   :  { %v16460_v17 = vmul.f32 %v4873_v44, %v4858_v1 }
0x2e99   :  { %4985 = vrot.lane.b32.xlu1 %v16460_v17, %s15429_s15 }
0x2ecb   :  { %v4890_v3 = vpop.permute.xlu0 %4889 }
0x2ecc   :  { %13322 = vmatmul.mubr.msk.f32.vlgmr.msra.gmra.mrb[66].mxu1 %vm98_vm0, %v4890_v3 }
0x2ecd   :  { %14410 = vmatpush3.bf16.msra.mxu1 %v15640_v59  ;;  %13343 = vmatprep.mubr.msk.f32.mxu1 %vm15426_vm1, %v17465_v13 }
0x2ece   :  { %14411 = vmatprep.subr.bf16.mxu1 %v17464_v7 }
0x2ed1   :  { %14413 = vmatpush3.bf16.msra.mxu1 %v15651_v62 }
0x2ed2   :  { %14420 = vmatprep.subr.bf16.mxu1 %v17464_v7 }
0x2ed4   :  { %13344 = vmatmul.mubr.msk.f32.vlgmr.msra.gmra.mrb[68].mxu1 %vm98_vm0, %v4890_v3 }
0x2ed5   :  { %14422 = vmatpush3.bf16.msra.mxu1 %v15618_v52  ;;  %13365 = vmatprep.mubr.msk.f32.mxu1 %vm15426_vm1, %v17465_v13 }
0x2ed6   :  { %14423 = vmatprep.subr.bf16.mxu1 %v17464_v7 }
0x2ed9   :  { %14425 = vmatpush3.bf16.msra.mxu1 %v15628_v56 }
0x2eda   :  { %14432 = vmatprep.subr.bf16.mxu1 %v17464_v7 }
0x2f0b   :  { %v4986_v32 = vpop.permute.xlu1 %4985 }
0x2f0c   :  { %13333 = vmatmul.mubr.msk.f32.vlgmr.msra.gmra.mrb[72].mxu0 %vm98_vm0, %v4986_v32 }
0x2f0d   :  { %14416 = vmatpush3.bf16.msra.mxu0 %v15523_v11  ;;  %13354 = vmatprep.mubr.msk.f32.mxu0 %vm15426_vm1, %v17465_v13 }
0x2f0e   :  { %14417 = vmatprep.subr.bf16.mxu0 %v17464_v7 }
0x2f11   :  { %14419 = vmatpush3.bf16.msra.mxu0 %v15546_v18 }
0x2f12   :  { %14426 = vmatprep.subr.bf16.mxu0 %v17464_v7 }
0x2f9f   :  { %v4959_v1 = vpop.f32.mrb[66].mxu1 }
0x2fa0   :  { %v4963_v53 = vadd.f32 %v4959_v1, %v371_v57  ;;  %v13323_v54 = vpop.f32.mrb[67].mxu1 }
0x2fa2   :  { %15178 = vtanh.f32 %v4963_v53 }
0x2fa7   :  { %v5125_v4 = vpop.f32.mrb[68].mxu1 }
0x2fa8   :  { %v13345_v43 = vpop.f32.mrb[69].mxu1 }
0x2fac   :  { %v15179_v48 = vpop.eup %15178 }
0x2fad   :  { %4969 = vrot.lane.b32.xlu0 %v15179_v48, %s15428_s1  ;;  %v4965_v3 = vmul.f32 0.5, %v15179_v48 }
0x2faf   :  { %v4966_v14 = vadd.f32 0.5, %v4965_v3 }
0x2fdf   :  { %v5055_v5 = vpop.f32.mrb[72].mxu0 }
0x2fe0   :  { %v5126_v9 = vadd.f32 %v5125_v4, %v5055_v5  ;;  %v13334_v15 = vpop.f32.mrb[73].mxu0  ;;  %v4967_v4 = vmul.f32 %v4966_v14, %v4703_v63 }
0x2fe2   :  { %v5129_v10 = vadd.f32 %v16449_v8, %v5126_v9 }
0x2fe4   :  { %15180 = vtanh.f32 %v5129_v10 }
0x2fee   :  { %v15181_v44 = vpop.eup %15180 }
0x2fef   :  { %5135 = vrot.lane.b32.xlu1 %v15181_v44, %s15428_s1  ;;  %v5131_v1 = vmul.f32 0.5, %v15181_v44 }
0x2ff1   :  { %v5132_v53 = vadd.f32 0.5, %v5131_v1 }
0x2ff3   :  { %v5133_v10 = vmul.f32 %v5132_v53, %v4869_v23 }
0x301f   :  { %v4970_v32 = vpop.permute.xlu0 %4969 }
0x3020   :  { %v4972_v57 = vmul.f32 %v4970_v32, %v4966_v14 }
0x3022   :  { %4974 = vrot.lane.b32.xlu0 %v4972_v57, %s15429_s15 }
0x3061   :  { %v5136_v54 = vpop.permute.xlu1 %5135 }
0x3062   :  { %v5138_v43 = vmul.f32 %v5136_v54, %v5132_v53 }
0x3064   :  { %5140 = vrot.lane.b32.xlu1 %v5138_v43, %s15429_s15 }
0x3094   :  { %v4975_v5 = vpop.permute.xlu0 %4974 }
0x3095   :  { %v4977_v15 = vadd.f32 %v4975_v5, %v4967_v4 }
0x3097   :  { %15182 = vtanh.f32 %v4977_v15 }
0x30a1   :  { %v15183_v9 = vpop.eup %15182 }
0x30a2   :  { %4980 = vrot.lane.b32.xlu0 %v15183_v9, %s15428_s1 }
0x30d6   :  { %v5141_v48 = vpop.permute.xlu1 %5140 }
0x30d7   :  { %v5143_v3 = vadd.f32 %v5141_v48, %v5133_v10 }
0x30d9   :  { %15184 = vtanh.f32 %v5143_v3 }
0x30e3   :  { %v15185_v32 = vpop.eup %15184 }
0x30e4   :  { %5146 = vrot.lane.b32.xlu1 %v15185_v32, %s15428_s1 }
0x3114   :  { %v4981_v44 = vpop.permute.xlu0 %4980 }
0x3115   :  { %v4983_v57 = vmul.f32 %v4981_v44, %v4966_v14  ;;  %v376_v14 = vadd.f32 %v16398_v12, %v15944_v19 }
0x3117   :  { %5152 = vrot.lane.b32.xlu0 %v4983_v57, %s15429_s15 }
0x3156   :  { %v5147_v1 = vpop.permute.xlu1 %5146 }
0x3157   :  { %v5149_v54 = vmul.f32 %v5147_v1, %v5132_v53 }
0x3159   :  { %5248 = vrot.lane.b32.xlu1 %v5149_v54, %s15429_s15 }
0x3189   :  { %v5153_v63 = vpop.permute.xlu0 %5152 }
0x318a   :  { %13355 = vmatmul.mubr.msk.f32.vlgmr.msra.gmra.mrb[74].mxu0 %vm98_vm0, %v5153_v63 }
0x318b   :  { %14428 = vmatpush3.bf16.msra.mxu0 %v15640_v59  ;;  %13376 = vmatprep.mubr.msk.f32.mxu0 %vm15426_vm1, %v17465_v13 }
0x318c   :  { %14429 = vmatprep.subr.bf16.mxu0 %v17464_v7 }
0x318f   :  { %14431 = vmatpush3.bf16.msra.mxu0 %v15651_v62 }
0x3190   :  { %14438 = vmatprep.subr.bf16.mxu0 %v17464_v7 }
0x3192   :  { %13377 = vmatmul.mubr.msk.f32.vlgmr.msra.gmra.mrb[76].mxu0 %vm98_vm0, %v5153_v63 }
0x3193   :  { %14440 = vmatpush3.bf16.msra.mxu0 %v15618_v52  ;;  %13398 = vmatprep.mubr.msk.f32.mxu0 %vm15426_vm1, %v17465_v13 }
0x3194   :  { %14441 = vmatprep.subr.bf16.mxu0 %v17464_v7 }
0x3197   :  { %14443 = vmatpush3.bf16.msra.mxu0 %v15628_v56 }
0x3198   :  { %14450 = vmatprep.subr.bf16.mxu0 %v17464_v7 }
0x31cb   :  { %v16510_v23 = vpop.permute.xlu1 %5248 }
0x31cc   :  { %13366 = vmatmul.mubr.msk.f32.vlgmr.msra.gmra.mrb[70].mxu1 %vm98_vm0, %v16510_v23 }
0x31cd   :  { %14434 = vmatpush3.bf16.msra.mxu1 %v15523_v11  ;;  %13387 = vmatprep.mubr.msk.f32.mxu1 %vm15426_vm1, %v17465_v13 }
0x31ce   :  { %14435 = vmatprep.subr.bf16.mxu1 %v17464_v7 }
0x31d1   :  { %14437 = vmatpush3.bf16.msra.mxu1 %v15546_v18 }
0x31d2   :  { %14444 = vmatprep.subr.bf16.mxu1 %v17464_v7 }
0x325d   :  { %v5222_v53 = vpop.f32.mrb[74].mxu0 }
0x325e   :  { %v5226_v43 = vadd.f32 %v5222_v53, %v376_v14  ;;  %v13356_v4 = vpop.f32.mrb[75].mxu0 }
0x3260   :  { %15186 = vtanh.f32 %v5226_v43 }
0x3265   :  { %v5388_v5 = vpop.f32.mrb[76].mxu0 }
0x3266   :  { %v13378_v9 = vpop.f32.mrb[77].mxu0 }
0x326a   :  { %v15187_v10 = vpop.eup %15186 }
0x326b   :  { %5232 = vrot.lane.b32.xlu0 %v15187_v10, %s15428_s1  ;;  %v5228_v54 = vmul.f32 0.5, %v15187_v10 }
0x326d   :  { %v5229_v19 = vadd.f32 0.5, %v5228_v54 }
0x329f   :  { %v5318_v48 = vpop.f32.mrb[70].mxu1 }
0x32a0   :  { %v5389_v32 = vadd.f32 %v5388_v5, %v5318_v48  ;;  %v13367_v44 = vpop.f32.mrb[71].mxu1  ;;  %v5230_v5 = vmul.f32 %v5229_v19, %v4977_v15 }
0x32a2   :  { %v5392_v57 = vadd.f32 %v16449_v8, %v5389_v32 }
0x32a4   :  { %15188 = vtanh.f32 %v5392_v57 }
0x32ae   :  { %v15189_v1 = vpop.eup %15188 }
0x32af   :  { %5398 = vrot.lane.b32.xlu1 %v15189_v1, %s15428_s1  ;;  %v5394_v53 = vmul.f32 0.5, %v15189_v1 }
0x32b1   :  { %v5395_v43 = vadd.f32 0.5, %v5394_v53 }
0x32b3   :  { %v5396_v57 = vmul.f32 %v5395_v43, %v5143_v3 }
0x32dd   :  { %v5233_v63 = vpop.permute.xlu0 %5232 }
0x32de   :  { %v5235_v14 = vmul.f32 %v5233_v63, %v5229_v19 }
0x32e0   :  { %5237 = vrot.lane.b32.xlu0 %v5235_v14, %s15429_s15 }
0x3321   :  { %v5399_v4 = vpop.permute.xlu1 %5398 }
0x3322   :  { %v5401_v9 = vmul.f32 %v5399_v4, %v5395_v43 }
0x3324   :  { %5403 = vrot.lane.b32.xlu1 %v5401_v9, %s15429_s15 }
0x3352   :  { %v5238_v48 = vpop.permute.xlu0 %5237 }
0x3353   :  { %v5240_v44 = vadd.f32 %v5238_v48, %v5230_v5 }
0x3355   :  { %15190 = vtanh.f32 %v5240_v44 }
0x335f   :  { %v15191_v32 = vpop.eup %15190 }
0x3360   :  { %5243 = vrot.lane.b32.xlu0 %v15191_v32, %s15428_s1 }
0x3396   :  { %v5404_v10 = vpop.permute.xlu1 %5403 }
0x3397   :  { %v5406_v54 = vadd.f32 %v5404_v10, %v5396_v57 }
0x3399   :  { %15192 = vtanh.f32 %v5406_v54 }
0x33a3   :  { %v15193_v63 = vpop.eup %15192 }
0x33a4   :  { %5409 = vrot.lane.b32.xlu1 %v15193_v63, %s15428_s1 }
0x33d2   :  { %v5244_v1 = vpop.permute.xlu0 %5243 }
0x33d3   :  { %v5246_v14 = vmul.f32 %v5244_v1, %v5229_v19  ;;  %v381_v19 = vadd.f32 %v16398_v12, %v15942_v16 }
0x33d5   :  { %5415 = vrot.lane.b32.xlu0 %v5246_v14, %s15429_s15 }
0x3416   :  { %v5410_v53 = vpop.permute.xlu1 %5409 }
0x3417   :  { %v16530_v4 = vmul.f32 %v5410_v53, %v5395_v43 }
0x3419   :  { %5511 = vrot.lane.b32.xlu1 %v16530_v4, %s15429_s15 }
0x3447   :  { %v5416_v15 = vpop.permute.xlu0 %5415 }
0x3448   :  { %13388 = vmatmul.mubr.msk.f32.vlgmr.msra.gmra.mrb[72].mxu1 %vm98_vm0, %v5416_v15 }
0x3449   :  { %14446 = vmatpush3.bf16.msra.mxu1 %v15640_v59  ;;  %13409 = vmatprep.mubr.msk.f32.mxu1 %vm15426_vm1, %v17465_v13 }
0x344a   :  { %14447 = vmatprep.subr.bf16.mxu1 %v17464_v7 }
0x344d   :  { %14449 = vmatpush3.bf16.msra.mxu1 %v15651_v62 }
0x344e   :  { %14456 = vmatprep.subr.bf16.mxu1 %v17464_v7 }
0x3450   :  { %13410 = vmatmul.mubr.msk.f32.vlgmr.msra.gmra.mrb[74].mxu1 %vm98_vm0, %v5416_v15 }
0x3451   :  { %14458 = vmatpush3.bf16.msra.mxu1 %v15618_v52  ;;  %13431 = vmatprep.mubr.msk.f32.mxu1 %vm15426_vm1, %v17465_v13 }
0x3452   :  { %14459 = vmatprep.subr.bf16.mxu1 %v17464_v7 }
0x3455   :  { %14461 = vmatpush3.bf16.msra.mxu1 %v15628_v56 }
0x3456   :  { %14468 = vmatprep.subr.bf16.mxu1 %v17464_v7 }
0x348b   :  { %v5512_v3 = vpop.permute.xlu1 %5511 }
0x348c   :  { %13399 = vmatmul.mubr.msk.f32.vlgmr.msra.gmra.mrb[78].mxu0 %vm98_vm0, %v5512_v3 }
0x348d   :  { %14452 = vmatpush3.bf16.msra.mxu0 %v15523_v11  ;;  %13420 = vmatprep.mubr.msk.f32.mxu0 %vm15426_vm1, %v17465_v13 }
0x348e   :  { %14453 = vmatprep.subr.bf16.mxu0 %v17464_v7 }
0x3491   :  { %14455 = vmatpush3.bf16.msra.mxu0 %v15546_v18 }
0x3492   :  { %14462 = vmatprep.subr.bf16.mxu0 %v17464_v7 }
0x351b   :  { %v5485_v43 = vpop.f32.mrb[72].mxu1 }
0x351c   :  { %v5489_v9 = vadd.f32 %v5485_v43, %v381_v19  ;;  %v13389_v5 = vpop.f32.mrb[73].mxu1 }
0x351e   :  { %15194 = vtanh.f32 %v5489_v9 }
0x3523   :  { %v5651_v48 = vpop.f32.mrb[74].mxu1 }
0x3524   :  { %v13411_v32 = vpop.f32.mrb[75].mxu1 }
0x3528   :  { %v15195_v57 = vpop.eup %15194 }
0x3529   :  { %5495 = vrot.lane.b32.xlu0 %v15195_v57, %s15428_s1  ;;  %v5491_v15 = vmul.f32 0.5, %v15195_v57 }
0x352b   :  { %v5492_v16 = vadd.f32 0.5, %v5491_v15 }
0x355f   :  { %v5581_v10 = vpop.f32.mrb[78].mxu0 }
0x3560   :  { %v5652_v63 = vadd.f32 %v5651_v48, %v5581_v10  ;;  %v13400_v1 = vpop.f32.mrb[79].mxu0  ;;  %v5493_v48 = vmul.f32 %v5492_v16, %v5240_v44 }
0x3562   :  { %v5655_v14 = vadd.f32 %v16449_v8, %v5652_v63 }
0x3564   :  { %15196 = vtanh.f32 %v5655_v14 }
0x356e   :  { %v15197_v53 = vpop.eup %15196 }
0x356f   :  { %5661 = vrot.lane.b32.xlu1 %v15197_v53, %s15428_s1  ;;  %v5657_v43 = vmul.f32 0.5, %v15197_v53 }
0x3571   :  { %v5658_v9 = vadd.f32 0.5, %v5657_v43 }
0x3573   :  { %v5659_v14 = vmul.f32 %v5658_v9, %v5406_v54 }
0x359b   :  { %v5496_v3 = vpop.permute.xlu0 %5495 }
0x359c   :  { %v5498_v19 = vmul.f32 %v5496_v3, %v5492_v16 }
0x359e   :  { %5500 = vrot.lane.b32.xlu0 %v5498_v19, %s15429_s15 }
0x35e1   :  { %v5662_v5 = vpop.permute.xlu1 %5661 }
0x35e2   :  { %v5664_v32 = vmul.f32 %v5662_v5, %v5658_v9 }
0x35e4   :  { %5666 = vrot.lane.b32.xlu1 %v5664_v32, %s15429_s15 }
0x3610   :  { %v5501_v10 = vpop.permute.xlu0 %5500 }
0x3611   :  { %v5503_v1 = vadd.f32 %v5501_v10, %v5493_v48 }
0x3613   :  { %15198 = vtanh.f32 %v5503_v1 }
0x361d   :  { %v15199_v63 = vpop.eup %15198 }
0x361e   :  { %5506 = vrot.lane.b32.xlu0 %v15199_v63, %s15428_s1 }
0x3656   :  { %v5667_v57 = vpop.permute.xlu1 %5666 }
0x3657   :  { %v5669_v15 = vadd.f32 %v5667_v57, %v5659_v14 }
0x3659   :  { %15200 = vtanh.f32 %v5669_v15 }
0x3663   :  { %v15201_v3 = vpop.eup %15200 }
0x3664   :  { %5672 = vrot.lane.b32.xlu1 %v15201_v3, %s15428_s1 }
0x3690   :  { %v5507_v53 = vpop.permute.xlu0 %5506 }
0x3691   :  { %v5509_v19 = vmul.f32 %v5507_v53, %v5492_v16  ;;  %v386_v16 = vadd.f32 %v16398_v12, %v15953_v21 }
0x3693   :  { %5678 = vrot.lane.b32.xlu0 %v5509_v19, %s15429_s15 }
0x36d6   :  { %v5673_v43 = vpop.permute.xlu1 %5672 }
0x36d7   :  { %v16565_v5 = vmul.f32 %v5673_v43, %v5658_v9 }
0x36d9   :  { %5774 = vrot.lane.b32.xlu1 %v16565_v5, %s15429_s15 }
0x3705   :  { %v5679_v44 = vpop.permute.xlu0 %5678 }
0x3706   :  { %13421 = vmatmul.mubr.msk.f32.vlgmr.msra.gmra.mrb[80].mxu0 %vm98_vm0, %v5679_v44 }
0x3707   :  { %14464 = vmatpush3.bf16.msra.mxu0 %v15640_v59  ;;  %13442 = vmatprep.mubr.msk.f32.mxu0 %vm15426_vm1, %v17465_v13 }
0x3708   :  { %14465 = vmatprep.subr.bf16.mxu0 %v17464_v7 }
0x370b   :  { %14467 = vmatpush3.bf16.msra.mxu0 %v15651_v62 }
0x370c   :  { %14474 = vmatprep.subr.bf16.mxu0 %v17464_v7 }
0x370e   :  { %13443 = vmatmul.mubr.msk.f32.vlgmr.msra.gmra.mrb[82].mxu0 %vm98_vm0, %v5679_v44 }
0x370f   :  { %14476 = vmatpush3.bf16.msra.mxu0 %v15618_v52  ;;  %13464 = vmatprep.mubr.msk.f32.mxu0 %vm15426_vm1, %v17465_v13 }
0x3710   :  { %14477 = vmatprep.subr.bf16.mxu0 %v17464_v7 }
0x3713   :  { %14479 = vmatpush3.bf16.msra.mxu0 %v15628_v56 }
0x3714   :  { %14486 = vmatprep.subr.bf16.mxu0 %v17464_v7 }
0x374b   :  { %v5775_v54 = vpop.permute.xlu1 %5774 }
0x374c   :  { %13432 = vmatmul.mubr.msk.f32.vlgmr.msra.gmra.mrb[76].mxu1 %vm98_vm0, %v5775_v54 }
0x374d   :  { %14470 = vmatpush3.bf16.msra.mxu1 %v15523_v11  ;;  %13453 = vmatprep.mubr.msk.f32.mxu1 %vm15426_vm1, %v17465_v13 }
0x374e   :  { %14471 = vmatprep.subr.bf16.mxu1 %v17464_v7 }
0x3751   :  { %14473 = vmatpush3.bf16.msra.mxu1 %v15546_v18 }
0x3752   :  { %14480 = vmatprep.subr.bf16.mxu1 %v17464_v7 }
0x37d9   :  { %v5748_v9 = vpop.f32.mrb[80].mxu0 }
0x37da   :  { %v5752_v32 = vadd.f32 %v5748_v9, %v386_v16  ;;  %v13422_v48 = vpop.f32.mrb[81].mxu0 }
0x37dc   :  { %15202 = vtanh.f32 %v5752_v32 }
0x37e1   :  { %v5914_v10 = vpop.f32.mrb[82].mxu0 }
0x37e2   :  { %v13444_v63 = vpop.f32.mrb[83].mxu0 }
0x37e6   :  { %v15203_v14 = vpop.eup %15202 }
0x37e7   :  { %5758 = vrot.lane.b32.xlu0 %v15203_v14, %s15428_s1  ;;  %v5754_v44 = vmul.f32 0.5, %v15203_v14 }
0x37e9   :  { %v5755_v21 = vadd.f32 0.5, %v5754_v44 }
0x381f   :  { %v5844_v57 = vpop.f32.mrb[76].mxu1 }
0x3820   :  { %v5915_v3 = vadd.f32 %v5914_v10, %v5844_v57  ;;  %v13433_v53 = vpop.f32.mrb[77].mxu1  ;;  %v5756_v10 = vmul.f32 %v5755_v21, %v5503_v1 }
0x3822   :  { %v5918_v19 = vadd.f32 %v16449_v8, %v5915_v3 }
0x3824   :  { %15204 = vtanh.f32 %v5918_v19 }
0x382e   :  { %v15205_v43 = vpop.eup %15204 }
0x382f   :  { %5924 = vrot.lane.b32.xlu1 %v15205_v43, %s15428_s1  ;;  %v5920_v9 = vmul.f32 0.5, %v15205_v43 }
0x3831   :  { %v5921_v32 = vadd.f32 0.5, %v5920_v9 }
0x3833   :  { %v5922_v19 = vmul.f32 %v5921_v32, %v5669_v15 }
0x3859   :  { %v5759_v54 = vpop.permute.xlu0 %5758 }
0x385a   :  { %v5761_v16 = vmul.f32 %v5759_v54, %v5755_v21 }
0x385c   :  { %5763 = vrot.lane.b32.xlu0 %v5761_v16, %s15429_s15 }
0x38a1   :  { %v5925_v48 = vpop.permute.xlu1 %5924 }
0x38a2   :  { %v5927_v63 = vmul.f32 %v5925_v48, %v5921_v32 }
0x38a4   :  { %5929 = vrot.lane.b32.xlu1 %v5927_v63, %s15429_s15 }
0x38ce   :  { %v5764_v57 = vpop.permute.xlu0 %5763 }
0x38cf   :  { %v5766_v53 = vadd.f32 %v5764_v57, %v5756_v10 }
0x38d1   :  { %15206 = vtanh.f32 %v5766_v53 }
0x38db   :  { %v15207_v3 = vpop.eup %15206 }
0x38dc   :  { %5769 = vrot.lane.b32.xlu0 %v15207_v3, %s15428_s1 }
0x3916   :  { %v5930_v14 = vpop.permute.xlu1 %5929 }
0x3917   :  { %v5932_v44 = vadd.f32 %v5930_v14, %v5922_v19 }
0x3919   :  { %15208 = vtanh.f32 %v5932_v44 }
0x3923   :  { %v15209_v54 = vpop.eup %15208 }
0x3924   :  { %5935 = vrot.lane.b32.xlu1 %v15209_v54, %s15428_s1 }
0x394e   :  { %v5770_v43 = vpop.permute.xlu0 %5769 }
0x394f   :  { %v5772_v16 = vmul.f32 %v5770_v43, %v5755_v21  ;;  %v391_v21 = vadd.f32 %v16398_v12, %v15950_v20 }
0x3951   :  { %5952 = vrot.lane.b32.xlu0 %v5772_v16, %s15429_s15 }
0x3996   :  { %v5936_v9 = vpop.permute.xlu1 %5935 }
0x3997   :  { %v16600_v48 = vmul.f32 %v5936_v9, %v5921_v32 }
0x3999   :  { %6048 = vrot.lane.b32.xlu1 %v16600_v48, %s15429_s15 }
0x39c3   :  { %v5953_v1 = vpop.permute.xlu0 %5952 }
0x39c4   :  { %13454 = vmatmul.mubr.msk.f32.vlgmr.msra.gmra.mrb[78].mxu1 %vm98_vm0, %v5953_v1 }
0x39c5   :  { %14482 = vmatpush3.bf16.msra.mxu1 %v15640_v59  ;;  %13475 = vmatprep.mubr.msk.f32.mxu1 %vm15426_vm1, %v17465_v13 }
0x39c6   :  { %14483 = vmatprep.subr.bf16.mxu1 %v17464_v7 }
0x39c9   :  { %14485 = vmatpush3.bf16.msra.mxu1 %v15651_v62 }
0x39ca   :  { %14492 = vmatprep.subr.bf16.mxu1 %v17464_v7 }
0x39cc   :  { %13476 = vmatmul.mubr.msk.f32.vlgmr.msra.gmra.mrb[80].mxu1 %vm98_vm0, %v5953_v1 }
0x39cd   :  { %14494 = vmatpush3.bf16.msra.mxu1 %v15618_v52  ;;  %13497 = vmatprep.mubr.msk.f32.mxu1 %vm15426_vm1, %v17465_v13 }
0x39ce   :  { %14495 = vmatprep.subr.bf16.mxu1 %v17464_v7 }
0x39d1   :  { %14497 = vmatpush3.bf16.msra.mxu1 %v15628_v56 }
0x39d2   :  { %14504 = vmatprep.subr.bf16.mxu1 %v17464_v7 }
0x3a0b   :  { %v6049_v15 = vpop.permute.xlu1 %6048 }
0x3a0c   :  { %13465 = vmatmul.mubr.msk.f32.vlgmr.msra.gmra.mrb[84].mxu0 %vm98_vm0, %v6049_v15 }
0x3a0d   :  { %14488 = vmatpush3.bf16.msra.mxu0 %v15523_v11  ;;  %13486 = vmatprep.mubr.msk.f32.mxu0 %vm15426_vm1, %v17465_v13 }
0x3a0e   :  { %14489 = vmatprep.subr.bf16.mxu0 %v17464_v7 }
0x3a11   :  { %14491 = vmatpush3.bf16.msra.mxu0 %v15546_v18 }
0x3a12   :  { %14498 = vmatprep.subr.bf16.mxu0 %v17464_v7 }
0x3a97   :  { %v6022_v32 = vpop.f32.mrb[78].mxu1 }
0x3a98   :  { %v6026_v63 = vadd.f32 %v6022_v32, %v391_v21  ;;  %v13455_v10 = vpop.f32.mrb[79].mxu1 }
0x3a9a   :  { %15210 = vtanh.f32 %v6026_v63 }
0x3a9f   :  { %v6188_v57 = vpop.f32.mrb[80].mxu1 }
0x3aa0   :  { %v13477_v3 = vpop.f32.mrb[81].mxu1 }
0x3aa4   :  { %v15211_v19 = vpop.eup %15210 }
0x3aa5   :  { %6032 = vrot.lane.b32.xlu0 %v15211_v19, %s15428_s1  ;;  %v6028_v1 = vmul.f32 0.5, %v15211_v19 }
0x3aa7   :  { %v6029_v20 = vadd.f32 0.5, %v6028_v1 }
0x3adf   :  { %v6118_v14 = vpop.f32.mrb[84].mxu0 }
0x3ae0   :  { %v6189_v54 = vadd.f32 %v6188_v57, %v6118_v14  ;;  %v13466_v43 = vpop.f32.mrb[85].mxu0  ;;  %v6030_v57 = vmul.f32 %v6029_v20, %v5766_v53 }
0x3ae2   :  { %v6192_v16 = vadd.f32 %v16449_v8, %v6189_v54 }
0x3ae4   :  { %15212 = vtanh.f32 %v6192_v16 }
0x3aee   :  { %v15213_v9 = vpop.eup %15212 }
0x3aef   :  { %6198 = vrot.lane.b32.xlu1 %v15213_v9, %s15428_s1  ;;  %v6194_v32 = vmul.f32 0.5, %v15213_v9 }
0x3af1   :  { %v6195_v63 = vadd.f32 0.5, %v6194_v32 }
0x3af3   :  { %v6196_v16 = vmul.f32 %v6195_v63, %v5932_v44 }
0x3b17   :  { %v6033_v15 = vpop.permute.xlu0 %6032 }
0x3b18   :  { %v6035_v21 = vmul.f32 %v6033_v15, %v6029_v20 }
0x3b1a   :  { %6037 = vrot.lane.b32.xlu0 %v6035_v21, %s15429_s15 }
0x3b61   :  { %v6199_v10 = vpop.permute.xlu1 %6198 }
0x3b62   :  { %v6201_v3 = vmul.f32 %v6199_v10, %v6195_v63 }
0x3b64   :  { %6203 = vrot.lane.b32.xlu1 %v6201_v3, %s15429_s15 }
0x3b8c   :  { %v6038_v14 = vpop.permute.xlu0 %6037 }
0x3b8d   :  { %v6040_v43 = vadd.f32 %v6038_v14, %v6030_v57 }
0x3b8f   :  { %15214 = vtanh.f32 %v6040_v43 }
0x3b99   :  { %v15215_v54 = vpop.eup %15214 }
0x3b9a   :  { %6043 = vrot.lane.b32.xlu0 %v15215_v54, %s15428_s1 }
0x3bd6   :  { %v6204_v19 = vpop.permute.xlu1 %6203 }
0x3bd7   :  { %v6206_v1 = vadd.f32 %v6204_v19, %v6196_v16 }
0x3bd9   :  { %15216 = vtanh.f32 %v6206_v1 }
0x3be3   :  { %v15217_v15 = vpop.eup %15216 }
0x3be4   :  { %6209 = vrot.lane.b32.xlu1 %v15217_v15, %s15428_s1 }
0x3c0c   :  { %v6044_v9 = vpop.permute.xlu0 %6043 }
0x3c0d   :  { %v6046_v21 = vmul.f32 %v6044_v9, %v6029_v20  ;;  %v396_v20 = vadd.f32 %v16398_v12, %v15959_v25 }
0x3c0f   :  { %6215 = vrot.lane.b32.xlu0 %v6046_v21, %s15429_s15 }
0x3c56   :  { %v6210_v32 = vpop.permute.xlu1 %6209 }
0x3c57   :  { %v6212_v10 = vmul.f32 %v6210_v32, %v6195_v63 }
0x3c59   :  { %6311 = vrot.lane.b32.xlu1 %v6212_v10, %s15429_s15 }
0x3c81   :  { %v6216_v53 = vpop.permute.xlu0 %6215 }
0x3c82   :  { %13487 = vmatmul.mubr.msk.f32.vlgmr.msra.gmra.mrb[86].mxu0 %vm98_vm0, %v6216_v53 }
0x3c83   :  { %14500 = vmatpush3.bf16.msra.mxu0 %v15640_v59  ;;  %13508 = vmatprep.mubr.msk.f32.mxu0 %vm15426_vm1, %v17465_v13 }
0x3c84   :  { %14501 = vmatprep.subr.bf16.mxu0 %v17464_v7 }
0x3c87   :  { %14503 = vmatpush3.bf16.msra.mxu0 %v15651_v62 }
0x3c88   :  { %14510 = vmatprep.subr.bf16.mxu0 %v17464_v7 }
0x3c8a   :  { %13509 = vmatmul.mubr.msk.f32.vlgmr.msra.gmra.mrb[88].mxu0 %vm98_vm0, %v6216_v53 }
0x3c8b   :  { %14512 = vmatpush3.bf16.msra.mxu0 %v15618_v52  ;;  %13530 = vmatprep.mubr.msk.f32.mxu0 %vm15426_vm1, %v17465_v13 }
0x3c8c   :  { %14513 = vmatprep.subr.bf16.mxu0 %v17464_v7 }
0x3c8f   :  { %14515 = vmatpush3.bf16.msra.mxu0 %v15628_v56 }
0x3c90   :  { %14522 = vmatprep.subr.bf16.mxu0 %v17464_v7 }
0x3ccb   :  { %v16650_v44 = vpop.permute.xlu1 %6311 }
0x3ccc   :  { %13498 = vmatmul.mubr.msk.f32.vlgmr.msra.gmra.mrb[82].mxu1 %vm98_vm0, %v16650_v44 }
0x3ccd   :  { %14506 = vmatpush3.bf16.msra.mxu1 %v15523_v11  ;;  %13519 = vmatprep.mubr.msk.f32.mxu1 %vm15426_vm1, %v17465_v13 }
0x3cce   :  { %14507 = vmatprep.subr.bf16.mxu1 %v17464_v7 }
0x3cd1   :  { %14509 = vmatpush3.bf16.msra.mxu1 %v15546_v18 }
0x3cd2   :  { %14516 = vmatprep.subr.bf16.mxu1 %v17464_v7 }
0x3d55   :  { %v6285_v63 = vpop.f32.mrb[86].mxu0 }
0x3d56   :  { %v6289_v3 = vadd.f32 %v6285_v63, %v396_v20  ;;  %v13488_v57 = vpop.f32.mrb[87].mxu0 }
0x3d58   :  { %15218 = vtanh.f32 %v6289_v3 }
0x3d5d   :  { %v6451_v14 = vpop.f32.mrb[88].mxu0 }
0x3d5e   :  { %v13510_v54 = vpop.f32.mrb[89].mxu0 }
0x3d62   :  { %v15219_v16 = vpop.eup %15218 }
0x3d63   :  { %6295 = vrot.lane.b32.xlu0 %v15219_v16, %s15428_s1  ;;  %v6291_v10 = vmul.f32 0.5, %v15219_v16 }
0x3d65   :  { %v6292_v25 = vadd.f32 0.5, %v6291_v10 }
0x3d9f   :  { %v6381_v19 = vpop.f32.mrb[82].mxu1 }
0x3da0   :  { %v6452_v15 = vadd.f32 %v6451_v14, %v6381_v19  ;;  %v13499_v9 = vpop.f32.mrb[83].mxu1  ;;  %v6293_v14 = vmul.f32 %v6292_v25, %v6040_v43 }
0x3da2   :  { %v6455_v21 = vadd.f32 %v16449_v8, %v6452_v15 }
0x3da4   :  { %15220 = vtanh.f32 %v6455_v21 }
0x3dae   :  { %v15221_v32 = vpop.eup %15220 }
0x3daf   :  { %6461 = vrot.lane.b32.xlu1 %v15221_v32, %s15428_s1  ;;  %v6457_v20 = vmul.f32 0.5, %v15221_v32 }
0x3db1   :  { %v6458_v63 = vadd.f32 0.5, %v6457_v20 }
0x3db3   :  { %v6459_v16 = vmul.f32 %v6458_v63, %v6206_v1 }
0x3dd5   :  { %v6296_v12 = vpop.permute.xlu0 %6295 }
0x3dd6   :  { %v6298_v53 = vmul.f32 %v6296_v12, %v6292_v25 }
0x3dd8   :  { %6300 = vrot.lane.b32.xlu0 %v6298_v53, %s15429_s15 }
0x3e21   :  { %v6462_v3 = vpop.permute.xlu1 %6461 }
0x3e22   :  { %v6464_v57 = vmul.f32 %v6462_v3, %v6458_v63 }
0x3e24   :  { %6466 = vrot.lane.b32.xlu1 %v6464_v57, %s15429_s15 }
0x3e4a   :  { %v6301_v54 = vpop.permute.xlu0 %6300 }
0x3e4b   :  { %v16667_v19 = vadd.f32 %v6301_v54, %v6293_v14 }
0x3e4d   :  { %15222 = vtanh.f32 %v16667_v19 }
0x3e57   :  { %v15223_v15 = vpop.eup %15222 }
0x3e58   :  { %6306 = vrot.lane.b32.xlu0 %v15223_v15, %s15428_s1 }
0x3e96   :  { %v6467_v9 = vpop.permute.xlu1 %6466 }
0x3e97   :  { %v16671_v21 = vadd.f32 %v6467_v9, %v6459_v16 }
0x3e99   :  { %15224 = vtanh.f32 %v16671_v21 }
0x3ea3   :  { %v15225_v32 = vpop.eup %15224 }
0x3ea4   :  { %6472 = vrot.lane.b32.xlu1 %v15225_v32, %s15428_s1 }
0x3eca   :  { %v6307_v10 = vpop.permute.xlu0 %6306 }
0x3ecb   :  { %v6309_v12 = vmul.f32 %v6307_v10, %v6292_v25  ;;  %v16704_v25 = vld [vmem:[%s17451_s3] ss:$0 sm:$0xff] }
0x3ecd   :  { %6478 = vrot.lane.b32.xlu0 %v6309_v12, %s15429_s15 }
0x3f16   :  { %v6473_v43 = vpop.permute.xlu1 %6472 }
0x3f17   :  { %v16676_v53 = vmul.f32 %v6473_v43, %v6458_v63  ;;  %v401_v63 = vadd.f32 %v16704_v25, %v15956_v22 }
0x3f19   :  { %6574 = vrot.lane.b32.xlu1 %v16676_v53, %s15429_s15 }
0x3f3f   :  { %v6479_v20 = vpop.permute.xlu0 %6478 }
0x3f40   :  { %13520 = vmatmul.mubr.msk.f32.vlgmr.msra.gmra.mrb[84].mxu1 %vm98_vm0, %v6479_v20 }
0x3f41   :  { %14518 = vmatpush3.bf16.msra.mxu1 %v15640_v59  ;;  %13541 = vmatprep.mubr.msk.f32.mxu1 %vm15426_vm1, %v17465_v13 }
0x3f42   :  { %14519 = vmatprep.subr.bf16.mxu1 %v17464_v7 }
0x3f45   :  { %14521 = vmatpush3.bf16.msra.mxu1 %v15651_v62 }
0x3f46   :  { %14528 = vmatprep.subr.bf16.mxu1 %v17464_v7 }
0x3f48   :  { %13542 = vmatmul.mubr.msk.f32.vlgmr.msra.gmra.mrb[86].mxu1 %vm98_vm0, %v6479_v20 }
0x3f49   :  { %14530 = vmatpush3.bf16.msra.mxu1 %v15618_v52  ;;  %13563 = vmatprep.mubr.msk.f32.mxu1 %vm15426_vm1, %v17465_v13 }
0x3f4a   :  { %14531 = vmatprep.subr.bf16.mxu1 %v17464_v7 }
0x3f4d   :  { %14533 = vmatpush3.bf16.msra.mxu1 %v15628_v56 }
0x3f4e   :  { %14540 = vmatprep.subr.bf16.mxu1 %v17464_v7 }
0x3f8b   :  { %v6575_v1 = vpop.permute.xlu1 %6574 }
0x3f8c   :  { %13531 = vmatmul.mubr.msk.f32.vlgmr.msra.gmra.mrb[90].mxu0 %vm98_vm0, %v6575_v1 }
0x3f8d   :  { %14524 = vmatpush3.bf16.msra.mxu0 %v15523_v11  ;;  %13552 = vmatprep.mubr.msk.f32.mxu0 %vm15426_vm1, %v17465_v13 }
0x3f8e   :  { %14525 = vmatprep.subr.bf16.mxu0 %v17464_v7 }
0x3f91   :  { %14527 = vmatpush3.bf16.msra.mxu0 %v15546_v18 }
0x3f92   :  { %14534 = vmatprep.subr.bf16.mxu0 %v17464_v7 }
0x4013   :  { %v6548_v3 = vpop.f32.mrb[84].mxu1 }
0x4014   :  { %v6552_v57 = vadd.f32 %v6548_v3, %v401_v63  ;;  %v13521_v14 = vpop.f32.mrb[85].mxu1 }
0x4016   :  { %15226 = vtanh.f32 %v6552_v57 }
0x401b   :  { %v6714_v54 = vpop.f32.mrb[86].mxu1 }
0x401c   :  { %v13543_v15 = vpop.f32.mrb[87].mxu1 }
0x4020   :  { %v15227_v16 = vpop.eup %15226 }
0x4021   :  { %6558 = vrot.lane.b32.xlu0 %v15227_v16, %s15428_s1  ;;  %v6554_v20 = vmul.f32 0.5, %v15227_v16 }
0x4023   :  { %v6555_v22 = vadd.f32 0.5, %v6554_v20 }
0x405f   :  { %v6644_v9 = vpop.f32.mrb[90].mxu0 }
0x4060   :  { %v6715_v32 = vadd.f32 %v6714_v54, %v6644_v9  ;;  %v13532_v10 = vpop.f32.mrb[91].mxu0  ;;  %v6556_v54 = vmul.f32 %v6555_v22, %v16667_v19 }
0x4062   :  { %v6718_v12 = vadd.f32 %v16449_v8, %v6715_v32 }
0x4064   :  { %15228 = vtanh.f32 %v6718_v12 }
0x406e   :  { %v15229_v43 = vpop.eup %15228 }
0x406f   :  { %6724 = vrot.lane.b32.xlu1 %v15229_v43, %s15428_s1  ;;  %v6720_v3 = vmul.f32 0.5, %v15229_v43 }
0x4071   :  { %v6721_v57 = vadd.f32 0.5, %v6720_v3 }
0x4073   :  { %v6722_v16 = vmul.f32 %v6721_v57, %v16671_v21 }
0x4093   :  { %v6559_v1 = vpop.permute.xlu0 %6558 }
0x4094   :  { %v6561_v63 = vmul.f32 %v6559_v1, %v6555_v22 }
0x4096   :  { %6563 = vrot.lane.b32.xlu0 %v6561_v63, %s15429_s15 }
0x40e1   :  { %v6725_v14 = vpop.permute.xlu1 %6724 }
0x40e2   :  { %v6727_v15 = vmul.f32 %v6725_v14, %v6721_v57 }
0x40e4   :  { %6729 = vrot.lane.b32.xlu1 %v6727_v15, %s15429_s15 }
0x4108   :  { %v6564_v9 = vpop.permute.xlu0 %6563 }
0x4109   :  { %v16714_v8 = vadd.f32 %v6564_v9, %v6556_v54 }
0x410b   :  { %15230 = vtanh.f32 %v16714_v8 }
0x4115   :  { %v15231_v32 = vpop.eup %15230 }
0x4116   :  { %6569 = vrot.lane.b32.xlu0 %v15231_v32, %s15428_s1 }
0x4156   :  { %v6730_v10 = vpop.permute.xlu1 %6729 }
0x4157   :  { %v16719_v12 = vadd.f32 %v6730_v10, %v6722_v16 }
0x4159   :  { %15232 = vtanh.f32 %v16719_v12 }
0x4163   :  { %v15233_v43 = vpop.eup %15232 }
0x4164   :  { %6735 = vrot.lane.b32.xlu1 %v15233_v43, %s15428_s1 }
0x4188   :  { %v6570_v20 = vpop.permute.xlu0 %6569 }
0x4189   :  { %v6572_v19 = vmul.f32 %v6570_v20, %v6555_v22  ;;  %v406_v22 = vadd.f32 %v16704_v25, %v15963_v36  ;;  %v16755_v20 = vld [vmem:[%s17454_s6] ss:$0 sm:$0xff] }
0x418b   :  { %6741 = vrot.lane.b32.xlu0 %v6572_v19, %s15429_s15 }
0x41d6   :  { %v6736_v1 = vpop.permute.xlu1 %6735 }
0x41d7   :  { %v16724_v63 = vmul.f32 %v6736_v1, %v6721_v57 }
0x41d9   :  { %6837 = vrot.lane.b32.xlu1 %v16724_v63, %s15429_s15 }
0x41fd   :  { %v6742_v3 = vpop.permute.xlu0 %6741 }
0x41fe   :  { %13553 = vmatmul.mubr.msk.f32.vlgmr.msra.gmra.mrb[92].mxu0 %vm98_vm0, %v6742_v3 }
0x41ff   :  { %14536 = vmatpush3.bf16.msra.mxu0 %v15640_v59  ;;  %13574 = vmatprep.mubr.msk.f32.mxu0 %vm15426_vm1, %v17465_v13 }
0x4200   :  { %14537 = vmatprep.subr.bf16.mxu0 %v17464_v7 }
0x4203   :  { %14539 = vmatpush3.bf16.msra.mxu0 %v15651_v62 }
0x4204   :  { %14546 = vmatprep.subr.bf16.mxu0 %v17464_v7 }
0x4206   :  { %13575 = vmatmul.mubr.msk.f32.vlgmr.msra.gmra.mrb[94].mxu0 %vm98_vm0, %v6742_v3 }
0x4207   :  { %14548 = vmatpush3.bf16.msra.mxu0 %v15618_v52  ;;  %13596 = vmatprep.mubr.msk.f32.mxu0 %vm15426_vm1, %v17465_v13 }
0x4208   :  { %14549 = vmatprep.subr.bf16.mxu0 %v17464_v7 }
0x420b   :  { %14551 = vmatpush3.bf16.msra.mxu0 %v15628_v56 }
0x420c   :  { %14558 = vmatprep.subr.bf16.mxu0 %v17464_v7 }
0x424b   :  { %v6838_v21 = vpop.permute.xlu1 %6837 }
0x424c   :  { %13564 = vmatmul.mubr.msk.f32.vlgmr.msra.gmra.mrb[88].mxu1 %vm98_vm0, %v6838_v21 }
0x424d   :  { %14542 = vmatpush3.bf16.msra.mxu1 %v15523_v11  ;;  %13585 = vmatprep.mubr.msk.f32.mxu1 %vm15426_vm1, %v17465_v13 }
0x424e   :  { %14543 = vmatprep.subr.bf16.mxu1 %v17464_v7 }
0x4251   :  { %14545 = vmatpush3.bf16.msra.mxu1 %v15546_v18 }
0x4252   :  { %14552 = vmatprep.subr.bf16.mxu1 %v17464_v7 }
0x42d1   :  { %v6811_v57 = vpop.f32.mrb[92].mxu0 }
0x42d2   :  { %v6815_v14 = vadd.f32 %v6811_v57, %v406_v22  ;;  %v13554_v15 = vpop.f32.mrb[93].mxu0 }
0x42d4   :  { %15234 = vtanh.f32 %v6815_v14 }
0x42d9   :  { %v6977_v54 = vpop.f32.mrb[94].mxu0 }
0x42da   :  { %v13576_v9 = vpop.f32.mrb[95].mxu0 }
0x42de   :  { %v15235_v32 = vpop.eup %15234 }
0x42df   :  { %6821 = vrot.lane.b32.xlu0 %v15235_v32, %s15428_s1  ;;  %v6817_v1 = vmul.f32 0.5, %v15235_v32 }
0x42e1   :  { %v6818_v3 = vadd.f32 0.5, %v6817_v1 }
0x42e3   :  { %v6819_v9 = vmul.f32 %v6818_v3, %v16714_v8 }
0x431f   :  { %v6907_v16 = vpop.f32.mrb[88].mxu1 }
0x4320   :  { %v6978_v10 = vadd.f32 %v6977_v54, %v6907_v16  ;;  %v13565_v43 = vpop.f32.mrb[89].mxu1 }
0x4322   :  { %v6981_v19 = vadd.f32 %v16755_v20, %v6978_v10 }
0x4324   :  { %15236 = vtanh.f32 %v6981_v19 }
0x432e   :  { %v15237_v36 = vpop.eup %15236 }
0x432f   :  { %6987 = vrot.lane.b32.xlu1 %v15237_v36, %s15428_s1  ;;  %v6983_v57 = vmul.f32 0.5, %v15237_v36 }
0x4331   :  { %v6984_v14 = vadd.f32 0.5, %v6983_v57 }
0x4333   :  { %v6985_v32 = vmul.f32 %v6984_v14, %v16719_v12 }
0x4351   :  { %v6822_v21 = vpop.permute.xlu0 %6821 }
0x4352   :  { %v6824_v22 = vmul.f32 %v6822_v21, %v6818_v3 }
0x4354   :  { %6826 = vrot.lane.b32.xlu0 %v6824_v22, %s15429_s15 }
0x43a1   :  { %v6988_v15 = vpop.permute.xlu1 %6987 }
0x43a2   :  { %v6990_v54 = vmul.f32 %v6988_v15, %v6984_v14 }
0x43a4   :  { %6992 = vrot.lane.b32.xlu1 %v6990_v54, %s15429_s15 }
0x43c6   :  { %v6827_v16 = vpop.permute.xlu0 %6826 }
0x43c7   :  { %v6829_v10 = vadd.f32 %v6827_v16, %v6819_v9 }
0x43c9   :  { %15238 = vtanh.f32 %v6829_v10 }
0x43d3   :  { %v15239_v43 = vpop.eup %15238 }
0x43d4   :  { %6832 = vrot.lane.b32.xlu0 %v15239_v43, %s15428_s1 }
0x4416   :  { %v6993_v19 = vpop.permute.xlu1 %6992 }
0x4417   :  { %v6995_v1 = vadd.f32 %v6993_v19, %v6985_v32 }
0x4419   :  { %15240 = vtanh.f32 %v6995_v1 }
0x4423   :  { %v15241_v21 = vpop.eup %15240 }
0x4424   :  { %6998 = vrot.lane.b32.xlu1 %v15241_v21, %s15428_s1 }
0x4446   :  { %v6833_v36 = vpop.permute.xlu0 %6832 }
0x4447   :  { %v6835_v22 = vmul.f32 %v6833_v36, %v6818_v3  ;;  %v411_v3 = vadd.f32 %v16704_v25, %v15961_v27 }
0x4449   :  { %7015 = vrot.lane.b32.xlu0 %v6835_v22, %s15429_s15 }
0x4496   :  { %v6999_v57 = vpop.permute.xlu1 %6998 }
0x4497   :  { %v16766_v8 = vmul.f32 %v6999_v57, %v6984_v14 }
0x4499   :  { %7111 = vrot.lane.b32.xlu1 %v16766_v8, %s15429_s15 }
0x44bb   :  { %v7016_v15 = vpop.permute.xlu0 %7015 }
0x44bc   :  { %13586 = vmatmul.mubr.msk.f32.vlgmr.msra.gmra.mrb[90].mxu1 %vm98_vm0, %v7016_v15 }
0x44bd   :  { %14554 = vmatpush3.bf16.msra.mxu1 %v15640_v59  ;;  %13607 = vmatprep.mubr.msk.f32.mxu1 %vm15426_vm1, %v17465_v13 }
0x44be   :  { %14555 = vmatprep.subr.bf16.mxu1 %v17464_v7 }
0x44c1   :  { %14557 = vmatpush3.bf16.msra.mxu1 %v15651_v62 }
0x44c2   :  { %14564 = vmatprep.subr.bf16.mxu1 %v17464_v7 }
0x44c4   :  { %13608 = vmatmul.mubr.msk.f32.vlgmr.msra.gmra.mrb[92].mxu1 %vm98_vm0, %v7016_v15 }
0x44c5   :  { %14566 = vmatpush3.bf16.msra.mxu1 %v15618_v52  ;;  %13629 = vmatprep.mubr.msk.f32.mxu1 %vm15426_vm1, %v17465_v13 }
0x44c6   :  { %14567 = vmatprep.subr.bf16.mxu1 %v17464_v7 }
0x44c9   :  { %14569 = vmatpush3.bf16.msra.mxu1 %v15628_v56 }
0x44ca   :  { %14576 = vmatprep.subr.bf16.mxu1 %v17464_v7 }
0x450b   :  { %v7112_v12 = vpop.permute.xlu1 %7111 }
0x450c   :  { %13597 = vmatmul.mubr.msk.f32.vlgmr.msra.gmra.mrb[96].mxu0 %vm98_vm0, %v7112_v12 }
0x450d   :  { %14560 = vmatpush3.bf16.msra.mxu0 %v15523_v11  ;;  %13618 = vmatprep.mubr.msk.f32.mxu0 %vm15426_vm1, %v17465_v13 }
0x450e   :  { %14561 = vmatprep.subr.bf16.mxu0 %v17464_v7 }
0x4511   :  { %14563 = vmatpush3.bf16.msra.mxu0 %v15546_v18 }
0x4512   :  { %14570 = vmatprep.subr.bf16.mxu0 %v17464_v7 }
0x458f   :  { %v7085_v14 = vpop.f32.mrb[90].mxu1 }
0x4590   :  { %v7089_v54 = vadd.f32 %v7085_v14, %v411_v3  ;;  %v13587_v9 = vpop.f32.mrb[91].mxu1 }
0x4592   :  { %15242 = vtanh.f32 %v7089_v54 }
0x4597   :  { %v7251_v16 = vpop.f32.mrb[92].mxu1 }
0x4598   :  { %v13609_v43 = vpop.f32.mrb[93].mxu1 }
0x459c   :  { %v15243_v32 = vpop.eup %15242 }
0x459d   :  { %7095 = vrot.lane.b32.xlu0 %v15243_v32, %s15428_s1  ;;  %v7091_v15 = vmul.f32 0.5, %v15243_v32 }
0x459f   :  { %v7092_v27 = vadd.f32 0.5, %v7091_v15 }
0x45df   :  { %v7181_v19 = vpop.f32.mrb[96].mxu0 }
0x45e0   :  { %v7252_v21 = vadd.f32 %v7251_v16, %v7181_v19  ;;  %v13598_v36 = vpop.f32.mrb[97].mxu0  ;;  %v7093_v16 = vmul.f32 %v7092_v27, %v6829_v10 }
0x45e2   :  { %v7255_v22 = vadd.f32 %v16755_v20, %v7252_v21 }
0x45e4   :  { %15244 = vtanh.f32 %v7255_v22 }
0x45ee   :  { %v15245_v57 = vpop.eup %15244 }
0x45ef   :  { %7261 = vrot.lane.b32.xlu1 %v15245_v57, %s15428_s1  ;;  %v7257_v14 = vmul.f32 0.5, %v15245_v57 }
0x45f1   :  { %v7258_v54 = vadd.f32 0.5, %v7257_v14 }
0x45f3   :  { %v7259_v22 = vmul.f32 %v7258_v54, %v6995_v1 }
0x460f   :  { %v7096_v12 = vpop.permute.xlu0 %7095 }
0x4610   :  { %v7098_v3 = vmul.f32 %v7096_v12, %v7092_v27 }
0x4612   :  { %7100 = vrot.lane.b32.xlu0 %v7098_v3, %s15429_s15 }
0x4661   :  { %v7262_v9 = vpop.permute.xlu1 %7261 }
0x4662   :  { %v7264_v43 = vmul.f32 %v7262_v9, %v7258_v54 }
0x4664   :  { %7266 = vrot.lane.b32.xlu1 %v7264_v43, %s15429_s15 }
0x4684   :  { %v7101_v19 = vpop.permute.xlu0 %7100 }
0x4685   :  { %v7103_v36 = vadd.f32 %v7101_v19, %v7093_v16 }
0x4687   :  { %15246 = vtanh.f32 %v7103_v36 }
0x4691   :  { %v15247_v21 = vpop.eup %15246 }
0x4692   :  { %7106 = vrot.lane.b32.xlu0 %v15247_v21, %s15428_s1 }
0x46d6   :  { %v7267_v32 = vpop.permute.xlu1 %7266 }
0x46d7   :  { %v7269_v15 = vadd.f32 %v7267_v32, %v7259_v22 }
0x46d9   :  { %15248 = vtanh.f32 %v7269_v15 }
0x46e3   :  { %v15249_v12 = vpop.eup %15248 }
0x46e4   :  { %7272 = vrot.lane.b32.xlu1 %v15249_v12, %s15428_s1 }
0x4704   :  { %v7107_v57 = vpop.permute.xlu0 %7106 }
0x4705   :  { %v7109_v3 = vmul.f32 %v7107_v57, %v7092_v27  ;;  %v416_v27 = vadd.f32 %v16704_v25, %v15967_v38 }
0x4707   :  { %7278 = vrot.lane.b32.xlu0 %v7109_v3, %s15429_s15 }
0x4756   :  { %v7273_v14 = vpop.permute.xlu1 %7272 }
0x4757   :  { %v7275_v9 = vmul.f32 %v7273_v14, %v7258_v54 }
0x4759   :  { %7374 = vrot.lane.b32.xlu1 %v7275_v9, %s15429_s15 }
0x4779   :  { %v7279_v10 = vpop.permute.xlu0 %7278 }
0x477a   :  { %13619 = vmatmul.mubr.msk.f32.vlgmr.msra.gmra.mrb[98].mxu0 %vm98_vm0, %v7279_v10 }
0x477b   :  { %14572 = vmatpush3.bf16.msra.mxu0 %v15640_v59  ;;  %13640 = vmatprep.mubr.msk.f32.mxu0 %vm15426_vm1, %v17465_v13 }
0x477c   :  { %14573 = vmatprep.subr.bf16.mxu0 %v17464_v7 }
0x477f   :  { %14575 = vmatpush3.bf16.msra.mxu0 %v15651_v62 }
0x4780   :  { %14582 = vmatprep.subr.bf16.mxu0 %v17464_v7 }
0x4782   :  { %13641 = vmatmul.mubr.msk.f32.vlgmr.msra.gmra.mrb[100].mxu0 %vm98_vm0, %v7279_v10 }
0x4783   :  { %14584 = vmatpush3.bf16.msra.mxu0 %v15618_v52  ;;  %13662 = vmatprep.mubr.msk.f32.mxu0 %vm15426_vm1, %v17465_v13 }
0x4784   :  { %14585 = vmatprep.subr.bf16.mxu0 %v17464_v7 }
0x4787   :  { %14587 = vmatpush3.bf16.msra.mxu0 %v15628_v56 }
0x4788   :  { %14594 = vmatprep.subr.bf16.mxu0 %v17464_v7 }
0x47cb   :  { %v16816_v1 = vpop.permute.xlu1 %7374 }
0x47cc   :  { %13630 = vmatmul.mubr.msk.f32.vlgmr.msra.gmra.mrb[94].mxu1 %vm98_vm0, %v16816_v1 }
0x47cd   :  { %14578 = vmatpush3.bf16.msra.mxu1 %v15523_v11  ;;  %13651 = vmatprep.mubr.msk.f32.mxu1 %vm15426_vm1, %v17465_v13 }
0x47ce   :  { %14579 = vmatprep.subr.bf16.mxu1 %v17464_v7 }
0x47d1   :  { %14581 = vmatpush3.bf16.msra.mxu1 %v15546_v18 }
0x47d2   :  { %14588 = vmatprep.subr.bf16.mxu1 %v17464_v7 }
0x484d   :  { %v7348_v54 = vpop.f32.mrb[98].mxu0 }
0x484e   :  { %v7352_v43 = vadd.f32 %v7348_v54, %v416_v27  ;;  %v13620_v16 = vpop.f32.mrb[99].mxu0 }
0x4850   :  { %15250 = vtanh.f32 %v7352_v43 }
0x4855   :  { %v7514_v19 = vpop.f32.mrb[100].mxu0 }
0x4856   :  { %v13642_v21 = vpop.f32.mrb[101].mxu0 }
0x485a   :  { %v15251_v22 = vpop.eup %15250 }
0x485b   :  { %7358 = vrot.lane.b32.xlu0 %v15251_v22, %s15428_s1  ;;  %v7354_v9 = vmul.f32 0.5, %v15251_v22 }
0x485d   :  { %v7355_v38 = vadd.f32 0.5, %v7354_v9 }
0x489f   :  { %v7444_v32 = vpop.f32.mrb[94].mxu1 }
0x48a0   :  { %v7515_v12 = vadd.f32 %v7514_v19, %v7444_v32  ;;  %v13631_v57 = vpop.f32.mrb[95].mxu1  ;;  %v7356_v19 = vmul.f32 %v7355_v38, %v7103_v36 }
0x48a2   :  { %v7518_v3 = vadd.f32 %v16755_v20, %v7515_v12 }
0x48a4   :  { %15252 = vtanh.f32 %v7518_v3 }
0x48ae   :  { %v15253_v14 = vpop.eup %15252 }
0x48af   :  { %7524 = vrot.lane.b32.xlu1 %v15253_v14, %s15428_s1  ;;  %v7520_v54 = vmul.f32 0.5, %v15253_v14 }
0x48b1   :  { %v7521_v43 = vadd.f32 0.5, %v7520_v54 }
0x48b3   :  { %v7522_v3 = vmul.f32 %v7521_v43, %v7269_v15 }
0x48cd   :  { %v7359_v10 = vpop.permute.xlu0 %7358 }
0x48ce   :  { %v7361_v27 = vmul.f32 %v7359_v10, %v7355_v38 }
0x48d0   :  { %7363 = vrot.lane.b32.xlu0 %v7361_v27, %s15429_s15 }
0x4921   :  { %v7525_v16 = vpop.permute.xlu1 %7524 }
0x4922   :  { %v7527_v21 = vmul.f32 %v7525_v16, %v7521_v43 }
0x4924   :  { %7529 = vrot.lane.b32.xlu1 %v7527_v21, %s15429_s15 }
0x4942   :  { %v7364_v32 = vpop.permute.xlu0 %7363 }
0x4943   :  { %v7366_v57 = vadd.f32 %v7364_v32, %v7356_v19 }
0x4945   :  { %15254 = vtanh.f32 %v7366_v57 }
0x494f   :  { %v15255_v12 = vpop.eup %15254 }
0x4950   :  { %7369 = vrot.lane.b32.xlu0 %v15255_v12, %s15428_s1 }
0x4996   :  { %v7530_v22 = vpop.permute.xlu1 %7529 }
0x4997   :  { %v7532_v9 = vadd.f32 %v7530_v22, %v7522_v3 }
0x4999   :  { %15256 = vtanh.f32 %v7532_v9 }
0x49a3   :  { %v15257_v10 = vpop.eup %15256 }
0x49a4   :  { %7535 = vrot.lane.b32.xlu1 %v15257_v10, %s15428_s1 }
0x49c2   :  { %v7370_v14 = vpop.permute.xlu0 %7369 }
0x49c3   :  { %v7372_v27 = vmul.f32 %v7370_v14, %v7355_v38  ;;  %v421_v38 = vadd.f32 %v16704_v25, %v15965_v37 }
0x49c5   :  { %7541 = vrot.lane.b32.xlu0 %v7372_v27, %s15429_s15 }
0x4a16   :  { %v7536_v54 = vpop.permute.xlu1 %7535 }
0x4a17   :  { %v16836_v16 = vmul.f32 %v7536_v54, %v7521_v43 }
0x4a19   :  { %7637 = vrot.lane.b32.xlu1 %v16836_v16, %s15429_s15 }
0x4a37   :  { %v7542_v36 = vpop.permute.xlu0 %7541 }
0x4a38   :  { %13652 = vmatmul.mubr.msk.f32.vlgmr.msra.gmra.mrb[96].mxu1 %vm98_vm0, %v7542_v36 }
0x4a39   :  { %14590 = vmatpush3.bf16.msra.mxu1 %v15640_v59  ;;  %13673 = vmatprep.mubr.msk.f32.mxu1 %vm15426_vm1, %v17465_v13 }
0x4a3a   :  { %14591 = vmatprep.subr.bf16.mxu1 %v17464_v7 }
0x4a3d   :  { %14593 = vmatpush3.bf16.msra.mxu1 %v15651_v62 }
0x4a3e   :  { %14600 = vmatprep.subr.bf16.mxu1 %v17464_v7 }
0x4a40   :  { %13674 = vmatmul.mubr.msk.f32.vlgmr.msra.gmra.mrb[98].mxu1 %vm98_vm0, %v7542_v36 }
0x4a41   :  { %14602 = vmatpush3.bf16.msra.mxu1 %v15618_v52  ;;  %13695 = vmatprep.mubr.msk.f32.mxu1 %vm15426_vm1, %v17465_v13 }
0x4a42   :  { %14603 = vmatprep.subr.bf16.mxu1 %v17464_v7 }
0x4a45   :  { %14605 = vmatpush3.bf16.msra.mxu1 %v15628_v56 }
0x4a46   :  { %14612 = vmatprep.subr.bf16.mxu1 %v17464_v7 }
0x4a8b   :  { %v7638_v15 = vpop.permute.xlu1 %7637 }
0x4a8c   :  { %13663 = vmatmul.mubr.msk.f32.vlgmr.msra.gmra.mrb[102].mxu0 %vm98_vm0, %v7638_v15 }
0x4a8d   :  { %14596 = vmatpush3.bf16.msra.mxu0 %v15523_v11  ;;  %13684 = vmatprep.mubr.msk.f32.mxu0 %vm15426_vm1, %v17465_v13 }
0x4a8e   :  { %14597 = vmatprep.subr.bf16.mxu0 %v17464_v7 }
0x4a91   :  { %14599 = vmatpush3.bf16.msra.mxu0 %v15546_v18 }
0x4a92   :  { %14606 = vmatprep.subr.bf16.mxu0 %v17464_v7 }
0x4b0b   :  { %v7611_v43 = vpop.f32.mrb[96].mxu1 }
0x4b0c   :  { %v7615_v21 = vadd.f32 %v7611_v43, %v421_v38  ;;  %v13653_v19 = vpop.f32.mrb[97].mxu1 }
0x4b0e   :  { %15258 = vtanh.f32 %v7615_v21 }
0x4b13   :  { %v7777_v32 = vpop.f32.mrb[98].mxu1 }
0x4b14   :  { %v13675_v12 = vpop.f32.mrb[99].mxu1 }
0x4b18   :  { %v15259_v3 = vpop.eup %15258 }
0x4b19   :  { %7621 = vrot.lane.b32.xlu0 %v15259_v3, %s15428_s1  ;;  %v7617_v36 = vmul.f32 0.5, %v15259_v3 }
0x4b1b   :  { %v7618_v37 = vadd.f32 0.5, %v7617_v36 }
0x4b5f   :  { %v7707_v22 = vpop.f32.mrb[102].mxu0 }
0x4b60   :  { %v7778_v10 = vadd.f32 %v7777_v32, %v7707_v22  ;;  %v13664_v14 = vpop.f32.mrb[103].mxu0  ;;  %v7619_v32 = vmul.f32 %v7618_v37, %v7366_v57 }
0x4b62   :  { %v7781_v27 = vadd.f32 %v16755_v20, %v7778_v10 }
0x4b64   :  { %15260 = vtanh.f32 %v7781_v27 }
0x4b6e   :  { %v15261_v54 = vpop.eup %15260 }
0x4b6f   :  { %7787 = vrot.lane.b32.xlu1 %v15261_v54, %s15428_s1  ;;  %v7783_v43 = vmul.f32 0.5, %v15261_v54 }
0x4b71   :  { %v7784_v21 = vadd.f32 0.5, %v7783_v43 }
0x4b73   :  { %v7785_v27 = vmul.f32 %v7784_v21, %v7532_v9 }
0x4b8b   :  { %v7622_v15 = vpop.permute.xlu0 %7621 }
0x4b8c   :  { %v7624_v38 = vmul.f32 %v7622_v15, %v7618_v37 }
0x4b8e   :  { %7626 = vrot.lane.b32.xlu0 %v7624_v38, %s15429_s15 }
0x4be1   :  { %v7788_v19 = vpop.permute.xlu1 %7787 }
0x4be2   :  { %v7790_v12 = vmul.f32 %v7788_v19, %v7784_v21 }
0x4be4   :  { %7792 = vrot.lane.b32.xlu1 %v7790_v12, %s15429_s15 }
0x4c00   :  { %v7627_v22 = vpop.permute.xlu0 %7626 }
0x4c01   :  { %v7629_v14 = vadd.f32 %v7627_v22, %v7619_v32 }
0x4c03   :  { %15262 = vtanh.f32 %v7629_v14 }
0x4c0d   :  { %v15263_v10 = vpop.eup %15262 }
0x4c0e   :  { %7632 = vrot.lane.b32.xlu0 %v15263_v10, %s15428_s1 }
0x4c56   :  { %v7793_v3 = vpop.permute.xlu1 %7792 }
0x4c57   :  { %v7795_v36 = vadd.f32 %v7793_v3, %v7785_v27 }
0x4c59   :  { %15264 = vtanh.f32 %v7795_v36 }
0x4c63   :  { %v15265_v15 = vpop.eup %15264 }
0x4c64   :  { %7798 = vrot.lane.b32.xlu1 %v15265_v15, %s15428_s1 }
0x4c80   :  { %v7633_v54 = vpop.permute.xlu0 %7632 }
0x4c81   :  { %v7635_v38 = vmul.f32 %v7633_v54, %v7618_v37  ;;  %v426_v37 = vadd.f32 %v16704_v25, %v15971_v40 }
0x4c83   :  { %7804 = vrot.lane.b32.xlu0 %v7635_v38, %s15429_s15 }
0x4cd6   :  { %v7799_v43 = vpop.permute.xlu1 %7798 }
0x4cd7   :  { %v16871_v19 = vmul.f32 %v7799_v43, %v7784_v21 }
0x4cd9   :  { %7900 = vrot.lane.b32.xlu1 %v16871_v19, %s15429_s15 }
0x4cf5   :  { %v7805_v57 = vpop.permute.xlu0 %7804 }
0x4cf6   :  { %13685 = vmatmul.mubr.msk.f32.vlgmr.msra.gmra.mrb[104].mxu0 %vm98_vm0, %v7805_v57 }
0x4cf7   :  { %14608 = vmatpush3.bf16.msra.mxu0 %v15640_v59  ;;  %13706 = vmatprep.mubr.msk.f32.mxu0 %vm15426_vm1, %v17465_v13 }
0x4cf8   :  { %14609 = vmatprep.subr.bf16.mxu0 %v17464_v7 }
0x4cfb   :  { %14611 = vmatpush3.bf16.msra.mxu0 %v15651_v62 }
0x4cfc   :  { %14618 = vmatprep.subr.bf16.mxu0 %v17464_v7 }
0x4cfe   :  { %13707 = vmatmul.mubr.msk.f32.vlgmr.msra.gmra.mrb[106].mxu0 %vm98_vm0, %v7805_v57 }
0x4cff   :  { %14620 = vmatpush3.bf16.msra.mxu0 %v15618_v52  ;;  %13728 = vmatprep.mubr.msk.f32.mxu0 %vm15426_vm1, %v17465_v13 }
0x4d00   :  { %14621 = vmatprep.subr.bf16.mxu0 %v17464_v7 }
0x4d03   :  { %14623 = vmatpush3.bf16.msra.mxu0 %v15628_v56 }
0x4d04   :  { %14630 = vmatprep.subr.bf16.mxu0 %v17464_v7 }
0x4d4b   :  { %v7901_v9 = vpop.permute.xlu1 %7900 }
0x4d4c   :  { %13696 = vmatmul.mubr.msk.f32.vlgmr.msra.gmra.mrb[100].mxu1 %vm98_vm0, %v7901_v9 }
0x4d4d   :  { %14614 = vmatpush3.bf16.msra.mxu1 %v15523_v11  ;;  %13717 = vmatprep.mubr.msk.f32.mxu1 %vm15426_vm1, %v17465_v13 }
0x4d4e   :  { %14615 = vmatprep.subr.bf16.mxu1 %v17464_v7 }
0x4d51   :  { %14617 = vmatpush3.bf16.msra.mxu1 %v15546_v18 }
0x4d52   :  { %14624 = vmatprep.subr.bf16.mxu1 %v17464_v7 }
0x4dc9   :  { %v7874_v21 = vpop.f32.mrb[104].mxu0 }
0x4dca   :  { %v7878_v12 = vadd.f32 %v7874_v21, %v426_v37  ;;  %v13686_v32 = vpop.f32.mrb[105].mxu0 }
0x4dcc   :  { %15266 = vtanh.f32 %v7878_v12 }
0x4dd1   :  { %v8040_v22 = vpop.f32.mrb[106].mxu0 }
0x4dd2   :  { %v13708_v10 = vpop.f32.mrb[107].mxu0 }
0x4dd6   :  { %v15267_v27 = vpop.eup %15266 }
0x4dd7   :  { %7884 = vrot.lane.b32.xlu0 %v15267_v27, %s15428_s1  ;;  %v7880_v57 = vmul.f32 0.5, %v15267_v27 }
0x4dd9   :  { %v7881_v40 = vadd.f32 0.5, %v7880_v57 }
0x4e1f   :  { %v7970_v3 = vpop.f32.mrb[100].mxu1 }
0x4e20   :  { %v8041_v15 = vadd.f32 %v8040_v22, %v7970_v3  ;;  %v13697_v54 = vpop.f32.mrb[101].mxu1  ;;  %v7882_v22 = vmul.f32 %v7881_v40, %v7629_v14 }
0x4e22   :  { %v8044_v38 = vadd.f32 %v16755_v20, %v8041_v15 }
0x4e24   :  { %15268 = vtanh.f32 %v8044_v38 }
0x4e2e   :  { %v15269_v43 = vpop.eup %15268 }
0x4e2f   :  { %8050 = vrot.lane.b32.xlu1 %v15269_v43, %s15428_s1  ;;  %v8046_v21 = vmul.f32 0.5, %v15269_v43 }
0x4e31   :  { %v8047_v12 = vadd.f32 0.5, %v8046_v21 }
0x4e33   :  { %v8048_v38 = vmul.f32 %v8047_v12, %v7795_v36 }
0x4e49   :  { %v7885_v9 = vpop.permute.xlu0 %7884 }
0x4e4a   :  { %v7887_v37 = vmul.f32 %v7885_v9, %v7881_v40 }
0x4e4c   :  { %7889 = vrot.lane.b32.xlu0 %v7887_v37, %s15429_s15 }
0x4ea1   :  { %v8051_v32 = vpop.permute.xlu1 %8050 }
0x4ea2   :  { %v8053_v10 = vmul.f32 %v8051_v32, %v8047_v12 }
0x4ea4   :  { %8055 = vrot.lane.b32.xlu1 %v8053_v10, %s15429_s15 }
0x4ebe   :  { %v7890_v3 = vpop.permute.xlu0 %7889 }
0x4ebf   :  { %v7892_v54 = vadd.f32 %v7890_v3, %v7882_v22 }
0x4ec1   :  { %15270 = vtanh.f32 %v7892_v54 }
0x4ecb   :  { %v15271_v15 = vpop.eup %15270 }
0x4ecc   :  { %7895 = vrot.lane.b32.xlu0 %v15271_v15, %s15428_s1 }
0x4f16   :  { %v8056_v27 = vpop.permute.xlu1 %8055 }
0x4f17   :  { %v8058_v57 = vadd.f32 %v8056_v27, %v8048_v38 }
0x4f19   :  { %15272 = vtanh.f32 %v8058_v57 }
0x4f23   :  { %v15273_v9 = vpop.eup %15272 }
0x4f24   :  { %8061 = vrot.lane.b32.xlu1 %v15273_v9, %s15428_s1 }
0x4f3e   :  { %v7896_v43 = vpop.permute.xlu0 %7895 }
0x4f3f   :  { %v7898_v37 = vmul.f32 %v7896_v43, %v7881_v40  ;;  %v431_v40 = vadd.f32 %v16704_v25, %v15969_v39 }
0x4f41   :  { %8078 = vrot.lane.b32.xlu0 %v7898_v37, %s15429_s15 }
0x4f96   :  { %v8062_v21 = vpop.permute.xlu1 %8061 }
0x4f97   :  { %v16906_v32 = vmul.f32 %v8062_v21, %v8047_v12 }
0x4f99   :  { %8174 = vrot.lane.b32.xlu1 %v16906_v32, %s15429_s15 }
0x4fb3   :  { %v8079_v14 = vpop.permute.xlu0 %8078 }
0x4fb4   :  { %13718 = vmatmul.mubr.msk.f32.vlgmr.msra.gmra.mrb[102].mxu1 %vm98_vm0, %v8079_v14 }
0x4fb5   :  { %14626 = vmatpush3.bf16.msra.mxu1 %v15640_v59  ;;  %13739 = vmatprep.mubr.msk.f32.mxu1 %vm15426_vm1, %v17465_v13 }
0x4fb6   :  { %14627 = vmatprep.subr.bf16.mxu1 %v17464_v7 }
0x4fb9   :  { %14629 = vmatpush3.bf16.msra.mxu1 %v15651_v62 }
0x4fba   :  { %14636 = vmatprep.subr.bf16.mxu1 %v17464_v7 }
0x4fbc   :  { %13740 = vmatmul.mubr.msk.f32.vlgmr.msra.gmra.mrb[104].mxu1 %vm98_vm0, %v8079_v14 }
0x4fbd   :  { %14638 = vmatpush3.bf16.msra.mxu1 %v15618_v52  ;;  %13761 = vmatprep.mubr.msk.f32.mxu1 %vm15426_vm1, %v17465_v13 }
0x4fbe   :  { %14639 = vmatprep.subr.bf16.mxu1 %v17464_v7 }
0x4fc1   :  { %14641 = vmatpush3.bf16.msra.mxu1 %v15628_v56 }
0x4fc2   :  { %14648 = vmatprep.subr.bf16.mxu1 %v17464_v7 }
0x500b   :  { %v8175_v36 = vpop.permute.xlu1 %8174 }
0x500c   :  { %13729 = vmatmul.mubr.msk.f32.vlgmr.msra.gmra.mrb[108].mxu0 %vm98_vm0, %v8175_v36 }
0x500d   :  { %14632 = vmatpush3.bf16.msra.mxu0 %v15523_v11  ;;  %13750 = vmatprep.mubr.msk.f32.mxu0 %vm15426_vm1, %v17465_v13 }
0x500e   :  { %14633 = vmatprep.subr.bf16.mxu0 %v17464_v7 }
0x5011   :  { %14635 = vmatpush3.bf16.msra.mxu0 %v15546_v18 }
0x5012   :  { %14642 = vmatprep.subr.bf16.mxu0 %v17464_v7 }
0x5087   :  { %v8148_v12 = vpop.f32.mrb[102].mxu1 }
0x5088   :  { %v8152_v10 = vadd.f32 %v8148_v12, %v431_v40  ;;  %v13719_v22 = vpop.f32.mrb[103].mxu1 }
0x508a   :  { %15274 = vtanh.f32 %v8152_v10 }
0x508f   :  { %v8314_v3 = vpop.f32.mrb[104].mxu1 }
0x5090   :  { %v13741_v15 = vpop.f32.mrb[105].mxu1 }
0x5094   :  { %v15275_v38 = vpop.eup %15274 }
0x5095   :  { %8158 = vrot.lane.b32.xlu0 %v15275_v38, %s15428_s1  ;;  %v8154_v14 = vmul.f32 0.5, %v15275_v38 }
0x5097   :  { %v8155_v39 = vadd.f32 0.5, %v8154_v14 }
0x50df   :  { %v8244_v27 = vpop.f32.mrb[108].mxu0 }
0x50e0   :  { %v8315_v9 = vadd.f32 %v8314_v3, %v8244_v27  ;;  %v13730_v43 = vpop.f32.mrb[109].mxu0  ;;  %v8156_v3 = vmul.f32 %v8155_v39, %v7892_v54 }
0x50e2   :  { %v8318_v37 = vadd.f32 %v16755_v20, %v8315_v9 }
0x50e4   :  { %15276 = vtanh.f32 %v8318_v37 }
0x50ee   :  { %v15277_v21 = vpop.eup %15276 }
0x50ef   :  { %8324 = vrot.lane.b32.xlu1 %v15277_v21, %s15428_s1  ;;  %v8320_v12 = vmul.f32 0.5, %v15277_v21 }
0x50f1   :  { %v8321_v10 = vadd.f32 0.5, %v8320_v12 }
0x50f3   :  { %v8322_v37 = vmul.f32 %v8321_v10, %v8058_v57 }
0x5107   :  { %v8159_v36 = vpop.permute.xlu0 %8158 }
0x5108   :  { %v8161_v40 = vmul.f32 %v8159_v36, %v8155_v39 }
0x510a   :  { %8163 = vrot.lane.b32.xlu0 %v8161_v40, %s15429_s15 }
0x5161   :  { %v8325_v22 = vpop.permute.xlu1 %8324 }
0x5162   :  { %v8327_v15 = vmul.f32 %v8325_v22, %v8321_v10 }
0x5164   :  { %8329 = vrot.lane.b32.xlu1 %v8327_v15, %s15429_s15 }
0x517c   :  { %v8164_v27 = vpop.permute.xlu0 %8163 }
0x517d   :  { %v8166_v43 = vadd.f32 %v8164_v27, %v8156_v3 }
0x517f   :  { %15278 = vtanh.f32 %v8166_v43 }
0x5189   :  { %v15279_v9 = vpop.eup %15278 }
0x518a   :  { %8169 = vrot.lane.b32.xlu0 %v15279_v9, %s15428_s1 }
0x51d6   :  { %v8330_v38 = vpop.permute.xlu1 %8329 }
0x51d7   :  { %v8332_v14 = vadd.f32 %v8330_v38, %v8322_v37 }
0x51d9   :  { %15280 = vtanh.f32 %v8332_v14 }
0x51e3   :  { %v15281_v36 = vpop.eup %15280 }
0x51e4   :  { %8335 = vrot.lane.b32.xlu1 %v15281_v36, %s15428_s1 }
0x51fc   :  { %v8170_v21 = vpop.permute.xlu0 %8169 }
0x51fd   :  { %v8172_v40 = vmul.f32 %v8170_v21, %v8155_v39  ;;  %v436_v39 = vadd.f32 %v16704_v25, %v15975_v42 }
0x51ff   :  { %8341 = vrot.lane.b32.xlu0 %v8172_v40, %s15429_s15 }
0x5256   :  { %v8336_v12 = vpop.permute.xlu1 %8335 }
0x5257   :  { %v8338_v22 = vmul.f32 %v8336_v12, %v8321_v10 }
0x5259   :  { %8437 = vrot.lane.b32.xlu1 %v8338_v22, %s15429_s15 }
0x5271   :  { %v8342_v54 = vpop.permute.xlu0 %8341 }
0x5272   :  { %13751 = vmatmul.mubr.msk.f32.vlgmr.msra.gmra.mrb[110].mxu0 %vm98_vm0, %v8342_v54 }
0x5273   :  { %14644 = vmatpush3.bf16.msra.mxu0 %v15640_v59  ;;  %13772 = vmatprep.mubr.msk.f32.mxu0 %vm15426_vm1, %v17465_v13 }
0x5274   :  { %14645 = vmatprep.subr.bf16.mxu0 %v17464_v7 }
0x5277   :  { %14647 = vmatpush3.bf16.msra.mxu0 %v15651_v62 }
0x5278   :  { %14654 = vmatprep.subr.bf16.mxu0 %v17464_v7 }
0x527a   :  { %13773 = vmatmul.mubr.msk.f32.vlgmr.msra.gmra.mrb[112].mxu0 %vm98_vm0, %v8342_v54 }
0x527b   :  { %14656 = vmatpush3.bf16.msra.mxu0 %v15618_v52  ;;  %13794 = vmatprep.mubr.msk.f32.mxu0 %vm15426_vm1, %v17465_v13 }
0x527c   :  { %14657 = vmatprep.subr.bf16.mxu0 %v17464_v7 }
0x527f   :  { %14659 = vmatpush3.bf16.msra.mxu0 %v15628_v56 }
0x5280   :  { %14666 = vmatprep.subr.bf16.mxu0 %v17464_v7 }
0x52cb   :  { %v16956_v57 = vpop.permute.xlu1 %8437 }
0x52cc   :  { %13762 = vmatmul.mubr.msk.f32.vlgmr.msra.gmra.mrb[106].mxu1 %vm98_vm0, %v16956_v57 }
0x52cd   :  { %14650 = vmatpush3.bf16.msra.mxu1 %v15523_v11  ;;  %13783 = vmatprep.mubr.msk.f32.mxu1 %vm15426_vm1, %v17465_v13 }
0x52ce   :  { %14651 = vmatprep.subr.bf16.mxu1 %v17464_v7 }
0x52d1   :  { %14653 = vmatpush3.bf16.msra.mxu1 %v15546_v18 }
0x52d2   :  { %14660 = vmatprep.subr.bf16.mxu1 %v17464_v7 }
0x5345   :  { %v8411_v10 = vpop.f32.mrb[110].mxu0 }
0x5346   :  { %v8415_v15 = vadd.f32 %v8411_v10, %v436_v39  ;;  %v13752_v3 = vpop.f32.mrb[111].mxu0 }
0x5348   :  { %15282 = vtanh.f32 %v8415_v15 }
0x534d   :  { %v8577_v27 = vpop.f32.mrb[112].mxu0 }
0x534e   :  { %v13774_v9 = vpop.f32.mrb[113].mxu0 }
0x5352   :  { %v15283_v37 = vpop.eup %15282 }
0x5353   :  { %8421 = vrot.lane.b32.xlu0 %v15283_v37, %s15428_s1  ;;  %v8417_v22 = vmul.f32 0.5, %v15283_v37 }
0x5355   :  { %v8418_v42 = vadd.f32 0.5, %v8417_v22 }
0x539f   :  { %v8507_v38 = vpop.f32.mrb[106].mxu1 }
0x53a0   :  { %v8578_v36 = vadd.f32 %v8577_v27, %v8507_v38  ;;  %v13763_v21 = vpop.f32.mrb[107].mxu1  ;;  %v8419_v27 = vmul.f32 %v8418_v42, %v8166_v43 }
0x53a2   :  { %v8581_v40 = vadd.f32 %v16755_v20, %v8578_v36 }
0x53a4   :  { %15284 = vtanh.f32 %v8581_v40 }
0x53ae   :  { %v15285_v12 = vpop.eup %15284 }
0x53af   :  { %8587 = vrot.lane.b32.xlu1 %v15285_v12, %s15428_s1  ;;  %v8583_v39 = vmul.f32 0.5, %v15285_v12 }
0x53b1   :  { %v8584_v10 = vadd.f32 0.5, %v8583_v39 }
0x53b3   :  { %v8585_v37 = vmul.f32 %v8584_v10, %v8332_v14 }
0x53c5   :  { %v8422_v25 = vpop.permute.xlu0 %8421 }
0x53c6   :  { %v8424_v54 = vmul.f32 %v8422_v25, %v8418_v42 }
0x53c8   :  { %8426 = vrot.lane.b32.xlu0 %v8424_v54, %s15429_s15 }
0x5421   :  { %v8588_v15 = vpop.permute.xlu1 %8587 }
0x5422   :  { %v8590_v3 = vmul.f32 %v8588_v15, %v8584_v10 }
0x5424   :  { %8592 = vrot.lane.b32.xlu1 %v8590_v3, %s15429_s15 }
0x543a   :  { %v8427_v9 = vpop.permute.xlu0 %8426 }
0x543b   :  { %v16973_v38 = vadd.f32 %v8427_v9, %v8419_v27 }
0x543d   :  { %15286 = vtanh.f32 %v16973_v38 }
0x5447   :  { %v15287_v36 = vpop.eup %15286 }
0x5448   :  { %8432 = vrot.lane.b32.xlu0 %v15287_v36, %s15428_s1 }
0x5496   :  { %v8593_v21 = vpop.permute.xlu1 %8592 }
0x5497   :  { %v16977_v40 = vadd.f32 %v8593_v21, %v8585_v37 }
0x5499   :  { %15288 = vtanh.f32 %v16977_v40 }
0x54a3   :  { %v15289_v12 = vpop.eup %15288 }
0x54a4   :  { %8598 = vrot.lane.b32.xlu1 %v15289_v12, %s15428_s1 }
0x54ba   :  { %v8433_v22 = vpop.permute.xlu0 %8432 }
0x54bb   :  { %v8435_v25 = vmul.f32 %v8433_v22, %v8418_v42  ;;  %v17010_v42 = vld [vmem:[%s17451_s3] ss:$0 sm:$0xff] }
0x54bd   :  { %8604 = vrot.lane.b32.xlu0 %v8435_v25, %s15429_s15 }
0x5516   :  { %v8599_v43 = vpop.permute.xlu1 %8598 }
0x5517   :  { %v16982_v54 = vmul.f32 %v8599_v43, %v8584_v10  ;;  %v441_v10 = vadd.f32 %v17010_v42, %v15973_v41 }
0x5519   :  { %8700 = vrot.lane.b32.xlu1 %v16982_v54, %s15429_s15 }
0x552f   :  { %v8605_v39 = vpop.permute.xlu0 %8604 }
0x5530   :  { %13784 = vmatmul.mubr.msk.f32.vlgmr.msra.gmra.mrb[108].mxu1 %vm98_vm0, %v8605_v39 }
0x5531   :  { %14662 = vmatpush3.bf16.msra.mxu1 %v15640_v59  ;;  %13805 = vmatprep.mubr.msk.f32.mxu1 %vm15426_vm1, %v17465_v13 }
0x5532   :  { %14663 = vmatprep.subr.bf16.mxu1 %v17464_v7 }
0x5535   :  { %14665 = vmatpush3.bf16.msra.mxu1 %v15651_v62 }
0x5536   :  { %14672 = vmatprep.subr.bf16.mxu1 %v17464_v7 }
0x5538   :  { %13806 = vmatmul.mubr.msk.f32.vlgmr.msra.gmra.mrb[110].mxu1 %vm98_vm0, %v8605_v39 }
0x5539   :  { %14674 = vmatpush3.bf16.msra.mxu1 %v15618_v52  ;;  %13827 = vmatprep.mubr.msk.f32.mxu1 %vm15426_vm1, %v17465_v13 }
0x553a   :  { %14675 = vmatprep.subr.bf16.mxu1 %v17464_v7 }
0x553d   :  { %14677 = vmatpush3.bf16.msra.mxu1 %v15628_v56 }
0x553e   :  { %14684 = vmatprep.subr.bf16.mxu1 %v17464_v7 }
0x558b   :  { %v8701_v14 = vpop.permute.xlu1 %8700 }
0x558c   :  { %13795 = vmatmul.mubr.msk.f32.vlgmr.msra.gmra.mrb[114].mxu0 %vm98_vm0, %v8701_v14 }
0x558d   :  { %14668 = vmatpush3.bf16.msra.mxu0 %v15523_v11  ;;  %13816 = vmatprep.mubr.msk.f32.mxu0 %vm15426_vm1, %v17465_v13 }
0x558e   :  { %14669 = vmatprep.subr.bf16.mxu0 %v17464_v7 }
0x5591   :  { %14671 = vmatpush3.bf16.msra.mxu0 %v15546_v18 }
0x5592   :  { %14678 = vmatprep.subr.bf16.mxu0 %v17464_v7 }
0x5603   :  { %v8674_v15 = vpop.f32.mrb[108].mxu1 }
0x5604   :  { %v8678_v3 = vadd.f32 %v8674_v15, %v441_v10  ;;  %v13785_v27 = vpop.f32.mrb[109].mxu1 }
0x5606   :  { %15290 = vtanh.f32 %v8678_v3 }
0x560b   :  { %v8840_v9 = vpop.f32.mrb[110].mxu1 }
0x560c   :  { %v13807_v36 = vpop.f32.mrb[111].mxu1 }
0x5610   :  { %v15291_v37 = vpop.eup %15290 }
0x5611   :  { %8684 = vrot.lane.b32.xlu0 %v15291_v37, %s15428_s1  ;;  %v8680_v39 = vmul.f32 0.5, %v15291_v37 }
0x5613   :  { %v8681_v41 = vadd.f32 0.5, %v8680_v39 }
0x565f   :  { %v8770_v21 = vpop.f32.mrb[114].mxu0 }
0x5660   :  { %v8841_v12 = vadd.f32 %v8840_v9, %v8770_v21  ;;  %v13796_v22 = vpop.f32.mrb[115].mxu0  ;;  %v8682_v9 = vmul.f32 %v8681_v41, %v16973_v38 }
0x5662   :  { %v8844_v25 = vadd.f32 %v16755_v20, %v8841_v12 }
0x5664   :  { %15292 = vtanh.f32 %v8844_v25 }
0x566e   :  { %v15293_v43 = vpop.eup %15292 }
0x566f   :  { %8850 = vrot.lane.b32.xlu1 %v15293_v43, %s15428_s1  ;;  %v8846_v15 = vmul.f32 0.5, %v15293_v43 }
0x5671   :  { %v8847_v3 = vadd.f32 0.5, %v8846_v15 }
0x5673   :  { %v8848_v37 = vmul.f32 %v8847_v3, %v16977_v40 }
0x5683   :  { %v8685_v14 = vpop.permute.xlu0 %8684 }
0x5684   :  { %v8687_v10 = vmul.f32 %v8685_v14, %v8681_v41 }
0x5686   :  { %8689 = vrot.lane.b32.xlu0 %v8687_v10, %s15429_s15 }
0x56e1   :  { %v8851_v27 = vpop.permute.xlu1 %8850 }
0x56e2   :  { %v8853_v36 = vmul.f32 %v8851_v27, %v8847_v3 }
0x56e4   :  { %8855 = vrot.lane.b32.xlu1 %v8853_v36, %s15429_s15 }
0x56f8   :  { %v8690_v21 = vpop.permute.xlu0 %8689 }
0x56f9   :  { %v17020_v20 = vadd.f32 %v8690_v21, %v8682_v9 }
0x56fb   :  { %15294 = vtanh.f32 %v17020_v20 }
0x5705   :  { %v15295_v12 = vpop.eup %15294 }
0x5706   :  { %8695 = vrot.lane.b32.xlu0 %v15295_v12, %s15428_s1 }
0x5756   :  { %v8856_v22 = vpop.permute.xlu1 %8855 }
0x5757   :  { %v17025_v25 = vadd.f32 %v8856_v22, %v8848_v37 }
0x5759   :  { %15296 = vtanh.f32 %v17025_v25 }
0x5763   :  { %v15297_v43 = vpop.eup %15296 }
0x5764   :  { %8861 = vrot.lane.b32.xlu1 %v15297_v43, %s15428_s1 }
0x5778   :  { %v8696_v39 = vpop.permute.xlu0 %8695 }
0x5779   :  { %v8698_v38 = vmul.f32 %v8696_v39, %v8681_v41  ;;  %v446_v41 = vadd.f32 %v17010_v42, %v15585_v26  ;;  %v17061_v39 = vld [vmem:[%s17454_s6] ss:$0 sm:$0xff]  ;;  %s15430_s6 = smov 96  }
0x577b   :  { %8867 = vrot.lane.b32.xlu0 %v8698_v38, %s15429_s15 }
0x57d6   :  { %v8862_v14 = vpop.permute.xlu1 %8861 }
0x57d7   :  { %v17030_v10 = vmul.f32 %v8862_v14, %v8847_v3 }
0x57d9   :  { %8963 = vrot.lane.b32.xlu1 %v17030_v10, %s15429_s15 }
0x57ed   :  { %v8868_v15 = vpop.permute.xlu0 %8867 }
0x57ee   :  { %13817 = vmatmul.mubr.msk.f32.vlgmr.msra.gmra.mrb[116].mxu0 %vm98_vm0, %v8868_v15 }
0x57ef   :  { %14680 = vmatpush3.bf16.msra.mxu0 %v15640_v59  ;;  %13838 = vmatprep.mubr.msk.f32.mxu0 %vm15426_vm1, %v17465_v13 }
0x57f0   :  { %14681 = vmatprep.subr.bf16.mxu0 %v17464_v7 }
0x57f3   :  { %14683 = vmatpush3.bf16.msra.mxu0 %v15651_v62 }
0x57f4   :  { %14690 = vmatprep.subr.bf16.mxu0 %v17464_v7 }
0x57f6   :  { %13839 = vmatmul.mubr.msk.f32.vlgmr.msra.gmra.mrb[118].mxu0 %vm98_vm0, %v8868_v15 }
0x57f7   :  { %14692 = vmatpush3.bf16.msra.mxu0 %v15618_v52  ;;  %13860 = vmatprep.mubr.msk.f32.mxu0 %vm15426_vm1, %v17465_v13 }
0x57f8   :  { %14693 = vmatprep.subr.bf16.mxu0 %v17464_v7 }
0x57fb   :  { %14695 = vmatpush3.bf16.msra.mxu0 %v15628_v56 }
0x57fc   :  { %14702 = vmatprep.subr.bf16.mxu0 %v17464_v7 }
0x584b   :  { %v8964_v40 = vpop.permute.xlu1 %8963 }
0x584c   :  { %13828 = vmatmul.mubr.msk.f32.vlgmr.msra.gmra.mrb[112].mxu1 %vm98_vm0, %v8964_v40 }
0x584d   :  { %14686 = vmatpush3.bf16.msra.mxu1 %v15523_v11  ;;  %13849 = vmatprep.mubr.msk.f32.mxu1 %vm15426_vm1, %v17465_v13 }
0x584e   :  { %14687 = vmatprep.subr.bf16.mxu1 %v17464_v7 }
0x5851   :  { %14689 = vmatpush3.bf16.msra.mxu1 %v15546_v18 }
0x5852   :  { %14696 = vmatprep.subr.bf16.mxu1 %v17464_v7 }
0x58c1   :  { %v8937_v3 = vpop.f32.mrb[116].mxu0 }
0x58c2   :  { %v8941_v27 = vadd.f32 %v8937_v3, %v446_v41  ;;  %v13818_v36 = vpop.f32.mrb[117].mxu0 }
0x58c4   :  { %15298 = vtanh.f32 %v8941_v27 }
0x58c9   :  { %v9103_v9 = vpop.f32.mrb[118].mxu0 }
0x58ca   :  { %v13840_v21 = vpop.f32.mrb[119].mxu0 }
0x58ce   :  { %v15299_v12 = vpop.eup %15298 }
0x58cf   :  { %8947 = vrot.lane.b32.xlu0 %v15299_v12, %s15428_s1  ;;  %v8943_v14 = vmul.f32 0.5, %v15299_v12 }
0x58d1   :  { %v8944_v15 = vadd.f32 0.5, %v8943_v14 }
0x58d3   :  { %v8945_v21 = vmul.f32 %v8944_v15, %v17020_v20 }
0x591f   :  { %v9033_v37 = vpop.f32.mrb[112].mxu1 }
0x5920   :  { %v9104_v22 = vadd.f32 %v9103_v9, %v9033_v37  ;;  %v13829_v43 = vpop.f32.mrb[113].mxu1 }
0x5922   :  { %v9107_v38 = vadd.f32 %v17061_v39, %v9104_v22 }
0x5924   :  { %15300 = vtanh.f32 %v9107_v38 }
0x592e   :  { %v15301_v26 = vpop.eup %15300 }
0x592f   :  { %9113 = vrot.lane.b32.xlu1 %v15301_v26, %s15428_s1  ;;  %v9109_v3 = vmul.f32 0.5, %v15301_v26 }
0x5931   :  { %v9110_v27 = vadd.f32 0.5, %v9109_v3 }
0x5933   :  { %v9111_v12 = vmul.f32 %v9110_v27, %v17025_v25 }
0x5941   :  { %v8948_v40 = vpop.permute.xlu0 %8947 }
0x5942   :  { %v8950_v41 = vmul.f32 %v8948_v40, %v8944_v15 }
0x5944   :  { %8952 = vrot.lane.b32.xlu0 %v8950_v41, %s15429_s15 }
0x59a1   :  { %v9114_v36 = vpop.permute.xlu1 %9113 }
0x59a2   :  { %v9116_v9 = vmul.f32 %v9114_v36, %v9110_v27 }
0x59a4   :  { %9118 = vrot.lane.b32.xlu1 %v9116_v9, %s15429_s15 }
0x59b6   :  { %v8953_v37 = vpop.permute.xlu0 %8952 }
0x59b7   :  { %v8955_v22 = vadd.f32 %v8953_v37, %v8945_v21 }
0x59b9   :  { %15302 = vtanh.f32 %v8955_v22 }
0x59c3   :  { %v15303_v43 = vpop.eup %15302 }
0x59c4   :  { %8958 = vrot.lane.b32.xlu0 %v15303_v43, %s15428_s1 }
0x5a16   :  { %v9119_v38 = vpop.permute.xlu1 %9118 }
0x5a17   :  { %v9121_v14 = vadd.f32 %v9119_v38, %v9111_v12 }
0x5a19   :  { %15304 = vtanh.f32 %v9121_v14 }
0x5a23   :  { %v15305_v40 = vpop.eup %15304 }
0x5a24   :  { %9124 = vrot.lane.b32.xlu1 %v15305_v40, %s15428_s1 }
0x5a36   :  { %v8959_v26 = vpop.permute.xlu0 %8958 }
0x5a37   :  { %v8961_v41 = vmul.f32 %v8959_v26, %v8944_v15  ;;  %v451_v15 = vadd.f32 %v17010_v42, %v15581_v24 }
0x5a39   :  { %9141 = vrot.lane.b32.xlu0 %v8961_v41, %s15429_s15 }
0x5a96   :  { %v9125_v3 = vpop.permute.xlu1 %9124 }
0x5a97   :  { %v17072_v20 = vmul.f32 %v9125_v3, %v9110_v27 }
0x5a99   :  { %9237 = vrot.lane.b32.xlu1 %v17072_v20, %s15429_s15 }
0x5aab   :  { %v9142_v36 = vpop.permute.xlu0 %9141 }
0x5aac   :  { %13850 = vmatmul.mubr.msk.f32.vlgmr.msra.gmra.mrb[114].mxu1 %vm98_vm0, %v9142_v36 }
0x5aad   :  { %14698 = vmatpush3.bf16.msra.mxu1 %v15640_v59  ;;  %13871 = vmatprep.mubr.msk.f32.mxu1 %vm15426_vm1, %v17465_v13 }
0x5aae   :  { %14699 = vmatprep.subr.bf16.mxu1 %v17464_v7 }
0x5ab1   :  { %14701 = vmatpush3.bf16.msra.mxu1 %v15651_v62 }
0x5ab2   :  { %14708 = vmatprep.subr.bf16.mxu1 %v17464_v7 }
0x5ab4   :  { %13872 = vmatmul.mubr.msk.f32.vlgmr.msra.gmra.mrb[116].mxu1 %vm98_vm0, %v9142_v36 }
0x5ab5   :  { %14710 = vmatpush3.bf16.msra.mxu1 %v15618_v52  ;;  %13893 = vmatprep.mubr.msk.f32.mxu1 %vm15426_vm1, %v17465_v13 }
0x5ab6   :  { %14711 = vmatprep.subr.bf16.mxu1 %v17464_v7 }
0x5ab9   :  { %14713 = vmatpush3.bf16.msra.mxu1 %v15628_v56 }
0x5aba   :  { %14720 = vmatprep.subr.bf16.mxu1 %v17464_v7 }
0x5b0b   :  { %v9238_v25 = vpop.permute.xlu1 %9237 }
0x5b0c   :  { %13861 = vmatmul.mubr.msk.f32.vlgmr.msra.gmra.mrb[120].mxu0 %vm98_vm0, %v9238_v25 }
0x5b0d   :  { %14704 = vmatpush3.bf16.msra.mxu0 %v15523_v11  ;;  %13882 = vmatprep.mubr.msk.f32.mxu0 %vm15426_vm1, %v17465_v13 }
0x5b0e   :  { %14705 = vmatprep.subr.bf16.mxu0 %v17464_v7 }
0x5b11   :  { %14707 = vmatpush3.bf16.msra.mxu0 %v15546_v18 }
0x5b12   :  { %14714 = vmatprep.subr.bf16.mxu0 %v17464_v7 }
0x5b7f   :  { %v9211_v27 = vpop.f32.mrb[114].mxu1 }
0x5b80   :  { %v9215_v9 = vadd.f32 %v9211_v27, %v451_v15  ;;  %v13851_v21 = vpop.f32.mrb[115].mxu1 }
0x5b82   :  { %15306 = vtanh.f32 %v9215_v9 }
0x5b87   :  { %v9377_v37 = vpop.f32.mrb[116].mxu1 }
0x5b88   :  { %v13873_v43 = vpop.f32.mrb[117].mxu1 }
0x5b8c   :  { %v15307_v12 = vpop.eup %15306 }
0x5b8d   :  { %9221 = vrot.lane.b32.xlu0 %v15307_v12, %s15428_s1  ;;  %v9217_v36 = vmul.f32 0.5, %v15307_v12 }
0x5b8f   :  { %v9218_v24 = vadd.f32 0.5, %v9217_v36 }
0x5bdf   :  { %v9307_v38 = vpop.f32.mrb[120].mxu0 }
0x5be0   :  { %v9378_v40 = vadd.f32 %v9377_v37, %v9307_v38  ;;  %v13862_v26 = vpop.f32.mrb[121].mxu0  ;;  %v9219_v37 = vmul.f32 %v9218_v24, %v8955_v22 }
0x5be2   :  { %v9381_v41 = vadd.f32 %v17061_v39, %v9378_v40 }
0x5be4   :  { %15308 = vtanh.f32 %v9381_v41 }
0x5bee   :  { %v15309_v3 = vpop.eup %15308 }
0x5bef   :  { %9387 = vrot.lane.b32.xlu1 %v15309_v3, %s15428_s1  ;;  %v9383_v27 = vmul.f32 0.5, %v15309_v3 }
0x5bf1   :  { %v9384_v9 = vadd.f32 0.5, %v9383_v27 }
0x5bf3   :  { %v9385_v41 = vmul.f32 %v9384_v9, %v9121_v14 }
0x5bff   :  { %v9222_v25 = vpop.permute.xlu0 %9221 }
0x5c00   :  { %v9224_v15 = vmul.f32 %v9222_v25, %v9218_v24 }
0x5c02   :  { %9226 = vrot.lane.b32.xlu0 %v9224_v15, %s15429_s15 }
0x5c61   :  { %v9388_v21 = vpop.permute.xlu1 %9387 }
0x5c62   :  { %v9390_v43 = vmul.f32 %v9388_v21, %v9384_v9 }
0x5c64   :  { %9392 = vrot.lane.b32.xlu1 %v9390_v43, %s15429_s15 }
0x5c74   :  { %v9227_v38 = vpop.permute.xlu0 %9226 }
0x5c75   :  { %v9229_v26 = vadd.f32 %v9227_v38, %v9219_v37 }
0x5c77   :  { %15310 = vtanh.f32 %v9229_v26 }
0x5c81   :  { %v15311_v40 = vpop.eup %15310 }
0x5c82   :  { %9232 = vrot.lane.b32.xlu0 %v15311_v40, %s15428_s1 }
0x5cd6   :  { %v9393_v12 = vpop.permute.xlu1 %9392 }
0x5cd7   :  { %v9395_v36 = vadd.f32 %v9393_v12, %v9385_v41 }
0x5cd9   :  { %15312 = vtanh.f32 %v9395_v36 }
0x5ce3   :  { %v15313_v25 = vpop.eup %15312 }
0x5ce4   :  { %9398 = vrot.lane.b32.xlu1 %v15313_v25, %s15428_s1 }
0x5cf4   :  { %v9233_v3 = vpop.permute.xlu0 %9232 }
0x5cf5   :  { %v9235_v15 = vmul.f32 %v9233_v3, %v9218_v24  ;;  %v456_v24 = vadd.f32 %v17010_v42, %v15589_v29 }
0x5cf7   :  { %9404 = vrot.lane.b32.xlu0 %v9235_v15, %s15429_s15 }
0x5d56   :  { %v9399_v27 = vpop.permute.xlu1 %9398 }
0x5d57   :  { %v9401_v21 = vmul.f32 %v9399_v27, %v9384_v9 }
0x5d59   :  { %9500 = vrot.lane.b32.xlu1 %v9401_v21, %s15429_s15 }
0x5d69   :  { %v9405_v22 = vpop.permute.xlu0 %9404 }
0x5d6a   :  { %13883 = vmatmul.mubr.msk.f32.vlgmr.msra.gmra.mrb[122].mxu0 %vm98_vm0, %v9405_v22 }
0x5d6b   :  { %14716 = vmatpush3.bf16.msra.mxu0 %v15640_v59  ;;  %13904 = vmatprep.mubr.msk.f32.mxu0 %vm15426_vm1, %v17465_v13 }
0x5d6c   :  { %14717 = vmatprep.subr.bf16.mxu0 %v17464_v7 }
0x5d6f   :  { %14719 = vmatpush3.bf16.msra.mxu0 %v15651_v62 }
0x5d70   :  { %14726 = vmatprep.subr.bf16.mxu0 %v17464_v7 }
0x5d72   :  { %13905 = vmatmul.mubr.msk.f32.vlgmr.msra.gmra.mrb[124].mxu0 %vm98_vm0, %v9405_v22 }
0x5d73   :  { %14728 = vmatpush3.bf16.msra.mxu0 %v15618_v52  ;;  %13926 = vmatprep.mubr.msk.f32.mxu0 %vm15426_vm1, %v17465_v13 }
0x5d74   :  { %14729 = vmatprep.subr.bf16.mxu0 %v17464_v7 }
0x5d77   :  { %14731 = vmatpush3.bf16.msra.mxu0 %v15628_v56 }
0x5d78   :  { %14738 = vmatprep.subr.bf16.mxu0 %v17464_v7 }
0x5dcb   :  { %v17122_v14 = vpop.permute.xlu1 %9500 }
0x5dcc   :  { %13894 = vmatmul.mubr.msk.f32.vlgmr.msra.gmra.mrb[118].mxu1 %vm98_vm0, %v17122_v14 }
0x5dcd   :  { %14722 = vmatpush3.bf16.msra.mxu1 %v15523_v11  ;;  %13915 = vmatprep.mubr.msk.f32.mxu1 %vm15426_vm1, %v17465_v13 }
0x5dce   :  { %14723 = vmatprep.subr.bf16.mxu1 %v17464_v7 }
0x5dd1   :  { %14725 = vmatpush3.bf16.msra.mxu1 %v15546_v18 }
0x5dd2   :  { %14732 = vmatprep.subr.bf16.mxu1 %v17464_v7 }
0x5e3d   :  { %v9474_v9 = vpop.f32.mrb[122].mxu0 }
0x5e3e   :  { %v9478_v43 = vadd.f32 %v9474_v9, %v456_v24  ;;  %v13884_v37 = vpop.f32.mrb[123].mxu0 }
0x5e40   :  { %15314 = vtanh.f32 %v9478_v43 }
0x5e45   :  { %v9640_v38 = vpop.f32.mrb[124].mxu0 }
0x5e46   :  { %v13906_v40 = vpop.f32.mrb[125].mxu0 }
0x5e4a   :  { %v15315_v41 = vpop.eup %15314 }
0x5e4b   :  { %9484 = vrot.lane.b32.xlu0 %v15315_v41, %s15428_s1  ;;  %v9480_v21 = vmul.f32 0.5, %v15315_v41 }
0x5e4d   :  { %v9481_v29 = vadd.f32 0.5, %v9480_v21 }
0x5e9f   :  { %v9570_v12 = vpop.f32.mrb[118].mxu1 }
0x5ea0   :  { %v9641_v25 = vadd.f32 %v9640_v38, %v9570_v12  ;;  %v13895_v3 = vpop.f32.mrb[119].mxu1  ;;  %v9482_v38 = vmul.f32 %v9481_v29, %v9229_v26 }
0x5ea2   :  { %v9644_v15 = vadd.f32 %v17061_v39, %v9641_v25 }
0x5ea4   :  { %15316 = vtanh.f32 %v9644_v15 }
0x5eae   :  { %v15317_v27 = vpop.eup %15316 }
0x5eaf   :  { %9650 = vrot.lane.b32.xlu1 %v15317_v27, %s15428_s1  ;;  %v9646_v9 = vmul.f32 0.5, %v15317_v27 }
0x5eb1   :  { %v9647_v43 = vadd.f32 0.5, %v9646_v9 }
0x5eb3   :  { %v9648_v15 = vmul.f32 %v9647_v43, %v9395_v36 }
0x5ebd   :  { %v9485_v22 = vpop.permute.xlu0 %9484 }
0x5ebe   :  { %v9487_v24 = vmul.f32 %v9485_v22, %v9481_v29 }
0x5ec0   :  { %9489 = vrot.lane.b32.xlu0 %v9487_v24, %s15429_s15 }
0x5f21   :  { %v9651_v37 = vpop.permute.xlu1 %9650 }
0x5f22   :  { %v9653_v40 = vmul.f32 %v9651_v37, %v9647_v43 }
0x5f24   :  { %9655 = vrot.lane.b32.xlu1 %v9653_v40, %s15429_s15 }
0x5f32   :  { %v9490_v12 = vpop.permute.xlu0 %9489 }
0x5f33   :  { %v9492_v3 = vadd.f32 %v9490_v12, %v9482_v38 }
0x5f35   :  { %15318 = vtanh.f32 %v9492_v3 }
0x5f3f   :  { %v15319_v25 = vpop.eup %15318 }
0x5f40   :  { %9495 = vrot.lane.b32.xlu0 %v15319_v25, %s15428_s1 }
0x5f96   :  { %v9656_v41 = vpop.permute.xlu1 %9655 }
0x5f97   :  { %v9658_v21 = vadd.f32 %v9656_v41, %v9648_v15 }
0x5f99   :  { %15320 = vtanh.f32 %v9658_v21 }
0x5fa3   :  { %v15321_v22 = vpop.eup %15320 }
0x5fa4   :  { %9661 = vrot.lane.b32.xlu1 %v15321_v22, %s15428_s1 }
0x5fb2   :  { %v9496_v27 = vpop.permute.xlu0 %9495 }
0x5fb3   :  { %v9498_v24 = vmul.f32 %v9496_v27, %v9481_v29  ;;  %v461_v29 = vadd.f32 %v17010_v42, %v15587_v28 }
0x5fb5   :  { %9667 = vrot.lane.b32.xlu0 %v9498_v24, %s15429_s15 }
0x6016   :  { %v9662_v9 = vpop.permute.xlu1 %9661 }
0x6017   :  { %v17142_v37 = vmul.f32 %v9662_v9, %v9647_v43 }
0x6019   :  { %9763 = vrot.lane.b32.xlu1 %v17142_v37, %s15429_s15 }
0x6027   :  { %v9668_v26 = vpop.permute.xlu0 %9667 }
0x6028   :  { %13916 = vmatmul.mubr.msk.f32.vlgmr.msra.gmra.mrb[120].mxu1 %vm98_vm0, %v9668_v26 }
0x6029   :  { %14734 = vmatpush3.bf16.msra.mxu1 %v15640_v59  ;;  %13937 = vmatprep.mubr.msk.f32.mxu1 %vm15426_vm1, %v17465_v13 }
0x602a   :  { %14735 = vmatprep.subr.bf16.mxu1 %v17464_v7 }
0x602d   :  { %14737 = vmatpush3.bf16.msra.mxu1 %v15651_v62 }
0x602e   :  { %14744 = vmatprep.subr.bf16.mxu1 %v17464_v7 }
0x6030   :  { %13938 = vmatmul.mubr.msk.f32.vlgmr.msra.gmra.mrb[122].mxu1 %vm98_vm0, %v9668_v26 }
0x6031   :  { %14746 = vmatpush3.bf16.msra.mxu1 %v15618_v52  ;;  %13959 = vmatprep.mubr.msk.f32.mxu1 %vm15426_vm1, %v17465_v13 }
0x6032   :  { %14747 = vmatprep.subr.bf16.mxu1 %v17464_v7 }
0x6035   :  { %14749 = vmatpush3.bf16.msra.mxu1 %v15628_v56 }
0x6036   :  { %14756 = vmatprep.subr.bf16.mxu1 %v17464_v7 }
0x608b   :  { %v9764_v36 = vpop.permute.xlu1 %9763 }
0x608c   :  { %13927 = vmatmul.mubr.msk.f32.vlgmr.msra.gmra.mrb[126].mxu0 %vm98_vm0, %v9764_v36 }
0x608d   :  { %14740 = vmatpush3.bf16.msra.mxu0 %v15523_v11  ;;  %13948 = vmatprep.mubr.msk.f32.mxu0 %vm15426_vm1, %v17465_v13 }
0x608e   :  { %14741 = vmatprep.subr.bf16.mxu0 %v17464_v7 }
0x6091   :  { %14743 = vmatpush3.bf16.msra.mxu0 %v15546_v18 }
0x6092   :  { %14750 = vmatprep.subr.bf16.mxu0 %v17464_v7 }
0x60fb   :  { %v9737_v43 = vpop.f32.mrb[120].mxu1 }
0x60fc   :  { %v9741_v40 = vadd.f32 %v9737_v43, %v461_v29  ;;  %v13917_v38 = vpop.f32.mrb[121].mxu1 }
0x60fe   :  { %15322 = vtanh.f32 %v9741_v40 }
0x6103   :  { %v9903_v12 = vpop.f32.mrb[122].mxu1 }
0x6104   :  { %v13939_v25 = vpop.f32.mrb[123].mxu1 }
0x6108   :  { %v15323_v15 = vpop.eup %15322 }
0x6109   :  { %9747 = vrot.lane.b32.xlu0 %v15323_v15, %s15428_s1  ;;  %v9743_v26 = vmul.f32 0.5, %v15323_v15 }
0x610b   :  { %v9744_v28 = vadd.f32 0.5, %v9743_v26 }
0x615f   :  { %v9833_v41 = vpop.f32.mrb[126].mxu0 }
0x6160   :  { %v9904_v22 = vadd.f32 %v9903_v12, %v9833_v41  ;;  %v13928_v27 = vpop.f32.mrb[127].mxu0  ;;  %v9745_v12 = vmul.f32 %v9744_v28, %v9492_v3 }
0x6162   :  { %v9907_v24 = vadd.f32 %v17061_v39, %v9904_v22 }
0x6164   :  { %15324 = vtanh.f32 %v9907_v24 }
0x616e   :  { %v15325_v9 = vpop.eup %15324 }
0x616f   :  { %9913 = vrot.lane.b32.xlu1 %v15325_v9, %s15428_s1  ;;  %v9909_v43 = vmul.f32 0.5, %v15325_v9 }
0x6171   :  { %v9910_v40 = vadd.f32 0.5, %v9909_v43 }
0x6173   :  { %v9911_v24 = vmul.f32 %v9910_v40, %v9658_v21 }
0x617b   :  { %v9748_v36 = vpop.permute.xlu0 %9747 }
0x617c   :  { %v9750_v29 = vmul.f32 %v9748_v36, %v9744_v28 }
0x617e   :  { %9752 = vrot.lane.b32.xlu0 %v9750_v29, %s15429_s15 }
0x61e1   :  { %v9914_v38 = vpop.permute.xlu1 %9913 }
0x61e2   :  { %v9916_v25 = vmul.f32 %v9914_v38, %v9910_v40 }
0x61e4   :  { %9918 = vrot.lane.b32.xlu1 %v9916_v25, %s15429_s15 }
0x61f0   :  { %v9753_v41 = vpop.permute.xlu0 %9752 }
0x61f1   :  { %v9755_v27 = vadd.f32 %v9753_v41, %v9745_v12 }
0x61f3   :  { %15326 = vtanh.f32 %v9755_v27 }
0x61fd   :  { %v15327_v22 = vpop.eup %15326 }
0x61fe   :  { %9758 = vrot.lane.b32.xlu0 %v15327_v22, %s15428_s1 }
0x6256   :  { %v9919_v15 = vpop.permute.xlu1 %9918 }
0x6257   :  { %v9921_v26 = vadd.f32 %v9919_v15, %v9911_v24 }
0x6259   :  { %15328 = vtanh.f32 %v9921_v26 }
0x6263   :  { %v15329_v36 = vpop.eup %15328 }
0x6264   :  { %9924 = vrot.lane.b32.xlu1 %v15329_v36, %s15428_s1 }
0x6270   :  { %v9759_v9 = vpop.permute.xlu0 %9758 }
0x6271   :  { %v9761_v29 = vmul.f32 %v9759_v9, %v9744_v28  ;;  %v466_v28 = vadd.f32 %v17010_v42, %v15593_v31 }
0x6273   :  { %9930 = vrot.lane.b32.xlu0 %v9761_v29, %s15429_s15 }
0x62d6   :  { %v9925_v43 = vpop.permute.xlu1 %9924 }
0x62d7   :  { %v17177_v38 = vmul.f32 %v9925_v43, %v9910_v40 }
0x62d9   :  { %10026 = vrot.lane.b32.xlu1 %v17177_v38, %s15429_s15 }
0x62e5   :  { %v9931_v3 = vpop.permute.xlu0 %9930 }
0x62e6   :  { %13949 = vmatmul.mubr.msk.f32.vlgmr.msra.gmra.mrb[128].mxu0 %vm98_vm0, %v9931_v3 }
0x62e7   :  { %14752 = vmatpush3.bf16.msra.mxu0 %v15640_v59  ;;  %13970 = vmatprep.mubr.msk.f32.mxu0 %vm15426_vm1, %v17465_v13 }
0x62e8   :  { %14753 = vmatprep.subr.bf16.mxu0 %v17464_v7 }
0x62eb   :  { %14755 = vmatpush3.bf16.msra.mxu0 %v15651_v62 }
0x62ec   :  { %14762 = vmatprep.subr.bf16.mxu0 %v17464_v7 }
0x62ee   :  { %13971 = vmatmul.mubr.msk.f32.vlgmr.msra.gmra.mrb[130].mxu0 %vm98_vm0, %v9931_v3 }
0x62ef   :  { %14764 = vmatpush3.bf16.msra.mxu0 %v15618_v52  ;;  %13992 = vmatprep.mubr.msk.f32.mxu0 %vm15426_vm1, %v17465_v13 }
0x62f0   :  { %14765 = vmatprep.subr.bf16.mxu0 %v17464_v7 }
0x62f3   :  { %14767 = vmatpush3.bf16.msra.mxu0 %v15628_v56 }
0x62f4   :  { %14774 = vmatprep.subr.bf16.mxu0 %v17464_v7 }
0x634b   :  { %v10027_v21 = vpop.permute.xlu1 %10026 }
0x634c   :  { %13960 = vmatmul.mubr.msk.f32.vlgmr.msra.gmra.mrb[124].mxu1 %vm98_vm0, %v10027_v21 }
0x634d   :  { %14758 = vmatpush3.bf16.msra.mxu1 %v15523_v11  ;;  %13981 = vmatprep.mubr.msk.f32.mxu1 %vm15426_vm1, %v17465_v13 }
0x634e   :  { %14759 = vmatprep.subr.bf16.mxu1 %v17464_v7 }
0x6351   :  { %14761 = vmatpush3.bf16.msra.mxu1 %v15546_v18 }
0x6352   :  { %14768 = vmatprep.subr.bf16.mxu1 %v17464_v7 }
0x63b9   :  { %v10000_v40 = vpop.f32.mrb[128].mxu0 }
0x63ba   :  { %v10004_v25 = vadd.f32 %v10000_v40, %v466_v28  ;;  %v13950_v12 = vpop.f32.mrb[129].mxu0 }
0x63bc   :  { %15330 = vtanh.f32 %v10004_v25 }
0x63c1   :  { %v10166_v41 = vpop.f32.mrb[130].mxu0 }
0x63c2   :  { %v13972_v22 = vpop.f32.mrb[131].mxu0 }
0x63c6   :  { %v15331_v24 = vpop.eup %15330 }
0x63c7   :  { %10010 = vrot.lane.b32.xlu0 %v15331_v24, %s15428_s1  ;;  %v10006_v3 = vmul.f32 0.5, %v15331_v24 }
0x63c9   :  { %v10007_v31 = vadd.f32 0.5, %v10006_v3 }
0x641f   :  { %v10096_v15 = vpop.f32.mrb[124].mxu1 }
0x6420   :  { %v10167_v36 = vadd.f32 %v10166_v41, %v10096_v15  ;;  %v13961_v9 = vpop.f32.mrb[125].mxu1  ;;  %v10008_v41 = vmul.f32 %v10007_v31, %v9755_v27 }
0x6422   :  { %v10170_v29 = vadd.f32 %v17061_v39, %v10167_v36 }
0x6424   :  { %15332 = vtanh.f32 %v10170_v29 }
0x642e   :  { %v15333_v43 = vpop.eup %15332 }
0x642f   :  { %10176 = vrot.lane.b32.xlu1 %v15333_v43, %s15428_s1  ;;  %v10172_v40 = vmul.f32 0.5, %v15333_v43 }
0x6431   :  { %v10173_v25 = vadd.f32 0.5, %v10172_v40 }
0x6433   :  { %v10174_v29 = vmul.f32 %v10173_v25, %v9921_v26 }
0x6439   :  { %v10011_v21 = vpop.permute.xlu0 %10010 }
0x643a   :  { %v10013_v28 = vmul.f32 %v10011_v21, %v10007_v31 }
0x643c   :  { %10015 = vrot.lane.b32.xlu0 %v10013_v28, %s15429_s15 }
0x64a1   :  { %v10177_v12 = vpop.permute.xlu1 %10176 }
0x64a2   :  { %v10179_v22 = vmul.f32 %v10177_v12, %v10173_v25 }
0x64a4   :  { %10181 = vrot.lane.b32.xlu1 %v10179_v22, %s15429_s15 }
0x64ae   :  { %v10016_v15 = vpop.permute.xlu0 %10015 }
0x64af   :  { %v10018_v9 = vadd.f32 %v10016_v15, %v10008_v41 }
0x64b1   :  { %15334 = vtanh.f32 %v10018_v9 }
0x64bb   :  { %v15335_v36 = vpop.eup %15334 }
0x64bc   :  { %10021 = vrot.lane.b32.xlu0 %v15335_v36, %s15428_s1 }
0x6516   :  { %v10182_v24 = vpop.permute.xlu1 %10181 }
0x6517   :  { %v10184_v3 = vadd.f32 %v10182_v24, %v10174_v29 }
0x6519   :  { %15336 = vtanh.f32 %v10184_v3 }
0x6523   :  { %v15337_v21 = vpop.eup %15336 }
0x6524   :  { %10187 = vrot.lane.b32.xlu1 %v15337_v21, %s15428_s1 }
0x652e   :  { %v10022_v43 = vpop.permute.xlu0 %10021 }
0x652f   :  { %v10024_v28 = vmul.f32 %v10022_v43, %v10007_v31  ;;  %v471_v31 = vadd.f32 %v17010_v42, %v15591_v30 }
0x6531   :  { %10204 = vrot.lane.b32.xlu0 %v10024_v28, %s15429_s15 }
0x6596   :  { %v10188_v40 = vpop.permute.xlu1 %10187 }
0x6597   :  { %v17212_v12 = vmul.f32 %v10188_v40, %v10173_v25 }
0x6599   :  { %10300 = vrot.lane.b32.xlu1 %v17212_v12, %s15429_s15 }
0x65a3   :  { %v10205_v27 = vpop.permute.xlu0 %10204 }
0x65a4   :  { %13982 = vmatmul.mubr.msk.f32.vlgmr.msra.gmra.mrb[126].mxu1 %vm98_vm0, %v10205_v27 }
0x65a5   :  { %14770 = vmatpush3.bf16.msra.mxu1 %v15640_v59  ;;  %14003 = vmatprep.mubr.msk.f32.mxu1 %vm15426_vm1, %v17465_v13 }
0x65a6   :  { %14771 = vmatprep.subr.bf16.mxu1 %v17464_v7 }
0x65a9   :  { %14773 = vmatpush3.bf16.msra.mxu1 %v15651_v62 }
0x65aa   :  { %14780 = vmatprep.subr.bf16.mxu1 %v17464_v7 }
0x65ac   :  { %14004 = vmatmul.mubr.msk.f32.vlgmr.msra.gmra.mrb[128].mxu1 %vm98_vm0, %v10205_v27 }
0x65ad   :  { %14782 = vmatpush3.bf16.msra.mxu1 %v15618_v52  ;;  %14025 = vmatprep.mubr.msk.f32.mxu1 %vm15426_vm1, %v17465_v13 }
0x65ae   :  { %14783 = vmatprep.subr.bf16.mxu1 %v17464_v7 }
0x65b1   :  { %14785 = vmatpush3.bf16.msra.mxu1 %v15628_v56 }
0x65b2   :  { %14792 = vmatprep.subr.bf16.mxu1 %v17464_v7 }
0x660b   :  { %v10301_v26 = vpop.permute.xlu1 %10300 }
0x660c   :  { %13993 = vmatmul.mubr.msk.f32.vlgmr.msra.gmra.mrb[132].mxu0 %vm98_vm0, %v10301_v26 }
0x660d   :  { %14776 = vmatpush3.bf16.msra.mxu0 %v15523_v11  ;;  %14014 = vmatprep.mubr.msk.f32.mxu0 %vm15426_vm1, %v17465_v13 }
0x660e   :  { %14777 = vmatprep.subr.bf16.mxu0 %v17464_v7 }
0x6611   :  { %14779 = vmatpush3.bf16.msra.mxu0 %v15546_v18 }
0x6612   :  { %14786 = vmatprep.subr.bf16.mxu0 %v17464_v7 }
0x6677   :  { %v10274_v25 = vpop.f32.mrb[126].mxu1 }
0x6678   :  { %v10278_v22 = vadd.f32 %v10274_v25, %v471_v31  ;;  %v13983_v41 = vpop.f32.mrb[127].mxu1 }
0x667a   :  { %15338 = vtanh.f32 %v10278_v22 }
0x667f   :  { %v10440_v15 = vpop.f32.mrb[128].mxu1 }
0x6680   :  { %v14005_v36 = vpop.f32.mrb[129].mxu1 }
0x6684   :  { %v15339_v29 = vpop.eup %15338 }
0x6685   :  { %10284 = vrot.lane.b32.xlu0 %v15339_v29, %s15428_s1  ;;  %v10280_v27 = vmul.f32 0.5, %v15339_v29 }
0x6687   :  { %v10281_v30 = vadd.f32 0.5, %v10280_v27 }
0x66df   :  { %v10370_v24 = vpop.f32.mrb[132].mxu0 }
0x66e0   :  { %v10441_v21 = vadd.f32 %v10440_v15, %v10370_v24  ;;  %v13994_v43 = vpop.f32.mrb[133].mxu0  ;;  %v10282_v15 = vmul.f32 %v10281_v30, %v10018_v9 }
0x66e2   :  { %v10444_v28 = vadd.f32 %v17061_v39, %v10441_v21 }
0x66e4   :  { %15340 = vtanh.f32 %v10444_v28 }
0x66ee   :  { %v15341_v40 = vpop.eup %15340 }
0x66ef   :  { %10450 = vrot.lane.b32.xlu1 %v15341_v40, %s15428_s1  ;;  %v10446_v25 = vmul.f32 0.5, %v15341_v40 }
0x66f1   :  { %v10447_v22 = vadd.f32 0.5, %v10446_v25 }
0x66f3   :  { %v10448_v28 = vmul.f32 %v10447_v22, %v10184_v3 }
0x66f7   :  { %v10285_v26 = vpop.permute.xlu0 %10284 }
0x66f8   :  { %v10287_v31 = vmul.f32 %v10285_v26, %v10281_v30 }
0x66fa   :  { %10289 = vrot.lane.b32.xlu0 %v10287_v31, %s15429_s15 }
0x6761   :  { %v10451_v41 = vpop.permute.xlu1 %10450 }
0x6762   :  { %v10453_v36 = vmul.f32 %v10451_v41, %v10447_v22 }
0x6764   :  { %10455 = vrot.lane.b32.xlu1 %v10453_v36, %s15429_s15 }
0x676c   :  { %v10290_v24 = vpop.permute.xlu0 %10289 }
0x676d   :  { %v10292_v43 = vadd.f32 %v10290_v24, %v10282_v15 }
0x676f   :  { %15342 = vtanh.f32 %v10292_v43 }
0x6779   :  { %v15343_v21 = vpop.eup %15342 }
0x677a   :  { %10295 = vrot.lane.b32.xlu0 %v15343_v21, %s15428_s1 }
0x67d6   :  { %v10456_v29 = vpop.permute.xlu1 %10455 }
0x67d7   :  { %v10458_v27 = vadd.f32 %v10456_v29, %v10448_v28 }
0x67d9   :  { %15344 = vtanh.f32 %v10458_v27 }
0x67e3   :  { %v15345_v26 = vpop.eup %15344 }
0x67e4   :  { %10461 = vrot.lane.b32.xlu1 %v15345_v26, %s15428_s1 }
0x67ec   :  { %v10296_v40 = vpop.permute.xlu0 %10295 }
0x67ed   :  { %v10298_v31 = vmul.f32 %v10296_v40, %v10281_v30  ;;  %v476_v30 = vadd.f32 %v17010_v42, %v15602_v34 }
0x67ef   :  { %10467 = vrot.lane.b32.xlu0 %v10298_v31, %s15429_s15 }
0x6856   :  { %v10462_v25 = vpop.permute.xlu1 %10461 }
0x6857   :  { %v10464_v41 = vmul.f32 %v10462_v25, %v10447_v22 }
0x6859   :  { %10563 = vrot.lane.b32.xlu1 %v10464_v41, %s15429_s15 }
0x6861   :  { %v10468_v9 = vpop.permute.xlu0 %10467 }
0x6862   :  { %14015 = vmatmul.mubr.msk.f32.vlgmr.msra.gmra.mrb[134].mxu0 %vm98_vm0, %v10468_v9 }
0x6863   :  { %14788 = vmatpush3.bf16.msra.mxu0 %v15640_v59  ;;  %14036 = vmatprep.mubr.msk.f32.mxu0 %vm15426_vm1, %v17465_v13 }
0x6864   :  { %14789 = vmatprep.subr.bf16.mxu0 %v17464_v7 }
0x6867   :  { %14791 = vmatpush3.bf16.msra.mxu0 %v15651_v62 }
0x6868   :  { %14798 = vmatprep.subr.bf16.mxu0 %v17464_v7 }
0x686a   :  { %14037 = vmatmul.mubr.msk.f32.vlgmr.msra.gmra.mrb[136].mxu0 %vm98_vm0, %v10468_v9 }
0x686b   :  { %14800 = vmatpush3.bf16.msra.mxu0 %v15618_v52  ;;  %14058 = vmatprep.mubr.msk.f32.mxu0 %vm15426_vm1, %v17465_v13 }
0x686c   :  { %14801 = vmatprep.subr.bf16.mxu0 %v17464_v7 }
0x686f   :  { %14803 = vmatpush3.bf16.msra.mxu0 %v15628_v56 }
0x6870   :  { %14810 = vmatprep.subr.bf16.mxu0 %v17464_v7 }
0x68cb   :  { %v17262_v3 = vpop.permute.xlu1 %10563 }
0x68cc   :  { %14026 = vmatmul.mubr.msk.f32.vlgmr.msra.gmra.mrb[130].mxu1 %vm98_vm0, %v17262_v3 }
0x68cd   :  { %14794 = vmatpush3.bf16.msra.mxu1 %v15523_v11  ;;  %14047 = vmatprep.mubr.msk.f32.mxu1 %vm15426_vm1, %v17465_v13 }
0x68ce   :  { %14795 = vmatprep.subr.bf16.mxu1 %v17464_v7 }
0x68d1   :  { %14797 = vmatpush3.bf16.msra.mxu1 %v15546_v18 }
0x68d2   :  { %14804 = vmatprep.subr.bf16.mxu1 %v17464_v7 }
0x6935   :  { %v10537_v22 = vpop.f32.mrb[134].mxu0 }
0x6936   :  { %v10541_v36 = vadd.f32 %v10537_v22, %v476_v30  ;;  %v14016_v15 = vpop.f32.mrb[135].mxu0 }
0x6938   :  { %15346 = vtanh.f32 %v10541_v36 }
0x693d   :  { %v10703_v24 = vpop.f32.mrb[136].mxu0 }
0x693e   :  { %v14038_v21 = vpop.f32.mrb[137].mxu0 }
0x6942   :  { %v15347_v28 = vpop.eup %15346 }
0x6943   :  { %10547 = vrot.lane.b32.xlu0 %v15347_v28, %s15428_s1  ;;  %v10543_v31 = vmul.f32 0.5, %v15347_v28 }
0x6945   :  { %v10544_v34 = vadd.f32 0.5, %v10543_v31 }
0x6947   :  { %v10545_v15 = vmul.f32 %v10544_v34, %v10292_v43 }
0x699f   :  { %v10633_v11 = vpop.f32.mrb[130].mxu1 }
0x69a0   :  { %v10704_v29 = vadd.f32 %v10703_v24, %v10633_v11  ;;  %v14027_v26 = vpop.f32.mrb[131].mxu1 }
0x69a2   :  { %v10707_v40 = vadd.f32 %v17061_v39, %v10704_v29 }
0x69a4   :  { %15348 = vtanh.f32 %v10707_v40 }
0x69ae   :  { %v15349_v18 = vpop.eup %15348 }
0x69af   :  { %10713 = vrot.lane.b32.xlu1 %v15349_v18, %s15428_s1  ;;  %v10709_v9 = vmul.f32 0.5, %v15349_v18 }
0x69b1   :  { %v10710_v30 = vadd.f32 0.5, %v10709_v9 }
0x69b3   :  { %v10711_v29 = vmul.f32 %v10710_v30, %v10458_v27 }
0x69b5   :  { %v10548_v25 = vpop.permute.xlu0 %10547 }
0x69b6   :  { %v10550_v41 = vmul.f32 %v10548_v25, %v10544_v34 }
0x69b8   :  { %10552 = vrot.lane.b32.xlu0 %v10550_v41, %s15429_s15 }
0x6a21   :  { %v10714_v22 = vpop.permute.xlu1 %10713 }
0x6a22   :  { %v10716_v36 = vmul.f32 %v10714_v22, %v10710_v30 }
0x6a24   :  { %10718 = vrot.lane.b32.xlu1 %v10716_v36, %s15429_s15 }
0x6a2a   :  { %v10553_v24 = vpop.permute.xlu0 %10552 }
0x6a2b   :  { %v10555_v21 = vadd.f32 %v10553_v24, %v10545_v15 }
0x6a2d   :  { %15350 = vtanh.f32 %v10555_v21 }
0x6a37   :  { %v15351_v11 = vpop.eup %15350 }
0x6a38   :  { %10558 = vrot.lane.b32.xlu0 %v15351_v11, %s15428_s1 }
0x6a96   :  { %v10719_v28 = vpop.permute.xlu1 %10718 }
0x6a97   :  { %v10721_v26 = vadd.f32 %v10719_v28, %v10711_v29 }
0x6a99   :  { %15352 = vtanh.f32 %v10721_v26 }
0x6aa3   :  { %v15353_v40 = vpop.eup %15352 }
0x6aa4   :  { %10724 = vrot.lane.b32.xlu1 %v15353_v40, %s15428_s1 }
0x6aaa   :  { %v10559_v18 = vpop.permute.xlu0 %10558 }
0x6aab   :  { %v10561_v31 = vmul.f32 %v10559_v18, %v10544_v34 }
0x6aad   :  { %10730 = vrot.lane.b32.xlu0 %v10561_v31, %s15429_s15 }
0x6b16   :  { %v10725_v25 = vpop.permute.xlu1 %10724 }
0x6b17   :  { %v17282_v41 = vmul.f32 %v10725_v25, %v10710_v30 }
0x6b19   :  { %10826 = vrot.lane.b32.xlu1 %v17282_v41, %s15429_s15 }
0x6b1f   :  { %v10731_v43 = vpop.permute.xlu0 %10730 }
0x6b20   :  { %14048 = vmatmul.mubr.msk.f32.vlgmr.msra.gmra.mrb[132].mxu1 %vm98_vm0, %v10731_v43 }
0x6b21   :  { %14806 = vmatpush3.bf16.msra.mxu1 %v15640_v59  ;;  %14069 = vmatprep.mubr.msk.f32.mxu1 %vm15426_vm1, %v17465_v13 }
0x6b22   :  { %14807 = vmatprep.subr.bf16.mxu1 %v17464_v7 }
0x6b25   :  { %14809 = vmatpush3.bf16.msra.mxu1 %v15651_v62 }
0x6b26   :  { %14816 = vmatprep.subr.bf16.mxu1 %v17464_v7 }
0x6b28   :  { %14070 = vmatmul.mubr.msk.f32.vlgmr.msra.gmra.mrb[134].mxu1 %vm98_vm0, %v10731_v43 }
0x6b29   :  { %14818 = vmatpush3.bf16.msra.mxu1 %v15640_v59  ;;  %14091 = vmatprep.mubr.msk.f32.mxu1 %vm15426_vm1, %v17465_v13  ;;  %v481_v59 = vadd.f32 %v17010_v42, %v15600_v33 }
0x6b2a   :  { %14819 = vmatprep.subr.bf16.mxu1 %v17464_v7 }
0x6b2d   :  { %14821 = vmatpush3.bf16.msra.mxu1 %v15651_v62 }
0x6b8b   :  { %v10827_v27 = vpop.permute.xlu1 %10826 }
0x6b8c   :  { %14059 = vmatmul.mubr.msk.f32.vlgmr.msra.gmra.mrb[138].mxu0 %vm98_vm0, %v10827_v27 }
0x6b8d   :  { %14812 = vmatpush3.bf16.msra.mxu0 %v15618_v52  ;;  %14080 = vmatprep.mubr.msk.f32.mxu0 %vm15426_vm1, %v17465_v13 }
0x6b8e   :  { %14813 = vmatprep.subr.bf16.mxu0 %v17464_v7 }
0x6b91   :  { %14815 = vmatpush3.bf16.msra.mxu0 %v15628_v56 }
0x6bf3   :  { %v10800_v34 = vpop.f32.mrb[132].mxu1 }
0x6bf4   :  { %v10804_v9 = vadd.f32 %v10800_v34, %v481_v59  ;;  %v14049_v30 = vpop.f32.mrb[133].mxu1 }
0x6bf6   :  { %15354 = vtanh.f32 %v10804_v9 }
0x6bfb   :  { %v10966_v62 = vpop.f32.mrb[134].mxu1 }
0x6bfc   :  { %v14071_v22 = vpop.f32.mrb[135].mxu1 }
0x6c00   :  { %v15355_v36 = vpop.eup %15354 }
0x6c01   :  { %10810 = vrot.lane.b32.xlu0 %v15355_v36, %s15428_s1  ;;  %v10806_v56 = vmul.f32 0.5, %v15355_v36 }
0x6c03   :  { %v10807_v33 = vadd.f32 0.5, %v10806_v56 }
0x6c05   :  { %v10808_v31 = vmul.f32 %v10807_v33, %v10555_v21 }
0x6c5f   :  { %v10896_v52 = vpop.f32.mrb[138].mxu0 }
0x6c60   :  { %v10967_v15 = vadd.f32 %v10966_v62, %v10896_v52  ;;  %v14060_v24 = vpop.f32.mrb[139].mxu0 }
0x6c62   :  { %v10970_v13 = vadd.f32 %v17061_v39, %v10967_v15 }
0x6c64   :  { %15356 = vtanh.f32 %v10970_v13 }
0x6c6e   :  { %v15357_v7 = vpop.eup %15356 }
0x6c6f   :  { %10976 = vrot.lane.b32.xlu1 %v15357_v7, %s15428_s1  ;;  %v10972_v29 = vmul.f32 0.5, %v15357_v7 }
0x6c71   :  { %v10973_v28 = vadd.f32 0.5, %v10972_v29  ;;  %v15006_v29 = vpack.i.bf16 %v16224_v2, %v16370_v46  ;;  %v11196_v46 = vld [vmem:[#allocation4 + $0x18] sm:$0xff] }
0x6c73   :  { %v10811_v42 = vpop.permute.xlu0 %10810  ;;  %v10974_v59 = vmul.f32 %v10973_v28, %v10721_v26 }
0x6c74   :  { %v10813_v11 = vmul.f32 %v10811_v42, %v10807_v33 }
0x6c76   :  { %10815 = vrot.lane.b32.xlu0 %v10813_v11, %s15429_s15  ;;  %v14996_v11 = vpack.i.bf16 %v15733_v35, %v16064_v51  ;;  %v11241_v35 = vld [vmem:[#allocation4 + $0x180] sm:$0xff]  ;;  %v11242_v51 = vld [vmem:[#allocation4 + $0x188] sm:$0xff] }
0x6c77   :  { %v14854_v2 = vpack.c.bf16 %v11242_v51, %v11241_v35  ;;  %v11217_v35 = vld [vmem:[#allocation4 + $0xc0] sm:$0xff] }
0x6c79   :  { %14855 = vmatprep.subr.bf16.mxu1 %v14854_v2  ;;  %v11247_v2 = vld [vmem:[#allocation4 + $0x1b0] sm:$0xff] }
0x6ce1   :  { %v10977_v40 = vpop.permute.xlu1 %10976 }
0x6ce2   :  { %v10979_v18 = vmul.f32 %v10977_v40, %v10973_v28  ;;  %v11210_v40 = vld [vmem:[#allocation4 + $0x88] sm:$0xff] }
0x6ce4   :  { %10981 = vrot.lane.b32.xlu1 %v10979_v18, %s15429_s15  ;;  %v11193_v18 = vld [vmem:[#allocation4] sm:$0xff] }
0x6ce8   :  { %v10816_v25 = vpop.permute.xlu0 %10815 }
0x6ce9   :  { %v10818_v43 = vadd.f32 %v10816_v25, %v10808_v31  ;;  %v11194_v25 = vld [vmem:[#allocation4 + $0x8] sm:$0xff] }
0x6ceb   :  { %15358 = vtanh.f32 %v10818_v43  ;;  %v11211_v43 = vld [vmem:[#allocation4 + $0x90] sm:$0xff] }
0x6cf5   :  { %v15359_v27 = vpop.eup %15358 }
0x6cf6   :  { %10821 = vrot.lane.b32.xlu0 %v15359_v27, %s15428_s1  ;;  %v11212_v27 = vld [vmem:[#allocation4 + $0x98] sm:$0xff] }
0x6d56   :  { %v10982_v34 = vpop.permute.xlu1 %10981 }
0x6d57   :  { %v17313_v9 = vadd.f32 %v10982_v34, %v10974_v59  ;;  %v14824_v59 = vpack.c.bf16 %v11194_v25, %v11193_v18  ;;  %v14826_v34 = vpack.c.bf16 %v11212_v27, %v11211_v43  ;;  %v11216_v18 = vld [vmem:[#allocation4 + $0xb8] sm:$0xff]  ;;  %v11199_v25 = vld [vmem:[#allocation4 + $0x30] sm:$0xff]  ;;  %v11229_v43 = vld [vmem:[#allocation4 + $0x120] sm:$0xff] }
0x6d59   :  { %15360 = vtanh.f32 %v17313_v9 }
0x6d63   :  { %v15361_v30 = vpop.eup %15360 }
0x6d64   :  { %10987 = vrot.lane.b32.xlu1 %v15361_v30, %s15428_s1  ;;  %v11195_v30 = vld [vmem:[#allocation4 + $0x10] sm:$0xff] }
0x6d68   :  { %v10822_v62 = vpop.permute.xlu0 %10821 }
0x6d69   :  { %v10824_v22 = vmul.f32 %v10822_v62, %v10807_v33  ;;  %v11225_v62 = vld [vmem:[#allocation4 + $0x100] sm:$0xff] }
0x6d6b   :  { %11067 = vrot.lane.b32.xlu1 %v10824_v22, %s15429_s15  ;;  %v11226_v22 = vld [vmem:[#allocation4 + $0x108] sm:$0xff] }
0x6dd6   :  { %v10988_v21 = vpop.permute.xlu1 %10987 }
0x6dd7   :  { %v17318_v36 = vmul.f32 %v10988_v21, %v10973_v28  ;;  %v11209_v28 = vld [vmem:[#allocation4 + $0x80] sm:$0xff]  ;;  %v14828_v21 = vpack.c.bf16 %v11196_v46, %v11195_v30  ;;  %v11218_v30 = vld [vmem:[#allocation4 + $0xc8] sm:$0xff]  ;;  %v11248_v46 = vld [vmem:[#allocation4 + $0x1b8] sm:$0xff] }
0x6dd8   :  { %v14822_v31 = vpack.c.bf16 %v11210_v40, %v11209_v28  ;;  %v11215_v28 = vld [vmem:[#allocation4 + $0xb0] sm:$0xff] }
0x6dd9   :  { %10992 = vrot.lane.b32.xlu0 %v17318_v36, %s15429_s15  ;;  %v14834_v27 = vpack.c.bf16 %v11216_v18, %v11215_v28  ;;  %v11203_v18 = vld [vmem:[#allocation4 + $0x50] sm:$0xff] }
0x6dda   :  { %14823 = vmatprep.subr.bf16.mxu0 %v14822_v31  ;;  %v11246_v31 = vld [vmem:[#allocation4 + $0x1a8] sm:$0xff] }
0x6ddd   :  { %v11068_v52 = vpop.permute.xlu1 %11067 }
0x6dde   :  { %14092 = vmatmul.mubr.msk.f32.vlgmr.msra.gmra.mrb[136].mxu1 %vm98_vm0, %v11068_v52  ;;  %v14856_v52 = vpack.c.bf16 %v11226_v22, %v11225_v62  ;;  %v14866_v62 = vpack.c.bf16 %v11248_v46, %v11247_v2  ;;  %v11231_v22 = vld [vmem:[#allocation4 + $0x130] sm:$0xff]  ;;  %v11236_v46 = vld [vmem:[#allocation4 + $0x158] sm:$0xff] }
0x6ddf   :  { %v11235_v2 = vld [vmem:[#allocation4 + $0x150] sm:$0xff] }
0x6de0   :  { %14857 = vmatpush3.bf16.msra.mxu1 %v14856_v52  ;;  %v11232_v52 = vld [vmem:[#allocation4 + $0x138] sm:$0xff] }
0x6e4b   :  { %v10993_v26 = vpop.permute.xlu0 %10992 }
0x6e4c   :  { %14081 = vmatmul.mubr.msk.f32.vlgmr.msra.gmra.mrb[140].mxu0 %vm98_vm0, %v10993_v26  ;;  %v11243_v26 = vld [vmem:[#allocation4 + $0x190] sm:$0xff] }
0x6e4d   :  { %14825 = vmatpush3.bf16.msra.mxu0 %v14824_v59  ;;  %v11200_v59 = vld [vmem:[#allocation4 + $0x38] sm:$0xff] }
0x6e4e   :  { %14827 = vmatprep.subr.bf16.mxu0 %v14826_v34  ;;  %v11230_v34 = vld [vmem:[#allocation4 + $0x128] sm:$0xff] }
0x6e4f   :  { %v14864_v51 = vpack.c.bf16 %v11230_v34, %v11229_v43  ;;  %v11251_v43 = vld [vmem:[#allocation4 + $0x1d0] sm:$0xff]  ;;  %v11205_v34 = vld [vmem:[#allocation4 + $0x60] sm:$0xff] }
0x6e51   :  { %14829 = vmatpush3.bf16.msra.mxu0 %v14828_v21  ;;  %v14836_v21 = vpack.c.bf16 %v11200_v59, %v11199_v25  ;;  %v11222_v25 = vld [vmem:[#allocation4 + $0xe8] sm:$0xff]  ;;  %v11252_v59 = vld [vmem:[#allocation4 + $0x1d8] sm:$0xff] }
0x6eb1   :  { %v11137_v15 = vpop.f32.mrb[136].mxu1 }
0x6eb2   :  { %v14093_v24 = vpop.f32.mrb[137].mxu1 }
0x6f1f   :  { %v11062_v13 = vpop.f32.mrb[140].mxu0 }
0x6f20   :  { %v11138_v7 = vadd.f32 %v11137_v15, %v11062_v13  ;;  %v14082_v56 = vpop.f32.mrb[141].mxu0  ;;  %v15026_v15 = vpack.i.bf16 %v16836_v16, %v16982_v54  ;;  %v11244_v13 = vld [vmem:[#allocation4 + $0x198] sm:$0xff] }
0x6f21   :  { %v11198_v56 = vld [vmem:[#allocation4 + $0x28] sm:$0xff] }
0x6f22   :  { %v11141_v33 = vadd.f32 %v17061_v39, %v11138_v7  ;;  %v15016_v39 = vpack.i.bf16 %v16530_v4, %v16676_v53  ;;  %v11213_v4 = vld [vmem:[#allocation4 + $0xa0] sm:$0xff]  ;;  %v11214_v53 = vld [vmem:[#allocation4 + $0xa8] sm:$0xff] }
0x6f23   :  { %v14830_v24 = vpack.c.bf16 %v11214_v53, %v11213_v4  ;;  %v11197_v7 = vld [vmem:[#allocation4 + $0x20] sm:$0xff]  ;;  %v14838_v53 = vpack.c.bf16 %v11218_v30, %v11217_v35  ;;  %v11206_v35 = vld [vmem:[#allocation4 + $0x68] sm:$0xff] }
0x6f24   :  { %15362 = vtanh.f32 %v11141_v33  ;;  %v14858_v33 = vpack.c.bf16 %v11244_v13, %v11243_v26  ;;  %v14832_v16 = vpack.c.bf16 %v11198_v56, %v11197_v7  ;;  %v11249_v4 = vld [vmem:[#allocation4 + $0x1c0] sm:$0xff]  ;;  %v14868_v13 = vpack.c.bf16 %v11232_v52, %v11231_v22  ;;  %v11219_v7 = vld [vmem:[#allocation4 + $0xd0] sm:$0xff]  ;;  %v11220_v56 = vld [vmem:[#allocation4 + $0xd8] sm:$0xff] }
0x6f25   :  { %14831 = vmatprep.subr.bf16.mxu0 %v14830_v24  ;;  %v11201_v26 = vld [vmem:[#allocation4 + $0x40] sm:$0xff]  ;;  %v11250_v24 = vld [vmem:[#allocation4 + $0x1c8] sm:$0xff]  ;;  %v14848_v30 = vpack.c.bf16 %v11206_v35, %v11205_v34  ;;  %v11223_v22 = vld [vmem:[#allocation4 + $0xf0] sm:$0xff] }
0x6f26   :  { %14859 = vmatprep.subr.bf16.mxu1 %v14858_v33  ;;  %14833 = vmatpush3.bf16.msra.mxu0 %v14832_v16  ;;  %v14870_v33 = vpack.c.bf16 %v11250_v24, %v11249_v4  ;;  %v11224_v52 = vld [vmem:[#allocation4 + $0xf8] sm:$0xff]  ;;  %v11306_v34 = vld [vmem:[#allocation4 + $0x388] sm:$0xff] }
0x6f27   :  { %14835 = vmatprep.subr.bf16.mxu0 %v14834_v27  ;;  %v14850_v4 = vpack.c.bf16 %v11224_v52, %v11223_v22 }
0x6f2a   :  { %14837 = vmatpush3.bf16.msra.mxu0 %v14836_v21  ;;  %v11253_v21 = vld [vmem:[#allocation4 + $0x1e0] sm:$0xff] }
0x6f2b   :  { %14839 = vmatprep.subr.bf16.mxu0 %v14838_v53  ;;  %v11254_v53 = vld [vmem:[#allocation4 + $0x1e8] sm:$0xff] }
0x6f2e   :  { %v17325_v42 = vpop.eup %15362 }
0x6f2f   :  { %11147 = vrot.lane.b32.xlu0 %v17325_v42, %s15428_s1  ;;  %v11143_v24 = vmul.f32 0.5, %v17325_v42 }
0x6f33   :  { %14997 = vrot.lane.b32.xlu0 %v14996_v11, %s15428_s1  ;;  %v11227_v11 = vld [vmem:[#allocation4 + $0x110] sm:$0xff] }
0x6f37   :  { %15007 = vrot.lane.b32.xlu0 %v15006_v29, %s15428_s1  ;;  %v11228_v29 = vld [vmem:[#allocation4 + $0x118] sm:$0xff] }
0x6f38   :  { %v14860_v40 = vpack.c.bf16 %v11228_v29, %v11227_v11  ;;  %v11233_v11 = vld [vmem:[#allocation4 + $0x140] sm:$0xff]  ;;  %v11234_v29 = vld [vmem:[#allocation4 + $0x148] sm:$0xff] }
0x6f3a   :  { %14861 = vmatpush3.bf16.msra.mxu1 %v14860_v40  ;;  %v14842_v40 = vpack.c.bf16 %v11220_v56, %v11219_v7  ;;  %v11237_v56 = vld [vmem:[#allocation4 + $0x160] sm:$0xff] }
0x6f3b   :  { %15017 = vrot.lane.b32.xlu0 %v15016_v39, %s15428_s1  ;;  %v11245_v39 = vld [vmem:[#allocation4 + $0x1a0] sm:$0xff] }
0x6f3c   :  { %v14862_v54 = vpack.c.bf16 %v11246_v31, %v11245_v39  ;;  %v11204_v39 = vld [vmem:[#allocation4 + $0x58] sm:$0xff]  ;;  %v14872_v31 = vpack.c.bf16 %v11234_v29, %v11233_v11  ;;  %v11255_v29 = vld [vmem:[#allocation4 + $0x1f0] sm:$0xff] }
0x6f3d   :  { %v14844_v16 = vpack.c.bf16 %v11204_v39, %v11203_v18  ;;  %v11274_v39 = vld [vmem:[#allocation4 + $0x288] sm:$0xff] }
0x6f3e   :  { %14863 = vmatprep.subr.bf16.mxu1 %v14862_v54  ;;  %v11221_v54 = vld [vmem:[#allocation4 + $0xe0] sm:$0xff] }
0x6f3f   :  { %15027 = vrot.lane.b32.xlu0 %v15026_v15, %s15428_s1  ;;  %v11202_v15 = vld [vmem:[#allocation4 + $0x48] sm:$0xff]  ;;  %14865 = vmatpush3.bf16.msra.mxu1 %v14864_v51  ;;  %v14846_v27 = vpack.c.bf16 %v11222_v25, %v11221_v54  ;;  %v14874_v51 = vpack.c.bf16 %v11252_v59, %v11251_v43  ;;  %v17342_v54 = vadd.f32 0.5, %v11143_v24  ;;  %v11305_v59 = vld [vmem:[#allocation4 + $0x380] sm:$0xff] }
0x6f40   :  { %14867 = vmatprep.subr.bf16.mxu1 %v14866_v62  ;;  %v14840_v28 = vpack.c.bf16 %v11202_v15, %v11201_v26  ;;  %v14876_v62 = vpack.c.bf16 %v11236_v46, %v11235_v2  ;;  %v11207_v26 = vld [vmem:[#allocation4 + $0x70] sm:$0xff]  ;;  %v11208_v15 = vld [vmem:[#allocation4 + $0x78] sm:$0xff]  ;;  %v14918_v35 = vpack.c.bf16 %v11306_v34, %v11305_v59  ;;  %v15021_v2 = vpack.i.bf16 %v16565_v5, %v16724_v63 }
0x6f41   :  { %v14852_v7 = vpack.c.bf16 %v11208_v15, %v11207_v26  ;;  %v15031_v46 = vpack.i.bf16 %v16871_v19, %v17030_v10 }
0x6f42   :  { %14841 = vmatpush3.bf16.msra.mxu0 %v14840_v28  ;;  %v11256_v28 = vld [vmem:[#allocation4 + $0x1f8] sm:$0xff] }
0x6f43   :  { %14869 = vmatpush3.bf16.msra.mxu1 %v14868_v13  ;;  %14843 = vmatprep.subr.bf16.mxu0 %v14842_v40  ;;  %v14878_v13 = vpack.c.bf16 %v11254_v53, %v11253_v21  ;;  %v11273_v40 = vld [vmem:[#allocation4 + $0x280] sm:$0xff]  ;;  %v14882_v18 = vpack.c.bf16 %v11256_v28, %v11255_v29 }
0x6f44   :  { %14871 = vmatprep.subr.bf16.mxu1 %v14870_v33  ;;  %v11238_v33 = vld [vmem:[#allocation4 + $0x168] sm:$0xff]  ;;  %v14886_v25 = vpack.c.bf16 %v11274_v39, %v11273_v40  ;;  %v11259_v39 = vld [vmem:[#allocation4 + $0x210] sm:$0xff] }
0x6f45   :  { %v14880_v11 = vpack.c.bf16 %v11238_v33, %v11237_v56 }
0x6f46   :  { %14845 = vmatpush3.bf16.msra.mxu0 %v14844_v16  ;;  %v11240_v16 = vld [vmem:[#allocation4 + $0x178] sm:$0xff] }
0x6f47   :  { %14873 = vmatpush3.bf16.msra.mxu1 %v14872_v31  ;;  %14847 = vmatprep.subr.bf16.mxu0 %v14846_v27  ;;  %v11239_v31 = vld [vmem:[#allocation4 + $0x170] sm:$0xff] }
0x6f48   :  { %14875 = vmatprep.subr.bf16.mxu1 %v14874_v51  ;;  %v14884_v42 = vpack.c.bf16 %v11240_v16, %v11239_v31  ;;  %v15001_v51 = vpack.i.bf16 %v15898_v58, %v16112_v55  ;;  %v15036_v58 = vpack.i.bf16 %v17142_v37, %v17282_v41  ;;  %v11257_v37 = vld [vmem:[#allocation4 + $0x200] sm:$0xff]  ;;  %v11258_v41 = vld [vmem:[#allocation4 + $0x208] sm:$0xff]  ;;  %v11260_v31 = vld [vmem:[#allocation4 + $0x218] sm:$0xff] }
0x6f49   :  { %v14888_v28 = vpack.c.bf16 %v11258_v41, %v11257_v37  ;;  %v11292_v37 = vld [vmem:[#allocation4 + $0x318] sm:$0xff]  ;;  %v11279_v41 = vld [vmem:[#allocation4 + $0x2b0] sm:$0xff] }
0x6f4a   :  { %14849 = vmatpush3.bf16.msra.mxu0 %v14848_v30  ;;  %v15011_v30 = vpack.i.bf16 %v16259_v45, %v16418_v49  ;;  %v11145_v45 = vmul.f32 %v17342_v54, %v17313_v9 }
0x6f4b   :  { %14877 = vmatpush3.bf16.msra.mxu1 %v14876_v62  ;;  %14851 = vmatprep.subr.bf16.mxu0 %v14850_v4 }
0x6f4c   :  { %14879 = vmatprep.subr.bf16.mxu1 %v14878_v13  ;;  %v11275_v13 = vld [vmem:[#allocation4 + $0x290] sm:$0xff] }
0x6f4e   :  { %14853 = vmatpush3.bf16.msra.mxu0 %v14852_v7  ;;  %v11276_v7 = vld [vmem:[#allocation4 + $0x298] sm:$0xff] }
0x6f4f   :  { %14881 = vmatpush3.bf16.msra.mxu1 %v14880_v11  ;;  %14887 = vmatprep.subr.bf16.mxu0 %v14886_v25  ;;  %v17466_v11 = vld [vmem:[#allocation10_spill] sm:$0xff] }
0x6f50   :  { %14883 = vmatprep.subr.bf16.mxu1 %v14882_v18 }
0x6f53   :  { %14885 = vmatpush3.bf16.msra.mxu1 %v14884_v42 }
0x6f54   :  { %14919 = vmatprep.subr.bf16.mxu1 %v14918_v35 }
0x6fa1   :  { %v11148_v43 = vpop.permute.xlu0 %11147 }
0x6fa2   :  { %v11150_v27 = vmul.f32 %v11148_v43, %v17342_v54  ;;  %v14890_v43 = vpack.c.bf16 %v11276_v7, %v11275_v13 }
0x6fa4   :  { %11152 = vrot.lane.b32.xlu1 %v11150_v27, %s15429_s15  ;;  %v11290_v27 = vld [vmem:[#allocation4 + $0x308] sm:$0xff] }
0x6fa5   :  { %v14998_v55 = vpop.permute.xlu0 %14997 }
0x6fa6   :  { %v15000_v5 = vunpack.i.h.bf16 %v14998_v55  ;;  %v14999_v63 = vunpack.i.l.bf16 %v14998_v55  ;;  %v11308_v55 = vld [vmem:[#allocation4 + $0x398] sm:$0xff] }
0x6fa8   :  { %15002 = vrot.lane.b32.xlu1 %v15001_v51, %s15430_s6  ;;  %v1692_v4 = vsel %vm98_vm0, %v15705_v50, %v15000_v5  ;;  %v2757_v9 = vsel %vm98_vm0, %v16038_v47, %v14999_v63  ;;  %v11277_v51 = vld [vmem:[#allocation4 + $0x2a0] sm:$0xff] }
0x6fa9   :  { %v15008_v62 = vpop.permute.xlu0 %15007  ;;  %v11261_v63 = vld [vmem:[#allocation4 + $0x220] sm:$0xff] }
0x6faa   :  { %v15010_v53 = vunpack.i.h.bf16 %v15008_v62  ;;  %v15009_v26 = vunpack.i.l.bf16 %v15008_v62 }
0x6fac   :  { %15012 = vrot.lane.b32.xlu1 %v15011_v30, %s15430_s6  ;;  %v3820_v16 = vsel %vm98_vm0, %v16204_v60, %v15010_v53  ;;  %v4883_v25 = vsel %vm98_vm0, %v16344_v61, %v15009_v26  ;;  %v11278_v30 = vld [vmem:[#allocation4 + $0x2a8] sm:$0xff]  ;;  %v11280_v53 = vld [vmem:[#allocation4 + $0x2b8] sm:$0xff]  ;;  %v11309_v26 = vld [vmem:[#allocation4 + $0x3a0] sm:$0xff] }
0x6fad   :  { %v17363_v19 = vpop.permute.xlu0 %15017 }
0x6fae   :  { %v15019_v42 = vunpack.i.l.bf16 %v17363_v19 }
0x6fb0   :  { %15022 = vrot.lane.b32.xlu1 %v15021_v2, %s15430_s6 }
0x6fb1   :  { %v17380_v59 = vpop.permute.xlu0 %15027 }
0x6fb4   :  { %15032 = vrot.lane.b32.xlu1 %v15031_v46, %s15430_s6  ;;  %v14892_v46 = vpack.c.bf16 %v11260_v31, %v11259_v39  ;;  %v11282_v39 = vld [vmem:[#allocation4 + $0x2c8] sm:$0xff]  ;;  %v11311_v31 = vld [vmem:[#allocation4 + $0x3b0] sm:$0xff] }
0x6fb8   :  { %15037 = vrot.lane.b32.xlu1 %v15036_v58, %s15428_s1  ;;  %v11307_v58 = vld [vmem:[#allocation4 + $0x390] sm:$0xff] }
0x7016   :  { %v11153_v49 = vpop.permute.xlu1 %11152 }
0x7017   :  { %v11155_v22 = vadd.f32 %v11153_v49, %v11145_v45 }
0x7019   :  { %15364 = vtanh.f32 %v11155_v22 }
0x701a   :  { %v15003_v52 = vpop.permute.xlu1 %15002 }
0x701b   :  { %v15005_v10 = vunpack.i.h.bf16 %v15003_v52  ;;  %v15004_v21 = vunpack.i.l.bf16 %v15003_v52  ;;  %v11262_v52 = vld [vmem:[#allocation4 + $0x228] sm:$0xff] }
0x701d   :  { %v1694_v15 = vsel %vm1693_vm2, %v1692_v4, %v15005_v10  ;;  %v2758_v24 = vsel %vm1693_vm2, %v2757_v9, %v15004_v21  ;;  %v7009_v10 = vsel %vm98_vm0, %v16650_v44, %v15019_v42  ;;  %v11291_v21 = vld [vmem:[#allocation4 + $0x310] sm:$0xff]  ;;  %v14922_v9 = vpack.c.bf16 %v11308_v55, %v11307_v58  ;;  %v11314_v58 = vld [vmem:[#allocation4 + $0x3c8] sm:$0xff] }
0x701e   :  { %v15013_v56 = vpop.permute.xlu1 %15012  ;;  %v2759_v33 = vsel %vm1695_vm3, %v2758_v24, %v16154_v6  ;;  %v1696_v29 = vsel %vm1695_vm3, %v1694_v15, %v17466_v11  ;;  %v11289_v6 = vld [vmem:[#allocation4 + $0x300] sm:$0xff]  ;;  %v11310_v15 = vld [vmem:[#allocation4 + $0x3a8] sm:$0xff]  ;;  %v15041_v24 = vpack.i.bf16 %v17177_v38, %v17318_v36  ;;  %v14924_v11 = vpack.c.bf16 %v11292_v37, %v11291_v21 }
0x701f   :  { %v15015_v50 = vunpack.i.h.bf16 %v15013_v56  ;;  %v15014_v40 = vunpack.i.l.bf16 %v15013_v56  ;;  %v11184_v18 = vmax.f32 %v2759_v33, 0.0  ;;  %v11183_v47 = vmax.f32 %v1696_v29, 0.0  ;;  %v11263_v29 = vld [vmem:[#allocation4 + $0x230] sm:$0xff] }
0x7020   :  { %v14920_v5 = vpack.c.bf16 %v11290_v27, %v11289_v6  ;;  %v14896_v33 = vpack.c.bf16 %v11262_v52, %v11261_v63  ;;  %v14898_v38 = vpack.c.bf16 %v11280_v53, %v11279_v41  ;;  %v14926_v36 = vpack.c.bf16 %v11310_v15, %v11309_v26  ;;  %v11265_v6 = vld [vmem:[#allocation4 + $0x240] sm:$0xff]  ;;  %v11266_v27 = vld [vmem:[#allocation4 + $0x248] sm:$0xff]  ;;  %v11299_v26 = vld [vmem:[#allocation4 + $0x350] sm:$0xff] }
0x7021   :  { %v3821_v34 = vsel %vm1693_vm2, %v3820_v16, %v15015_v50  ;;  %v4884_v35 = vsel %vm1693_vm2, %v4883_v25, %v15014_v40  ;;  %11424 = vmatprep.mubr.f32.mxu0 %v11184_v18  ;;  %v11293_v40 = vld [vmem:[#allocation4 + $0x320] sm:$0xff]  ;;  %v11294_v18 = vld [vmem:[#allocation4 + $0x328] sm:$0xff]  ;;  %v11312_v16 = vld [vmem:[#allocation4 + $0x3b8] sm:$0xff] }
0x7022   :  { %v17384_v2 = vpop.permute.xlu1 %15022  ;;  %11425 = vmatmul.mubr.f32.vlgmr.msra.gmra.mrb[142].mxu0 %v11183_v47  ;;  %v4885_v60 = vsel %vm1695_vm3, %v4884_v35, %v16460_v17  ;;  %v3822_v61 = vsel %vm1695_vm3, %v3821_v34, %v16294_v0  ;;  %v15029_v17 = vunpack.i.l.bf16 %v17380_v59  ;;  %v14894_v0 = vpack.c.bf16 %v11278_v30, %v11277_v51  ;;  %v11295_v51 = vld [vmem:[#allocation4 + $0x330] sm:$0xff]  ;;  %v11296_v30 = vld [vmem:[#allocation4 + $0x338] sm:$0xff]  ;;  %v11298_v63 = vld [vmem:[#allocation4 + $0x348] sm:$0xff] }
0x7023   :  { %v15365_v62 = vpop.eup %15364  ;;  %v15024_v45 = vunpack.i.l.bf16 %v17384_v2  ;;  %14889 = vmatpush3.bf16.msra.mxu0 %v14888_v28  ;;  %v11186_v49 = vmax.f32 %v4885_v60, 0.0  ;;  %v11185_v22 = vmax.f32 %v3822_v61, 0.0  ;;  %v11264_v28 = vld [vmem:[#allocation4 + $0x238] sm:$0xff]  ;;  %v14930_v35 = vpack.c.bf16 %v11312_v16, %v11311_v31  ;;  %v11283_v60 = vld [vmem:[#allocation4 + $0x2d0] sm:$0xff]  ;;  %v11285_v52 = vld [vmem:[#allocation4 + $0x2e0] sm:$0xff] }
0x7024   :  { %11158 = vrot.lane.b32.xlu0 %v15365_v62, %s15428_s1  ;;  %14891 = vmatprep.subr.bf16.mxu0 %v14890_v43  ;;  %v9135_v50 = vsel %vm98_vm0, %v16956_v57, %v15029_v17  ;;  %v14900_v42 = vpack.c.bf16 %v11264_v28, %v11263_v29  ;;  %v14928_v43 = vpack.c.bf16 %v11294_v18, %v11293_v40  ;;  %v11284_v61 = vld [vmem:[#allocation4 + $0x2d8] sm:$0xff]  ;;  %v11267_v62 = vld [vmem:[#allocation4 + $0x250] sm:$0xff]  ;;  %v11269_v41 = vld [vmem:[#allocation4 + $0x260] sm:$0xff] }
0x7025   :  { %v7010_v4 = vsel %vm1693_vm2, %v7009_v10, %v15024_v45  ;;  %11494 = vmatprep.mubr.f32.mxu1 %v11186_v49  ;;  %v14932_v55 = vpack.c.bf16 %v11296_v30, %v11295_v51  ;;  %v11268_v45 = vld [vmem:[#allocation4 + $0x258] sm:$0xff]  ;;  %v14906_v49 = vpack.c.bf16 %v11284_v61, %v11283_v60  ;;  %v11286_v10 = vld [vmem:[#allocation4 + $0x2e8] sm:$0xff]  ;;  %v11315_v17 = vld [vmem:[#allocation4 + $0x3d0] sm:$0xff] }
0x7026   :  { %v17398_v44 = vpop.permute.xlu1 %15032  ;;  %11495 = vmatmul.mubr.f32.vlgmr.msra.gmra.mrb[138].mxu1 %v11185_v22  ;;  %v7011_v13 = vsel %vm1695_vm3, %v7010_v4, %v16766_v8  ;;  %v11281_v8 = vld [vmem:[#allocation4 + $0x2c0] sm:$0xff]  ;;  %v14908_v21 = vpack.c.bf16 %v11268_v45, %v11267_v62  ;;  %v11270_v4 = vld [vmem:[#allocation4 + $0x268] sm:$0xff]  ;;  %v11300_v15 = vld [vmem:[#allocation4 + $0x358] sm:$0xff] }
0x7027   :  { %v15034_v7 = vunpack.i.l.bf16 %v17398_v44  ;;  %14893 = vmatpush3.bf16.msra.mxu0 %v14892_v46  ;;  %14921 = vmatpush3.bf16.msra.mxu1 %v14920_v5  ;;  %v11188_v56 = vmax.f32 %v7011_v13, 0.0  ;;  %v14902_v34 = vpack.c.bf16 %v11282_v39, %v11281_v8  ;;  %v11313_v46 = vld [vmem:[#allocation4 + $0x3c0] sm:$0xff]  ;;  %v15020_v13 = vunpack.i.h.bf16 %v17363_v19  ;;  %v11302_v8 = vld [vmem:[#allocation4 + $0x368] sm:$0xff]  ;;  %v11320_v31 = vld [vmem:[#allocation4 + $0x3f8] sm:$0xff] }
0x7028   :  { %15042 = vrot.lane.b32.xlu0 %v15041_v24, %s15430_s6  ;;  %14895 = vmatprep.subr.bf16.mxu0 %v14894_v0  ;;  %v14934_v22 = vpack.c.bf16 %v11314_v58, %v11313_v46  ;;  %v11297_v5 = vld [vmem:[#allocation4 + $0x340] sm:$0xff]  ;;  %v11316_v0 = vld [vmem:[#allocation4 + $0x3d8] sm:$0xff]  ;;  %v11287_v24 = vld [vmem:[#allocation4 + $0x2f0] sm:$0xff]  ;;  %v14912_v29 = vpack.c.bf16 %v11270_v4, %v11269_v41  ;;  %v14940_v28 = vpack.c.bf16 %v11300_v15, %v11299_v26  ;;  %v15030_v39 = vunpack.i.h.bf16 %v17380_v59 }
0x7029   :  { %v9136_v47 = vsel %vm1693_vm2, %v9135_v50, %v15034_v7  ;;  %11564 = vmatprep.mubr.f32.mxu0 %v11188_v56  ;;  %14923 = vmatprep.subr.bf16.mxu1 %v14922_v9  ;;  %v14936_v37 = vpack.c.bf16 %v11298_v63, %v11297_v5  ;;  %v14910_v9 = vpack.c.bf16 %v11286_v10, %v11285_v52  ;;  %v11288_v7 = vld [vmem:[#allocation4 + $0x2f8] sm:$0xff]  ;;  %v11317_v56 = vld [vmem:[#allocation4 + $0x3e0] sm:$0xff]  ;;  %v11271_v50 = vld [vmem:[#allocation4 + $0x270] sm:$0xff] }
0x702a   :  { %v9137_v25 = vsel %vm1695_vm3, %v9136_v47, %v17072_v20  ;;  %v14904_v20 = vpack.c.bf16 %v11266_v27, %v11265_v6  ;;  %v14938_v53 = vpack.c.bf16 %v11316_v0, %v11315_v17  ;;  %v11301_v18 = vld [vmem:[#allocation4 + $0x360] sm:$0xff]  ;;  %v11319_v47 = vld [vmem:[#allocation4 + $0x3f0] sm:$0xff]  ;;  %v5946_v19 = vsel %vm98_vm0, %v16510_v23, %v15020_v13  ;;  %v11338_v16 = vld [vmem:[#allocation4 + $0x488] sm:$0xff] }
0x702b   :  { %14897 = vmatpush3.bf16.msra.mxu0 %v14896_v33  ;;  %14925 = vmatpush3.bf16.msra.mxu1 %v14924_v11  ;;  %v11190_v57 = vmax.f32 %v9137_v25, 0.0  ;;  %v11318_v33 = vld [vmem:[#allocation4 + $0x3e8] sm:$0xff]  ;;  %v15025_v11 = vunpack.i.h.bf16 %v17384_v2  ;;  %v11337_v2 = vld [vmem:[#allocation4 + $0x480] sm:$0xff]  ;;  %v11303_v6 = vld [vmem:[#allocation4 + $0x370] sm:$0xff]  ;;  %v14946_v27 = vpack.c.bf16 %v11320_v31, %v11319_v47  ;;  %v8072_v59 = vsel %vm98_vm0, %v16816_v1, %v15030_v39 }
0x702c   :  { %14899 = vmatprep.subr.bf16.mxu0 %v14898_v38  ;;  %14927 = vmatprep.subr.bf16.mxu1 %v14926_v36  ;;  %v11272_v38 = vld [vmem:[#allocation4 + $0x278] sm:$0xff]  ;;  %v14914_v36 = vpack.c.bf16 %v11288_v7, %v11287_v24  ;;  %v14942_v40 = vpack.c.bf16 %v11318_v33, %v11317_v56  ;;  %v11321_v23 = vld [vmem:[#allocation4 + $0x400] sm:$0xff]  ;;  %v11322_v51 = vld [vmem:[#allocation4 + $0x408] sm:$0xff] }
0x702d   :  { %11634 = vmatprep.mubr.f32.mxu1 %v11190_v57  ;;  %v5947_v25 = vsel %vm1693_vm2, %v5946_v19, %v15025_v11  ;;  %v15035_v57 = vunpack.i.h.bf16 %v17398_v44  ;;  %v11339_v60 = vld [vmem:[#allocation4 + $0x490] sm:$0xff]  ;;  %v11340_v44 = vld [vmem:[#allocation4 + $0x498] sm:$0xff]  ;;  %v14952_v58 = vpack.c.bf16 %v11322_v51, %v11321_v23  ;;  %v11325_v52 = vld [vmem:[#allocation4 + $0x420] sm:$0xff] }
0x702e   :  { %v5948_v30 = vsel %vm1695_vm3, %v5947_v25, %v16600_v48  ;;  %v11323_v62 = vld [vmem:[#allocation4 + $0x410] sm:$0xff]  ;;  %v11324_v45 = vld [vmem:[#allocation4 + $0x418] sm:$0xff]  ;;  %v11326_v10 = vld [vmem:[#allocation4 + $0x428] sm:$0xff]  ;;  %v15038_v25 = vpop.permute.xlu1 %15037 }
0x702f   :  { %14901 = vmatpush3.bf16.msra.mxu0 %v14900_v42  ;;  %14929 = vmatpush3.bf16.msra.mxu1 %v14928_v43  ;;  %v14916_v42 = vpack.c.bf16 %v11272_v38, %v11271_v50  ;;  %v14944_v43 = vpack.c.bf16 %v11302_v8, %v11301_v18  ;;  %v8073_v61 = vsel %vm1693_vm2, %v8072_v59, %v15035_v57  ;;  %v11343_v17 = vld [vmem:[#allocation4 + $0x4b0] sm:$0xff]  ;;  %v11344_v0 = vld [vmem:[#allocation4 + $0x4b8] sm:$0xff]  ;;  %v11345_v4 = vld [vmem:[#allocation4 + $0x4c0] sm:$0xff] }
0x7030   :  { %14903 = vmatprep.subr.bf16.mxu0 %v14902_v34  ;;  %14931 = vmatprep.subr.bf16.mxu1 %v14930_v35  ;;  %v11304_v34 = vld [vmem:[#allocation4 + $0x378] sm:$0xff]  ;;  %v14950_v35 = vpack.c.bf16 %v11338_v16, %v11337_v2  ;;  %v8074_v1 = vsel %vm1695_vm3, %v8073_v61, %v16906_v32  ;;  %v14956_v48 = vpack.c.bf16 %v11324_v45, %v11323_v62  ;;  %v11327_v41 = vld [vmem:[#allocation4 + $0x430] sm:$0xff]  ;;  %v11329_v15 = vld [vmem:[#allocation4 + $0x440] sm:$0xff] }
0x7031   :  { %v14948_v46 = vpack.c.bf16 %v11304_v34, %v11303_v6  ;;  %v11189_v5 = vmax.f32 %v8074_v1, 0.0  ;;  %v11328_v32 = vld [vmem:[#allocation4 + $0x438] sm:$0xff]  ;;  %v11330_v24 = vld [vmem:[#allocation4 + $0x448] sm:$0xff]  ;;  %v11347_v13 = vld [vmem:[#allocation4 + $0x4d0] sm:$0xff] }
0x7032   :  { %v11348_v7 = vld [vmem:[#allocation4 + $0x4d8] sm:$0xff]  ;;  %v14968_v56 = vpack.c.bf16 %v11330_v24, %v11329_v15  ;;  %v11331_v11 = vld [vmem:[#allocation4 + $0x450] sm:$0xff]  ;;  %v11350_v50 = vld [vmem:[#allocation4 + $0x4e8] sm:$0xff] }
0x7033   :  { %14905 = vmatpush3.bf16.msra.mxu0 %v14904_v20  ;;  %14933 = vmatpush3.bf16.msra.mxu1 %v14932_v55  ;;  %v11187_v20 = vmax.f32 %v5948_v30, 0.0  ;;  %v14954_v55 = vpack.c.bf16 %v11340_v44, %v11339_v60  ;;  %v14970_v33 = vpack.c.bf16 %v11348_v7, %v11347_v13  ;;  %v11334_v18 = vld [vmem:[#allocation4 + $0x468] sm:$0xff]  ;;  %v11351_v8 = vld [vmem:[#allocation4 + $0x4f0] sm:$0xff]  ;;  %v11352_v47 = vld [vmem:[#allocation4 + $0x4f8] sm:$0xff] }
0x7034   :  { %14907 = vmatprep.subr.bf16.mxu0 %v14906_v49  ;;  %14935 = vmatprep.subr.bf16.mxu1 %v14934_v22  ;;  %v11341_v49 = vld [vmem:[#allocation4 + $0x4a0] sm:$0xff]  ;;  %v11342_v22 = vld [vmem:[#allocation4 + $0x4a8] sm:$0xff]  ;;  %v14978_v39 = vpack.c.bf16 %v11352_v47, %v11351_v8  ;;  %v11335_v31 = vld [vmem:[#allocation4 + $0x470] sm:$0xff] }
0x7035   :  { %v14958_v63 = vpack.c.bf16 %v11342_v22, %v11341_v49  ;;  %v11336_v2 = vld [vmem:[#allocation4 + $0x478] sm:$0xff] }
0x7036   :  { %v14980_v16 = vpack.c.bf16 %v11336_v2, %v11335_v31 }
0x7037   :  { %14909 = vmatpush3.bf16.msra.mxu0 %v14908_v21  ;;  %14937 = vmatpush3.bf16.msra.mxu1 %v14936_v37  ;;  %v14960_v21 = vpack.c.bf16 %v11326_v10, %v11325_v52  ;;  %v14962_v37 = vpack.c.bf16 %v11344_v0, %v11343_v17 }
0x7038   :  { %14911 = vmatprep.subr.bf16.mxu0 %v14910_v9  ;;  %14939 = vmatprep.subr.bf16.mxu1 %v14938_v53  ;;  %v11346_v9 = vld [vmem:[#allocation4 + $0x4c8] sm:$0xff]  ;;  %v14964_v53 = vpack.c.bf16 %v11328_v32, %v11327_v41 }
0x7039   :  { %v14966_v26 = vpack.c.bf16 %v11346_v9, %v11345_v4 }
0x703b   :  { %14913 = vmatpush3.bf16.msra.mxu0 %v14912_v29  ;;  %14941 = vmatpush3.bf16.msra.mxu1 %v14940_v28  ;;  %v11332_v29 = vld [vmem:[#allocation4 + $0x458] sm:$0xff]  ;;  %v11349_v28 = vld [vmem:[#allocation4 + $0x4e0] sm:$0xff] }
0x703c   :  { %14915 = vmatprep.subr.bf16.mxu0 %v14914_v36  ;;  %14943 = vmatprep.subr.bf16.mxu1 %v14942_v40  ;;  %v14972_v38 = vpack.c.bf16 %v11332_v29, %v11331_v11  ;;  %v14974_v36 = vpack.c.bf16 %v11350_v50, %v11349_v28  ;;  %v11333_v40 = vld [vmem:[#allocation4 + $0x460] sm:$0xff] }
0x703d   :  { %v14976_v19 = vpack.c.bf16 %v11334_v18, %v11333_v40 }
0x703f   :  { %14917 = vmatpush3.bf16.msra.mxu0 %v14916_v42  ;;  %14945 = vmatpush3.bf16.msra.mxu1 %v14944_v43  ;;  %v15040_v42 = vunpack.i.h.bf16 %v15038_v25  ;;  %v15039_v43 = vunpack.i.l.bf16 %v15038_v25 }
0x7040   :  { %14947 = vmatprep.subr.bf16.mxu1 %v14946_v27  ;;  %14951 = vmatprep.subr.bf16.mxu0 %v14950_v35 }
0x7041   :  { %v10198_v35 = vsel %vm98_vm0, %v17122_v14, %v15040_v42  ;;  %v11169_v23 = vsel %vm98_vm0, %v17262_v3, %v15039_v43  ;;  %v11886_v3 = vld [vmem:[%s17456_s8] ss:$0 sm:$0xff]  ;;  %s15396_s8 = scalar_lea.vmem %s11718_s12, 128 }
0x7042   :  { %11565 = vmatmul.mubr.f32.vlgmr.msra.gmra.mrb[144].mxu0 %v11187_v20  ;;  %p15397_p8 = scmp.ne.s32.totalorder %s11718_s12, %s15396_s8  ;;  %p15402_p10 = scmp.lt.s32.totalorder %s15396_s8, %s15396_s8 }
0x7043   :  { %14949 = vmatpush3.bf16.msra.mxu1 %v14948_v46  ;;  %14953 = vmatpush3.bf16.msra.mxu0 %v14952_v58 }
0x7044   :  { %14955 = vmatprep.subr.bf16.mxu0 %v14954_v55  ;;  %p15403_p11 = por %p15402_p10, %p15401_p9 }
0x7046   :  { %11635 = vmatmul.mubr.f32.vlgmr.msra.gmra.mrb[140].mxu1 %v11189_v5  ;;  %p15404_p12 = pnand %p15403_p11, %p15397_p8 }
0x7047   :  { %14957 = vmatpush3.bf16.msra.mxu0 %v14956_v48 }
0x7048   :  { %14959 = vmatprep.subr.bf16.mxu0 %v14958_v63 }
0x704b   :  { %14961 = vmatpush3.bf16.msra.mxu0 %v14960_v21 }
0x704c   :  { %14963 = vmatprep.subr.bf16.mxu0 %v14962_v37 }
0x704f   :  { %14965 = vmatpush3.bf16.msra.mxu0 %v14964_v53 }
0x7050   :  { %14967 = vmatprep.subr.bf16.mxu0 %v14966_v26 }
0x7053   :  { %14969 = vmatpush3.bf16.msra.mxu0 %v14968_v56 }
0x7054   :  { %14971 = vmatprep.subr.bf16.mxu0 %v14970_v33 }
0x7057   :  { %14973 = vmatpush3.bf16.msra.mxu0 %v14972_v38 }
0x7058   :  { %14975 = vmatprep.subr.bf16.mxu0 %v14974_v36 }
0x705b   :  { %14977 = vmatpush3.bf16.msra.mxu0 %v14976_v19 }
0x705c   :  { %14979 = vmatprep.subr.bf16.mxu0 %v14978_v39 }
0x705f   :  { %14981 = vmatpush3.bf16.msra.mxu0 %v14980_v16 }
0x7096   :  { %v11159_v57 = vpop.permute.xlu0 %11158 }
0x7097   :  { %v11161_v51 = vmul.f32 %v11159_v57, %v17342_v54 }
0x709a   :  { %v15043_v6 = vpop.permute.xlu0 %15042 }
0x709b   :  { %v15045_v27 = vunpack.i.h.bf16 %v15043_v6  ;;  %v15044_v34 = vunpack.i.l.bf16 %v15043_v6 }
0x709d   :  { %v10199_v59 = vsel %vm1693_vm2, %v10198_v35, %v15045_v27  ;;  %v11170_v30 = vsel %vm1693_vm2, %v11169_v23, %v15044_v34 }
0x709e   :  { %v10200_v60 = vsel %vm1695_vm3, %v10199_v59, %v17212_v12  ;;  %v11171_v44 = vsel %vm1695_vm3, %v11170_v30, %v11161_v51 }
0x709f   :  { %v11192_v61 = vmax.f32 %v11171_v44, 0.0  ;;  %v11191_v46 = vmax.f32 %v10200_v60, 0.0 }
0x70a1   :  { %11704 = vmatprep.mubr.f32.mxu0 %v11192_v61 }
0x70a2   :  { %11705 = vmatmul.mubr.f32.vlgmr.msra.gmra.mrb[146].mxu0 %v11191_v46 }
0x70f5   :  { %v12563_v58 = vpop.f32.mrb[142].mxu0 }
0x70f6   :  { %v12564_v14 = vpop.f32.mrb[143].mxu0 }
0x70f7   :  { %v12565_v20 = vadd.f32 %v12564_v14, %v12563_v58 }
0x70f9   :  { %v12598_v54 = vpop.f32.mrb[138].mxu1  ;;  %v11427_v62 = vadd.f32 %v12565_v20, %v11886_v3 }
0x70fa   :  { %v12599_v55 = vpop.f32.mrb[139].mxu1 }
0x70fb   :  { %v12600_v45 = vadd.f32 %v12599_v55, %v12598_v54 }
0x70fd   :  { %v11497_v1 = vadd.f32 %v12600_v45, %v11427_v62 }
0x7115   :  { %v12633_v49 = vpop.f32.mrb[144].mxu0 }
0x7116   :  { %v12634_v12 = vpop.f32.mrb[145].mxu0 }
0x7117   :  { %v12635_v22 = vadd.f32 %v12634_v12, %v12633_v49 }
0x7119   :  { %v11567_v48 = vadd.f32 %v12635_v22, %v11497_v1  ;;  %v12668_v5 = vpop.f32.mrb[140].mxu1 }
0x711a   :  { %v12669_v63 = vpop.f32.mrb[141].mxu1 }
0x711b   :  { %v12670_v52 = vadd.f32 %v12669_v63, %v12668_v5 }
0x711d   :  { %v11637_v10 = vadd.f32 %v12670_v52, %v11567_v48 }
0x7175   :  { %v12703_v17 = vpop.f32.mrb[146].mxu0 }
0x7176   :  { %v12704_v0 = vpop.f32.mrb[147].mxu0 }
0x7177   :  { %v12705_v21 = vadd.f32 %v12704_v0, %v12703_v17 }
0x7179   :  { %v11707_v37 = vadd.f32 %v12705_v21, %v11637_v10 }
0x717b   :  { %11710 = vst [vmem:[#allocation7] sm:$0xff] %v11707_v37 }
0x717c   :  { %15407 = shalt.err (!%p15404_p12)
}
0x717d   :  { %s15408_s16 = scalar_lea.hbm %s17457_s9, 128 }
0x717e   :  { %p15409_p13 = scmp.ne.s32.totalorder %s17457_s9, %s15408_s16  ;;  %p15412_p0 = scmp.lt.u32.totalorder %s15408_s16, %s17457_s9 }
0x7180   :  { %p15414_p1 = pnand %p15412_p0, %p15409_p13 }
0x7182   :  { %15417 = shalt.err (!%p15414_p1)
}
0x7183   :  { %11720 = dma.vmem_to_hbm [thread:$0]  %s11718_s12, 128, %s17457_s9, [#allocation6]  }
0x7184   :  { %15420 = dma.done.wait [#allocation6], 128  }
0x7185   :  { %15421 = vsyncadd [#allocation6], 4294967168 }
0x7186   :  { %11724 = vsyncpa [#allocation5], 1 }
0x7187   :  { %11725 = vsyncpa [#allocation6], 1 }

</bundles_post_ra>
